<compile_context>
chip_gen: v5e
topology: v5e:2x2
jax: 0.10.0
libtpu: 0.0.40
codegen_flags: <defaults>
</compile_context>

<pallas_src>
import math
import functools

import jax
import jax.numpy as jnp
from jax import lax
from jax.experimental import pallas as pl
from jax.experimental.pallas import tpu as pltpu

F32 = jnp.float32


# ------------------------------ in-kernel helpers ----------------------------

def _ln(h, g, b, eps=1e-5):
    mu = jnp.mean(h, axis=-1, keepdims=True)
    var = jnp.mean((h - mu) ** 2, axis=-1, keepdims=True)
    return (h - mu) * lax.rsqrt(var + eps) * g + b


def _softmax_last(x):
    m = jnp.max(x, axis=-1, keepdims=True)
    e = jnp.exp(x - m)
    return e * pl.reciprocal(jnp.sum(e, axis=-1, keepdims=True), approx=True)


# ------------------------------- Pallas kernels ------------------------------

def _embed_static_kernel(xm1_ref, x0_ref, xp1_ref, xmark_ref, pe_ref, stat_ref,
                         km1_ref, k0_ref, kp1_ref, mark_w_ref,
                         wf_ref, bf_ref, ws_ref, bs_ref, g_ref, b_ref, o_ref):
    """TokenEmbedding(circular conv k=3) + timeF + positional, then
    StaticContextEmbedding (softmax fuse) + residual LayerNorm."""
    xm1 = xm1_ref[0]     # (L, C)   x[:, l-1]
    x0 = x0_ref[0]       # (L, C)   x[:, l]
    xp1 = xp1_ref[0]     # (L, C)   x[:, l+1]
    val = (jnp.dot(xm1, km1_ref[...], preferred_element_type=F32)
           + jnp.dot(x0, k0_ref[...], preferred_element_type=F32)
           + jnp.dot(xp1, kp1_ref[...], preferred_element_type=F32))
    tmp = jnp.dot(xmark_ref[0], mark_w_ref[...], preferred_element_type=F32)
    src = val + tmp + pe_ref[...]                                   # (L, D)

    q = jnp.dot(src, wf_ref[...], preferred_element_type=F32) + bf_ref[...]
    v = jnp.dot(stat_ref[0], ws_ref[...], preferred_element_type=F32) + bs_ref[...]
    key = _softmax_last(q)                                          # (L, D)
    h = src + key * v                                               # broadcast (1,D)
    o_ref[0] = _ln(h, g_ref[...], b_ref[...])


def _attn_block_kernel(xq_ref, xkv_ref, wq_ref, bq_ref, wk_ref, bk_ref,
                       wv_ref, bv_ref, wo_ref, bo_ref, g_ref, b_ref, o_ref,
                       *, n_heads, scale):
    """Multi-head attention + output projection + residual + LayerNorm."""
    xq = xq_ref[0]       # (Lq, D)
    xkv = xkv_ref[0]     # (S,  D)
    q = jnp.dot(xq, wq_ref[...], preferred_element_type=F32) + bq_ref[...]
    k = jnp.dot(xkv, wk_ref[...], preferred_element_type=F32) + bk_ref[...]
    v = jnp.dot(xkv, wv_ref[...], preferred_element_type=F32) + bv_ref[...]
    D = q.shape[-1]
    E = D // n_heads
    proj = None
    for h in range(n_heads):
        lo, hi = h * E, (h + 1) * E
        qh, kh, vh = q[:, lo:hi], k[:, lo:hi], v[:, lo:hi]
        s = lax.dot_general(qh, kh, (((1,), (1,)), ((), ())),
                            preferred_element_type=F32) * scale     # (Lq, S)
        p = _softmax_last(s)
        oh = jnp.dot(p, vh, preferred_element_type=F32)             # (Lq, E)
        # concat(heads) @ Wo  ==  sum_h  head_h @ Wo[hE:(h+1)E, :]
        ph = jnp.dot(oh, wo_ref[lo:hi, :], preferred_element_type=F32)
        proj = ph if proj is None else proj + ph
    hres = xq + proj + bo_ref[...]
    o_ref[0] = _ln(hres, g_ref[...], b_ref[...])


def _ffn_block_kernel(x_ref, w1_ref, b1_ref, w2_ref, b2_ref, g_ref, b_ref,
                      o_ref, *, act):
    x = x_ref[0]                                                    # (L, D)
    y = jnp.dot(x, w1_ref[...], preferred_element_type=F32) + b1_ref[...]
    if act == "relu":
        y = jnp.maximum(y, 0.0)
    else:
        y = jax.nn.gelu(y, approximate=True)
    y = jnp.dot(y, w2_ref[...], preferred_element_type=F32) + b2_ref[...]
    o_ref[0] = _ln(x + y, g_ref[...], b_ref[...])


def _gp_kernel(xf_ref, gpT_ref, wq_ref, bq_ref, wv_ref, bv_ref,
               fuse_ref, key_ref, gpad_ref):
    """GpLayer core: key = softmax(x_flat @ Wq), vals = gp.T @ Wv,
    fuse = key @ vals;  also emits global_padding = key @ x_gp.T."""
    xf = xf_ref[...]                                                # (B, L*D)
    q = jnp.dot(xf, wq_ref[...], preferred_element_type=F32) + bq_ref[...]
    key = _softmax_last(q)                                          # (B, gp_len)
    key_ref[...] = key
    vals = jnp.dot(gpT_ref[...], wv_ref[...],
                   preferred_element_type=F32) + bv_ref[...]        # (gp_len, L*D)
    fuse_ref[...] = jnp.dot(key, vals, preferred_element_type=F32)  # (B, L*D)
    gpad_ref[...] = jnp.dot(key, gpT_ref[...],
                            preferred_element_type=F32)             # (B, gp_seq_len)


def _add_ln_kernel(x_ref, y_ref, g_ref, b_ref, o_ref):
    o_ref[0] = _ln(x_ref[0] + y_ref[0], g_ref[...], b_ref[...])


def _ln_kernel(x_ref, g_ref, b_ref, o_ref):
    o_ref[0] = _ln(x_ref[0], g_ref[...], b_ref[...])


def _ln_proj_kernel(x_ref, g_ref, b_ref, w_ref, pb_ref, o_ref):
    h = _ln(x_ref[0], g_ref[...], b_ref[...])
    o_ref[0] = jnp.dot(h, w_ref[...], preferred_element_type=F32) + pb_ref[...]


# ------------------------------ kernel wrappers -------------------------------

_PAR = pltpu.CompilerParams(dimension_semantics=("parallel",))


def _w2d(r, c):
    return pl.BlockSpec((r, c), lambda i: (0, 0))


def embed_and_static(x, x_mark, static, pe, ep, sp):
    B, L, C = x.shape
    D = ep["k0"].shape[1]
    dm = x_mark.shape[-1]
    ds = static.shape[-1]
    xm1 = jnp.roll(x, 1, axis=1)     # circular padding neighbours (XLA glue)
    xp1 = jnp.roll(x, -1, axis=1)
    stat3 = static.reshape(B, 1, ds)
    return pl.pallas_call(
        _embed_static_kernel,
        out_shape=jax.ShapeDtypeStruct((B, L, D), F32),
        grid=(B,),
        in_specs=[
            pl.BlockSpec((1, L, C), lambda i: (i, 0, 0)),
            pl.BlockSpec((1, L, C), lambda i: (i, 0, 0)),
            pl.BlockSpec((1, L, C), lambda i: (i, 0, 0)),
            pl.BlockSpec((1, L, dm), lambda i: (i, 0, 0)),
            _w2d(L, D),
            pl.BlockSpec((1, 1, ds), lambda i: (i, 0, 0)),
            _w2d(C, D), _w2d(C, D), _w2d(C, D), _w2d(dm, D),
            _w2d(D, D), _w2d(1, D), _w2d(ds, D), _w2d(1, D),
            _w2d(1, D), _w2d(1, D),
        ],
        out_specs=pl.BlockSpec((1, L, D), lambda i: (i, 0, 0)),
        compiler_params=_PAR,
    )(xm1, x, xp1, x_mark, pe, stat3,
      ep["km1"], ep["k0"], ep["kp1"], ep["mark_w"],
      sp["w_fuse"], sp["b_fuse"], sp["w_stat"], sp["b_stat"], sp["g"], sp["b"])


def attn_block(x_q, x_kv, ap, lnp, n_heads):
    B, Lq, D = x_q.shape
    S = x_kv.shape[1]
    scale = 1.0 / math.sqrt(D // n_heads)
    return pl.pallas_call(
        functools.partial(_attn_block_kernel, n_heads=n_heads, scale=scale),
        out_shape=jax.ShapeDtypeStruct((B, Lq, D), F32),
        grid=(B,),
        in_specs=[
            pl.BlockSpec((1, Lq, D), lambda i: (i, 0, 0)),
            pl.BlockSpec((1, S, D), lambda i: (i, 0, 0)),
            _w2d(D, D), _w2d(1, D), _w2d(D, D), _w2d(1, D),
            _w2d(D, D), _w2d(1, D), _w2d(D, D), _w2d(1, D),
            _w2d(1, D), _w2d(1, D),
        ],
        out_specs=pl.BlockSpec((1, Lq, D), lambda i: (i, 0, 0)),
        compiler_params=_PAR,
    )(x_q, x_kv, ap["wq"], ap["bq"], ap["wk"], ap["bk"],
      ap["wv"], ap["bv"], ap["wo"], ap["bo"], lnp["g"], lnp["b"])


def ffn_block(x, fp, lnp, act):
    B, L, D = x.shape
    Fh = fp["w1"].shape[1]
    return pl.pallas_call(
        functools.partial(_ffn_block_kernel, act=act),
        out_shape=jax.ShapeDtypeStruct((B, L, D), F32),
        grid=(B,),
        in_specs=[
            pl.BlockSpec((1, L, D), lambda i: (i, 0, 0)),
            _w2d(D, Fh), _w2d(1, Fh), _w2d(Fh, D), _w2d(1, D),
            _w2d(1, D), _w2d(1, D),
        ],
        out_specs=pl.BlockSpec((1, L, D), lambda i: (i, 0, 0)),
        compiler_params=_PAR,
    )(x, fp["w1"], fp["b1"], fp["w2"], fp["b2"], lnp["g"], lnp["b"])


def add_layernorm(x, y, g, b):
    B, L, D = x.shape
    return pl.pallas_call(
        _add_ln_kernel,
        out_shape=jax.ShapeDtypeStruct((B, L, D), F32),
        grid=(B,),
        in_specs=[
            pl.BlockSpec((1, L, D), lambda i: (i, 0, 0)),
            pl.BlockSpec((1, L, D), lambda i: (i, 0, 0)),
            _w2d(1, D), _w2d(1, D),
        ],
        out_specs=pl.BlockSpec((1, L, D), lambda i: (i, 0, 0)),
        compiler_params=_PAR,
    )(x, y, g, b)


def layernorm(x, g, b):
    B, L, D = x.shape
    return pl.pallas_call(
        _ln_kernel,
        out_shape=jax.ShapeDtypeStruct((B, L, D), F32),
        grid=(B,),
        in_specs=[
            pl.BlockSpec((1, L, D), lambda i: (i, 0, 0)),
            _w2d(1, D), _w2d(1, D),
        ],
        out_specs=pl.BlockSpec((1, L, D), lambda i: (i, 0, 0)),
        compiler_params=_PAR,
    )(x, g, b)


def ln_project(x, g, b, w, pb):
    B, L, D = x.shape
    C = w.shape[1]
    return pl.pallas_call(
        _ln_proj_kernel,
        out_shape=jax.ShapeDtypeStruct((B, L, C), F32),
        grid=(B,),
        in_specs=[
            pl.BlockSpec((1, L, D), lambda i: (i, 0, 0)),
            _w2d(1, D), _w2d(1, D), _w2d(D, C), _w2d(1, C),
        ],
        out_specs=pl.BlockSpec((1, L, C), lambda i: (i, 0, 0)),
        compiler_params=_PAR,
    )(x, g, b, w, pb)


def gp_block(x, gp, p):
    """GpLayer (reconstructed): returns (LN(x + fuse), key, key @ x_gp.T)."""
    # TODO(synk): GpLayer source not provided; reconstructed from its constructor
    # signature and from matmul(key, x_gp.transpose(0,1)) downstream.
    B, L, D = x.shape
    LD = L * D
    gs, gl = gp.shape
    xf = x.reshape(B, LD)
    gpT = gp.T                                   # (gp_len, gp_seq_len), XLA glue
    fuse, key, gpad = pl.pallas_call(
        _gp_kernel,
        out_shape=(jax.ShapeDtypeStruct((B, LD), F32),
                   jax.ShapeDtypeStruct((B, gl), F32),
                   jax.ShapeDtypeStruct((B, gs), F32)),
    )(xf, gpT, p["wq"], p["bq"], p["wv"], p["bv"])
    out = add_layernorm(x, fuse.reshape(B, L, D), p["g"], p["b"])
    return out, key, gpad


# -------------------------------- full forward --------------------------------

def dyneformer_forward(params, cfg, x_enc, x_mark_enc, x_dec, x_mark_dec,
                       x_static, x_gp):
    H, act, pred_len = cfg["n_heads"], cfg["activation"], cfg["pred_len"]
    pe = params["pe"]

    # encoder embedding + shared static-context layer (fused)
    enc_out = embed_and_static(x_enc, x_mark_enc, x_static,
                               pe[: x_enc.shape[1]], params["enc_emb"],
                               params["static"])

    # GpEncoder: alternate encoder layers and gp layers, final LayerNorm
    x = enc_out
    gpad = None
    for lp in params["enc_layers"]:
        x = attn_block(x, x, lp["attn"], lp["ln1"], H)
        x = ffn_block(x, lp["ffn"], lp["ln2"], act)
        x, _key, gpad = gp_block(x, x_gp, lp["gp"])
    enc_out = layernorm(x, params["enc_norm"]["g"], params["enc_norm"]["b"])

    # global padding: key @ x_gp.T (computed inside the last gp kernel)
    global_padding = gpad
    if cfg["if_padding"]:
        if global_padding.shape[-1] >= pred_len:
            x_dec = x_dec.at[:, -pred_len:, 0].set(global_padding[:, -pred_len:])
        else:
            rf = pred_len // global_padding.shape[-1] + 1
            ext = jnp.tile(global_padding, (1, rf))
            x_dec = x_dec.at[:, -pred_len:, 0].set(ext[:, -pred_len:])
    else:
        x_dec = x_dec.at[:, -pred_len:, 0].set(0.0)

    # decoder embedding (shares the static layer) + decoder layers
    dec_out = embed_and_static(x_dec, x_mark_dec, x_static,
                               pe[: x_dec.shape[1]], params["dec_emb"],
                               params["static"])
    for lp in params["dec_layers"]:
        dec_out = attn_block(dec_out, dec_out, lp["self_attn"], lp["ln1"], H)
        dec_out = attn_block(dec_out, enc_out, lp["cross_attn"], lp["ln2"], H)
        dec_out = ffn_block(dec_out, lp["ffn"], lp["ln3"], act)

    out = ln_project(dec_out, params["dec_norm"]["g"], params["dec_norm"]["b"],
                     params["proj_w"], params["proj_b"])
    return out[:, -pred_len:, :]


# ------------------------------ parameter creation -----------------------------

def positional_embedding(L, D):
    pos = jnp.arange(L, dtype=F32)[:, None]
    div = jnp.exp(jnp.arange(0, D, 2, dtype=F32) * (-math.log(10000.0) / D))
    pe = jnp.zeros((L, D), F32)
    pe = pe.at[:, 0::2].set(jnp.sin(pos * div))
    pe = pe.at[:, 1::2].set(jnp.cos(pos * div))
    return pe


def init_params(key, cfg):
    D, Fh = cfg["d_model"], cfg["d_ff"]
    keys = iter(jax.random.split(key, 512))

    def nk():
        return next(keys)

    def dense(fan_in, fan_out, bias=True):
        kw, kb = jax.random.split(nk())
        bound = 1.0 / math.sqrt(fan_in)
        w = jax.random.uniform(kw, (fan_in, fan_out), F32, -bound, bound)
        b = (jax.random.uniform(kb, (1, fan_out), F32, -bound, bound)
             if bias else None)
        return w, b

    def ln_p():
        return dict(g=jnp.ones((1, D), F32), b=jnp.zeros((1, D), F32))

    def attn_params():
        wq, bq = dense(D, D)
        wk, bk = dense(D, D)
        wv, bv = dense(D, D)
        wo, bo = dense(D, D)
        return dict(wq=wq, bq=bq, wk=wk, bk=bk, wv=wv, bv=bv, wo=wo, bo=bo)

    def emb_params(c_in):
        conv_w, _ = dense(3 * c_in, D, bias=False)      # circular conv k=3, no bias
        mark_w, _ = dense(cfg["d_mark"], D, bias=False)  # timeF embedding, no bias
        return dict(km1=conv_w[:c_in], k0=conv_w[c_in:2 * c_in],
                    kp1=conv_w[2 * c_in:], mark_w=mark_w)

    def ffn_params():
        w1, b1 = dense(D, Fh)
        w2, b2 = dense(Fh, D)
        return dict(w1=w1, b1=b1, w2=w2, b2=b2)

    def gp_params():
        LD = cfg["seq_len"] * D
        wq, bq = dense(LD, cfg["gp_len"])
        wv, bv = dense(cfg["gp_seq_len"], LD)
        return dict(wq=wq, bq=bq, wv=wv, bv=bv,
                    g=jnp.ones((1, D), F32), b=jnp.zeros((1, D), F32))

    w_fuse, b_fuse = dense(D, D)
    w_stat, b_stat = dense(cfg["dim_static"], D)
    proj_w, proj_b = dense(D, cfg["c_out"])
    max_len = max(cfg["seq_len"], cfg["label_len"] + cfg["pred_len"])

    return dict(
        pe=positional_embedding(max_len, D),
        enc_emb=emb_params(cfg["enc_in"]),
        dec_emb=emb_params(cfg["dec_in"]),
        static=dict(w_fuse=w_fuse, b_fuse=b_fuse, w_stat=w_stat, b_stat=b_stat,
                    g=jnp.ones((1, D), F32), b=jnp.zeros((1, D), F32)),
        enc_layers=[dict(attn=attn_params(), ln1=ln_p(), ffn=ffn_params(),
                         ln2=ln_p(), gp=gp_params())
                    for _ in range(cfg["e_layers"])],
        enc_norm=ln_p(),
        dec_layers=[dict(self_attn=attn_params(), ln1=ln_p(),
                         cross_attn=attn_params(), ln2=ln_p(),
                         ffn=ffn_params(), ln3=ln_p())
                    for _ in range(cfg["d_layers"])],
        dec_norm=ln_p(),
        proj_w=proj_w, proj_b=proj_b,
    )


# ------------------------------------- main ------------------------------------

if __name__ == "__main__":
    cfg = dict(
        enc_in=4, dec_in=4, c_out=1, d_model=32, n_heads=4, d_ff=64,
        e_layers=2, d_layers=1, dropout=0.0, activation="relu",
        seq_len=8, label_len=4, pred_len=4, dim_static=6,
        gp_len=5, gp_seq_len=8, d_mark=4, if_padding=True,
        output_attention=False,
    )

    root = jax.random.PRNGKey(0)
    pkey, dkey = jax.random.split(root)
    params = init_params(pkey, cfg)

    k1, k2, k3, k4, k5, k6 = jax.random.split(dkey, 6)
    B = 2
    L_enc = cfg["seq_len"]
    L_dec = cfg["label_len"] + cfg["pred_len"]
    x_enc = jax.random.normal(k1, (B, L_enc, cfg["enc_in"]), F32)
    x_mark_enc = jax.random.normal(k2, (B, L_enc, cfg["d_mark"]), F32)
    x_dec = jax.random.normal(k3, (B, L_dec, cfg["dec_in"]), F32)
    x_mark_dec = jax.random.normal(k4, (B, L_dec, cfg["d_mark"]), F32)
    x_static = jax.random.normal(k5, (B, cfg["dim_static"]), F32)
    x_gp = jax.random.normal(k6, (cfg["gp_seq_len"], cfg["gp_len"]), F32)

    fwd = jax.jit(functools.partial(dyneformer_forward, params, cfg))
    out = fwd(x_enc, x_mark_enc, x_dec, x_mark_dec, x_static, x_gp)
    jax.block_until_ready(out)
    assert out.shape == (B, cfg["pred_len"], cfg["c_out"]), out.shape
    assert bool(jnp.all(jnp.isfinite(out)))
    print("KERNEL_OK")
</pallas_src>

<mosaic_0001>
module attributes {stable_mosaic.version = 11 : i64} {
  func.func @_attn_block_kernel(%arg0: i32, %arg1: memref<1x8x32xf32, #tpu.memory_space<vmem>>, %arg2: memref<1x8x32xf32, #tpu.memory_space<vmem>>, %arg3: memref<32x32xf32, #tpu.memory_space<vmem>>, %arg4: memref<1x32xf32, #tpu.memory_space<vmem>>, %arg5: memref<32x32xf32, #tpu.memory_space<vmem>>, %arg6: memref<1x32xf32, #tpu.memory_space<vmem>>, %arg7: memref<32x32xf32, #tpu.memory_space<vmem>>, %arg8: memref<1x32xf32, #tpu.memory_space<vmem>>, %arg9: memref<32x32xf32, #tpu.memory_space<vmem>>, %arg10: memref<1x32xf32, #tpu.memory_space<vmem>>, %arg11: memref<1x32xf32, #tpu.memory_space<vmem>>, %arg12: memref<1x32xf32, #tpu.memory_space<vmem>>, %arg13: memref<1x8x32xf32, #tpu.memory_space<vmem>>) attributes {dimension_semantics = [#tpu.dimension_semantics<parallel>], iteration_bounds = array<i64: 2>, scalar_prefetch = 0 : i64, scratch_operands = 0 : i64, tpu.core_type = #tpu.core_type<tc>, window_params = [{transform_indices = @transform_0, window_bounds = array<i64: 1, 8, 32>}, {transform_indices = @transform_1, window_bounds = array<i64: 1, 8, 32>}, {pipeline_mode = #tpu.pipeline_mode<synchronous>, transform_indices = @transform_2, window_bounds = array<i64: 32, 32>}, {pipeline_mode = #tpu.pipeline_mode<synchronous>, transform_indices = @transform_3, window_bounds = array<i64: 1, 32>}, {pipeline_mode = #tpu.pipeline_mode<synchronous>, transform_indices = @transform_4, window_bounds = array<i64: 32, 32>}, {pipeline_mode = #tpu.pipeline_mode<synchronous>, transform_indices = @transform_5, window_bounds = array<i64: 1, 32>}, {pipeline_mode = #tpu.pipeline_mode<synchronous>, transform_indices = @transform_6, window_bounds = array<i64: 32, 32>}, {pipeline_mode = #tpu.pipeline_mode<synchronous>, transform_indices = @transform_7, window_bounds = array<i64: 1, 32>}, {pipeline_mode = #tpu.pipeline_mode<synchronous>, transform_indices = @transform_8, window_bounds = array<i64: 32, 32>}, {pipeline_mode = #tpu.pipeline_mode<synchronous>, transform_indices = @transform_9, window_bounds = array<i64: 1, 32>}, {pipeline_mode = #tpu.pipeline_mode<synchronous>, transform_indices = @transform_10, window_bounds = array<i64: 1, 32>}, {pipeline_mode = #tpu.pipeline_mode<synchronous>, transform_indices = @transform_11, window_bounds = array<i64: 1, 32>}, {transform_indices = @transform_12, window_bounds = array<i64: 1, 8, 32>}]} {
    %c0 = arith.constant 0 : index
    %c0_0 = arith.constant 0 : index
    %c0_1 = arith.constant 0 : index
    %0 = vector.load %arg1[%c0, %c0_0, %c0_1] : memref<1x8x32xf32, #tpu.memory_space<vmem>>, vector<1x8x32xf32>
    %1 = vector.shape_cast %0 : vector<1x8x32xf32> to vector<8x32xf32>
    %c0_2 = arith.constant 0 : index
    %c0_3 = arith.constant 0 : index
    %c0_4 = arith.constant 0 : index
    %2 = vector.load %arg2[%c0_2, %c0_3, %c0_4] : memref<1x8x32xf32, #tpu.memory_space<vmem>>, vector<1x8x32xf32>
    %3 = vector.shape_cast %2 : vector<1x8x32xf32> to vector<8x32xf32>
    %c0_5 = arith.constant 0 : index
    %c0_6 = arith.constant 0 : index
    %4 = vector.load %arg3[%c0_5, %c0_6] : memref<32x32xf32, #tpu.memory_space<vmem>>, vector<32x32xf32>
    %cst = arith.constant dense<0.000000e+00> : vector<8x32xf32>
    %5 = tpu.matmul %1, %4, %cst {dimension_numbers = #tpu.dot_dimension_numbers<[1], [0], [0], [1], [0, 0, 1, 1], [], []>} : vector<8x32xf32>, vector<32x32xf32>, vector<8x32xf32> -> vector<8x32xf32>
    %c0_7 = arith.constant 0 : index
    %c0_8 = arith.constant 0 : index
    %6 = vector.load %arg4[%c0_7, %c0_8] : memref<1x32xf32, #tpu.memory_space<vmem>>, vector<1x32xf32>
    %7 = vector.broadcast %6 : vector<1x32xf32> to vector<8x32xf32>
    %8 = arith.addf %5, %7 : vector<8x32xf32>
    %c0_9 = arith.constant 0 : index
    %c0_10 = arith.constant 0 : index
    %9 = vector.load %arg5[%c0_9, %c0_10] : memref<32x32xf32, #tpu.memory_space<vmem>>, vector<32x32xf32>
    %cst_11 = arith.constant dense<0.000000e+00> : vector<8x32xf32>
    %10 = tpu.matmul %3, %9, %cst_11 {dimension_numbers = #tpu.dot_dimension_numbers<[1], [0], [0], [1], [0, 0, 1, 1], [], []>} : vector<8x32xf32>, vector<32x32xf32>, vector<8x32xf32> -> vector<8x32xf32>
    %c0_12 = arith.constant 0 : index
    %c0_13 = arith.constant 0 : index
    %11 = vector.load %arg6[%c0_12, %c0_13] : memref<1x32xf32, #tpu.memory_space<vmem>>, vector<1x32xf32>
    %12 = vector.broadcast %11 : vector<1x32xf32> to vector<8x32xf32>
    %13 = arith.addf %10, %12 : vector<8x32xf32>
    %c0_14 = arith.constant 0 : index
    %c0_15 = arith.constant 0 : index
    %14 = vector.load %arg7[%c0_14, %c0_15] : memref<32x32xf32, #tpu.memory_space<vmem>>, vector<32x32xf32>
    %cst_16 = arith.constant dense<0.000000e+00> : vector<8x32xf32>
    %15 = tpu.matmul %3, %14, %cst_16 {dimension_numbers = #tpu.dot_dimension_numbers<[1], [0], [0], [1], [0, 0, 1, 1], [], []>} : vector<8x32xf32>, vector<32x32xf32>, vector<8x32xf32> -> vector<8x32xf32>
    %c0_17 = arith.constant 0 : index
    %c0_18 = arith.constant 0 : index
    %16 = vector.load %arg8[%c0_17, %c0_18] : memref<1x32xf32, #tpu.memory_space<vmem>>, vector<1x32xf32>
    %17 = vector.broadcast %16 : vector<1x32xf32> to vector<8x32xf32>
    %18 = arith.addf %15, %17 : vector<8x32xf32>
    %19 = vector.extract_strided_slice %8 {offsets = [0, 0], sizes = [8, 8], strides = [1, 1]} : vector<8x32xf32> to vector<8x8xf32>
    %20 = vector.extract_strided_slice %13 {offsets = [0, 0], sizes = [8, 8], strides = [1, 1]} : vector<8x32xf32> to vector<8x8xf32>
    %21 = vector.extract_strided_slice %18 {offsets = [0, 0], sizes = [8, 8], strides = [1, 1]} : vector<8x32xf32> to vector<8x8xf32>
    %cst_19 = arith.constant dense<0.000000e+00> : vector<8x8xf32>
    %22 = tpu.matmul %19, %20, %cst_19 {dimension_numbers = #tpu.dot_dimension_numbers<[1], [1], [0], [0], [0, 0, 1, 0], [], []>} : vector<8x8xf32>, vector<8x8xf32>, vector<8x8xf32> -> vector<8x8xf32>
    %cst_20 = arith.constant 0.353553385 : f32
    %23 = vector.broadcast %cst_20 : f32 to vector<8x8xf32>
    %24 = arith.mulf %22, %23 : vector<8x8xf32>
    %cst_21 = arith.constant dense<0xFF800000> : vector<8xf32>
    %25 = vector.multi_reduction <maximumf>, %24, %cst_21 [1] : vector<8x8xf32> to vector<8xf32>
    %26 = vector.shape_cast %25 : vector<8xf32> to vector<8x1xf32>
    %27 = vector.broadcast %26 : vector<8x1xf32> to vector<8x8xf32>
    %28 = arith.subf %24, %27 : vector<8x8xf32>
    %29 = math.exp %28 : vector<8x8xf32>
    %cst_22 = arith.constant dense<0.000000e+00> : vector<8xf32>
    %30 = vector.multi_reduction <add>, %29, %cst_22 [1] : vector<8x8xf32> to vector<8xf32>
    %31 = vector.shape_cast %30 : vector<8xf32> to vector<8x1xf32>
    %32 = tpu.reciprocal %31 {approx = true} : vector<8x1xf32> -> vector<8x1xf32>
    %33 = vector.broadcast %32 : vector<8x1xf32> to vector<8x8xf32>
    %34 = arith.mulf %29, %33 : vector<8x8xf32>
    %cst_23 = arith.constant dense<0.000000e+00> : vector<8x8xf32>
    %35 = tpu.matmul %34, %21, %cst_23 {dimension_numbers = #tpu.dot_dimension_numbers<[1], [0], [0], [1], [0, 0, 1, 1], [], []>} : vector<8x8xf32>, vector<8x8xf32>, vector<8x8xf32> -> vector<8x8xf32>
    %c0_24 = arith.constant 0 : index
    %c0_25 = arith.constant 0 : index
    %36 = vector.load %arg9[%c0_24, %c0_25] : memref<32x32xf32, #tpu.memory_space<vmem>>, vector<8x32xf32>
    %cst_26 = arith.constant dense<0.000000e+00> : vector<8x32xf32>
    %37 = tpu.matmul %35, %36, %cst_26 {dimension_numbers = #tpu.dot_dimension_numbers<[1], [0], [0], [1], [0, 0, 1, 1], [], []>} : vector<8x8xf32>, vector<8x32xf32>, vector<8x32xf32> -> vector<8x32xf32>
    %38 = vector.extract_strided_slice %8 {offsets = [0, 8], sizes = [8, 8], strides = [1, 1]} : vector<8x32xf32> to vector<8x8xf32>
    %39 = vector.extract_strided_slice %13 {offsets = [0, 8], sizes = [8, 8], strides = [1, 1]} : vector<8x32xf32> to vector<8x8xf32>
    %40 = vector.extract_strided_slice %18 {offsets = [0, 8], sizes = [8, 8], strides = [1, 1]} : vector<8x32xf32> to vector<8x8xf32>
    %cst_27 = arith.constant dense<0.000000e+00> : vector<8x8xf32>
    %41 = tpu.matmul %38, %39, %cst_27 {dimension_numbers = #tpu.dot_dimension_numbers<[1], [1], [0], [0], [0, 0, 1, 0], [], []>} : vector<8x8xf32>, vector<8x8xf32>, vector<8x8xf32> -> vector<8x8xf32>
    %cst_28 = arith.constant 0.353553385 : f32
    %42 = vector.broadcast %cst_28 : f32 to vector<8x8xf32>
    %43 = arith.mulf %41, %42 : vector<8x8xf32>
    %cst_29 = arith.constant dense<0xFF800000> : vector<8xf32>
    %44 = vector.multi_reduction <maximumf>, %43, %cst_29 [1] : vector<8x8xf32> to vector<8xf32>
    %45 = vector.shape_cast %44 : vector<8xf32> to vector<8x1xf32>
    %46 = vector.broadcast %45 : vector<8x1xf32> to vector<8x8xf32>
    %47 = arith.subf %43, %46 : vector<8x8xf32>
    %48 = math.exp %47 : vector<8x8xf32>
    %cst_30 = arith.constant dense<0.000000e+00> : vector<8xf32>
    %49 = vector.multi_reduction <add>, %48, %cst_30 [1] : vector<8x8xf32> to vector<8xf32>
    %50 = vector.shape_cast %49 : vector<8xf32> to vector<8x1xf32>
    %51 = tpu.reciprocal %50 {approx = true} : vector<8x1xf32> -> vector<8x1xf32>
    %52 = vector.broadcast %51 : vector<8x1xf32> to vector<8x8xf32>
    %53 = arith.mulf %48, %52 : vector<8x8xf32>
    %cst_31 = arith.constant dense<0.000000e+00> : vector<8x8xf32>
    %54 = tpu.matmul %53, %40, %cst_31 {dimension_numbers = #tpu.dot_dimension_numbers<[1], [0], [0], [1], [0, 0, 1, 1], [], []>} : vector<8x8xf32>, vector<8x8xf32>, vector<8x8xf32> -> vector<8x8xf32>
    %c8 = arith.constant 8 : index
    %c0_32 = arith.constant 0 : index
    %55 = vector.load %arg9[%c8, %c0_32] : memref<32x32xf32, #tpu.memory_space<vmem>>, vector<8x32xf32>
    %cst_33 = arith.constant dense<0.000000e+00> : vector<8x32xf32>
    %56 = tpu.matmul %54, %55, %cst_33 {dimension_numbers = #tpu.dot_dimension_numbers<[1], [0], [0], [1], [0, 0, 1, 1], [], []>} : vector<8x8xf32>, vector<8x32xf32>, vector<8x32xf32> -> vector<8x32xf32>
    %57 = arith.addf %37, %56 : vector<8x32xf32>
    %58 = vector.extract_strided_slice %8 {offsets = [0, 16], sizes = [8, 8], strides = [1, 1]} : vector<8x32xf32> to vector<8x8xf32>
    %59 = vector.extract_strided_slice %13 {offsets = [0, 16], sizes = [8, 8], strides = [1, 1]} : vector<8x32xf32> to vector<8x8xf32>
    %60 = vector.extract_strided_slice %18 {offsets = [0, 16], sizes = [8, 8], strides = [1, 1]} : vector<8x32xf32> to vector<8x8xf32>
    %cst_34 = arith.constant dense<0.000000e+00> : vector<8x8xf32>
    %61 = tpu.matmul %58, %59, %cst_34 {dimension_numbers = #tpu.dot_dimension_numbers<[1], [1], [0], [0], [0, 0, 1, 0], [], []>} : vector<8x8xf32>, vector<8x8xf32>, vector<8x8xf32> -> vector<8x8xf32>
    %cst_35 = arith.constant 0.353553385 : f32
    %62 = vector.broadcast %cst_35 : f32 to vector<8x8xf32>
    %63 = arith.mulf %61, %62 : vector<8x8xf32>
    %cst_36 = arith.constant dense<0xFF800000> : vector<8xf32>
    %64 = vector.multi_reduction <maximumf>, %63, %cst_36 [1] : vector<8x8xf32> to vector<8xf32>
    %65 = vector.shape_cast %64 : vector<8xf32> to vector<8x1xf32>
    %66 = vector.broadcast %65 : vector<8x1xf32> to vector<8x8xf32>
    %67 = arith.subf %63, %66 : vector<8x8xf32>
    %68 = math.exp %67 : vector<8x8xf32>
    %cst_37 = arith.constant dense<0.000000e+00> : vector<8xf32>
    %69 = vector.multi_reduction <add>, %68, %cst_37 [1] : vector<8x8xf32> to vector<8xf32>
    %70 = vector.shape_cast %69 : vector<8xf32> to vector<8x1xf32>
    %71 = tpu.reciprocal %70 {approx = true} : vector<8x1xf32> -> vector<8x1xf32>
    %72 = vector.broadcast %71 : vector<8x1xf32> to vector<8x8xf32>
    %73 = arith.mulf %68, %72 : vector<8x8xf32>
    %cst_38 = arith.constant dense<0.000000e+00> : vector<8x8xf32>
    %74 = tpu.matmul %73, %60, %cst_38 {dimension_numbers = #tpu.dot_dimension_numbers<[1], [0], [0], [1], [0, 0, 1, 1], [], []>} : vector<8x8xf32>, vector<8x8xf32>, vector<8x8xf32> -> vector<8x8xf32>
    %c16 = arith.constant 16 : index
    %c0_39 = arith.constant 0 : index
    %75 = vector.load %arg9[%c16, %c0_39] : memref<32x32xf32, #tpu.memory_space<vmem>>, vector<8x32xf32>
    %cst_40 = arith.constant dense<0.000000e+00> : vector<8x32xf32>
    %76 = tpu.matmul %74, %75, %cst_40 {dimension_numbers = #tpu.dot_dimension_numbers<[1], [0], [0], [1], [0, 0, 1, 1], [], []>} : vector<8x8xf32>, vector<8x32xf32>, vector<8x32xf32> -> vector<8x32xf32>
    %77 = arith.addf %57, %76 : vector<8x32xf32>
    %78 = vector.extract_strided_slice %8 {offsets = [0, 24], sizes = [8, 8], strides = [1, 1]} : vector<8x32xf32> to vector<8x8xf32>
    %79 = vector.extract_strided_slice %13 {offsets = [0, 24], sizes = [8, 8], strides = [1, 1]} : vector<8x32xf32> to vector<8x8xf32>
    %80 = vector.extract_strided_slice %18 {offsets = [0, 24], sizes = [8, 8], strides = [1, 1]} : vector<8x32xf32> to vector<8x8xf32>
    %cst_41 = arith.constant dense<0.000000e+00> : vector<8x8xf32>
    %81 = tpu.matmul %78, %79, %cst_41 {dimension_numbers = #tpu.dot_dimension_numbers<[1], [1], [0], [0], [0, 0, 1, 0], [], []>} : vector<8x8xf32>, vector<8x8xf32>, vector<8x8xf32> -> vector<8x8xf32>
    %cst_42 = arith.constant 0.353553385 : f32
    %82 = vector.broadcast %cst_42 : f32 to vector<8x8xf32>
    %83 = arith.mulf %81, %82 : vector<8x8xf32>
    %cst_43 = arith.constant dense<0xFF800000> : vector<8xf32>
    %84 = vector.multi_reduction <maximumf>, %83, %cst_43 [1] : vector<8x8xf32> to vector<8xf32>
    %85 = vector.shape_cast %84 : vector<8xf32> to vector<8x1xf32>
    %86 = vector.broadcast %85 : vector<8x1xf32> to vector<8x8xf32>
    %87 = arith.subf %83, %86 : vector<8x8xf32>
    %88 = math.exp %87 : vector<8x8xf32>
    %cst_44 = arith.constant dense<0.000000e+00> : vector<8xf32>
    %89 = vector.multi_reduction <add>, %88, %cst_44 [1] : vector<8x8xf32> to vector<8xf32>
    %90 = vector.shape_cast %89 : vector<8xf32> to vector<8x1xf32>
    %91 = tpu.reciprocal %90 {approx = true} : vector<8x1xf32> -> vector<8x1xf32>
    %92 = vector.broadcast %91 : vector<8x1xf32> to vector<8x8xf32>
    %93 = arith.mulf %88, %92 : vector<8x8xf32>
    %cst_45 = arith.constant dense<0.000000e+00> : vector<8x8xf32>
    %94 = tpu.matmul %93, %80, %cst_45 {dimension_numbers = #tpu.dot_dimension_numbers<[1], [0], [0], [1], [0, 0, 1, 1], [], []>} : vector<8x8xf32>, vector<8x8xf32>, vector<8x8xf32> -> vector<8x8xf32>
    %c24 = arith.constant 24 : index
    %c0_46 = arith.constant 0 : index
    %95 = vector.load %arg9[%c24, %c0_46] : memref<32x32xf32, #tpu.memory_space<vmem>>, vector<8x32xf32>
    %cst_47 = arith.constant dense<0.000000e+00> : vector<8x32xf32>
    %96 = tpu.matmul %94, %95, %cst_47 {dimension_numbers = #tpu.dot_dimension_numbers<[1], [0], [0], [1], [0, 0, 1, 1], [], []>} : vector<8x8xf32>, vector<8x32xf32>, vector<8x32xf32> -> vector<8x32xf32>
    %97 = arith.addf %77, %96 : vector<8x32xf32>
    %98 = arith.addf %1, %97 : vector<8x32xf32>
    %c0_48 = arith.constant 0 : index
    %c0_49 = arith.constant 0 : index
    %99 = vector.load %arg10[%c0_48, %c0_49] : memref<1x32xf32, #tpu.memory_space<vmem>>, vector<1x32xf32>
    %100 = vector.broadcast %99 : vector<1x32xf32> to vector<8x32xf32>
    %101 = arith.addf %98, %100 : vector<8x32xf32>
    %c0_50 = arith.constant 0 : index
    %c0_51 = arith.constant 0 : index
    %102 = vector.load %arg11[%c0_50, %c0_51] : memref<1x32xf32, #tpu.memory_space<vmem>>, vector<1x32xf32>
    %c0_52 = arith.constant 0 : index
    %c0_53 = arith.constant 0 : index
    %103 = vector.load %arg12[%c0_52, %c0_53] : memref<1x32xf32, #tpu.memory_space<vmem>>, vector<1x32xf32>
    %cst_54 = arith.constant dense<0.000000e+00> : vector<8xf32>
    %104 = vector.multi_reduction <add>, %101, %cst_54 [1] : vector<8x32xf32> to vector<8xf32>
    %105 = vector.shape_cast %104 : vector<8xf32> to vector<8x1xf32>
    %cst_55 = arith.constant 3.200000e+01 : f32
    %106 = vector.broadcast %cst_55 : f32 to vector<8x1xf32>
    %107 = arith.divf %105, %106 : vector<8x1xf32>
    %108 = vector.broadcast %107 : vector<8x1xf32> to vector<8x32xf32>
    %109 = arith.subf %101, %108 : vector<8x32xf32>
    %110 = arith.mulf %109, %109 : vector<8x32xf32>
    %cst_56 = arith.constant dense<0.000000e+00> : vector<8xf32>
    %111 = vector.multi_reduction <add>, %110, %cst_56 [1] : vector<8x32xf32> to vector<8xf32>
    %112 = vector.shape_cast %111 : vector<8xf32> to vector<8x1xf32>
    %cst_57 = arith.constant 3.200000e+01 : f32
    %113 = vector.broadcast %cst_57 : f32 to vector<8x1xf32>
    %114 = arith.divf %112, %113 : vector<8x1xf32>
    %115 = vector.broadcast %107 : vector<8x1xf32> to vector<8x32xf32>
    %116 = arith.subf %101, %115 : vector<8x32xf32>
    %cst_58 = arith.constant 9.99999974E-6 : f32
    %117 = vector.broadcast %cst_58 : f32 to vector<8x1xf32>
    %118 = arith.addf %114, %117 : vector<8x1xf32>
    %119 = math.rsqrt %118 : vector<8x1xf32>
    %120 = vector.broadcast %119 : vector<8x1xf32> to vector<8x32xf32>
    %121 = arith.mulf %116, %120 : vector<8x32xf32>
    %122 = vector.broadcast %102 : vector<1x32xf32> to vector<8x32xf32>
    %123 = arith.mulf %121, %122 : vector<8x32xf32>
    %124 = vector.broadcast %103 : vector<1x32xf32> to vector<8x32xf32>
    %125 = arith.addf %123, %124 : vector<8x32xf32>
    %c0_59 = arith.constant 0 : index
    %c0_60 = arith.constant 0 : index
    %c0_61 = arith.constant 0 : index
    %126 = vector.load %arg13[%c0_59, %c0_60, %c0_61] : memref<1x8x32xf32, #tpu.memory_space<vmem>>, vector<1x8x32xf32>
    %127 = vector.shape_cast %126 : vector<1x8x32xf32> to vector<8x32xf32>
    %128 = vector.shape_cast %125 : vector<8x32xf32> to vector<1x8x32xf32>
    tpu.vector_store %arg13[%c0_59, %c0_60, %c0_61], %128 {strides = array<i32>} : memref<1x8x32xf32, #tpu.memory_space<vmem>>, vector<1x8x32xf32>,
    return
  }
  func.func @transform_0(%arg0: i32) -> (i32, i32, i32) {
    %c0_i32 = arith.constant 0 : i32
    %c0_i32_0 = arith.constant 0 : i32
    %c0_i32_1 = arith.constant 0 : i32
    return %arg0, %c0_i32, %c0_i32_0 : i32, i32, i32
  }
  func.func @transform_1(%arg0: i32) -> (i32, i32, i32) {
    %c0_i32 = arith.constant 0 : i32
    %c0_i32_0 = arith.constant 0 : i32
    %c0_i32_1 = arith.constant 0 : i32
    return %arg0, %c0_i32, %c0_i32_0 : i32, i32, i32
  }
  func.func @transform_2(%arg0: i32) -> (i32, i32) {
    %c0_i32 = arith.constant 0 : i32
    %c0_i32_0 = arith.constant 0 : i32
    %c0_i32_1 = arith.constant 0 : i32
    return %c0_i32, %c0_i32_0 : i32, i32
  }
  func.func @transform_3(%arg0: i32) -> (i32, i32) {
    %c0_i32 = arith.constant 0 : i32
    %c0_i32_0 = arith.constant 0 : i32
    %c0_i32_1 = arith.constant 0 : i32
    return %c0_i32, %c0_i32_0 : i32, i32
  }
  func.func @transform_4(%arg0: i32) -> (i32, i32) {
    %c0_i32 = arith.constant 0 : i32
    %c0_i32_0 = arith.constant 0 : i32
    %c0_i32_1 = arith.constant 0 : i32
    return %c0_i32, %c0_i32_0 : i32, i32
  }
  func.func @transform_5(%arg0: i32) -> (i32, i32) {
    %c0_i32 = arith.constant 0 : i32
    %c0_i32_0 = arith.constant 0 : i32
    %c0_i32_1 = arith.constant 0 : i32
    return %c0_i32, %c0_i32_0 : i32, i32
  }
  func.func @transform_6(%arg0: i32) -> (i32, i32) {
    %c0_i32 = arith.constant 0 : i32
    %c0_i32_0 = arith.constant 0 : i32
    %c0_i32_1 = arith.constant 0 : i32
    return %c0_i32, %c0_i32_0 : i32, i32
  }
  func.func @transform_7(%arg0: i32) -> (i32, i32) {
    %c0_i32 = arith.constant 0 : i32
    %c0_i32_0 = arith.constant 0 : i32
    %c0_i32_1 = arith.constant 0 : i32
    return %c0_i32, %c0_i32_0 : i32, i32
  }
  func.func @transform_8(%arg0: i32) -> (i32, i32) {
    %c0_i32 = arith.constant 0 : i32
    %c0_i32_0 = arith.constant 0 : i32
    %c0_i32_1 = arith.constant 0 : i32
    return %c0_i32, %c0_i32_0 : i32, i32
  }
  func.func @transform_9(%arg0: i32) -> (i32, i32) {
    %c0_i32 = arith.constant 0 : i32
    %c0_i32_0 = arith.constant 0 : i32
    %c0_i32_1 = arith.constant 0 : i32
    return %c0_i32, %c0_i32_0 : i32, i32
  }
  func.func @transform_10(%arg0: i32) -> (i32, i32) {
    %c0_i32 = arith.constant 0 : i32
    %c0_i32_0 = arith.constant 0 : i32
    %c0_i32_1 = arith.constant 0 : i32
    return %c0_i32, %c0_i32_0 : i32, i32
  }
  func.func @transform_11(%arg0: i32) -> (i32, i32) {
    %c0_i32 = arith.constant 0 : i32
    %c0_i32_0 = arith.constant 0 : i32
    %c0_i32_1 = arith.constant 0 : i32
    return %c0_i32, %c0_i32_0 : i32, i32
  }
  func.func @transform_12(%arg0: i32) -> (i32, i32, i32) {
    %c0_i32 = arith.constant 0 : i32
    %c0_i32_0 = arith.constant 0 : i32
    %c0_i32_1 = arith.constant 0 : i32
    return %arg0, %c0_i32, %c0_i32_0 : i32, i32, i32
  }
}

module attributes {stable_mosaic.version = 11 : i64} {
  func.func @_embed_static_kernel(%arg0: i32, %arg1: memref<1x8x4xf32, #tpu.memory_space<vmem>>, %arg2: memref<1x8x4xf32, #tpu.memory_space<vmem>>, %arg3: memref<1x8x4xf32, #tpu.memory_space<vmem>>, %arg4: memref<1x8x4xf32, #tpu.memory_space<vmem>>, %arg5: memref<8x32xf32, #tpu.memory_space<vmem>>, %arg6: memref<1x1x6xf32, #tpu.memory_space<vmem>>, %arg7: memref<4x32xf32, #tpu.memory_space<vmem>>, %arg8: memref<4x32xf32, #tpu.memory_space<vmem>>, %arg9: memref<4x32xf32, #tpu.memory_space<vmem>>, %arg10: memref<4x32xf32, #tpu.memory_space<vmem>>, %arg11: memref<32x32xf32, #tpu.memory_space<vmem>>, %arg12: memref<1x32xf32, #tpu.memory_space<vmem>>, %arg13: memref<6x32xf32, #tpu.memory_space<vmem>>, %arg14: memref<1x32xf32, #tpu.memory_space<vmem>>, %arg15: memref<1x32xf32, #tpu.memory_space<vmem>>, %arg16: memref<1x32xf32, #tpu.memory_space<vmem>>, %arg17: memref<1x8x32xf32, #tpu.memory_space<vmem>>) attributes {dimension_semantics = [#tpu.dimension_semantics<parallel>], iteration_bounds = array<i64: 2>, scalar_prefetch = 0 : i64, scratch_operands = 0 : i64, tpu.core_type = #tpu.core_type<tc>, window_params = [{transform_indices = @transform_0, window_bounds = array<i64: 1, 8, 4>}, {transform_indices = @transform_1, window_bounds = array<i64: 1, 8, 4>}, {transform_indices = @transform_2, window_bounds = array<i64: 1, 8, 4>}, {transform_indices = @transform_3, window_bounds = array<i64: 1, 8, 4>}, {pipeline_mode = #tpu.pipeline_mode<synchronous>, transform_indices = @transform_4, window_bounds = array<i64: 8, 32>}, {transform_indices = @transform_5, window_bounds = array<i64: 1, 1, 6>}, {pipeline_mode = #tpu.pipeline_mode<synchronous>, transform_indices = @transform_6, window_bounds = array<i64: 4, 32>}, {pipeline_mode = #tpu.pipeline_mode<synchronous>, transform_indices = @transform_7, window_bounds = array<i64: 4, 32>}, {pipeline_mode = #tpu.pipeline_mode<synchronous>, transform_indices = @transform_8, window_bounds = array<i64: 4, 32>}, {pipeline_mode = #tpu.pipeline_mode<synchronous>, transform_indices = @transform_9, window_bounds = array<i64: 4, 32>}, {pipeline_mode = #tpu.pipeline_mode<synchronous>, transform_indices = @transform_10, window_bounds = array<i64: 32, 32>}, {pipeline_mode = #tpu.pipeline_mode<synchronous>, transform_indices = @transform_11, window_bounds = array<i64: 1, 32>}, {pipeline_mode = #tpu.pipeline_mode<synchronous>, transform_indices = @transform_12, window_bounds = array<i64: 6, 32>}, {pipeline_mode = #tpu.pipeline_mode<synchronous>, transform_indices = @transform_13, window_bounds = array<i64: 1, 32>}, {pipeline_mode = #tpu.pipeline_mode<synchronous>, transform_indices = @transform_14, window_bounds = array<i64: 1, 32>}, {pipeline_mode = #tpu.pipeline_mode<synchronous>, transform_indices = @transform_15, window_bounds = array<i64: 1, 32>}, {transform_indices = @transform_16, window_bounds = array<i64: 1, 8, 32>}]} {
    %c0 = arith.constant 0 : index
    %c0_0 = arith.constant 0 : index
    %c0_1 = arith.constant 0 : index
    %0 = vector.load %arg1[%c0, %c0_0, %c0_1] : memref<1x8x4xf32, #tpu.memory_space<vmem>>, vector<1x8x4xf32>
    %1 = vector.shape_cast %0 : vector<1x8x4xf32> to vector<8x4xf32>
    %c0_2 = arith.constant 0 : index
    %c0_3 = arith.constant 0 : index
    %c0_4 = arith.constant 0 : index
    %2 = vector.load %arg2[%c0_2, %c0_3, %c0_4] : memref<1x8x4xf32, #tpu.memory_space<vmem>>, vector<1x8x4xf32>
    %3 = vector.shape_cast %2 : vector<1x8x4xf32> to vector<8x4xf32>
    %c0_5 = arith.constant 0 : index
    %c0_6 = arith.constant 0 : index
    %c0_7 = arith.constant 0 : index
    %4 = vector.load %arg3[%c0_5, %c0_6, %c0_7] : memref<1x8x4xf32, #tpu.memory_space<vmem>>, vector<1x8x4xf32>
    %5 = vector.shape_cast %4 : vector<1x8x4xf32> to vector<8x4xf32>
    %c0_8 = arith.constant 0 : index
    %c0_9 = arith.constant 0 : index
    %6 = vector.load %arg7[%c0_8, %c0_9] : memref<4x32xf32, #tpu.memory_space<vmem>>, vector<4x32xf32>
    %cst = arith.constant dense<0.000000e+00> : vector<8x32xf32>
    %7 = tpu.matmul %1, %6, %cst {dimension_numbers = #tpu.dot_dimension_numbers<[1], [0], [0], [1], [0, 0, 1, 1], [], []>} : vector<8x4xf32>, vector<4x32xf32>, vector<8x32xf32> -> vector<8x32xf32>
    %c0_10 = arith.constant 0 : index
    %c0_11 = arith.constant 0 : index
    %8 = vector.load %arg8[%c0_10, %c0_11] : memref<4x32xf32, #tpu.memory_space<vmem>>, vector<4x32xf32>
    %cst_12 = arith.constant dense<0.000000e+00> : vector<8x32xf32>
    %9 = tpu.matmul %3, %8, %cst_12 {dimension_numbers = #tpu.dot_dimension_numbers<[1], [0], [0], [1], [0, 0, 1, 1], [], []>} : vector<8x4xf32>, vector<4x32xf32>, vector<8x32xf32> -> vector<8x32xf32>
    %10 = arith.addf %7, %9 : vector<8x32xf32>
    %c0_13 = arith.constant 0 : index
    %c0_14 = arith.constant 0 : index
    %11 = vector.load %arg9[%c0_13, %c0_14] : memref<4x32xf32, #tpu.memory_space<vmem>>, vector<4x32xf32>
    %cst_15 = arith.constant dense<0.000000e+00> : vector<8x32xf32>
    %12 = tpu.matmul %5, %11, %cst_15 {dimension_numbers = #tpu.dot_dimension_numbers<[1], [0], [0], [1], [0, 0, 1, 1], [], []>} : vector<8x4xf32>, vector<4x32xf32>, vector<8x32xf32> -> vector<8x32xf32>
    %13 = arith.addf %10, %12 : vector<8x32xf32>
    %c0_16 = arith.constant 0 : index
    %c0_17 = arith.constant 0 : index
    %c0_18 = arith.constant 0 : index
    %14 = vector.load %arg4[%c0_16, %c0_17, %c0_18] : memref<1x8x4xf32, #tpu.memory_space<vmem>>, vector<1x8x4xf32>
    %15 = vector.shape_cast %14 : vector<1x8x4xf32> to vector<8x4xf32>
    %c0_19 = arith.constant 0 : index
    %c0_20 = arith.constant 0 : index
    %16 = vector.load %arg10[%c0_19, %c0_20] : memref<4x32xf32, #tpu.memory_space<vmem>>, vector<4x32xf32>
    %cst_21 = arith.constant dense<0.000000e+00> : vector<8x32xf32>
    %17 = tpu.matmul %15, %16, %cst_21 {dimension_numbers = #tpu.dot_dimension_numbers<[1], [0], [0], [1], [0, 0, 1, 1], [], []>} : vector<8x4xf32>, vector<4x32xf32>, vector<8x32xf32> -> vector<8x32xf32>
    %18 = arith.addf %13, %17 : vector<8x32xf32>
    %c0_22 = arith.constant 0 : index
    %c0_23 = arith.constant 0 : index
    %19 = vector.load %arg5[%c0_22, %c0_23] : memref<8x32xf32, #tpu.memory_space<vmem>>, vector<8x32xf32>
    %20 = arith.addf %18, %19 : vector<8x32xf32>
    %c0_24 = arith.constant 0 : index
    %c0_25 = arith.constant 0 : index
    %21 = vector.load %arg11[%c0_24, %c0_25] : memref<32x32xf32, #tpu.memory_space<vmem>>, vector<32x32xf32>
    %cst_26 = arith.constant dense<0.000000e+00> : vector<8x32xf32>
    %22 = tpu.matmul %20, %21, %cst_26 {dimension_numbers = #tpu.dot_dimension_numbers<[1], [0], [0], [1], [0, 0, 1, 1], [], []>} : vector<8x32xf32>, vector<32x32xf32>, vector<8x32xf32> -> vector<8x32xf32>
    %c0_27 = arith.constant 0 : index
    %c0_28 = arith.constant 0 : index
    %23 = vector.load %arg12[%c0_27, %c0_28] : memref<1x32xf32, #tpu.memory_space<vmem>>, vector<1x32xf32>
    %24 = vector.broadcast %23 : vector<1x32xf32> to vector<8x32xf32>
    %25 = arith.addf %22, %24 : vector<8x32xf32>
    %c0_29 = arith.constant 0 : index
    %c0_30 = arith.constant 0 : index
    %c0_31 = arith.constant 0 : index
    %26 = vector.load %arg6[%c0_29, %c0_30, %c0_31] : memref<1x1x6xf32, #tpu.memory_space<vmem>>, vector<1x1x6xf32>
    %27 = vector.shape_cast %26 : vector<1x1x6xf32> to vector<1x6xf32>
    %c0_32 = arith.constant 0 : index
    %c0_33 = arith.constant 0 : index
    %28 = vector.load %arg13[%c0_32, %c0_33] : memref<6x32xf32, #tpu.memory_space<vmem>>, vector<6x32xf32>
    %cst_34 = arith.constant dense<0.000000e+00> : vector<1x32xf32>
    %29 = tpu.matmul %27, %28, %cst_34 {dimension_numbers = #tpu.dot_dimension_numbers<[1], [0], [0], [1], [0, 0, 1, 1], [], []>} : vector<1x6xf32>, vector<6x32xf32>, vector<1x32xf32> -> vector<1x32xf32>
    %c0_35 = arith.constant 0 : index
    %c0_36 = arith.constant 0 : index
    %30 = vector.load %arg14[%c0_35, %c0_36] : memref<1x32xf32, #tpu.memory_space<vmem>>, vector<1x32xf32>
    %31 = arith.addf %29, %30 : vector<1x32xf32>
    %cst_37 = arith.constant dense<0xFF800000> : vector<8xf32>
    %32 = vector.multi_reduction <maximumf>, %25, %cst_37 [1] : vector<8x32xf32> to vector<8xf32>
    %33 = vector.shape_cast %32 : vector<8xf32> to vector<8x1xf32>
    %34 = vector.broadcast %33 : vector<8x1xf32> to vector<8x32xf32>
    %35 = arith.subf %25, %34 : vector<8x32xf32>
    %36 = math.exp %35 : vector<8x32xf32>
    %cst_38 = arith.constant dense<0.000000e+00> : vector<8xf32>
    %37 = vector.multi_reduction <add>, %36, %cst_38 [1] : vector<8x32xf32> to vector<8xf32>
    %38 = vector.shape_cast %37 : vector<8xf32> to vector<8x1xf32>
    %39 = tpu.reciprocal %38 {approx = true} : vector<8x1xf32> -> vector<8x1xf32>
    %40 = vector.broadcast %39 : vector<8x1xf32> to vector<8x32xf32>
    %41 = arith.mulf %36, %40 : vector<8x32xf32>
    %42 = vector.broadcast %31 : vector<1x32xf32> to vector<8x32xf32>
    %43 = arith.mulf %41, %42 : vector<8x32xf32>
    %44 = arith.addf %20, %43 : vector<8x32xf32>
    %c0_39 = arith.constant 0 : index
    %c0_40 = arith.constant 0 : index
    %45 = vector.load %arg15[%c0_39, %c0_40] : memref<1x32xf32, #tpu.memory_space<vmem>>, vector<1x32xf32>
    %c0_41 = arith.constant 0 : index
    %c0_42 = arith.constant 0 : index
    %46 = vector.load %arg16[%c0_41, %c0_42] : memref<1x32xf32, #tpu.memory_space<vmem>>, vector<1x32xf32>
    %cst_43 = arith.constant dense<0.000000e+00> : vector<8xf32>
    %47 = vector.multi_reduction <add>, %44, %cst_43 [1] : vector<8x32xf32> to vector<8xf32>
    %48 = vector.shape_cast %47 : vector<8xf32> to vector<8x1xf32>
    %cst_44 = arith.constant 3.200000e+01 : f32
    %49 = vector.broadcast %cst_44 : f32 to vector<8x1xf32>
    %50 = arith.divf %48, %49 : vector<8x1xf32>
    %51 = vector.broadcast %50 : vector<8x1xf32> to vector<8x32xf32>
    %52 = arith.subf %44, %51 : vector<8x32xf32>
    %53 = arith.mulf %52, %52 : vector<8x32xf32>
    %cst_45 = arith.constant dense<0.000000e+00> : vector<8xf32>
    %54 = vector.multi_reduction <add>, %53, %cst_45 [1] : vector<8x32xf32> to vector<8xf32>
    %55 = vector.shape_cast %54 : vector<8xf32> to vector<8x1xf32>
    %cst_46 = arith.constant 3.200000e+01 : f32
    %56 = vector.broadcast %cst_46 : f32 to vector<8x1xf32>
    %57 = arith.divf %55, %56 : vector<8x1xf32>
    %58 = vector.broadcast %50 : vector<8x1xf32> to vector<8x32xf32>
    %59 = arith.subf %44, %58 : vector<8x32xf32>
    %cst_47 = arith.constant 9.99999974E-6 : f32
    %60 = vector.broadcast %cst_47 : f32 to vector<8x1xf32>
    %61 = arith.addf %57, %60 : vector<8x1xf32>
    %62 = math.rsqrt %61 : vector<8x1xf32>
    %63 = vector.broadcast %62 : vector<8x1xf32> to vector<8x32xf32>
    %64 = arith.mulf %59, %63 : vector<8x32xf32>
    %65 = vector.broadcast %45 : vector<1x32xf32> to vector<8x32xf32>
    %66 = arith.mulf %64, %65 : vector<8x32xf32>
    %67 = vector.broadcast %46 : vector<1x32xf32> to vector<8x32xf32>
    %68 = arith.addf %66, %67 : vector<8x32xf32>
    %c0_48 = arith.constant 0 : index
    %c0_49 = arith.constant 0 : index
    %c0_50 = arith.constant 0 : index
    %69 = vector.load %arg17[%c0_48, %c0_49, %c0_50] : memref<1x8x32xf32, #tpu.memory_space<vmem>>, vector<1x8x32xf32>
    %70 = vector.shape_cast %69 : vector<1x8x32xf32> to vector<8x32xf32>
    %71 = vector.shape_cast %68 : vector<8x32xf32> to vector<1x8x32xf32>
    tpu.vector_store %arg17[%c0_48, %c0_49, %c0_50], %71 {strides = array<i32>} : memref<1x8x32xf32, #tpu.memory_space<vmem>>, vector<1x8x32xf32>,
    return
  }
  func.func @transform_0(%arg0: i32) -> (i32, i32, i32) {
    %c0_i32 = arith.constant 0 : i32
    %c0_i32_0 = arith.constant 0 : i32
    %c0_i32_1 = arith.constant 0 : i32
    return %arg0, %c0_i32, %c0_i32_0 : i32, i32, i32
  }
  func.func @transform_1(%arg0: i32) -> (i32, i32, i32) {
    %c0_i32 = arith.constant 0 : i32
    %c0_i32_0 = arith.constant 0 : i32
    %c0_i32_1 = arith.constant 0 : i32
    return %arg0, %c0_i32, %c0_i32_0 : i32, i32, i32
  }
  func.func @transform_2(%arg0: i32) -> (i32, i32, i32) {
    %c0_i32 = arith.constant 0 : i32
    %c0_i32_0 = arith.constant 0 : i32
    %c0_i32_1 = arith.constant 0 : i32
    return %arg0, %c0_i32, %c0_i32_0 : i32, i32, i32
  }
  func.func @transform_3(%arg0: i32) -> (i32, i32, i32) {
    %c0_i32 = arith.constant 0 : i32
    %c0_i32_0 = arith.constant 0 : i32
    %c0_i32_1 = arith.constant 0 : i32
    return %arg0, %c0_i32, %c0_i32_0 : i32, i32, i32
  }
  func.func @transform_4(%arg0: i32) -> (i32, i32) {
    %c0_i32 = arith.constant 0 : i32
    %c0_i32_0 = arith.constant 0 : i32
    %c0_i32_1 = arith.constant 0 : i32
    return %c0_i32, %c0_i32_0 : i32, i32
  }
  func.func @transform_5(%arg0: i32) -> (i32, i32, i32) {
    %c0_i32 = arith.constant 0 : i32
    %c0_i32_0 = arith.constant 0 : i32
    %c0_i32_1 = arith.constant 0 : i32
    return %arg0, %c0_i32, %c0_i32_0 : i32, i32, i32
  }
  func.func @transform_6(%arg0: i32) -> (i32, i32) {
    %c0_i32 = arith.constant 0 : i32
    %c0_i32_0 = arith.constant 0 : i32
    %c0_i32_1 = arith.constant 0 : i32
    return %c0_i32, %c0_i32_0 : i32, i32
  }
  func.func @transform_7(%arg0: i32) -> (i32, i32) {
    %c0_i32 = arith.constant 0 : i32
    %c0_i32_0 = arith.constant 0 : i32
    %c0_i32_1 = arith.constant 0 : i32
    return %c0_i32, %c0_i32_0 : i32, i32
  }
  func.func @transform_8(%arg0: i32) -> (i32, i32) {
    %c0_i32 = arith.constant 0 : i32
    %c0_i32_0 = arith.constant 0 : i32
    %c0_i32_1 = arith.constant 0 : i32
    return %c0_i32, %c0_i32_0 : i32, i32
  }
  func.func @transform_9(%arg0: i32) -> (i32, i32) {
    %c0_i32 = arith.constant 0 : i32
    %c0_i32_0 = arith.constant 0 : i32
    %c0_i32_1 = arith.constant 0 : i32
    return %c0_i32, %c0_i32_0 : i32, i32
  }
  func.func @transform_10(%arg0: i32) -> (i32, i32) {
    %c0_i32 = arith.constant 0 : i32
    %c0_i32_0 = arith.constant 0 : i32
    %c0_i32_1 = arith.constant 0 : i32
    return %c0_i32, %c0_i32_0 : i32, i32
  }
  func.func @transform_11(%arg0: i32) -> (i32, i32) {
    %c0_i32 = arith.constant 0 : i32
    %c0_i32_0 = arith.constant 0 : i32
    %c0_i32_1 = arith.constant 0 : i32
    return %c0_i32, %c0_i32_0 : i32, i32
  }
  func.func @transform_12(%arg0: i32) -> (i32, i32) {
    %c0_i32 = arith.constant 0 : i32
    %c0_i32_0 = arith.constant 0 : i32
    %c0_i32_1 = arith.constant 0 : i32
    return %c0_i32, %c0_i32_0 : i32, i32
  }
  func.func @transform_13(%arg0: i32) -> (i32, i32) {
    %c0_i32 = arith.constant 0 : i32
    %c0_i32_0 = arith.constant 0 : i32
    %c0_i32_1 = arith.constant 0 : i32
    return %c0_i32, %c0_i32_0 : i32, i32
  }
  func.func @transform_14(%arg0: i32) -> (i32, i32) {
    %c0_i32 = arith.constant 0 : i32
    %c0_i32_0 = arith.constant 0 : i32
    %c0_i32_1 = arith.constant 0 : i32
    return %c0_i32, %c0_i32_0 : i32, i32
  }
  func.func @transform_15(%arg0: i32) -> (i32, i32) {
    %c0_i32 = arith.constant 0 : i32
    %c0_i32_0 = arith.constant 0 : i32
    %c0_i32_1 = arith.constant 0 : i32
    return %c0_i32, %c0_i32_0 : i32, i32
  }
  func.func @transform_16(%arg0: i32) -> (i32, i32, i32) {
    %c0_i32 = arith.constant 0 : i32
    %c0_i32_0 = arith.constant 0 : i32
    %c0_i32_1 = arith.constant 0 : i32
    return %arg0, %c0_i32, %c0_i32_0 : i32, i32, i32
  }
}

module attributes {stable_mosaic.version = 11 : i64} {
  func.func @_ffn_block_kernel(%arg0: i32, %arg1: memref<1x8x32xf32, #tpu.memory_space<vmem>>, %arg2: memref<32x64xf32, #tpu.memory_space<vmem>>, %arg3: memref<1x64xf32, #tpu.memory_space<vmem>>, %arg4: memref<64x32xf32, #tpu.memory_space<vmem>>, %arg5: memref<1x32xf32, #tpu.memory_space<vmem>>, %arg6: memref<1x32xf32, #tpu.memory_space<vmem>>, %arg7: memref<1x32xf32, #tpu.memory_space<vmem>>, %arg8: memref<1x8x32xf32, #tpu.memory_space<vmem>>) attributes {dimension_semantics = [#tpu.dimension_semantics<parallel>], iteration_bounds = array<i64: 2>, scalar_prefetch = 0 : i64, scratch_operands = 0 : i64, tpu.core_type = #tpu.core_type<tc>, window_params = [{transform_indices = @transform_0, window_bounds = array<i64: 1, 8, 32>}, {pipeline_mode = #tpu.pipeline_mode<synchronous>, transform_indices = @transform_1, window_bounds = array<i64: 32, 64>}, {pipeline_mode = #tpu.pipeline_mode<synchronous>, transform_indices = @transform_2, window_bounds = array<i64: 1, 64>}, {pipeline_mode = #tpu.pipeline_mode<synchronous>, transform_indices = @transform_3, window_bounds = array<i64: 64, 32>}, {pipeline_mode = #tpu.pipeline_mode<synchronous>, transform_indices = @transform_4, window_bounds = array<i64: 1, 32>}, {pipeline_mode = #tpu.pipeline_mode<synchronous>, transform_indices = @transform_5, window_bounds = array<i64: 1, 32>}, {pipeline_mode = #tpu.pipeline_mode<synchronous>, transform_indices = @transform_6, window_bounds = array<i64: 1, 32>}, {transform_indices = @transform_7, window_bounds = array<i64: 1, 8, 32>}]} {
    %c0 = arith.constant 0 : index
    %c0_0 = arith.constant 0 : index
    %c0_1 = arith.constant 0 : index
    %0 = vector.load %arg1[%c0, %c0_0, %c0_1] : memref<1x8x32xf32, #tpu.memory_space<vmem>>, vector<1x8x32xf32>
    %1 = vector.shape_cast %0 : vector<1x8x32xf32> to vector<8x32xf32>
    %c0_2 = arith.constant 0 : index
    %c0_3 = arith.constant 0 : index
    %2 = vector.load %arg2[%c0_2, %c0_3] : memref<32x64xf32, #tpu.memory_space<vmem>>, vector<32x64xf32>
    %cst = arith.constant dense<0.000000e+00> : vector<8x64xf32>
    %3 = tpu.matmul %1, %2, %cst {dimension_numbers = #tpu.dot_dimension_numbers<[1], [0], [0], [1], [0, 0, 1, 1], [], []>} : vector<8x32xf32>, vector<32x64xf32>, vector<8x64xf32> -> vector<8x64xf32>
    %c0_4 = arith.constant 0 : index
    %c0_5 = arith.constant 0 : index
    %4 = vector.load %arg3[%c0_4, %c0_5] : memref<1x64xf32, #tpu.memory_space<vmem>>, vector<1x64xf32>
    %5 = vector.broadcast %4 : vector<1x64xf32> to vector<8x64xf32>
    %6 = arith.addf %3, %5 : vector<8x64xf32>
    %cst_6 = arith.constant 0.000000e+00 : f32
    %7 = vector.broadcast %cst_6 : f32 to vector<8x64xf32>
    %8 = arith.maximumf %6, %7 : vector<8x64xf32>
    %c0_7 = arith.constant 0 : index
    %c0_8 = arith.constant 0 : index
    %9 = vector.load %arg4[%c0_7, %c0_8] : memref<64x32xf32, #tpu.memory_space<vmem>>, vector<64x32xf32>
    %cst_9 = arith.constant dense<0.000000e+00> : vector<8x32xf32>
    %10 = tpu.matmul %8, %9, %cst_9 {dimension_numbers = #tpu.dot_dimension_numbers<[1], [0], [0], [1], [0, 0, 1, 1], [], []>} : vector<8x64xf32>, vector<64x32xf32>, vector<8x32xf32> -> vector<8x32xf32>
    %c0_10 = arith.constant 0 : index
    %c0_11 = arith.constant 0 : index
    %11 = vector.load %arg5[%c0_10, %c0_11] : memref<1x32xf32, #tpu.memory_space<vmem>>, vector<1x32xf32>
    %12 = vector.broadcast %11 : vector<1x32xf32> to vector<8x32xf32>
    %13 = arith.addf %10, %12 : vector<8x32xf32>
    %14 = arith.addf %1, %13 : vector<8x32xf32>
    %c0_12 = arith.constant 0 : index
    %c0_13 = arith.constant 0 : index
    %15 = vector.load %arg6[%c0_12, %c0_13] : memref<1x32xf32, #tpu.memory_space<vmem>>, vector<1x32xf32>
    %c0_14 = arith.constant 0 : index
    %c0_15 = arith.constant 0 : index
    %16 = vector.load %arg7[%c0_14, %c0_15] : memref<1x32xf32, #tpu.memory_space<vmem>>, vector<1x32xf32>
    %cst_16 = arith.constant dense<0.000000e+00> : vector<8xf32>
    %17 = vector.multi_reduction <add>, %14, %cst_16 [1] : vector<8x32xf32> to vector<8xf32>
    %18 = vector.shape_cast %17 : vector<8xf32> to vector<8x1xf32>
    %cst_17 = arith.constant 3.200000e+01 : f32
    %19 = vector.broadcast %cst_17 : f32 to vector<8x1xf32>
    %20 = arith.divf %18, %19 : vector<8x1xf32>
    %21 = vector.broadcast %20 : vector<8x1xf32> to vector<8x32xf32>
    %22 = arith.subf %14, %21 : vector<8x32xf32>
    %23 = arith.mulf %22, %22 : vector<8x32xf32>
    %cst_18 = arith.constant dense<0.000000e+00> : vector<8xf32>
    %24 = vector.multi_reduction <add>, %23, %cst_18 [1] : vector<8x32xf32> to vector<8xf32>
    %25 = vector.shape_cast %24 : vector<8xf32> to vector<8x1xf32>
    %cst_19 = arith.constant 3.200000e+01 : f32
    %26 = vector.broadcast %cst_19 : f32 to vector<8x1xf32>
    %27 = arith.divf %25, %26 : vector<8x1xf32>
    %28 = vector.broadcast %20 : vector<8x1xf32> to vector<8x32xf32>
    %29 = arith.subf %14, %28 : vector<8x32xf32>
    %cst_20 = arith.constant 9.99999974E-6 : f32
    %30 = vector.broadcast %cst_20 : f32 to vector<8x1xf32>
    %31 = arith.addf %27, %30 : vector<8x1xf32>
    %32 = math.rsqrt %31 : vector<8x1xf32>
    %33 = vector.broadcast %32 : vector<8x1xf32> to vector<8x32xf32>
    %34 = arith.mulf %29, %33 : vector<8x32xf32>
    %35 = vector.broadcast %15 : vector<1x32xf32> to vector<8x32xf32>
    %36 = arith.mulf %34, %35 : vector<8x32xf32>
    %37 = vector.broadcast %16 : vector<1x32xf32> to vector<8x32xf32>
    %38 = arith.addf %36, %37 : vector<8x32xf32>
    %c0_21 = arith.constant 0 : index
    %c0_22 = arith.constant 0 : index
    %c0_23 = arith.constant 0 : index
    %39 = vector.load %arg8[%c0_21, %c0_22, %c0_23] : memref<1x8x32xf32, #tpu.memory_space<vmem>>, vector<1x8x32xf32>
    %40 = vector.shape_cast %39 : vector<1x8x32xf32> to vector<8x32xf32>
    %41 = vector.shape_cast %38 : vector<8x32xf32> to vector<1x8x32xf32>
    tpu.vector_store %arg8[%c0_21, %c0_22, %c0_23], %41 {strides = array<i32>} : memref<1x8x32xf32, #tpu.memory_space<vmem>>, vector<1x8x32xf32>,
    return
  }
  func.func @transform_0(%arg0: i32) -> (i32, i32, i32) {
    %c0_i32 = arith.constant 0 : i32
    %c0_i32_0 = arith.constant 0 : i32
    %c0_i32_1 = arith.constant 0 : i32
    return %arg0, %c0_i32, %c0_i32_0 : i32, i32, i32
  }
  func.func @transform_1(%arg0: i32) -> (i32, i32) {
    %c0_i32 = arith.constant 0 : i32
    %c0_i32_0 = arith.constant 0 : i32
    %c0_i32_1 = arith.constant 0 : i32
    return %c0_i32, %c0_i32_0 : i32, i32
  }
  func.func @transform_2(%arg0: i32) -> (i32, i32) {
    %c0_i32 = arith.constant 0 : i32
    %c0_i32_0 = arith.constant 0 : i32
    %c0_i32_1 = arith.constant 0 : i32
    return %c0_i32, %c0_i32_0 : i32, i32
  }
  func.func @transform_3(%arg0: i32) -> (i32, i32) {
    %c0_i32 = arith.constant 0 : i32
    %c0_i32_0 = arith.constant 0 : i32
    %c0_i32_1 = arith.constant 0 : i32
    return %c0_i32, %c0_i32_0 : i32, i32
  }
  func.func @transform_4(%arg0: i32) -> (i32, i32) {
    %c0_i32 = arith.constant 0 : i32
    %c0_i32_0 = arith.constant 0 : i32
    %c0_i32_1 = arith.constant 0 : i32
    return %c0_i32, %c0_i32_0 : i32, i32
  }
  func.func @transform_5(%arg0: i32) -> (i32, i32) {
    %c0_i32 = arith.constant 0 : i32
    %c0_i32_0 = arith.constant 0 : i32
    %c0_i32_1 = arith.constant 0 : i32
    return %c0_i32, %c0_i32_0 : i32, i32
  }
  func.func @transform_6(%arg0: i32) -> (i32, i32) {
    %c0_i32 = arith.constant 0 : i32
    %c0_i32_0 = arith.constant 0 : i32
    %c0_i32_1 = arith.constant 0 : i32
    return %c0_i32, %c0_i32_0 : i32, i32
  }
  func.func @transform_7(%arg0: i32) -> (i32, i32, i32) {
    %c0_i32 = arith.constant 0 : i32
    %c0_i32_0 = arith.constant 0 : i32
    %c0_i32_1 = arith.constant 0 : i32
    return %arg0, %c0_i32, %c0_i32_0 : i32, i32, i32
  }
}

module attributes {stable_mosaic.version = 11 : i64} {
  func.func @_gp_kernel(%arg0: memref<2x256xf32, #tpu.memory_space<vmem>>, %arg1: memref<5x8xf32, #tpu.memory_space<vmem>>, %arg2: memref<256x5xf32, #tpu.memory_space<vmem>>, %arg3: memref<1x5xf32, #tpu.memory_space<vmem>>, %arg4: memref<8x256xf32, #tpu.memory_space<vmem>>, %arg5: memref<1x256xf32, #tpu.memory_space<vmem>>, %arg6: memref<2x256xf32, #tpu.memory_space<vmem>>, %arg7: memref<2x5xf32, #tpu.memory_space<vmem>>, %arg8: memref<2x8xf32, #tpu.memory_space<vmem>>) attributes {dimension_semantics = [], scalar_prefetch = 0 : i64, scratch_operands = 0 : i64, tpu.core_type = #tpu.core_type<tc>} {
    %c0 = arith.constant 0 : index
    %c0_0 = arith.constant 0 : index
    %0 = vector.load %arg0[%c0, %c0_0] : memref<2x256xf32, #tpu.memory_space<vmem>>, vector<2x256xf32>
    %c0_1 = arith.constant 0 : index
    %c0_2 = arith.constant 0 : index
    %1 = vector.load %arg2[%c0_1, %c0_2] : memref<256x5xf32, #tpu.memory_space<vmem>>, vector<256x5xf32>
    %cst = arith.constant dense<0.000000e+00> : vector<2x5xf32>
    %2 = tpu.matmul %0, %1, %cst {dimension_numbers = #tpu.dot_dimension_numbers<[1], [0], [0], [1], [0, 0, 1, 1], [], []>} : vector<2x256xf32>, vector<256x5xf32>, vector<2x5xf32> -> vector<2x5xf32>
    %c0_3 = arith.constant 0 : index
    %c0_4 = arith.constant 0 : index
    %3 = vector.load %arg3[%c0_3, %c0_4] : memref<1x5xf32, #tpu.memory_space<vmem>>, vector<1x5xf32>
    %4 = vector.broadcast %3 : vector<1x5xf32> to vector<2x5xf32>
    %5 = arith.addf %2, %4 : vector<2x5xf32>
    %cst_5 = arith.constant dense<0xFF800000> : vector<2xf32>
    %6 = vector.multi_reduction <maximumf>, %5, %cst_5 [1] : vector<2x5xf32> to vector<2xf32>
    %7 = vector.shape_cast %6 : vector<2xf32> to vector<2x1xf32>
    %8 = vector.broadcast %7 : vector<2x1xf32> to vector<2x5xf32>
    %9 = arith.subf %5, %8 : vector<2x5xf32>
    %10 = math.exp %9 : vector<2x5xf32>
    %cst_6 = arith.constant dense<0.000000e+00> : vector<2xf32>
    %11 = vector.multi_reduction <add>, %10, %cst_6 [1] : vector<2x5xf32> to vector<2xf32>
    %12 = vector.shape_cast %11 : vector<2xf32> to vector<2x1xf32>
    %13 = tpu.reciprocal %12 {approx = true} : vector<2x1xf32> -> vector<2x1xf32>
    %14 = vector.broadcast %13 : vector<2x1xf32> to vector<2x5xf32>
    %15 = arith.mulf %10, %14 : vector<2x5xf32>
    %c0_7 = arith.constant 0 : index
    %c0_8 = arith.constant 0 : index
    %16 = vector.load %arg7[%c0_7, %c0_8] : memref<2x5xf32, #tpu.memory_space<vmem>>, vector<2x5xf32>
    tpu.vector_store %arg7[%c0_7, %c0_8], %15 {strides = array<i32>} : memref<2x5xf32, #tpu.memory_space<vmem>>, vector<2x5xf32>,
    %c0_9 = arith.constant 0 : index
    %c0_10 = arith.constant 0 : index
    %17 = vector.load %arg1[%c0_9, %c0_10] : memref<5x8xf32, #tpu.memory_space<vmem>>, vector<5x8xf32>
    %c0_11 = arith.constant 0 : index
    %c0_12 = arith.constant 0 : index
    %18 = vector.load %arg4[%c0_11, %c0_12] : memref<8x256xf32, #tpu.memory_space<vmem>>, vector<8x256xf32>
    %cst_13 = arith.constant dense<0.000000e+00> : vector<5x256xf32>
    %19 = tpu.matmul %17, %18, %cst_13 {dimension_numbers = #tpu.dot_dimension_numbers<[1], [0], [0], [1], [0, 0, 1, 1], [], []>} : vector<5x8xf32>, vector<8x256xf32>, vector<5x256xf32> -> vector<5x256xf32>
    %c0_14 = arith.constant 0 : index
    %c0_15 = arith.constant 0 : index
    %20 = vector.load %arg5[%c0_14, %c0_15] : memref<1x256xf32, #tpu.memory_space<vmem>>, vector<1x256xf32>
    %21 = vector.broadcast %20 : vector<1x256xf32> to vector<5x256xf32>
    %22 = arith.addf %19, %21 : vector<5x256xf32>
    %cst_16 = arith.constant dense<0.000000e+00> : vector<2x256xf32>
    %23 = tpu.matmul %15, %22, %cst_16 {dimension_numbers = #tpu.dot_dimension_numbers<[1], [0], [0], [1], [0, 0, 1, 1], [], []>} : vector<2x5xf32>, vector<5x256xf32>, vector<2x256xf32> -> vector<2x256xf32>
    %c0_17 = arith.constant 0 : index
    %c0_18 = arith.constant 0 : index
    %24 = vector.load %arg6[%c0_17, %c0_18] : memref<2x256xf32, #tpu.memory_space<vmem>>, vector<2x256xf32>
    tpu.vector_store %arg6[%c0_17, %c0_18], %23 {strides = array<i32>} : memref<2x256xf32, #tpu.memory_space<vmem>>, vector<2x256xf32>,
    %c0_19 = arith.constant 0 : index
    %c0_20 = arith.constant 0 : index
    %25 = vector.load %arg1[%c0_19, %c0_20] : memref<5x8xf32, #tpu.memory_space<vmem>>, vector<5x8xf32>
    %cst_21 = arith.constant dense<0.000000e+00> : vector<2x8xf32>
    %26 = tpu.matmul %15, %25, %cst_21 {dimension_numbers = #tpu.dot_dimension_numbers<[1], [0], [0], [1], [0, 0, 1, 1], [], []>} : vector<2x5xf32>, vector<5x8xf32>, vector<2x8xf32> -> vector<2x8xf32>
    %c0_22 = arith.constant 0 : index
    %c0_23 = arith.constant 0 : index
    %27 = vector.load %arg8[%c0_22, %c0_23] : memref<2x8xf32, #tpu.memory_space<vmem>>, vector<2x8xf32>
    tpu.vector_store %arg8[%c0_22, %c0_23], %26 {strides = array<i32>} : memref<2x8xf32, #tpu.memory_space<vmem>>, vector<2x8xf32>,
    return
  }
}

module attributes {stable_mosaic.version = 11 : i64} {
  func.func @_add_ln_kernel(%arg0: i32, %arg1: memref<1x8x32xf32, #tpu.memory_space<vmem>>, %arg2: memref<1x8x32xf32, #tpu.memory_space<vmem>>, %arg3: memref<1x32xf32, #tpu.memory_space<vmem>>, %arg4: memref<1x32xf32, #tpu.memory_space<vmem>>, %arg5: memref<1x8x32xf32, #tpu.memory_space<vmem>>) attributes {dimension_semantics = [#tpu.dimension_semantics<parallel>], iteration_bounds = array<i64: 2>, scalar_prefetch = 0 : i64, scratch_operands = 0 : i64, tpu.core_type = #tpu.core_type<tc>, window_params = [{transform_indices = @transform_0, window_bounds = array<i64: 1, 8, 32>}, {transform_indices = @transform_1, window_bounds = array<i64: 1, 8, 32>}, {pipeline_mode = #tpu.pipeline_mode<synchronous>, transform_indices = @transform_2, window_bounds = array<i64: 1, 32>}, {pipeline_mode = #tpu.pipeline_mode<synchronous>, transform_indices = @transform_3, window_bounds = array<i64: 1, 32>}, {transform_indices = @transform_4, window_bounds = array<i64: 1, 8, 32>}]} {
    %c0 = arith.constant 0 : index
    %c0_0 = arith.constant 0 : index
    %c0_1 = arith.constant 0 : index
    %0 = vector.load %arg1[%c0, %c0_0, %c0_1] : memref<1x8x32xf32, #tpu.memory_space<vmem>>, vector<1x8x32xf32>
    %1 = vector.shape_cast %0 : vector<1x8x32xf32> to vector<8x32xf32>
    %c0_2 = arith.constant 0 : index
    %c0_3 = arith.constant 0 : index
    %c0_4 = arith.constant 0 : index
    %2 = vector.load %arg2[%c0_2, %c0_3, %c0_4] : memref<1x8x32xf32, #tpu.memory_space<vmem>>, vector<1x8x32xf32>
    %3 = vector.shape_cast %2 : vector<1x8x32xf32> to vector<8x32xf32>
    %4 = arith.addf %1, %3 : vector<8x32xf32>
    %c0_5 = arith.constant 0 : index
    %c0_6 = arith.constant 0 : index
    %5 = vector.load %arg3[%c0_5, %c0_6] : memref<1x32xf32, #tpu.memory_space<vmem>>, vector<1x32xf32>
    %c0_7 = arith.constant 0 : index
    %c0_8 = arith.constant 0 : index
    %6 = vector.load %arg4[%c0_7, %c0_8] : memref<1x32xf32, #tpu.memory_space<vmem>>, vector<1x32xf32>
    %cst = arith.constant dense<0.000000e+00> : vector<8xf32>
    %7 = vector.multi_reduction <add>, %4, %cst [1] : vector<8x32xf32> to vector<8xf32>
    %8 = vector.shape_cast %7 : vector<8xf32> to vector<8x1xf32>
    %cst_9 = arith.constant 3.200000e+01 : f32
    %9 = vector.broadcast %cst_9 : f32 to vector<8x1xf32>
    %10 = arith.divf %8, %9 : vector<8x1xf32>
    %11 = vector.broadcast %10 : vector<8x1xf32> to vector<8x32xf32>
    %12 = arith.subf %4, %11 : vector<8x32xf32>
    %13 = arith.mulf %12, %12 : vector<8x32xf32>
    %cst_10 = arith.constant dense<0.000000e+00> : vector<8xf32>
    %14 = vector.multi_reduction <add>, %13, %cst_10 [1] : vector<8x32xf32> to vector<8xf32>
    %15 = vector.shape_cast %14 : vector<8xf32> to vector<8x1xf32>
    %cst_11 = arith.constant 3.200000e+01 : f32
    %16 = vector.broadcast %cst_11 : f32 to vector<8x1xf32>
    %17 = arith.divf %15, %16 : vector<8x1xf32>
    %18 = vector.broadcast %10 : vector<8x1xf32> to vector<8x32xf32>
    %19 = arith.subf %4, %18 : vector<8x32xf32>
    %cst_12 = arith.constant 9.99999974E-6 : f32
    %20 = vector.broadcast %cst_12 : f32 to vector<8x1xf32>
    %21 = arith.addf %17, %20 : vector<8x1xf32>
    %22 = math.rsqrt %21 : vector<8x1xf32>
    %23 = vector.broadcast %22 : vector<8x1xf32> to vector<8x32xf32>
    %24 = arith.mulf %19, %23 : vector<8x32xf32>
    %25 = vector.broadcast %5 : vector<1x32xf32> to vector<8x32xf32>
    %26 = arith.mulf %24, %25 : vector<8x32xf32>
    %27 = vector.broadcast %6 : vector<1x32xf32> to vector<8x32xf32>
    %28 = arith.addf %26, %27 : vector<8x32xf32>
    %c0_13 = arith.constant 0 : index
    %c0_14 = arith.constant 0 : index
    %c0_15 = arith.constant 0 : index
    %29 = vector.load %arg5[%c0_13, %c0_14, %c0_15] : memref<1x8x32xf32, #tpu.memory_space<vmem>>, vector<1x8x32xf32>
    %30 = vector.shape_cast %29 : vector<1x8x32xf32> to vector<8x32xf32>
    %31 = vector.shape_cast %28 : vector<8x32xf32> to vector<1x8x32xf32>
    tpu.vector_store %arg5[%c0_13, %c0_14, %c0_15], %31 {strides = array<i32>} : memref<1x8x32xf32, #tpu.memory_space<vmem>>, vector<1x8x32xf32>,
    return
  }
  func.func @transform_0(%arg0: i32) -> (i32, i32, i32) {
    %c0_i32 = arith.constant 0 : i32
    %c0_i32_0 = arith.constant 0 : i32
    %c0_i32_1 = arith.constant 0 : i32
    return %arg0, %c0_i32, %c0_i32_0 : i32, i32, i32
  }
  func.func @transform_1(%arg0: i32) -> (i32, i32, i32) {
    %c0_i32 = arith.constant 0 : i32
    %c0_i32_0 = arith.constant 0 : i32
    %c0_i32_1 = arith.constant 0 : i32
    return %arg0, %c0_i32, %c0_i32_0 : i32, i32, i32
  }
  func.func @transform_2(%arg0: i32) -> (i32, i32) {
    %c0_i32 = arith.constant 0 : i32
    %c0_i32_0 = arith.constant 0 : i32
    %c0_i32_1 = arith.constant 0 : i32
    return %c0_i32, %c0_i32_0 : i32, i32
  }
  func.func @transform_3(%arg0: i32) -> (i32, i32) {
    %c0_i32 = arith.constant 0 : i32
    %c0_i32_0 = arith.constant 0 : i32
    %c0_i32_1 = arith.constant 0 : i32
    return %c0_i32, %c0_i32_0 : i32, i32
  }
  func.func @transform_4(%arg0: i32) -> (i32, i32, i32) {
    %c0_i32 = arith.constant 0 : i32
    %c0_i32_0 = arith.constant 0 : i32
    %c0_i32_1 = arith.constant 0 : i32
    return %arg0, %c0_i32, %c0_i32_0 : i32, i32, i32
  }
}

module attributes {stable_mosaic.version = 11 : i64} {
  func.func @_ffn_block_kernel(%arg0: i32, %arg1: memref<1x8x32xf32, #tpu.memory_space<vmem>>, %arg2: memref<32x64xf32, #tpu.memory_space<vmem>>, %arg3: memref<1x64xf32, #tpu.memory_space<vmem>>, %arg4: memref<64x32xf32, #tpu.memory_space<vmem>>, %arg5: memref<1x32xf32, #tpu.memory_space<vmem>>, %arg6: memref<1x32xf32, #tpu.memory_space<vmem>>, %arg7: memref<1x32xf32, #tpu.memory_space<vmem>>, %arg8: memref<1x8x32xf32, #tpu.memory_space<vmem>>) attributes {dimension_semantics = [#tpu.dimension_semantics<parallel>], iteration_bounds = array<i64: 2>, scalar_prefetch = 0 : i64, scratch_operands = 0 : i64, tpu.core_type = #tpu.core_type<tc>, window_params = [{transform_indices = @transform_0, window_bounds = array<i64: 1, 8, 32>}, {pipeline_mode = #tpu.pipeline_mode<synchronous>, transform_indices = @transform_1, window_bounds = array<i64: 32, 64>}, {pipeline_mode = #tpu.pipeline_mode<synchronous>, transform_indices = @transform_2, window_bounds = array<i64: 1, 64>}, {pipeline_mode = #tpu.pipeline_mode<synchronous>, transform_indices = @transform_3, window_bounds = array<i64: 64, 32>}, {pipeline_mode = #tpu.pipeline_mode<synchronous>, transform_indices = @transform_4, window_bounds = array<i64: 1, 32>}, {pipeline_mode = #tpu.pipeline_mode<synchronous>, transform_indices = @transform_5, window_bounds = array<i64: 1, 32>}, {pipeline_mode = #tpu.pipeline_mode<synchronous>, transform_indices = @transform_6, window_bounds = array<i64: 1, 32>}, {transform_indices = @transform_7, window_bounds = array<i64: 1, 8, 32>}]} {
    %c0 = arith.constant 0 : index
    %c0_0 = arith.constant 0 : index
    %c0_1 = arith.constant 0 : index
    %0 = vector.load %arg1[%c0, %c0_0, %c0_1] : memref<1x8x32xf32, #tpu.memory_space<vmem>>, vector<1x8x32xf32>
    %1 = vector.shape_cast %0 : vector<1x8x32xf32> to vector<8x32xf32>
    %c0_2 = arith.constant 0 : index
    %c0_3 = arith.constant 0 : index
    %2 = vector.load %arg2[%c0_2, %c0_3] : memref<32x64xf32, #tpu.memory_space<vmem>>, vector<32x64xf32>
    %cst = arith.constant dense<0.000000e+00> : vector<8x64xf32>
    %3 = tpu.matmul %1, %2, %cst {dimension_numbers = #tpu.dot_dimension_numbers<[1], [0], [0], [1], [0, 0, 1, 1], [], []>} : vector<8x32xf32>, vector<32x64xf32>, vector<8x64xf32> -> vector<8x64xf32>
    %c0_4 = arith.constant 0 : index
    %c0_5 = arith.constant 0 : index
    %4 = vector.load %arg3[%c0_4, %c0_5] : memref<1x64xf32, #tpu.memory_space<vmem>>, vector<1x64xf32>
    %5 = vector.broadcast %4 : vector<1x64xf32> to vector<8x64xf32>
    %6 = arith.addf %3, %5 : vector<8x64xf32>
    %cst_6 = arith.constant 0.000000e+00 : f32
    %7 = vector.broadcast %cst_6 : f32 to vector<8x64xf32>
    %8 = arith.maximumf %6, %7 : vector<8x64xf32>
    %c0_7 = arith.constant 0 : index
    %c0_8 = arith.constant 0 : index
    %9 = vector.load %arg4[%c0_7, %c0_8] : memref<64x32xf32, #tpu.memory_space<vmem>>, vector<64x32xf32>
    %cst_9 = arith.constant dense<0.000000e+00> : vector<8x32xf32>
    %10 = tpu.matmul %8, %9, %cst_9 {dimension_numbers = #tpu.dot_dimension_numbers<[1], [0], [0], [1], [0, 0, 1, 1], [], []>} : vector<8x64xf32>, vector<64x32xf32>, vector<8x32xf32> -> vector<8x32xf32>
    %c0_10 = arith.constant 0 : index
    %c0_11 = arith.constant 0 : index
    %11 = vector.load %arg5[%c0_10, %c0_11] : memref<1x32xf32, #tpu.memory_space<vmem>>, vector<1x32xf32>
    %12 = vector.broadcast %11 : vector<1x32xf32> to vector<8x32xf32>
    %13 = arith.addf %10, %12 : vector<8x32xf32>
    %14 = arith.addf %1, %13 : vector<8x32xf32>
    %c0_12 = arith.constant 0 : index
    %c0_13 = arith.constant 0 : index
    %15 = vector.load %arg6[%c0_12, %c0_13] : memref<1x32xf32, #tpu.memory_space<vmem>>, vector<1x32xf32>
    %c0_14 = arith.constant 0 : index
    %c0_15 = arith.constant 0 : index
    %16 = vector.load %arg7[%c0_14, %c0_15] : memref<1x32xf32, #tpu.memory_space<vmem>>, vector<1x32xf32>
    %cst_16 = arith.constant dense<0.000000e+00> : vector<8xf32>
    %17 = vector.multi_reduction <add>, %14, %cst_16 [1] : vector<8x32xf32> to vector<8xf32>
    %18 = vector.shape_cast %17 : vector<8xf32> to vector<8x1xf32>
    %cst_17 = arith.constant 3.200000e+01 : f32
    %19 = vector.broadcast %cst_17 : f32 to vector<8x1xf32>
    %20 = arith.divf %18, %19 : vector<8x1xf32>
    %21 = vector.broadcast %20 : vector<8x1xf32> to vector<8x32xf32>
    %22 = arith.subf %14, %21 : vector<8x32xf32>
    %23 = arith.mulf %22, %22 : vector<8x32xf32>
    %cst_18 = arith.constant dense<0.000000e+00> : vector<8xf32>
    %24 = vector.multi_reduction <add>, %23, %cst_18 [1] : vector<8x32xf32> to vector<8xf32>
    %25 = vector.shape_cast %24 : vector<8xf32> to vector<8x1xf32>
    %cst_19 = arith.constant 3.200000e+01 : f32
    %26 = vector.broadcast %cst_19 : f32 to vector<8x1xf32>
    %27 = arith.divf %25, %26 : vector<8x1xf32>
    %28 = vector.broadcast %20 : vector<8x1xf32> to vector<8x32xf32>
    %29 = arith.subf %14, %28 : vector<8x32xf32>
    %cst_20 = arith.constant 9.99999974E-6 : f32
    %30 = vector.broadcast %cst_20 : f32 to vector<8x1xf32>
    %31 = arith.addf %27, %30 : vector<8x1xf32>
    %32 = math.rsqrt %31 : vector<8x1xf32>
    %33 = vector.broadcast %32 : vector<8x1xf32> to vector<8x32xf32>
    %34 = arith.mulf %29, %33 : vector<8x32xf32>
    %35 = vector.broadcast %15 : vector<1x32xf32> to vector<8x32xf32>
    %36 = arith.mulf %34, %35 : vector<8x32xf32>
    %37 = vector.broadcast %16 : vector<1x32xf32> to vector<8x32xf32>
    %38 = arith.addf %36, %37 : vector<8x32xf32>
    %c0_21 = arith.constant 0 : index
    %c0_22 = arith.constant 0 : index
    %c0_23 = arith.constant 0 : index
    %39 = vector.load %arg8[%c0_21, %c0_22, %c0_23] : memref<1x8x32xf32, #tpu.memory_space<vmem>>, vector<1x8x32xf32>
    %40 = vector.shape_cast %39 : vector<1x8x32xf32> to vector<8x32xf32>
    %41 = vector.shape_cast %38 : vector<8x32xf32> to vector<1x8x32xf32>
    tpu.vector_store %arg8[%c0_21, %c0_22, %c0_23], %41 {strides = array<i32>} : memref<1x8x32xf32, #tpu.memory_space<vmem>>, vector<1x8x32xf32>,
    return
  }
  func.func @transform_0(%arg0: i32) -> (i32, i32, i32) {
    %c0_i32 = arith.constant 0 : i32
    %c0_i32_0 = arith.constant 0 : i32
    %c0_i32_1 = arith.constant 0 : i32
    return %arg0, %c0_i32, %c0_i32_0 : i32, i32, i32
  }
  func.func @transform_1(%arg0: i32) -> (i32, i32) {
    %c0_i32 = arith.constant 0 : i32
    %c0_i32_0 = arith.constant 0 : i32
    %c0_i32_1 = arith.constant 0 : i32
    return %c0_i32, %c0_i32_0 : i32, i32
  }
  func.func @transform_2(%arg0: i32) -> (i32, i32) {
    %c0_i32 = arith.constant 0 : i32
    %c0_i32_0 = arith.constant 0 : i32
    %c0_i32_1 = arith.constant 0 : i32
    return %c0_i32, %c0_i32_0 : i32, i32
  }
  func.func @transform_3(%arg0: i32) -> (i32, i32) {
    %c0_i32 = arith.constant 0 : i32
    %c0_i32_0 = arith.constant 0 : i32
    %c0_i32_1 = arith.constant 0 : i32
    return %c0_i32, %c0_i32_0 : i32, i32
  }
  func.func @transform_4(%arg0: i32) -> (i32, i32) {
    %c0_i32 = arith.constant 0 : i32
    %c0_i32_0 = arith.constant 0 : i32
    %c0_i32_1 = arith.constant 0 : i32
    return %c0_i32, %c0_i32_0 : i32, i32
  }
  func.func @transform_5(%arg0: i32) -> (i32, i32) {
    %c0_i32 = arith.constant 0 : i32
    %c0_i32_0 = arith.constant 0 : i32
    %c0_i32_1 = arith.constant 0 : i32
    return %c0_i32, %c0_i32_0 : i32, i32
  }
  func.func @transform_6(%arg0: i32) -> (i32, i32) {
    %c0_i32 = arith.constant 0 : i32
    %c0_i32_0 = arith.constant 0 : i32
    %c0_i32_1 = arith.constant 0 : i32
    return %c0_i32, %c0_i32_0 : i32, i32
  }
  func.func @transform_7(%arg0: i32) -> (i32, i32, i32) {
    %c0_i32 = arith.constant 0 : i32
    %c0_i32_0 = arith.constant 0 : i32
    %c0_i32_1 = arith.constant 0 : i32
    return %arg0, %c0_i32, %c0_i32_0 : i32, i32, i32
  }
}

module attributes {stable_mosaic.version = 11 : i64} {
  func.func @_gp_kernel(%arg0: memref<2x256xf32, #tpu.memory_space<vmem>>, %arg1: memref<5x8xf32, #tpu.memory_space<vmem>>, %arg2: memref<256x5xf32, #tpu.memory_space<vmem>>, %arg3: memref<1x5xf32, #tpu.memory_space<vmem>>, %arg4: memref<8x256xf32, #tpu.memory_space<vmem>>, %arg5: memref<1x256xf32, #tpu.memory_space<vmem>>, %arg6: memref<2x256xf32, #tpu.memory_space<vmem>>, %arg7: memref<2x5xf32, #tpu.memory_space<vmem>>, %arg8: memref<2x8xf32, #tpu.memory_space<vmem>>) attributes {dimension_semantics = [], scalar_prefetch = 0 : i64, scratch_operands = 0 : i64, tpu.core_type = #tpu.core_type<tc>} {
    %c0 = arith.constant 0 : index
    %c0_0 = arith.constant 0 : index
    %0 = vector.load %arg0[%c0, %c0_0] : memref<2x256xf32, #tpu.memory_space<vmem>>, vector<2x256xf32>
    %c0_1 = arith.constant 0 : index
    %c0_2 = arith.constant 0 : index
    %1 = vector.load %arg2[%c0_1, %c0_2] : memref<256x5xf32, #tpu.memory_space<vmem>>, vector<256x5xf32>
    %cst = arith.constant dense<0.000000e+00> : vector<2x5xf32>
    %2 = tpu.matmul %0, %1, %cst {dimension_numbers = #tpu.dot_dimension_numbers<[1], [0], [0], [1], [0, 0, 1, 1], [], []>} : vector<2x256xf32>, vector<256x5xf32>, vector<2x5xf32> -> vector<2x5xf32>
    %c0_3 = arith.constant 0 : index
    %c0_4 = arith.constant 0 : index
    %3 = vector.load %arg3[%c0_3, %c0_4] : memref<1x5xf32, #tpu.memory_space<vmem>>, vector<1x5xf32>
    %4 = vector.broadcast %3 : vector<1x5xf32> to vector<2x5xf32>
    %5 = arith.addf %2, %4 : vector<2x5xf32>
    %cst_5 = arith.constant dense<0xFF800000> : vector<2xf32>
    %6 = vector.multi_reduction <maximumf>, %5, %cst_5 [1] : vector<2x5xf32> to vector<2xf32>
    %7 = vector.shape_cast %6 : vector<2xf32> to vector<2x1xf32>
    %8 = vector.broadcast %7 : vector<2x1xf32> to vector<2x5xf32>
    %9 = arith.subf %5, %8 : vector<2x5xf32>
    %10 = math.exp %9 : vector<2x5xf32>
    %cst_6 = arith.constant dense<0.000000e+00> : vector<2xf32>
    %11 = vector.multi_reduction <add>, %10, %cst_6 [1] : vector<2x5xf32> to vector<2xf32>
    %12 = vector.shape_cast %11 : vector<2xf32> to vector<2x1xf32>
    %13 = tpu.reciprocal %12 {approx = true} : vector<2x1xf32> -> vector<2x1xf32>
    %14 = vector.broadcast %13 : vector<2x1xf32> to vector<2x5xf32>
    %15 = arith.mulf %10, %14 : vector<2x5xf32>
    %c0_7 = arith.constant 0 : index
    %c0_8 = arith.constant 0 : index
    %16 = vector.load %arg7[%c0_7, %c0_8] : memref<2x5xf32, #tpu.memory_space<vmem>>, vector<2x5xf32>
    tpu.vector_store %arg7[%c0_7, %c0_8], %15 {strides = array<i32>} : memref<2x5xf32, #tpu.memory_space<vmem>>, vector<2x5xf32>,
    %c0_9 = arith.constant 0 : index
    %c0_10 = arith.constant 0 : index
    %17 = vector.load %arg1[%c0_9, %c0_10] : memref<5x8xf32, #tpu.memory_space<vmem>>, vector<5x8xf32>
    %c0_11 = arith.constant 0 : index
    %c0_12 = arith.constant 0 : index
    %18 = vector.load %arg4[%c0_11, %c0_12] : memref<8x256xf32, #tpu.memory_space<vmem>>, vector<8x256xf32>
    %cst_13 = arith.constant dense<0.000000e+00> : vector<5x256xf32>
    %19 = tpu.matmul %17, %18, %cst_13 {dimension_numbers = #tpu.dot_dimension_numbers<[1], [0], [0], [1], [0, 0, 1, 1], [], []>} : vector<5x8xf32>, vector<8x256xf32>, vector<5x256xf32> -> vector<5x256xf32>
    %c0_14 = arith.constant 0 : index
    %c0_15 = arith.constant 0 : index
    %20 = vector.load %arg5[%c0_14, %c0_15] : memref<1x256xf32, #tpu.memory_space<vmem>>, vector<1x256xf32>
    %21 = vector.broadcast %20 : vector<1x256xf32> to vector<5x256xf32>
    %22 = arith.addf %19, %21 : vector<5x256xf32>
    %cst_16 = arith.constant dense<0.000000e+00> : vector<2x256xf32>
    %23 = tpu.matmul %15, %22, %cst_16 {dimension_numbers = #tpu.dot_dimension_numbers<[1], [0], [0], [1], [0, 0, 1, 1], [], []>} : vector<2x5xf32>, vector<5x256xf32>, vector<2x256xf32> -> vector<2x256xf32>
    %c0_17 = arith.constant 0 : index
    %c0_18 = arith.constant 0 : index
    %24 = vector.load %arg6[%c0_17, %c0_18] : memref<2x256xf32, #tpu.memory_space<vmem>>, vector<2x256xf32>
    tpu.vector_store %arg6[%c0_17, %c0_18], %23 {strides = array<i32>} : memref<2x256xf32, #tpu.memory_space<vmem>>, vector<2x256xf32>,
    %c0_19 = arith.constant 0 : index
    %c0_20 = arith.constant 0 : index
    %25 = vector.load %arg1[%c0_19, %c0_20] : memref<5x8xf32, #tpu.memory_space<vmem>>, vector<5x8xf32>
    %cst_21 = arith.constant dense<0.000000e+00> : vector<2x8xf32>
    %26 = tpu.matmul %15, %25, %cst_21 {dimension_numbers = #tpu.dot_dimension_numbers<[1], [0], [0], [1], [0, 0, 1, 1], [], []>} : vector<2x5xf32>, vector<5x8xf32>, vector<2x8xf32> -> vector<2x8xf32>
    %c0_22 = arith.constant 0 : index
    %c0_23 = arith.constant 0 : index
    %27 = vector.load %arg8[%c0_22, %c0_23] : memref<2x8xf32, #tpu.memory_space<vmem>>, vector<2x8xf32>
    tpu.vector_store %arg8[%c0_22, %c0_23], %26 {strides = array<i32>} : memref<2x8xf32, #tpu.memory_space<vmem>>, vector<2x8xf32>,
    return
  }
}

module attributes {stable_mosaic.version = 11 : i64} {
  func.func @_attn_block_kernel(%arg0: i32, %arg1: memref<1x8x32xf32, #tpu.memory_space<vmem>>, %arg2: memref<1x8x32xf32, #tpu.memory_space<vmem>>, %arg3: memref<32x32xf32, #tpu.memory_space<vmem>>, %arg4: memref<1x32xf32, #tpu.memory_space<vmem>>, %arg5: memref<32x32xf32, #tpu.memory_space<vmem>>, %arg6: memref<1x32xf32, #tpu.memory_space<vmem>>, %arg7: memref<32x32xf32, #tpu.memory_space<vmem>>, %arg8: memref<1x32xf32, #tpu.memory_space<vmem>>, %arg9: memref<32x32xf32, #tpu.memory_space<vmem>>, %arg10: memref<1x32xf32, #tpu.memory_space<vmem>>, %arg11: memref<1x32xf32, #tpu.memory_space<vmem>>, %arg12: memref<1x32xf32, #tpu.memory_space<vmem>>, %arg13: memref<1x8x32xf32, #tpu.memory_space<vmem>>) attributes {dimension_semantics = [#tpu.dimension_semantics<parallel>], iteration_bounds = array<i64: 2>, scalar_prefetch = 0 : i64, scratch_operands = 0 : i64, tpu.core_type = #tpu.core_type<tc>, window_params = [{transform_indices = @transform_0, window_bounds = array<i64: 1, 8, 32>}, {transform_indices = @transform_1, window_bounds = array<i64: 1, 8, 32>}, {pipeline_mode = #tpu.pipeline_mode<synchronous>, transform_indices = @transform_2, window_bounds = array<i64: 32, 32>}, {pipeline_mode = #tpu.pipeline_mode<synchronous>, transform_indices = @transform_3, window_bounds = array<i64: 1, 32>}, {pipeline_mode = #tpu.pipeline_mode<synchronous>, transform_indices = @transform_4, window_bounds = array<i64: 32, 32>}, {pipeline_mode = #tpu.pipeline_mode<synchronous>, transform_indices = @transform_5, window_bounds = array<i64: 1, 32>}, {pipeline_mode = #tpu.pipeline_mode<synchronous>, transform_indices = @transform_6, window_bounds = array<i64: 32, 32>}, {pipeline_mode = #tpu.pipeline_mode<synchronous>, transform_indices = @transform_7, window_bounds = array<i64: 1, 32>}, {pipeline_mode = #tpu.pipeline_mode<synchronous>, transform_indices = @transform_8, window_bounds = array<i64: 32, 32>}, {pipeline_mode = #tpu.pipeline_mode<synchronous>, transform_indices = @transform_9, window_bounds = array<i64: 1, 32>}, {pipeline_mode = #tpu.pipeline_mode<synchronous>, transform_indices = @transform_10, window_bounds = array<i64: 1, 32>}, {pipeline_mode = #tpu.pipeline_mode<synchronous>, transform_indices = @transform_11, window_bounds = array<i64: 1, 32>}, {transform_indices = @transform_12, window_bounds = array<i64: 1, 8, 32>}]} {
    %c0 = arith.constant 0 : index
    %c0_0 = arith.constant 0 : index
    %c0_1 = arith.constant 0 : index
    %0 = vector.load %arg1[%c0, %c0_0, %c0_1] : memref<1x8x32xf32, #tpu.memory_space<vmem>>, vector<1x8x32xf32>
    %1 = vector.shape_cast %0 : vector<1x8x32xf32> to vector<8x32xf32>
    %c0_2 = arith.constant 0 : index
    %c0_3 = arith.constant 0 : index
    %c0_4 = arith.constant 0 : index
    %2 = vector.load %arg2[%c0_2, %c0_3, %c0_4] : memref<1x8x32xf32, #tpu.memory_space<vmem>>, vector<1x8x32xf32>
    %3 = vector.shape_cast %2 : vector<1x8x32xf32> to vector<8x32xf32>
    %c0_5 = arith.constant 0 : index
    %c0_6 = arith.constant 0 : index
    %4 = vector.load %arg3[%c0_5, %c0_6] : memref<32x32xf32, #tpu.memory_space<vmem>>, vector<32x32xf32>
    %cst = arith.constant dense<0.000000e+00> : vector<8x32xf32>
    %5 = tpu.matmul %1, %4, %cst {dimension_numbers = #tpu.dot_dimension_numbers<[1], [0], [0], [1], [0, 0, 1, 1], [], []>} : vector<8x32xf32>, vector<32x32xf32>, vector<8x32xf32> -> vector<8x32xf32>
    %c0_7 = arith.constant 0 : index
    %c0_8 = arith.constant 0 : index
    %6 = vector.load %arg4[%c0_7, %c0_8] : memref<1x32xf32, #tpu.memory_space<vmem>>, vector<1x32xf32>
    %7 = vector.broadcast %6 : vector<1x32xf32> to vector<8x32xf32>
    %8 = arith.addf %5, %7 : vector<8x32xf32>
    %c0_9 = arith.constant 0 : index
    %c0_10 = arith.constant 0 : index
    %9 = vector.load %arg5[%c0_9, %c0_10] : memref<32x32xf32, #tpu.memory_space<vmem>>, vector<32x32xf32>
    %cst_11 = arith.constant dense<0.000000e+00> : vector<8x32xf32>
    %10 = tpu.matmul %3, %9, %cst_11 {dimension_numbers = #tpu.dot_dimension_numbers<[1], [0], [0], [1], [0, 0, 1, 1], [], []>} : vector<8x32xf32>, vector<32x32xf32>, vector<8x32xf32> -> vector<8x32xf32>
    %c0_12 = arith.constant 0 : index
    %c0_13 = arith.constant 0 : index
    %11 = vector.load %arg6[%c0_12, %c0_13] : memref<1x32xf32, #tpu.memory_space<vmem>>, vector<1x32xf32>
    %12 = vector.broadcast %11 : vector<1x32xf32> to vector<8x32xf32>
    %13 = arith.addf %10, %12 : vector<8x32xf32>
    %c0_14 = arith.constant 0 : index
    %c0_15 = arith.constant 0 : index
    %14 = vector.load %arg7[%c0_14, %c0_15] : memref<32x32xf32, #tpu.memory_space<vmem>>, vector<32x32xf32>
    %cst_16 = arith.constant dense<0.000000e+00> : vector<8x32xf32>
    %15 = tpu.matmul %3, %14, %cst_16 {dimension_numbers = #tpu.dot_dimension_numbers<[1], [0], [0], [1], [0, 0, 1, 1], [], []>} : vector<8x32xf32>, vector<32x32xf32>, vector<8x32xf32> -> vector<8x32xf32>
    %c0_17 = arith.constant 0 : index
    %c0_18 = arith.constant 0 : index
    %16 = vector.load %arg8[%c0_17, %c0_18] : memref<1x32xf32, #tpu.memory_space<vmem>>, vector<1x32xf32>
    %17 = vector.broadcast %16 : vector<1x32xf32> to vector<8x32xf32>
    %18 = arith.addf %15, %17 : vector<8x32xf32>
    %19 = vector.extract_strided_slice %8 {offsets = [0, 0], sizes = [8, 8], strides = [1, 1]} : vector<8x32xf32> to vector<8x8xf32>
    %20 = vector.extract_strided_slice %13 {offsets = [0, 0], sizes = [8, 8], strides = [1, 1]} : vector<8x32xf32> to vector<8x8xf32>
    %21 = vector.extract_strided_slice %18 {offsets = [0, 0], sizes = [8, 8], strides = [1, 1]} : vector<8x32xf32> to vector<8x8xf32>
    %cst_19 = arith.constant dense<0.000000e+00> : vector<8x8xf32>
    %22 = tpu.matmul %19, %20, %cst_19 {dimension_numbers = #tpu.dot_dimension_numbers<[1], [1], [0], [0], [0, 0, 1, 0], [], []>} : vector<8x8xf32>, vector<8x8xf32>, vector<8x8xf32> -> vector<8x8xf32>
    %cst_20 = arith.constant 0.353553385 : f32
    %23 = vector.broadcast %cst_20 : f32 to vector<8x8xf32>
    %24 = arith.mulf %22, %23 : vector<8x8xf32>
    %cst_21 = arith.constant dense<0xFF800000> : vector<8xf32>
    %25 = vector.multi_reduction <maximumf>, %24, %cst_21 [1] : vector<8x8xf32> to vector<8xf32>
    %26 = vector.shape_cast %25 : vector<8xf32> to vector<8x1xf32>
    %27 = vector.broadcast %26 : vector<8x1xf32> to vector<8x8xf32>
    %28 = arith.subf %24, %27 : vector<8x8xf32>
    %29 = math.exp %28 : vector<8x8xf32>
    %cst_22 = arith.constant dense<0.000000e+00> : vector<8xf32>
    %30 = vector.multi_reduction <add>, %29, %cst_22 [1] : vector<8x8xf32> to vector<8xf32>
    %31 = vector.shape_cast %30 : vector<8xf32> to vector<8x1xf32>
    %32 = tpu.reciprocal %31 {approx = true} : vector<8x1xf32> -> vector<8x1xf32>
    %33 = vector.broadcast %32 : vector<8x1xf32> to vector<8x8xf32>
    %34 = arith.mulf %29, %33 : vector<8x8xf32>
    %cst_23 = arith.constant dense<0.000000e+00> : vector<8x8xf32>
    %35 = tpu.matmul %34, %21, %cst_23 {dimension_numbers = #tpu.dot_dimension_numbers<[1], [0], [0], [1], [0, 0, 1, 1], [], []>} : vector<8x8xf32>, vector<8x8xf32>, vector<8x8xf32> -> vector<8x8xf32>
    %c0_24 = arith.constant 0 : index
    %c0_25 = arith.constant 0 : index
    %36 = vector.load %arg9[%c0_24, %c0_25] : memref<32x32xf32, #tpu.memory_space<vmem>>, vector<8x32xf32>
    %cst_26 = arith.constant dense<0.000000e+00> : vector<8x32xf32>
    %37 = tpu.matmul %35, %36, %cst_26 {dimension_numbers = #tpu.dot_dimension_numbers<[1], [0], [0], [1], [0, 0, 1, 1], [], []>} : vector<8x8xf32>, vector<8x32xf32>, vector<8x32xf32> -> vector<8x32xf32>
    %38 = vector.extract_strided_slice %8 {offsets = [0, 8], sizes = [8, 8], strides = [1, 1]} : vector<8x32xf32> to vector<8x8xf32>
    %39 = vector.extract_strided_slice %13 {offsets = [0, 8], sizes = [8, 8], strides = [1, 1]} : vector<8x32xf32> to vector<8x8xf32>
    %40 = vector.extract_strided_slice %18 {offsets = [0, 8], sizes = [8, 8], strides = [1, 1]} : vector<8x32xf32> to vector<8x8xf32>
    %cst_27 = arith.constant dense<0.000000e+00> : vector<8x8xf32>
    %41 = tpu.matmul %38, %39, %cst_27 {dimension_numbers = #tpu.dot_dimension_numbers<[1], [1], [0], [0], [0, 0, 1, 0], [], []>} : vector<8x8xf32>, vector<8x8xf32>, vector<8x8xf32> -> vector<8x8xf32>
    %cst_28 = arith.constant 0.353553385 : f32
    %42 = vector.broadcast %cst_28 : f32 to vector<8x8xf32>
    %43 = arith.mulf %41, %42 : vector<8x8xf32>
    %cst_29 = arith.constant dense<0xFF800000> : vector<8xf32>
    %44 = vector.multi_reduction <maximumf>, %43, %cst_29 [1] : vector<8x8xf32> to vector<8xf32>
    %45 = vector.shape_cast %44 : vector<8xf32> to vector<8x1xf32>
    %46 = vector.broadcast %45 : vector<8x1xf32> to vector<8x8xf32>
    %47 = arith.subf %43, %46 : vector<8x8xf32>
    %48 = math.exp %47 : vector<8x8xf32>
    %cst_30 = arith.constant dense<0.000000e+00> : vector<8xf32>
    %49 = vector.multi_reduction <add>, %48, %cst_30 [1] : vector<8x8xf32> to vector<8xf32>
    %50 = vector.shape_cast %49 : vector<8xf32> to vector<8x1xf32>
    %51 = tpu.reciprocal %50 {approx = true} : vector<8x1xf32> -> vector<8x1xf32>
    %52 = vector.broadcast %51 : vector<8x1xf32> to vector<8x8xf32>
    %53 = arith.mulf %48, %52 : vector<8x8xf32>
    %cst_31 = arith.constant dense<0.000000e+00> : vector<8x8xf32>
    %54 = tpu.matmul %53, %40, %cst_31 {dimension_numbers = #tpu.dot_dimension_numbers<[1], [0], [0], [1], [0, 0, 1, 1], [], []>} : vector<8x8xf32>, vector<8x8xf32>, vector<8x8xf32> -> vector<8x8xf32>
    %c8 = arith.constant 8 : index
    %c0_32 = arith.constant 0 : index
    %55 = vector.load %arg9[%c8, %c0_32] : memref<32x32xf32, #tpu.memory_space<vmem>>, vector<8x32xf32>
    %cst_33 = arith.constant dense<0.000000e+00> : vector<8x32xf32>
    %56 = tpu.matmul %54, %55, %cst_33 {dimension_numbers = #tpu.dot_dimension_numbers<[1], [0], [0], [1], [0, 0, 1, 1], [], []>} : vector<8x8xf32>, vector<8x32xf32>, vector<8x32xf32> -> vector<8x32xf32>
    %57 = arith.addf %37, %56 : vector<8x32xf32>
    %58 = vector.extract_strided_slice %8 {offsets = [0, 16], sizes = [8, 8], strides = [1, 1]} : vector<8x32xf32> to vector<8x8xf32>
    %59 = vector.extract_strided_slice %13 {offsets = [0, 16], sizes = [8, 8], strides = [1, 1]} : vector<8x32xf32> to vector<8x8xf32>
    %60 = vector.extract_strided_slice %18 {offsets = [0, 16], sizes = [8, 8], strides = [1, 1]} : vector<8x32xf32> to vector<8x8xf32>
    %cst_34 = arith.constant dense<0.000000e+00> : vector<8x8xf32>
    %61 = tpu.matmul %58, %59, %cst_34 {dimension_numbers = #tpu.dot_dimension_numbers<[1], [1], [0], [0], [0, 0, 1, 0], [], []>} : vector<8x8xf32>, vector<8x8xf32>, vector<8x8xf32> -> vector<8x8xf32>
    %cst_35 = arith.constant 0.353553385 : f32
    %62 = vector.broadcast %cst_35 : f32 to vector<8x8xf32>
    %63 = arith.mulf %61, %62 : vector<8x8xf32>
    %cst_36 = arith.constant dense<0xFF800000> : vector<8xf32>
    %64 = vector.multi_reduction <maximumf>, %63, %cst_36 [1] : vector<8x8xf32> to vector<8xf32>
    %65 = vector.shape_cast %64 : vector<8xf32> to vector<8x1xf32>
    %66 = vector.broadcast %65 : vector<8x1xf32> to vector<8x8xf32>
    %67 = arith.subf %63, %66 : vector<8x8xf32>
    %68 = math.exp %67 : vector<8x8xf32>
    %cst_37 = arith.constant dense<0.000000e+00> : vector<8xf32>
    %69 = vector.multi_reduction <add>, %68, %cst_37 [1] : vector<8x8xf32> to vector<8xf32>
    %70 = vector.shape_cast %69 : vector<8xf32> to vector<8x1xf32>
    %71 = tpu.reciprocal %70 {approx = true} : vector<8x1xf32> -> vector<8x1xf32>
    %72 = vector.broadcast %71 : vector<8x1xf32> to vector<8x8xf32>
    %73 = arith.mulf %68, %72 : vector<8x8xf32>
    %cst_38 = arith.constant dense<0.000000e+00> : vector<8x8xf32>
    %74 = tpu.matmul %73, %60, %cst_38 {dimension_numbers = #tpu.dot_dimension_numbers<[1], [0], [0], [1], [0, 0, 1, 1], [], []>} : vector<8x8xf32>, vector<8x8xf32>, vector<8x8xf32> -> vector<8x8xf32>
    %c16 = arith.constant 16 : index
    %c0_39 = arith.constant 0 : index
    %75 = vector.load %arg9[%c16, %c0_39] : memref<32x32xf32, #tpu.memory_space<vmem>>, vector<8x32xf32>
    %cst_40 = arith.constant dense<0.000000e+00> : vector<8x32xf32>
    %76 = tpu.matmul %74, %75, %cst_40 {dimension_numbers = #tpu.dot_dimension_numbers<[1], [0], [0], [1], [0, 0, 1, 1], [], []>} : vector<8x8xf32>, vector<8x32xf32>, vector<8x32xf32> -> vector<8x32xf32>
    %77 = arith.addf %57, %76 : vector<8x32xf32>
    %78 = vector.extract_strided_slice %8 {offsets = [0, 24], sizes = [8, 8], strides = [1, 1]} : vector<8x32xf32> to vector<8x8xf32>
    %79 = vector.extract_strided_slice %13 {offsets = [0, 24], sizes = [8, 8], strides = [1, 1]} : vector<8x32xf32> to vector<8x8xf32>
    %80 = vector.extract_strided_slice %18 {offsets = [0, 24], sizes = [8, 8], strides = [1, 1]} : vector<8x32xf32> to vector<8x8xf32>
    %cst_41 = arith.constant dense<0.000000e+00> : vector<8x8xf32>
    %81 = tpu.matmul %78, %79, %cst_41 {dimension_numbers = #tpu.dot_dimension_numbers<[1], [1], [0], [0], [0, 0, 1, 0], [], []>} : vector<8x8xf32>, vector<8x8xf32>, vector<8x8xf32> -> vector<8x8xf32>
    %cst_42 = arith.constant 0.353553385 : f32
    %82 = vector.broadcast %cst_42 : f32 to vector<8x8xf32>
    %83 = arith.mulf %81, %82 : vector<8x8xf32>
    %cst_43 = arith.constant dense<0xFF800000> : vector<8xf32>
    %84 = vector.multi_reduction <maximumf>, %83, %cst_43 [1] : vector<8x8xf32> to vector<8xf32>
    %85 = vector.shape_cast %84 : vector<8xf32> to vector<8x1xf32>
    %86 = vector.broadcast %85 : vector<8x1xf32> to vector<8x8xf32>
    %87 = arith.subf %83, %86 : vector<8x8xf32>
    %88 = math.exp %87 : vector<8x8xf32>
    %cst_44 = arith.constant dense<0.000000e+00> : vector<8xf32>
    %89 = vector.multi_reduction <add>, %88, %cst_44 [1] : vector<8x8xf32> to vector<8xf32>
    %90 = vector.shape_cast %89 : vector<8xf32> to vector<8x1xf32>
    %91 = tpu.reciprocal %90 {approx = true} : vector<8x1xf32> -> vector<8x1xf32>
    %92 = vector.broadcast %91 : vector<8x1xf32> to vector<8x8xf32>
    %93 = arith.mulf %88, %92 : vector<8x8xf32>
    %cst_45 = arith.constant dense<0.000000e+00> : vector<8x8xf32>
    %94 = tpu.matmul %93, %80, %cst_45 {dimension_numbers = #tpu.dot_dimension_numbers<[1], [0], [0], [1], [0, 0, 1, 1], [], []>} : vector<8x8xf32>, vector<8x8xf32>, vector<8x8xf32> -> vector<8x8xf32>
    %c24 = arith.constant 24 : index
    %c0_46 = arith.constant 0 : index
    %95 = vector.load %arg9[%c24, %c0_46] : memref<32x32xf32, #tpu.memory_space<vmem>>, vector<8x32xf32>
    %cst_47 = arith.constant dense<0.000000e+00> : vector<8x32xf32>
    %96 = tpu.matmul %94, %95, %cst_47 {dimension_numbers = #tpu.dot_dimension_numbers<[1], [0], [0], [1], [0, 0, 1, 1], [], []>} : vector<8x8xf32>, vector<8x32xf32>, vector<8x32xf32> -> vector<8x32xf32>
    %97 = arith.addf %77, %96 : vector<8x32xf32>
    %98 = arith.addf %1, %97 : vector<8x32xf32>
    %c0_48 = arith.constant 0 : index
    %c0_49 = arith.constant 0 : index
    %99 = vector.load %arg10[%c0_48, %c0_49] : memref<1x32xf32, #tpu.memory_space<vmem>>, vector<1x32xf32>
    %100 = vector.broadcast %99 : vector<1x32xf32> to vector<8x32xf32>
    %101 = arith.addf %98, %100 : vector<8x32xf32>
    %c0_50 = arith.constant 0 : index
    %c0_51 = arith.constant 0 : index
    %102 = vector.load %arg11[%c0_50, %c0_51] : memref<1x32xf32, #tpu.memory_space<vmem>>, vector<1x32xf32>
    %c0_52 = arith.constant 0 : index
    %c0_53 = arith.constant 0 : index
    %103 = vector.load %arg12[%c0_52, %c0_53] : memref<1x32xf32, #tpu.memory_space<vmem>>, vector<1x32xf32>
    %cst_54 = arith.constant dense<0.000000e+00> : vector<8xf32>
    %104 = vector.multi_reduction <add>, %101, %cst_54 [1] : vector<8x32xf32> to vector<8xf32>
    %105 = vector.shape_cast %104 : vector<8xf32> to vector<8x1xf32>
    %cst_55 = arith.constant 3.200000e+01 : f32
    %106 = vector.broadcast %cst_55 : f32 to vector<8x1xf32>
    %107 = arith.divf %105, %106 : vector<8x1xf32>
    %108 = vector.broadcast %107 : vector<8x1xf32> to vector<8x32xf32>
    %109 = arith.subf %101, %108 : vector<8x32xf32>
    %110 = arith.mulf %109, %109 : vector<8x32xf32>
    %cst_56 = arith.constant dense<0.000000e+00> : vector<8xf32>
    %111 = vector.multi_reduction <add>, %110, %cst_56 [1] : vector<8x32xf32> to vector<8xf32>
    %112 = vector.shape_cast %111 : vector<8xf32> to vector<8x1xf32>
    %cst_57 = arith.constant 3.200000e+01 : f32
    %113 = vector.broadcast %cst_57 : f32 to vector<8x1xf32>
    %114 = arith.divf %112, %113 : vector<8x1xf32>
    %115 = vector.broadcast %107 : vector<8x1xf32> to vector<8x32xf32>
    %116 = arith.subf %101, %115 : vector<8x32xf32>
    %cst_58 = arith.constant 9.99999974E-6 : f32
    %117 = vector.broadcast %cst_58 : f32 to vector<8x1xf32>
    %118 = arith.addf %114, %117 : vector<8x1xf32>
    %119 = math.rsqrt %118 : vector<8x1xf32>
    %120 = vector.broadcast %119 : vector<8x1xf32> to vector<8x32xf32>
    %121 = arith.mulf %116, %120 : vector<8x32xf32>
    %122 = vector.broadcast %102 : vector<1x32xf32> to vector<8x32xf32>
    %123 = arith.mulf %121, %122 : vector<8x32xf32>
    %124 = vector.broadcast %103 : vector<1x32xf32> to vector<8x32xf32>
    %125 = arith.addf %123, %124 : vector<8x32xf32>
    %c0_59 = arith.constant 0 : index
    %c0_60 = arith.constant 0 : index
    %c0_61 = arith.constant 0 : index
    %126 = vector.load %arg13[%c0_59, %c0_60, %c0_61] : memref<1x8x32xf32, #tpu.memory_space<vmem>>, vector<1x8x32xf32>
    %127 = vector.shape_cast %126 : vector<1x8x32xf32> to vector<8x32xf32>
    %128 = vector.shape_cast %125 : vector<8x32xf32> to vector<1x8x32xf32>
    tpu.vector_store %arg13[%c0_59, %c0_60, %c0_61], %128 {strides = array<i32>} : memref<1x8x32xf32, #tpu.memory_space<vmem>>, vector<1x8x32xf32>,
    return
  }
  func.func @transform_0(%arg0: i32) -> (i32, i32, i32) {
    %c0_i32 = arith.constant 0 : i32
    %c0_i32_0 = arith.constant 0 : i32
    %c0_i32_1 = arith.constant 0 : i32
    return %arg0, %c0_i32, %c0_i32_0 : i32, i32, i32
  }
  func.func @transform_1(%arg0: i32) -> (i32, i32, i32) {
    %c0_i32 = arith.constant 0 : i32
    %c0_i32_0 = arith.constant 0 : i32
    %c0_i32_1 = arith.constant 0 : i32
    return %arg0, %c0_i32, %c0_i32_0 : i32, i32, i32
  }
  func.func @transform_2(%arg0: i32) -> (i32, i32) {
    %c0_i32 = arith.constant 0 : i32
    %c0_i32_0 = arith.constant 0 : i32
    %c0_i32_1 = arith.constant 0 : i32
    return %c0_i32, %c0_i32_0 : i32, i32
  }
  func.func @transform_3(%arg0: i32) -> (i32, i32) {
    %c0_i32 = arith.constant 0 : i32
    %c0_i32_0 = arith.constant 0 : i32
    %c0_i32_1 = arith.constant 0 : i32
    return %c0_i32, %c0_i32_0 : i32, i32
  }
  func.func @transform_4(%arg0: i32) -> (i32, i32) {
    %c0_i32 = arith.constant 0 : i32
    %c0_i32_0 = arith.constant 0 : i32
    %c0_i32_1 = arith.constant 0 : i32
    return %c0_i32, %c0_i32_0 : i32, i32
  }
  func.func @transform_5(%arg0: i32) -> (i32, i32) {
    %c0_i32 = arith.constant 0 : i32
    %c0_i32_0 = arith.constant 0 : i32
    %c0_i32_1 = arith.constant 0 : i32
    return %c0_i32, %c0_i32_0 : i32, i32
  }
  func.func @transform_6(%arg0: i32) -> (i32, i32) {
    %c0_i32 = arith.constant 0 : i32
    %c0_i32_0 = arith.constant 0 : i32
    %c0_i32_1 = arith.constant 0 : i32
    return %c0_i32, %c0_i32_0 : i32, i32
  }
  func.func @transform_7(%arg0: i32) -> (i32, i32) {
    %c0_i32 = arith.constant 0 : i32
    %c0_i32_0 = arith.constant 0 : i32
    %c0_i32_1 = arith.constant 0 : i32
    return %c0_i32, %c0_i32_0 : i32, i32
  }
  func.func @transform_8(%arg0: i32) -> (i32, i32) {
    %c0_i32 = arith.constant 0 : i32
    %c0_i32_0 = arith.constant 0 : i32
    %c0_i32_1 = arith.constant 0 : i32
    return %c0_i32, %c0_i32_0 : i32, i32
  }
  func.func @transform_9(%arg0: i32) -> (i32, i32) {
    %c0_i32 = arith.constant 0 : i32
    %c0_i32_0 = arith.constant 0 : i32
    %c0_i32_1 = arith.constant 0 : i32
    return %c0_i32, %c0_i32_0 : i32, i32
  }
  func.func @transform_10(%arg0: i32) -> (i32, i32) {
    %c0_i32 = arith.constant 0 : i32
    %c0_i32_0 = arith.constant 0 : i32
    %c0_i32_1 = arith.constant 0 : i32
    return %c0_i32, %c0_i32_0 : i32, i32
  }
  func.func @transform_11(%arg0: i32) -> (i32, i32) {
    %c0_i32 = arith.constant 0 : i32
    %c0_i32_0 = arith.constant 0 : i32
    %c0_i32_1 = arith.constant 0 : i32
    return %c0_i32, %c0_i32_0 : i32, i32
  }
  func.func @transform_12(%arg0: i32) -> (i32, i32, i32) {
    %c0_i32 = arith.constant 0 : i32
    %c0_i32_0 = arith.constant 0 : i32
    %c0_i32_1 = arith.constant 0 : i32
    return %arg0, %c0_i32, %c0_i32_0 : i32, i32, i32
  }
}

module attributes {stable_mosaic.version = 11 : i64} {
  func.func @_ln_kernel(%arg0: i32, %arg1: memref<1x8x32xf32, #tpu.memory_space<vmem>>, %arg2: memref<1x32xf32, #tpu.memory_space<vmem>>, %arg3: memref<1x32xf32, #tpu.memory_space<vmem>>, %arg4: memref<1x8x32xf32, #tpu.memory_space<vmem>>) attributes {dimension_semantics = [#tpu.dimension_semantics<parallel>], iteration_bounds = array<i64: 2>, scalar_prefetch = 0 : i64, scratch_operands = 0 : i64, tpu.core_type = #tpu.core_type<tc>, window_params = [{transform_indices = @transform_0, window_bounds = array<i64: 1, 8, 32>}, {pipeline_mode = #tpu.pipeline_mode<synchronous>, transform_indices = @transform_1, window_bounds = array<i64: 1, 32>}, {pipeline_mode = #tpu.pipeline_mode<synchronous>, transform_indices = @transform_2, window_bounds = array<i64: 1, 32>}, {transform_indices = @transform_3, window_bounds = array<i64: 1, 8, 32>}]} {
    %c0 = arith.constant 0 : index
    %c0_0 = arith.constant 0 : index
    %c0_1 = arith.constant 0 : index
    %0 = vector.load %arg1[%c0, %c0_0, %c0_1] : memref<1x8x32xf32, #tpu.memory_space<vmem>>, vector<1x8x32xf32>
    %1 = vector.shape_cast %0 : vector<1x8x32xf32> to vector<8x32xf32>
    %c0_2 = arith.constant 0 : index
    %c0_3 = arith.constant 0 : index
    %2 = vector.load %arg2[%c0_2, %c0_3] : memref<1x32xf32, #tpu.memory_space<vmem>>, vector<1x32xf32>
    %c0_4 = arith.constant 0 : index
    %c0_5 = arith.constant 0 : index
    %3 = vector.load %arg3[%c0_4, %c0_5] : memref<1x32xf32, #tpu.memory_space<vmem>>, vector<1x32xf32>
    %cst = arith.constant dense<0.000000e+00> : vector<8xf32>
    %4 = vector.multi_reduction <add>, %1, %cst [1] : vector<8x32xf32> to vector<8xf32>
    %5 = vector.shape_cast %4 : vector<8xf32> to vector<8x1xf32>
    %cst_6 = arith.constant 3.200000e+01 : f32
    %6 = vector.broadcast %cst_6 : f32 to vector<8x1xf32>
    %7 = arith.divf %5, %6 : vector<8x1xf32>
    %8 = vector.broadcast %7 : vector<8x1xf32> to vector<8x32xf32>
    %9 = arith.subf %1, %8 : vector<8x32xf32>
    %10 = arith.mulf %9, %9 : vector<8x32xf32>
    %cst_7 = arith.constant dense<0.000000e+00> : vector<8xf32>
    %11 = vector.multi_reduction <add>, %10, %cst_7 [1] : vector<8x32xf32> to vector<8xf32>
    %12 = vector.shape_cast %11 : vector<8xf32> to vector<8x1xf32>
    %cst_8 = arith.constant 3.200000e+01 : f32
    %13 = vector.broadcast %cst_8 : f32 to vector<8x1xf32>
    %14 = arith.divf %12, %13 : vector<8x1xf32>
    %15 = vector.broadcast %7 : vector<8x1xf32> to vector<8x32xf32>
    %16 = arith.subf %1, %15 : vector<8x32xf32>
    %cst_9 = arith.constant 9.99999974E-6 : f32
    %17 = vector.broadcast %cst_9 : f32 to vector<8x1xf32>
    %18 = arith.addf %14, %17 : vector<8x1xf32>
    %19 = math.rsqrt %18 : vector<8x1xf32>
    %20 = vector.broadcast %19 : vector<8x1xf32> to vector<8x32xf32>
    %21 = arith.mulf %16, %20 : vector<8x32xf32>
    %22 = vector.broadcast %2 : vector<1x32xf32> to vector<8x32xf32>
    %23 = arith.mulf %21, %22 : vector<8x32xf32>
    %24 = vector.broadcast %3 : vector<1x32xf32> to vector<8x32xf32>
    %25 = arith.addf %23, %24 : vector<8x32xf32>
    %c0_10 = arith.constant 0 : index
    %c0_11 = arith.constant 0 : index
    %c0_12 = arith.constant 0 : index
    %26 = vector.load %arg4[%c0_10, %c0_11, %c0_12] : memref<1x8x32xf32, #tpu.memory_space<vmem>>, vector<1x8x32xf32>
    %27 = vector.shape_cast %26 : vector<1x8x32xf32> to vector<8x32xf32>
    %28 = vector.shape_cast %25 : vector<8x32xf32> to vector<1x8x32xf32>
    tpu.vector_store %arg4[%c0_10, %c0_11, %c0_12], %28 {strides = array<i32>} : memref<1x8x32xf32, #tpu.memory_space<vmem>>, vector<1x8x32xf32>,
    return
  }
  func.func @transform_0(%arg0: i32) -> (i32, i32, i32) {
    %c0_i32 = arith.constant 0 : i32
    %c0_i32_0 = arith.constant 0 : i32
    %c0_i32_1 = arith.constant 0 : i32
    return %arg0, %c0_i32, %c0_i32_0 : i32, i32, i32
  }
  func.func @transform_1(%arg0: i32) -> (i32, i32) {
    %c0_i32 = arith.constant 0 : i32
    %c0_i32_0 = arith.constant 0 : i32
    %c0_i32_1 = arith.constant 0 : i32
    return %c0_i32, %c0_i32_0 : i32, i32
  }
  func.func @transform_2(%arg0: i32) -> (i32, i32) {
    %c0_i32 = arith.constant 0 : i32
    %c0_i32_0 = arith.constant 0 : i32
    %c0_i32_1 = arith.constant 0 : i32
    return %c0_i32, %c0_i32_0 : i32, i32
  }
  func.func @transform_3(%arg0: i32) -> (i32, i32, i32) {
    %c0_i32 = arith.constant 0 : i32
    %c0_i32_0 = arith.constant 0 : i32
    %c0_i32_1 = arith.constant 0 : i32
    return %arg0, %c0_i32, %c0_i32_0 : i32, i32, i32
  }
}

module attributes {stable_mosaic.version = 11 : i64} {
  func.func @_embed_static_kernel(%arg0: i32, %arg1: memref<1x8x4xf32, #tpu.memory_space<vmem>>, %arg2: memref<1x8x4xf32, #tpu.memory_space<vmem>>, %arg3: memref<1x8x4xf32, #tpu.memory_space<vmem>>, %arg4: memref<1x8x4xf32, #tpu.memory_space<vmem>>, %arg5: memref<8x32xf32, #tpu.memory_space<vmem>>, %arg6: memref<1x1x6xf32, #tpu.memory_space<vmem>>, %arg7: memref<4x32xf32, #tpu.memory_space<vmem>>, %arg8: memref<4x32xf32, #tpu.memory_space<vmem>>, %arg9: memref<4x32xf32, #tpu.memory_space<vmem>>, %arg10: memref<4x32xf32, #tpu.memory_space<vmem>>, %arg11: memref<32x32xf32, #tpu.memory_space<vmem>>, %arg12: memref<1x32xf32, #tpu.memory_space<vmem>>, %arg13: memref<6x32xf32, #tpu.memory_space<vmem>>, %arg14: memref<1x32xf32, #tpu.memory_space<vmem>>, %arg15: memref<1x32xf32, #tpu.memory_space<vmem>>, %arg16: memref<1x32xf32, #tpu.memory_space<vmem>>, %arg17: memref<1x8x32xf32, #tpu.memory_space<vmem>>) attributes {dimension_semantics = [#tpu.dimension_semantics<parallel>], iteration_bounds = array<i64: 2>, scalar_prefetch = 0 : i64, scratch_operands = 0 : i64, tpu.core_type = #tpu.core_type<tc>, window_params = [{transform_indices = @transform_0, window_bounds = array<i64: 1, 8, 4>}, {transform_indices = @transform_1, window_bounds = array<i64: 1, 8, 4>}, {transform_indices = @transform_2, window_bounds = array<i64: 1, 8, 4>}, {transform_indices = @transform_3, window_bounds = array<i64: 1, 8, 4>}, {pipeline_mode = #tpu.pipeline_mode<synchronous>, transform_indices = @transform_4, window_bounds = array<i64: 8, 32>}, {transform_indices = @transform_5, window_bounds = array<i64: 1, 1, 6>}, {pipeline_mode = #tpu.pipeline_mode<synchronous>, transform_indices = @transform_6, window_bounds = array<i64: 4, 32>}, {pipeline_mode = #tpu.pipeline_mode<synchronous>, transform_indices = @transform_7, window_bounds = array<i64: 4, 32>}, {pipeline_mode = #tpu.pipeline_mode<synchronous>, transform_indices = @transform_8, window_bounds = array<i64: 4, 32>}, {pipeline_mode = #tpu.pipeline_mode<synchronous>, transform_indices = @transform_9, window_bounds = array<i64: 4, 32>}, {pipeline_mode = #tpu.pipeline_mode<synchronous>, transform_indices = @transform_10, window_bounds = array<i64: 32, 32>}, {pipeline_mode = #tpu.pipeline_mode<synchronous>, transform_indices = @transform_11, window_bounds = array<i64: 1, 32>}, {pipeline_mode = #tpu.pipeline_mode<synchronous>, transform_indices = @transform_12, window_bounds = array<i64: 6, 32>}, {pipeline_mode = #tpu.pipeline_mode<synchronous>, transform_indices = @transform_13, window_bounds = array<i64: 1, 32>}, {pipeline_mode = #tpu.pipeline_mode<synchronous>, transform_indices = @transform_14, window_bounds = array<i64: 1, 32>}, {pipeline_mode = #tpu.pipeline_mode<synchronous>, transform_indices = @transform_15, window_bounds = array<i64: 1, 32>}, {transform_indices = @transform_16, window_bounds = array<i64: 1, 8, 32>}]} {
    %c0 = arith.constant 0 : index
    %c0_0 = arith.constant 0 : index
    %c0_1 = arith.constant 0 : index
    %0 = vector.load %arg1[%c0, %c0_0, %c0_1] : memref<1x8x4xf32, #tpu.memory_space<vmem>>, vector<1x8x4xf32>
    %1 = vector.shape_cast %0 : vector<1x8x4xf32> to vector<8x4xf32>
    %c0_2 = arith.constant 0 : index
    %c0_3 = arith.constant 0 : index
    %c0_4 = arith.constant 0 : index
    %2 = vector.load %arg2[%c0_2, %c0_3, %c0_4] : memref<1x8x4xf32, #tpu.memory_space<vmem>>, vector<1x8x4xf32>
    %3 = vector.shape_cast %2 : vector<1x8x4xf32> to vector<8x4xf32>
    %c0_5 = arith.constant 0 : index
    %c0_6 = arith.constant 0 : index
    %c0_7 = arith.constant 0 : index
    %4 = vector.load %arg3[%c0_5, %c0_6, %c0_7] : memref<1x8x4xf32, #tpu.memory_space<vmem>>, vector<1x8x4xf32>
    %5 = vector.shape_cast %4 : vector<1x8x4xf32> to vector<8x4xf32>
    %c0_8 = arith.constant 0 : index
    %c0_9 = arith.constant 0 : index
    %6 = vector.load %arg7[%c0_8, %c0_9] : memref<4x32xf32, #tpu.memory_space<vmem>>, vector<4x32xf32>
    %cst = arith.constant dense<0.000000e+00> : vector<8x32xf32>
    %7 = tpu.matmul %1, %6, %cst {dimension_numbers = #tpu.dot_dimension_numbers<[1], [0], [0], [1], [0, 0, 1, 1], [], []>} : vector<8x4xf32>, vector<4x32xf32>, vector<8x32xf32> -> vector<8x32xf32>
    %c0_10 = arith.constant 0 : index
    %c0_11 = arith.constant 0 : index
    %8 = vector.load %arg8[%c0_10, %c0_11] : memref<4x32xf32, #tpu.memory_space<vmem>>, vector<4x32xf32>
    %cst_12 = arith.constant dense<0.000000e+00> : vector<8x32xf32>
    %9 = tpu.matmul %3, %8, %cst_12 {dimension_numbers = #tpu.dot_dimension_numbers<[1], [0], [0], [1], [0, 0, 1, 1], [], []>} : vector<8x4xf32>, vector<4x32xf32>, vector<8x32xf32> -> vector<8x32xf32>
    %10 = arith.addf %7, %9 : vector<8x32xf32>
    %c0_13 = arith.constant 0 : index
    %c0_14 = arith.constant 0 : index
    %11 = vector.load %arg9[%c0_13, %c0_14] : memref<4x32xf32, #tpu.memory_space<vmem>>, vector<4x32xf32>
    %cst_15 = arith.constant dense<0.000000e+00> : vector<8x32xf32>
    %12 = tpu.matmul %5, %11, %cst_15 {dimension_numbers = #tpu.dot_dimension_numbers<[1], [0], [0], [1], [0, 0, 1, 1], [], []>} : vector<8x4xf32>, vector<4x32xf32>, vector<8x32xf32> -> vector<8x32xf32>
    %13 = arith.addf %10, %12 : vector<8x32xf32>
    %c0_16 = arith.constant 0 : index
    %c0_17 = arith.constant 0 : index
    %c0_18 = arith.constant 0 : index
    %14 = vector.load %arg4[%c0_16, %c0_17, %c0_18] : memref<1x8x4xf32, #tpu.memory_space<vmem>>, vector<1x8x4xf32>
    %15 = vector.shape_cast %14 : vector<1x8x4xf32> to vector<8x4xf32>
    %c0_19 = arith.constant 0 : index
    %c0_20 = arith.constant 0 : index
    %16 = vector.load %arg10[%c0_19, %c0_20] : memref<4x32xf32, #tpu.memory_space<vmem>>, vector<4x32xf32>
    %cst_21 = arith.constant dense<0.000000e+00> : vector<8x32xf32>
    %17 = tpu.matmul %15, %16, %cst_21 {dimension_numbers = #tpu.dot_dimension_numbers<[1], [0], [0], [1], [0, 0, 1, 1], [], []>} : vector<8x4xf32>, vector<4x32xf32>, vector<8x32xf32> -> vector<8x32xf32>
    %18 = arith.addf %13, %17 : vector<8x32xf32>
    %c0_22 = arith.constant 0 : index
    %c0_23 = arith.constant 0 : index
    %19 = vector.load %arg5[%c0_22, %c0_23] : memref<8x32xf32, #tpu.memory_space<vmem>>, vector<8x32xf32>
    %20 = arith.addf %18, %19 : vector<8x32xf32>
    %c0_24 = arith.constant 0 : index
    %c0_25 = arith.constant 0 : index
    %21 = vector.load %arg11[%c0_24, %c0_25] : memref<32x32xf32, #tpu.memory_space<vmem>>, vector<32x32xf32>
    %cst_26 = arith.constant dense<0.000000e+00> : vector<8x32xf32>
    %22 = tpu.matmul %20, %21, %cst_26 {dimension_numbers = #tpu.dot_dimension_numbers<[1], [0], [0], [1], [0, 0, 1, 1], [], []>} : vector<8x32xf32>, vector<32x32xf32>, vector<8x32xf32> -> vector<8x32xf32>
    %c0_27 = arith.constant 0 : index
    %c0_28 = arith.constant 0 : index
    %23 = vector.load %arg12[%c0_27, %c0_28] : memref<1x32xf32, #tpu.memory_space<vmem>>, vector<1x32xf32>
    %24 = vector.broadcast %23 : vector<1x32xf32> to vector<8x32xf32>
    %25 = arith.addf %22, %24 : vector<8x32xf32>
    %c0_29 = arith.constant 0 : index
    %c0_30 = arith.constant 0 : index
    %c0_31 = arith.constant 0 : index
    %26 = vector.load %arg6[%c0_29, %c0_30, %c0_31] : memref<1x1x6xf32, #tpu.memory_space<vmem>>, vector<1x1x6xf32>
    %27 = vector.shape_cast %26 : vector<1x1x6xf32> to vector<1x6xf32>
    %c0_32 = arith.constant 0 : index
    %c0_33 = arith.constant 0 : index
    %28 = vector.load %arg13[%c0_32, %c0_33] : memref<6x32xf32, #tpu.memory_space<vmem>>, vector<6x32xf32>
    %cst_34 = arith.constant dense<0.000000e+00> : vector<1x32xf32>
    %29 = tpu.matmul %27, %28, %cst_34 {dimension_numbers = #tpu.dot_dimension_numbers<[1], [0], [0], [1], [0, 0, 1, 1], [], []>} : vector<1x6xf32>, vector<6x32xf32>, vector<1x32xf32> -> vector<1x32xf32>
    %c0_35 = arith.constant 0 : index
    %c0_36 = arith.constant 0 : index
    %30 = vector.load %arg14[%c0_35, %c0_36] : memref<1x32xf32, #tpu.memory_space<vmem>>, vector<1x32xf32>
    %31 = arith.addf %29, %30 : vector<1x32xf32>
    %cst_37 = arith.constant dense<0xFF800000> : vector<8xf32>
    %32 = vector.multi_reduction <maximumf>, %25, %cst_37 [1] : vector<8x32xf32> to vector<8xf32>
    %33 = vector.shape_cast %32 : vector<8xf32> to vector<8x1xf32>
    %34 = vector.broadcast %33 : vector<8x1xf32> to vector<8x32xf32>
    %35 = arith.subf %25, %34 : vector<8x32xf32>
    %36 = math.exp %35 : vector<8x32xf32>
    %cst_38 = arith.constant dense<0.000000e+00> : vector<8xf32>
    %37 = vector.multi_reduction <add>, %36, %cst_38 [1] : vector<8x32xf32> to vector<8xf32>
    %38 = vector.shape_cast %37 : vector<8xf32> to vector<8x1xf32>
    %39 = tpu.reciprocal %38 {approx = true} : vector<8x1xf32> -> vector<8x1xf32>
    %40 = vector.broadcast %39 : vector<8x1xf32> to vector<8x32xf32>
    %41 = arith.mulf %36, %40 : vector<8x32xf32>
    %42 = vector.broadcast %31 : vector<1x32xf32> to vector<8x32xf32>
    %43 = arith.mulf %41, %42 : vector<8x32xf32>
    %44 = arith.addf %20, %43 : vector<8x32xf32>
    %c0_39 = arith.constant 0 : index
    %c0_40 = arith.constant 0 : index
    %45 = vector.load %arg15[%c0_39, %c0_40] : memref<1x32xf32, #tpu.memory_space<vmem>>, vector<1x32xf32>
    %c0_41 = arith.constant 0 : index
    %c0_42 = arith.constant 0 : index
    %46 = vector.load %arg16[%c0_41, %c0_42] : memref<1x32xf32, #tpu.memory_space<vmem>>, vector<1x32xf32>
    %cst_43 = arith.constant dense<0.000000e+00> : vector<8xf32>
    %47 = vector.multi_reduction <add>, %44, %cst_43 [1] : vector<8x32xf32> to vector<8xf32>
    %48 = vector.shape_cast %47 : vector<8xf32> to vector<8x1xf32>
    %cst_44 = arith.constant 3.200000e+01 : f32
    %49 = vector.broadcast %cst_44 : f32 to vector<8x1xf32>
    %50 = arith.divf %48, %49 : vector<8x1xf32>
    %51 = vector.broadcast %50 : vector<8x1xf32> to vector<8x32xf32>
    %52 = arith.subf %44, %51 : vector<8x32xf32>
    %53 = arith.mulf %52, %52 : vector<8x32xf32>
    %cst_45 = arith.constant dense<0.000000e+00> : vector<8xf32>
    %54 = vector.multi_reduction <add>, %53, %cst_45 [1] : vector<8x32xf32> to vector<8xf32>
    %55 = vector.shape_cast %54 : vector<8xf32> to vector<8x1xf32>
    %cst_46 = arith.constant 3.200000e+01 : f32
    %56 = vector.broadcast %cst_46 : f32 to vector<8x1xf32>
    %57 = arith.divf %55, %56 : vector<8x1xf32>
    %58 = vector.broadcast %50 : vector<8x1xf32> to vector<8x32xf32>
    %59 = arith.subf %44, %58 : vector<8x32xf32>
    %cst_47 = arith.constant 9.99999974E-6 : f32
    %60 = vector.broadcast %cst_47 : f32 to vector<8x1xf32>
    %61 = arith.addf %57, %60 : vector<8x1xf32>
    %62 = math.rsqrt %61 : vector<8x1xf32>
    %63 = vector.broadcast %62 : vector<8x1xf32> to vector<8x32xf32>
    %64 = arith.mulf %59, %63 : vector<8x32xf32>
    %65 = vector.broadcast %45 : vector<1x32xf32> to vector<8x32xf32>
    %66 = arith.mulf %64, %65 : vector<8x32xf32>
    %67 = vector.broadcast %46 : vector<1x32xf32> to vector<8x32xf32>
    %68 = arith.addf %66, %67 : vector<8x32xf32>
    %c0_48 = arith.constant 0 : index
    %c0_49 = arith.constant 0 : index
    %c0_50 = arith.constant 0 : index
    %69 = vector.load %arg17[%c0_48, %c0_49, %c0_50] : memref<1x8x32xf32, #tpu.memory_space<vmem>>, vector<1x8x32xf32>
    %70 = vector.shape_cast %69 : vector<1x8x32xf32> to vector<8x32xf32>
    %71 = vector.shape_cast %68 : vector<8x32xf32> to vector<1x8x32xf32>
    tpu.vector_store %arg17[%c0_48, %c0_49, %c0_50], %71 {strides = array<i32>} : memref<1x8x32xf32, #tpu.memory_space<vmem>>, vector<1x8x32xf32>,
    return
  }
  func.func @transform_0(%arg0: i32) -> (i32, i32, i32) {
    %c0_i32 = arith.constant 0 : i32
    %c0_i32_0 = arith.constant 0 : i32
    %c0_i32_1 = arith.constant 0 : i32
    return %arg0, %c0_i32, %c0_i32_0 : i32, i32, i32
  }
  func.func @transform_1(%arg0: i32) -> (i32, i32, i32) {
    %c0_i32 = arith.constant 0 : i32
    %c0_i32_0 = arith.constant 0 : i32
    %c0_i32_1 = arith.constant 0 : i32
    return %arg0, %c0_i32, %c0_i32_0 : i32, i32, i32
  }
  func.func @transform_2(%arg0: i32) -> (i32, i32, i32) {
    %c0_i32 = arith.constant 0 : i32
    %c0_i32_0 = arith.constant 0 : i32
    %c0_i32_1 = arith.constant 0 : i32
    return %arg0, %c0_i32, %c0_i32_0 : i32, i32, i32
  }
  func.func @transform_3(%arg0: i32) -> (i32, i32, i32) {
    %c0_i32 = arith.constant 0 : i32
    %c0_i32_0 = arith.constant 0 : i32
    %c0_i32_1 = arith.constant 0 : i32
    return %arg0, %c0_i32, %c0_i32_0 : i32, i32, i32
  }
  func.func @transform_4(%arg0: i32) -> (i32, i32) {
    %c0_i32 = arith.constant 0 : i32
    %c0_i32_0 = arith.constant 0 : i32
    %c0_i32_1 = arith.constant 0 : i32
    return %c0_i32, %c0_i32_0 : i32, i32
  }
  func.func @transform_5(%arg0: i32) -> (i32, i32, i32) {
    %c0_i32 = arith.constant 0 : i32
    %c0_i32_0 = arith.constant 0 : i32
    %c0_i32_1 = arith.constant 0 : i32
    return %arg0, %c0_i32, %c0_i32_0 : i32, i32, i32
  }
  func.func @transform_6(%arg0: i32) -> (i32, i32) {
    %c0_i32 = arith.constant 0 : i32
    %c0_i32_0 = arith.constant 0 : i32
    %c0_i32_1 = arith.constant 0 : i32
    return %c0_i32, %c0_i32_0 : i32, i32
  }
  func.func @transform_7(%arg0: i32) -> (i32, i32) {
    %c0_i32 = arith.constant 0 : i32
    %c0_i32_0 = arith.constant 0 : i32
    %c0_i32_1 = arith.constant 0 : i32
    return %c0_i32, %c0_i32_0 : i32, i32
  }
  func.func @transform_8(%arg0: i32) -> (i32, i32) {
    %c0_i32 = arith.constant 0 : i32
    %c0_i32_0 = arith.constant 0 : i32
    %c0_i32_1 = arith.constant 0 : i32
    return %c0_i32, %c0_i32_0 : i32, i32
  }
  func.func @transform_9(%arg0: i32) -> (i32, i32) {
    %c0_i32 = arith.constant 0 : i32
    %c0_i32_0 = arith.constant 0 : i32
    %c0_i32_1 = arith.constant 0 : i32
    return %c0_i32, %c0_i32_0 : i32, i32
  }
  func.func @transform_10(%arg0: i32) -> (i32, i32) {
    %c0_i32 = arith.constant 0 : i32
    %c0_i32_0 = arith.constant 0 : i32
    %c0_i32_1 = arith.constant 0 : i32
    return %c0_i32, %c0_i32_0 : i32, i32
  }
  func.func @transform_11(%arg0: i32) -> (i32, i32) {
    %c0_i32 = arith.constant 0 : i32
    %c0_i32_0 = arith.constant 0 : i32
    %c0_i32_1 = arith.constant 0 : i32
    return %c0_i32, %c0_i32_0 : i32, i32
  }
  func.func @transform_12(%arg0: i32) -> (i32, i32) {
    %c0_i32 = arith.constant 0 : i32
    %c0_i32_0 = arith.constant 0 : i32
    %c0_i32_1 = arith.constant 0 : i32
    return %c0_i32, %c0_i32_0 : i32, i32
  }
  func.func @transform_13(%arg0: i32) -> (i32, i32) {
    %c0_i32 = arith.constant 0 : i32
    %c0_i32_0 = arith.constant 0 : i32
    %c0_i32_1 = arith.constant 0 : i32
    return %c0_i32, %c0_i32_0 : i32, i32
  }
  func.func @transform_14(%arg0: i32) -> (i32, i32) {
    %c0_i32 = arith.constant 0 : i32
    %c0_i32_0 = arith.constant 0 : i32
    %c0_i32_1 = arith.constant 0 : i32
    return %c0_i32, %c0_i32_0 : i32, i32
  }
  func.func @transform_15(%arg0: i32) -> (i32, i32) {
    %c0_i32 = arith.constant 0 : i32
    %c0_i32_0 = arith.constant 0 : i32
    %c0_i32_1 = arith.constant 0 : i32
    return %c0_i32, %c0_i32_0 : i32, i32
  }
  func.func @transform_16(%arg0: i32) -> (i32, i32, i32) {
    %c0_i32 = arith.constant 0 : i32
    %c0_i32_0 = arith.constant 0 : i32
    %c0_i32_1 = arith.constant 0 : i32
    return %arg0, %c0_i32, %c0_i32_0 : i32, i32, i32
  }
}

module attributes {stable_mosaic.version = 11 : i64} {
  func.func @_attn_block_kernel(%arg0: i32, %arg1: memref<1x8x32xf32, #tpu.memory_space<vmem>>, %arg2: memref<1x8x32xf32, #tpu.memory_space<vmem>>, %arg3: memref<32x32xf32, #tpu.memory_space<vmem>>, %arg4: memref<1x32xf32, #tpu.memory_space<vmem>>, %arg5: memref<32x32xf32, #tpu.memory_space<vmem>>, %arg6: memref<1x32xf32, #tpu.memory_space<vmem>>, %arg7: memref<32x32xf32, #tpu.memory_space<vmem>>, %arg8: memref<1x32xf32, #tpu.memory_space<vmem>>, %arg9: memref<32x32xf32, #tpu.memory_space<vmem>>, %arg10: memref<1x32xf32, #tpu.memory_space<vmem>>, %arg11: memref<1x32xf32, #tpu.memory_space<vmem>>, %arg12: memref<1x32xf32, #tpu.memory_space<vmem>>, %arg13: memref<1x8x32xf32, #tpu.memory_space<vmem>>) attributes {dimension_semantics = [#tpu.dimension_semantics<parallel>], iteration_bounds = array<i64: 2>, scalar_prefetch = 0 : i64, scratch_operands = 0 : i64, tpu.core_type = #tpu.core_type<tc>, window_params = [{transform_indices = @transform_0, window_bounds = array<i64: 1, 8, 32>}, {transform_indices = @transform_1, window_bounds = array<i64: 1, 8, 32>}, {pipeline_mode = #tpu.pipeline_mode<synchronous>, transform_indices = @transform_2, window_bounds = array<i64: 32, 32>}, {pipeline_mode = #tpu.pipeline_mode<synchronous>, transform_indices = @transform_3, window_bounds = array<i64: 1, 32>}, {pipeline_mode = #tpu.pipeline_mode<synchronous>, transform_indices = @transform_4, window_bounds = array<i64: 32, 32>}, {pipeline_mode = #tpu.pipeline_mode<synchronous>, transform_indices = @transform_5, window_bounds = array<i64: 1, 32>}, {pipeline_mode = #tpu.pipeline_mode<synchronous>, transform_indices = @transform_6, window_bounds = array<i64: 32, 32>}, {pipeline_mode = #tpu.pipeline_mode<synchronous>, transform_indices = @transform_7, window_bounds = array<i64: 1, 32>}, {pipeline_mode = #tpu.pipeline_mode<synchronous>, transform_indices = @transform_8, window_bounds = array<i64: 32, 32>}, {pipeline_mode = #tpu.pipeline_mode<synchronous>, transform_indices = @transform_9, window_bounds = array<i64: 1, 32>}, {pipeline_mode = #tpu.pipeline_mode<synchronous>, transform_indices = @transform_10, window_bounds = array<i64: 1, 32>}, {pipeline_mode = #tpu.pipeline_mode<synchronous>, transform_indices = @transform_11, window_bounds = array<i64: 1, 32>}, {transform_indices = @transform_12, window_bounds = array<i64: 1, 8, 32>}]} {
    %c0 = arith.constant 0 : index
    %c0_0 = arith.constant 0 : index
    %c0_1 = arith.constant 0 : index
    %0 = vector.load %arg1[%c0, %c0_0, %c0_1] : memref<1x8x32xf32, #tpu.memory_space<vmem>>, vector<1x8x32xf32>
    %1 = vector.shape_cast %0 : vector<1x8x32xf32> to vector<8x32xf32>
    %c0_2 = arith.constant 0 : index
    %c0_3 = arith.constant 0 : index
    %c0_4 = arith.constant 0 : index
    %2 = vector.load %arg2[%c0_2, %c0_3, %c0_4] : memref<1x8x32xf32, #tpu.memory_space<vmem>>, vector<1x8x32xf32>
    %3 = vector.shape_cast %2 : vector<1x8x32xf32> to vector<8x32xf32>
    %c0_5 = arith.constant 0 : index
    %c0_6 = arith.constant 0 : index
    %4 = vector.load %arg3[%c0_5, %c0_6] : memref<32x32xf32, #tpu.memory_space<vmem>>, vector<32x32xf32>
    %cst = arith.constant dense<0.000000e+00> : vector<8x32xf32>
    %5 = tpu.matmul %1, %4, %cst {dimension_numbers = #tpu.dot_dimension_numbers<[1], [0], [0], [1], [0, 0, 1, 1], [], []>} : vector<8x32xf32>, vector<32x32xf32>, vector<8x32xf32> -> vector<8x32xf32>
    %c0_7 = arith.constant 0 : index
    %c0_8 = arith.constant 0 : index
    %6 = vector.load %arg4[%c0_7, %c0_8] : memref<1x32xf32, #tpu.memory_space<vmem>>, vector<1x32xf32>
    %7 = vector.broadcast %6 : vector<1x32xf32> to vector<8x32xf32>
    %8 = arith.addf %5, %7 : vector<8x32xf32>
    %c0_9 = arith.constant 0 : index
    %c0_10 = arith.constant 0 : index
    %9 = vector.load %arg5[%c0_9, %c0_10] : memref<32x32xf32, #tpu.memory_space<vmem>>, vector<32x32xf32>
    %cst_11 = arith.constant dense<0.000000e+00> : vector<8x32xf32>
    %10 = tpu.matmul %3, %9, %cst_11 {dimension_numbers = #tpu.dot_dimension_numbers<[1], [0], [0], [1], [0, 0, 1, 1], [], []>} : vector<8x32xf32>, vector<32x32xf32>, vector<8x32xf32> -> vector<8x32xf32>
    %c0_12 = arith.constant 0 : index
    %c0_13 = arith.constant 0 : index
    %11 = vector.load %arg6[%c0_12, %c0_13] : memref<1x32xf32, #tpu.memory_space<vmem>>, vector<1x32xf32>
    %12 = vector.broadcast %11 : vector<1x32xf32> to vector<8x32xf32>
    %13 = arith.addf %10, %12 : vector<8x32xf32>
    %c0_14 = arith.constant 0 : index
    %c0_15 = arith.constant 0 : index
    %14 = vector.load %arg7[%c0_14, %c0_15] : memref<32x32xf32, #tpu.memory_space<vmem>>, vector<32x32xf32>
    %cst_16 = arith.constant dense<0.000000e+00> : vector<8x32xf32>
    %15 = tpu.matmul %3, %14, %cst_16 {dimension_numbers = #tpu.dot_dimension_numbers<[1], [0], [0], [1], [0, 0, 1, 1], [], []>} : vector<8x32xf32>, vector<32x32xf32>, vector<8x32xf32> -> vector<8x32xf32>
    %c0_17 = arith.constant 0 : index
    %c0_18 = arith.constant 0 : index
    %16 = vector.load %arg8[%c0_17, %c0_18] : memref<1x32xf32, #tpu.memory_space<vmem>>, vector<1x32xf32>
    %17 = vector.broadcast %16 : vector<1x32xf32> to vector<8x32xf32>
    %18 = arith.addf %15, %17 : vector<8x32xf32>
    %19 = vector.extract_strided_slice %8 {offsets = [0, 0], sizes = [8, 8], strides = [1, 1]} : vector<8x32xf32> to vector<8x8xf32>
    %20 = vector.extract_strided_slice %13 {offsets = [0, 0], sizes = [8, 8], strides = [1, 1]} : vector<8x32xf32> to vector<8x8xf32>
    %21 = vector.extract_strided_slice %18 {offsets = [0, 0], sizes = [8, 8], strides = [1, 1]} : vector<8x32xf32> to vector<8x8xf32>
    %cst_19 = arith.constant dense<0.000000e+00> : vector<8x8xf32>
    %22 = tpu.matmul %19, %20, %cst_19 {dimension_numbers = #tpu.dot_dimension_numbers<[1], [1], [0], [0], [0, 0, 1, 0], [], []>} : vector<8x8xf32>, vector<8x8xf32>, vector<8x8xf32> -> vector<8x8xf32>
    %cst_20 = arith.constant 0.353553385 : f32
    %23 = vector.broadcast %cst_20 : f32 to vector<8x8xf32>
    %24 = arith.mulf %22, %23 : vector<8x8xf32>
    %cst_21 = arith.constant dense<0xFF800000> : vector<8xf32>
    %25 = vector.multi_reduction <maximumf>, %24, %cst_21 [1] : vector<8x8xf32> to vector<8xf32>
    %26 = vector.shape_cast %25 : vector<8xf32> to vector<8x1xf32>
    %27 = vector.broadcast %26 : vector<8x1xf32> to vector<8x8xf32>
    %28 = arith.subf %24, %27 : vector<8x8xf32>
    %29 = math.exp %28 : vector<8x8xf32>
    %cst_22 = arith.constant dense<0.000000e+00> : vector<8xf32>
    %30 = vector.multi_reduction <add>, %29, %cst_22 [1] : vector<8x8xf32> to vector<8xf32>
    %31 = vector.shape_cast %30 : vector<8xf32> to vector<8x1xf32>
    %32 = tpu.reciprocal %31 {approx = true} : vector<8x1xf32> -> vector<8x1xf32>
    %33 = vector.broadcast %32 : vector<8x1xf32> to vector<8x8xf32>
    %34 = arith.mulf %29, %33 : vector<8x8xf32>
    %cst_23 = arith.constant dense<0.000000e+00> : vector<8x8xf32>
    %35 = tpu.matmul %34, %21, %cst_23 {dimension_numbers = #tpu.dot_dimension_numbers<[1], [0], [0], [1], [0, 0, 1, 1], [], []>} : vector<8x8xf32>, vector<8x8xf32>, vector<8x8xf32> -> vector<8x8xf32>
    %c0_24 = arith.constant 0 : index
    %c0_25 = arith.constant 0 : index
    %36 = vector.load %arg9[%c0_24, %c0_25] : memref<32x32xf32, #tpu.memory_space<vmem>>, vector<8x32xf32>
    %cst_26 = arith.constant dense<0.000000e+00> : vector<8x32xf32>
    %37 = tpu.matmul %35, %36, %cst_26 {dimension_numbers = #tpu.dot_dimension_numbers<[1], [0], [0], [1], [0, 0, 1, 1], [], []>} : vector<8x8xf32>, vector<8x32xf32>, vector<8x32xf32> -> vector<8x32xf32>
    %38 = vector.extract_strided_slice %8 {offsets = [0, 8], sizes = [8, 8], strides = [1, 1]} : vector<8x32xf32> to vector<8x8xf32>
    %39 = vector.extract_strided_slice %13 {offsets = [0, 8], sizes = [8, 8], strides = [1, 1]} : vector<8x32xf32> to vector<8x8xf32>
    %40 = vector.extract_strided_slice %18 {offsets = [0, 8], sizes = [8, 8], strides = [1, 1]} : vector<8x32xf32> to vector<8x8xf32>
    %cst_27 = arith.constant dense<0.000000e+00> : vector<8x8xf32>
    %41 = tpu.matmul %38, %39, %cst_27 {dimension_numbers = #tpu.dot_dimension_numbers<[1], [1], [0], [0], [0, 0, 1, 0], [], []>} : vector<8x8xf32>, vector<8x8xf32>, vector<8x8xf32> -> vector<8x8xf32>
    %cst_28 = arith.constant 0.353553385 : f32
    %42 = vector.broadcast %cst_28 : f32 to vector<8x8xf32>
    %43 = arith.mulf %41, %42 : vector<8x8xf32>
    %cst_29 = arith.constant dense<0xFF800000> : vector<8xf32>
    %44 = vector.multi_reduction <maximumf>, %43, %cst_29 [1] : vector<8x8xf32> to vector<8xf32>
    %45 = vector.shape_cast %44 : vector<8xf32> to vector<8x1xf32>
    %46 = vector.broadcast %45 : vector<8x1xf32> to vector<8x8xf32>
    %47 = arith.subf %43, %46 : vector<8x8xf32>
    %48 = math.exp %47 : vector<8x8xf32>
    %cst_30 = arith.constant dense<0.000000e+00> : vector<8xf32>
    %49 = vector.multi_reduction <add>, %48, %cst_30 [1] : vector<8x8xf32> to vector<8xf32>
    %50 = vector.shape_cast %49 : vector<8xf32> to vector<8x1xf32>
    %51 = tpu.reciprocal %50 {approx = true} : vector<8x1xf32> -> vector<8x1xf32>
    %52 = vector.broadcast %51 : vector<8x1xf32> to vector<8x8xf32>
    %53 = arith.mulf %48, %52 : vector<8x8xf32>
    %cst_31 = arith.constant dense<0.000000e+00> : vector<8x8xf32>
    %54 = tpu.matmul %53, %40, %cst_31 {dimension_numbers = #tpu.dot_dimension_numbers<[1], [0], [0], [1], [0, 0, 1, 1], [], []>} : vector<8x8xf32>, vector<8x8xf32>, vector<8x8xf32> -> vector<8x8xf32>
    %c8 = arith.constant 8 : index
    %c0_32 = arith.constant 0 : index
    %55 = vector.load %arg9[%c8, %c0_32] : memref<32x32xf32, #tpu.memory_space<vmem>>, vector<8x32xf32>
    %cst_33 = arith.constant dense<0.000000e+00> : vector<8x32xf32>
    %56 = tpu.matmul %54, %55, %cst_33 {dimension_numbers = #tpu.dot_dimension_numbers<[1], [0], [0], [1], [0, 0, 1, 1], [], []>} : vector<8x8xf32>, vector<8x32xf32>, vector<8x32xf32> -> vector<8x32xf32>
    %57 = arith.addf %37, %56 : vector<8x32xf32>
    %58 = vector.extract_strided_slice %8 {offsets = [0, 16], sizes = [8, 8], strides = [1, 1]} : vector<8x32xf32> to vector<8x8xf32>
    %59 = vector.extract_strided_slice %13 {offsets = [0, 16], sizes = [8, 8], strides = [1, 1]} : vector<8x32xf32> to vector<8x8xf32>
    %60 = vector.extract_strided_slice %18 {offsets = [0, 16], sizes = [8, 8], strides = [1, 1]} : vector<8x32xf32> to vector<8x8xf32>
    %cst_34 = arith.constant dense<0.000000e+00> : vector<8x8xf32>
    %61 = tpu.matmul %58, %59, %cst_34 {dimension_numbers = #tpu.dot_dimension_numbers<[1], [1], [0], [0], [0, 0, 1, 0], [], []>} : vector<8x8xf32>, vector<8x8xf32>, vector<8x8xf32> -> vector<8x8xf32>
    %cst_35 = arith.constant 0.353553385 : f32
    %62 = vector.broadcast %cst_35 : f32 to vector<8x8xf32>
    %63 = arith.mulf %61, %62 : vector<8x8xf32>
    %cst_36 = arith.constant dense<0xFF800000> : vector<8xf32>
    %64 = vector.multi_reduction <maximumf>, %63, %cst_36 [1] : vector<8x8xf32> to vector<8xf32>
    %65 = vector.shape_cast %64 : vector<8xf32> to vector<8x1xf32>
    %66 = vector.broadcast %65 : vector<8x1xf32> to vector<8x8xf32>
    %67 = arith.subf %63, %66 : vector<8x8xf32>
    %68 = math.exp %67 : vector<8x8xf32>
    %cst_37 = arith.constant dense<0.000000e+00> : vector<8xf32>
    %69 = vector.multi_reduction <add>, %68, %cst_37 [1] : vector<8x8xf32> to vector<8xf32>
    %70 = vector.shape_cast %69 : vector<8xf32> to vector<8x1xf32>
    %71 = tpu.reciprocal %70 {approx = true} : vector<8x1xf32> -> vector<8x1xf32>
    %72 = vector.broadcast %71 : vector<8x1xf32> to vector<8x8xf32>
    %73 = arith.mulf %68, %72 : vector<8x8xf32>
    %cst_38 = arith.constant dense<0.000000e+00> : vector<8x8xf32>
    %74 = tpu.matmul %73, %60, %cst_38 {dimension_numbers = #tpu.dot_dimension_numbers<[1], [0], [0], [1], [0, 0, 1, 1], [], []>} : vector<8x8xf32>, vector<8x8xf32>, vector<8x8xf32> -> vector<8x8xf32>
    %c16 = arith.constant 16 : index
    %c0_39 = arith.constant 0 : index
    %75 = vector.load %arg9[%c16, %c0_39] : memref<32x32xf32, #tpu.memory_space<vmem>>, vector<8x32xf32>
    %cst_40 = arith.constant dense<0.000000e+00> : vector<8x32xf32>
    %76 = tpu.matmul %74, %75, %cst_40 {dimension_numbers = #tpu.dot_dimension_numbers<[1], [0], [0], [1], [0, 0, 1, 1], [], []>} : vector<8x8xf32>, vector<8x32xf32>, vector<8x32xf32> -> vector<8x32xf32>
    %77 = arith.addf %57, %76 : vector<8x32xf32>
    %78 = vector.extract_strided_slice %8 {offsets = [0, 24], sizes = [8, 8], strides = [1, 1]} : vector<8x32xf32> to vector<8x8xf32>
    %79 = vector.extract_strided_slice %13 {offsets = [0, 24], sizes = [8, 8], strides = [1, 1]} : vector<8x32xf32> to vector<8x8xf32>
    %80 = vector.extract_strided_slice %18 {offsets = [0, 24], sizes = [8, 8], strides = [1, 1]} : vector<8x32xf32> to vector<8x8xf32>
    %cst_41 = arith.constant dense<0.000000e+00> : vector<8x8xf32>
    %81 = tpu.matmul %78, %79, %cst_41 {dimension_numbers = #tpu.dot_dimension_numbers<[1], [1], [0], [0], [0, 0, 1, 0], [], []>} : vector<8x8xf32>, vector<8x8xf32>, vector<8x8xf32> -> vector<8x8xf32>
    %cst_42 = arith.constant 0.353553385 : f32
    %82 = vector.broadcast %cst_42 : f32 to vector<8x8xf32>
    %83 = arith.mulf %81, %82 : vector<8x8xf32>
    %cst_43 = arith.constant dense<0xFF800000> : vector<8xf32>
    %84 = vector.multi_reduction <maximumf>, %83, %cst_43 [1] : vector<8x8xf32> to vector<8xf32>
    %85 = vector.shape_cast %84 : vector<8xf32> to vector<8x1xf32>
    %86 = vector.broadcast %85 : vector<8x1xf32> to vector<8x8xf32>
    %87 = arith.subf %83, %86 : vector<8x8xf32>
    %88 = math.exp %87 : vector<8x8xf32>
    %cst_44 = arith.constant dense<0.000000e+00> : vector<8xf32>
    %89 = vector.multi_reduction <add>, %88, %cst_44 [1] : vector<8x8xf32> to vector<8xf32>
    %90 = vector.shape_cast %89 : vector<8xf32> to vector<8x1xf32>
    %91 = tpu.reciprocal %90 {approx = true} : vector<8x1xf32> -> vector<8x1xf32>
    %92 = vector.broadcast %91 : vector<8x1xf32> to vector<8x8xf32>
    %93 = arith.mulf %88, %92 : vector<8x8xf32>
    %cst_45 = arith.constant dense<0.000000e+00> : vector<8x8xf32>
    %94 = tpu.matmul %93, %80, %cst_45 {dimension_numbers = #tpu.dot_dimension_numbers<[1], [0], [0], [1], [0, 0, 1, 1], [], []>} : vector<8x8xf32>, vector<8x8xf32>, vector<8x8xf32> -> vector<8x8xf32>
    %c24 = arith.constant 24 : index
    %c0_46 = arith.constant 0 : index
    %95 = vector.load %arg9[%c24, %c0_46] : memref<32x32xf32, #tpu.memory_space<vmem>>, vector<8x32xf32>
    %cst_47 = arith.constant dense<0.000000e+00> : vector<8x32xf32>
    %96 = tpu.matmul %94, %95, %cst_47 {dimension_numbers = #tpu.dot_dimension_numbers<[1], [0], [0], [1], [0, 0, 1, 1], [], []>} : vector<8x8xf32>, vector<8x32xf32>, vector<8x32xf32> -> vector<8x32xf32>
    %97 = arith.addf %77, %96 : vector<8x32xf32>
    %98 = arith.addf %1, %97 : vector<8x32xf32>
    %c0_48 = arith.constant 0 : index
    %c0_49 = arith.constant 0 : index
    %99 = vector.load %arg10[%c0_48, %c0_49] : memref<1x32xf32, #tpu.memory_space<vmem>>, vector<1x32xf32>
    %100 = vector.broadcast %99 : vector<1x32xf32> to vector<8x32xf32>
    %101 = arith.addf %98, %100 : vector<8x32xf32>
    %c0_50 = arith.constant 0 : index
    %c0_51 = arith.constant 0 : index
    %102 = vector.load %arg11[%c0_50, %c0_51] : memref<1x32xf32, #tpu.memory_space<vmem>>, vector<1x32xf32>
    %c0_52 = arith.constant 0 : index
    %c0_53 = arith.constant 0 : index
    %103 = vector.load %arg12[%c0_52, %c0_53] : memref<1x32xf32, #tpu.memory_space<vmem>>, vector<1x32xf32>
    %cst_54 = arith.constant dense<0.000000e+00> : vector<8xf32>
    %104 = vector.multi_reduction <add>, %101, %cst_54 [1] : vector<8x32xf32> to vector<8xf32>
    %105 = vector.shape_cast %104 : vector<8xf32> to vector<8x1xf32>
    %cst_55 = arith.constant 3.200000e+01 : f32
    %106 = vector.broadcast %cst_55 : f32 to vector<8x1xf32>
    %107 = arith.divf %105, %106 : vector<8x1xf32>
    %108 = vector.broadcast %107 : vector<8x1xf32> to vector<8x32xf32>
    %109 = arith.subf %101, %108 : vector<8x32xf32>
    %110 = arith.mulf %109, %109 : vector<8x32xf32>
    %cst_56 = arith.constant dense<0.000000e+00> : vector<8xf32>
    %111 = vector.multi_reduction <add>, %110, %cst_56 [1] : vector<8x32xf32> to vector<8xf32>
    %112 = vector.shape_cast %111 : vector<8xf32> to vector<8x1xf32>
    %cst_57 = arith.constant 3.200000e+01 : f32
    %113 = vector.broadcast %cst_57 : f32 to vector<8x1xf32>
    %114 = arith.divf %112, %113 : vector<8x1xf32>
    %115 = vector.broadcast %107 : vector<8x1xf32> to vector<8x32xf32>
    %116 = arith.subf %101, %115 : vector<8x32xf32>
    %cst_58 = arith.constant 9.99999974E-6 : f32
    %117 = vector.broadcast %cst_58 : f32 to vector<8x1xf32>
    %118 = arith.addf %114, %117 : vector<8x1xf32>
    %119 = math.rsqrt %118 : vector<8x1xf32>
    %120 = vector.broadcast %119 : vector<8x1xf32> to vector<8x32xf32>
    %121 = arith.mulf %116, %120 : vector<8x32xf32>
    %122 = vector.broadcast %102 : vector<1x32xf32> to vector<8x32xf32>
    %123 = arith.mulf %121, %122 : vector<8x32xf32>
    %124 = vector.broadcast %103 : vector<1x32xf32> to vector<8x32xf32>
    %125 = arith.addf %123, %124 : vector<8x32xf32>
    %c0_59 = arith.constant 0 : index
    %c0_60 = arith.constant 0 : index
    %c0_61 = arith.constant 0 : index
    %126 = vector.load %arg13[%c0_59, %c0_60, %c0_61] : memref<1x8x32xf32, #tpu.memory_space<vmem>>, vector<1x8x32xf32>
    %127 = vector.shape_cast %126 : vector<1x8x32xf32> to vector<8x32xf32>
    %128 = vector.shape_cast %125 : vector<8x32xf32> to vector<1x8x32xf32>
    tpu.vector_store %arg13[%c0_59, %c0_60, %c0_61], %128 {strides = array<i32>} : memref<1x8x32xf32, #tpu.memory_space<vmem>>, vector<1x8x32xf32>,
    return
  }
  func.func @transform_0(%arg0: i32) -> (i32, i32, i32) {
    %c0_i32 = arith.constant 0 : i32
    %c0_i32_0 = arith.constant 0 : i32
    %c0_i32_1 = arith.constant 0 : i32
    return %arg0, %c0_i32, %c0_i32_0 : i32, i32, i32
  }
  func.func @transform_1(%arg0: i32) -> (i32, i32, i32) {
    %c0_i32 = arith.constant 0 : i32
    %c0_i32_0 = arith.constant 0 : i32
    %c0_i32_1 = arith.constant 0 : i32
    return %arg0, %c0_i32, %c0_i32_0 : i32, i32, i32
  }
  func.func @transform_2(%arg0: i32) -> (i32, i32) {
    %c0_i32 = arith.constant 0 : i32
    %c0_i32_0 = arith.constant 0 : i32
    %c0_i32_1 = arith.constant 0 : i32
    return %c0_i32, %c0_i32_0 : i32, i32
  }
  func.func @transform_3(%arg0: i32) -> (i32, i32) {
    %c0_i32 = arith.constant 0 : i32
    %c0_i32_0 = arith.constant 0 : i32
    %c0_i32_1 = arith.constant 0 : i32
    return %c0_i32, %c0_i32_0 : i32, i32
  }
  func.func @transform_4(%arg0: i32) -> (i32, i32) {
    %c0_i32 = arith.constant 0 : i32
    %c0_i32_0 = arith.constant 0 : i32
    %c0_i32_1 = arith.constant 0 : i32
    return %c0_i32, %c0_i32_0 : i32, i32
  }
  func.func @transform_5(%arg0: i32) -> (i32, i32) {
    %c0_i32 = arith.constant 0 : i32
    %c0_i32_0 = arith.constant 0 : i32
    %c0_i32_1 = arith.constant 0 : i32
    return %c0_i32, %c0_i32_0 : i32, i32
  }
  func.func @transform_6(%arg0: i32) -> (i32, i32) {
    %c0_i32 = arith.constant 0 : i32
    %c0_i32_0 = arith.constant 0 : i32
    %c0_i32_1 = arith.constant 0 : i32
    return %c0_i32, %c0_i32_0 : i32, i32
  }
  func.func @transform_7(%arg0: i32) -> (i32, i32) {
    %c0_i32 = arith.constant 0 : i32
    %c0_i32_0 = arith.constant 0 : i32
    %c0_i32_1 = arith.constant 0 : i32
    return %c0_i32, %c0_i32_0 : i32, i32
  }
  func.func @transform_8(%arg0: i32) -> (i32, i32) {
    %c0_i32 = arith.constant 0 : i32
    %c0_i32_0 = arith.constant 0 : i32
    %c0_i32_1 = arith.constant 0 : i32
    return %c0_i32, %c0_i32_0 : i32, i32
  }
  func.func @transform_9(%arg0: i32) -> (i32, i32) {
    %c0_i32 = arith.constant 0 : i32
    %c0_i32_0 = arith.constant 0 : i32
    %c0_i32_1 = arith.constant 0 : i32
    return %c0_i32, %c0_i32_0 : i32, i32
  }
  func.func @transform_10(%arg0: i32) -> (i32, i32) {
    %c0_i32 = arith.constant 0 : i32
    %c0_i32_0 = arith.constant 0 : i32
    %c0_i32_1 = arith.constant 0 : i32
    return %c0_i32, %c0_i32_0 : i32, i32
  }
  func.func @transform_11(%arg0: i32) -> (i32, i32) {
    %c0_i32 = arith.constant 0 : i32
    %c0_i32_0 = arith.constant 0 : i32
    %c0_i32_1 = arith.constant 0 : i32
    return %c0_i32, %c0_i32_0 : i32, i32
  }
  func.func @transform_12(%arg0: i32) -> (i32, i32, i32) {
    %c0_i32 = arith.constant 0 : i32
    %c0_i32_0 = arith.constant 0 : i32
    %c0_i32_1 = arith.constant 0 : i32
    return %arg0, %c0_i32, %c0_i32_0 : i32, i32, i32
  }
}

module attributes {stable_mosaic.version = 11 : i64} {
  func.func @_attn_block_kernel(%arg0: i32, %arg1: memref<1x8x32xf32, #tpu.memory_space<vmem>>, %arg2: memref<1x8x32xf32, #tpu.memory_space<vmem>>, %arg3: memref<32x32xf32, #tpu.memory_space<vmem>>, %arg4: memref<1x32xf32, #tpu.memory_space<vmem>>, %arg5: memref<32x32xf32, #tpu.memory_space<vmem>>, %arg6: memref<1x32xf32, #tpu.memory_space<vmem>>, %arg7: memref<32x32xf32, #tpu.memory_space<vmem>>, %arg8: memref<1x32xf32, #tpu.memory_space<vmem>>, %arg9: memref<32x32xf32, #tpu.memory_space<vmem>>, %arg10: memref<1x32xf32, #tpu.memory_space<vmem>>, %arg11: memref<1x32xf32, #tpu.memory_space<vmem>>, %arg12: memref<1x32xf32, #tpu.memory_space<vmem>>, %arg13: memref<1x8x32xf32, #tpu.memory_space<vmem>>) attributes {dimension_semantics = [#tpu.dimension_semantics<parallel>], iteration_bounds = array<i64: 2>, scalar_prefetch = 0 : i64, scratch_operands = 0 : i64, tpu.core_type = #tpu.core_type<tc>, window_params = [{transform_indices = @transform_0, window_bounds = array<i64: 1, 8, 32>}, {transform_indices = @transform_1, window_bounds = array<i64: 1, 8, 32>}, {pipeline_mode = #tpu.pipeline_mode<synchronous>, transform_indices = @transform_2, window_bounds = array<i64: 32, 32>}, {pipeline_mode = #tpu.pipeline_mode<synchronous>, transform_indices = @transform_3, window_bounds = array<i64: 1, 32>}, {pipeline_mode = #tpu.pipeline_mode<synchronous>, transform_indices = @transform_4, window_bounds = array<i64: 32, 32>}, {pipeline_mode = #tpu.pipeline_mode<synchronous>, transform_indices = @transform_5, window_bounds = array<i64: 1, 32>}, {pipeline_mode = #tpu.pipeline_mode<synchronous>, transform_indices = @transform_6, window_bounds = array<i64: 32, 32>}, {pipeline_mode = #tpu.pipeline_mode<synchronous>, transform_indices = @transform_7, window_bounds = array<i64: 1, 32>}, {pipeline_mode = #tpu.pipeline_mode<synchronous>, transform_indices = @transform_8, window_bounds = array<i64: 32, 32>}, {pipeline_mode = #tpu.pipeline_mode<synchronous>, transform_indices = @transform_9, window_bounds = array<i64: 1, 32>}, {pipeline_mode = #tpu.pipeline_mode<synchronous>, transform_indices = @transform_10, window_bounds = array<i64: 1, 32>}, {pipeline_mode = #tpu.pipeline_mode<synchronous>, transform_indices = @transform_11, window_bounds = array<i64: 1, 32>}, {transform_indices = @transform_12, window_bounds = array<i64: 1, 8, 32>}]} {
    %c0 = arith.constant 0 : index
    %c0_0 = arith.constant 0 : index
    %c0_1 = arith.constant 0 : index
    %0 = vector.load %arg1[%c0, %c0_0, %c0_1] : memref<1x8x32xf32, #tpu.memory_space<vmem>>, vector<1x8x32xf32>
    %1 = vector.shape_cast %0 : vector<1x8x32xf32> to vector<8x32xf32>
    %c0_2 = arith.constant 0 : index
    %c0_3 = arith.constant 0 : index
    %c0_4 = arith.constant 0 : index
    %2 = vector.load %arg2[%c0_2, %c0_3, %c0_4] : memref<1x8x32xf32, #tpu.memory_space<vmem>>, vector<1x8x32xf32>
    %3 = vector.shape_cast %2 : vector<1x8x32xf32> to vector<8x32xf32>
    %c0_5 = arith.constant 0 : index
    %c0_6 = arith.constant 0 : index
    %4 = vector.load %arg3[%c0_5, %c0_6] : memref<32x32xf32, #tpu.memory_space<vmem>>, vector<32x32xf32>
    %cst = arith.constant dense<0.000000e+00> : vector<8x32xf32>
    %5 = tpu.matmul %1, %4, %cst {dimension_numbers = #tpu.dot_dimension_numbers<[1], [0], [0], [1], [0, 0, 1, 1], [], []>} : vector<8x32xf32>, vector<32x32xf32>, vector<8x32xf32> -> vector<8x32xf32>
    %c0_7 = arith.constant 0 : index
    %c0_8 = arith.constant 0 : index
    %6 = vector.load %arg4[%c0_7, %c0_8] : memref<1x32xf32, #tpu.memory_space<vmem>>, vector<1x32xf32>
    %7 = vector.broadcast %6 : vector<1x32xf32> to vector<8x32xf32>
    %8 = arith.addf %5, %7 : vector<8x32xf32>
    %c0_9 = arith.constant 0 : index
    %c0_10 = arith.constant 0 : index
    %9 = vector.load %arg5[%c0_9, %c0_10] : memref<32x32xf32, #tpu.memory_space<vmem>>, vector<32x32xf32>
    %cst_11 = arith.constant dense<0.000000e+00> : vector<8x32xf32>
    %10 = tpu.matmul %3, %9, %cst_11 {dimension_numbers = #tpu.dot_dimension_numbers<[1], [0], [0], [1], [0, 0, 1, 1], [], []>} : vector<8x32xf32>, vector<32x32xf32>, vector<8x32xf32> -> vector<8x32xf32>
    %c0_12 = arith.constant 0 : index
    %c0_13 = arith.constant 0 : index
    %11 = vector.load %arg6[%c0_12, %c0_13] : memref<1x32xf32, #tpu.memory_space<vmem>>, vector<1x32xf32>
    %12 = vector.broadcast %11 : vector<1x32xf32> to vector<8x32xf32>
    %13 = arith.addf %10, %12 : vector<8x32xf32>
    %c0_14 = arith.constant 0 : index
    %c0_15 = arith.constant 0 : index
    %14 = vector.load %arg7[%c0_14, %c0_15] : memref<32x32xf32, #tpu.memory_space<vmem>>, vector<32x32xf32>
    %cst_16 = arith.constant dense<0.000000e+00> : vector<8x32xf32>
    %15 = tpu.matmul %3, %14, %cst_16 {dimension_numbers = #tpu.dot_dimension_numbers<[1], [0], [0], [1], [0, 0, 1, 1], [], []>} : vector<8x32xf32>, vector<32x32xf32>, vector<8x32xf32> -> vector<8x32xf32>
    %c0_17 = arith.constant 0 : index
    %c0_18 = arith.constant 0 : index
    %16 = vector.load %arg8[%c0_17, %c0_18] : memref<1x32xf32, #tpu.memory_space<vmem>>, vector<1x32xf32>
    %17 = vector.broadcast %16 : vector<1x32xf32> to vector<8x32xf32>
    %18 = arith.addf %15, %17 : vector<8x32xf32>
    %19 = vector.extract_strided_slice %8 {offsets = [0, 0], sizes = [8, 8], strides = [1, 1]} : vector<8x32xf32> to vector<8x8xf32>
    %20 = vector.extract_strided_slice %13 {offsets = [0, 0], sizes = [8, 8], strides = [1, 1]} : vector<8x32xf32> to vector<8x8xf32>
    %21 = vector.extract_strided_slice %18 {offsets = [0, 0], sizes = [8, 8], strides = [1, 1]} : vector<8x32xf32> to vector<8x8xf32>
    %cst_19 = arith.constant dense<0.000000e+00> : vector<8x8xf32>
    %22 = tpu.matmul %19, %20, %cst_19 {dimension_numbers = #tpu.dot_dimension_numbers<[1], [1], [0], [0], [0, 0, 1, 0], [], []>} : vector<8x8xf32>, vector<8x8xf32>, vector<8x8xf32> -> vector<8x8xf32>
    %cst_20 = arith.constant 0.353553385 : f32
    %23 = vector.broadcast %cst_20 : f32 to vector<8x8xf32>
    %24 = arith.mulf %22, %23 : vector<8x8xf32>
    %cst_21 = arith.constant dense<0xFF800000> : vector<8xf32>
    %25 = vector.multi_reduction <maximumf>, %24, %cst_21 [1] : vector<8x8xf32> to vector<8xf32>
    %26 = vector.shape_cast %25 : vector<8xf32> to vector<8x1xf32>
    %27 = vector.broadcast %26 : vector<8x1xf32> to vector<8x8xf32>
    %28 = arith.subf %24, %27 : vector<8x8xf32>
    %29 = math.exp %28 : vector<8x8xf32>
    %cst_22 = arith.constant dense<0.000000e+00> : vector<8xf32>
    %30 = vector.multi_reduction <add>, %29, %cst_22 [1] : vector<8x8xf32> to vector<8xf32>
    %31 = vector.shape_cast %30 : vector<8xf32> to vector<8x1xf32>
    %32 = tpu.reciprocal %31 {approx = true} : vector<8x1xf32> -> vector<8x1xf32>
    %33 = vector.broadcast %32 : vector<8x1xf32> to vector<8x8xf32>
    %34 = arith.mulf %29, %33 : vector<8x8xf32>
    %cst_23 = arith.constant dense<0.000000e+00> : vector<8x8xf32>
    %35 = tpu.matmul %34, %21, %cst_23 {dimension_numbers = #tpu.dot_dimension_numbers<[1], [0], [0], [1], [0, 0, 1, 1], [], []>} : vector<8x8xf32>, vector<8x8xf32>, vector<8x8xf32> -> vector<8x8xf32>
    %c0_24 = arith.constant 0 : index
    %c0_25 = arith.constant 0 : index
    %36 = vector.load %arg9[%c0_24, %c0_25] : memref<32x32xf32, #tpu.memory_space<vmem>>, vector<8x32xf32>
    %cst_26 = arith.constant dense<0.000000e+00> : vector<8x32xf32>
    %37 = tpu.matmul %35, %36, %cst_26 {dimension_numbers = #tpu.dot_dimension_numbers<[1], [0], [0], [1], [0, 0, 1, 1], [], []>} : vector<8x8xf32>, vector<8x32xf32>, vector<8x32xf32> -> vector<8x32xf32>
    %38 = vector.extract_strided_slice %8 {offsets = [0, 8], sizes = [8, 8], strides = [1, 1]} : vector<8x32xf32> to vector<8x8xf32>
    %39 = vector.extract_strided_slice %13 {offsets = [0, 8], sizes = [8, 8], strides = [1, 1]} : vector<8x32xf32> to vector<8x8xf32>
    %40 = vector.extract_strided_slice %18 {offsets = [0, 8], sizes = [8, 8], strides = [1, 1]} : vector<8x32xf32> to vector<8x8xf32>
    %cst_27 = arith.constant dense<0.000000e+00> : vector<8x8xf32>
    %41 = tpu.matmul %38, %39, %cst_27 {dimension_numbers = #tpu.dot_dimension_numbers<[1], [1], [0], [0], [0, 0, 1, 0], [], []>} : vector<8x8xf32>, vector<8x8xf32>, vector<8x8xf32> -> vector<8x8xf32>
    %cst_28 = arith.constant 0.353553385 : f32
    %42 = vector.broadcast %cst_28 : f32 to vector<8x8xf32>
    %43 = arith.mulf %41, %42 : vector<8x8xf32>
    %cst_29 = arith.constant dense<0xFF800000> : vector<8xf32>
    %44 = vector.multi_reduction <maximumf>, %43, %cst_29 [1] : vector<8x8xf32> to vector<8xf32>
    %45 = vector.shape_cast %44 : vector<8xf32> to vector<8x1xf32>
    %46 = vector.broadcast %45 : vector<8x1xf32> to vector<8x8xf32>
    %47 = arith.subf %43, %46 : vector<8x8xf32>
    %48 = math.exp %47 : vector<8x8xf32>
    %cst_30 = arith.constant dense<0.000000e+00> : vector<8xf32>
    %49 = vector.multi_reduction <add>, %48, %cst_30 [1] : vector<8x8xf32> to vector<8xf32>
    %50 = vector.shape_cast %49 : vector<8xf32> to vector<8x1xf32>
    %51 = tpu.reciprocal %50 {approx = true} : vector<8x1xf32> -> vector<8x1xf32>
    %52 = vector.broadcast %51 : vector<8x1xf32> to vector<8x8xf32>
    %53 = arith.mulf %48, %52 : vector<8x8xf32>
    %cst_31 = arith.constant dense<0.000000e+00> : vector<8x8xf32>
    %54 = tpu.matmul %53, %40, %cst_31 {dimension_numbers = #tpu.dot_dimension_numbers<[1], [0], [0], [1], [0, 0, 1, 1], [], []>} : vector<8x8xf32>, vector<8x8xf32>, vector<8x8xf32> -> vector<8x8xf32>
    %c8 = arith.constant 8 : index
    %c0_32 = arith.constant 0 : index
    %55 = vector.load %arg9[%c8, %c0_32] : memref<32x32xf32, #tpu.memory_space<vmem>>, vector<8x32xf32>
    %cst_33 = arith.constant dense<0.000000e+00> : vector<8x32xf32>
    %56 = tpu.matmul %54, %55, %cst_33 {dimension_numbers = #tpu.dot_dimension_numbers<[1], [0], [0], [1], [0, 0, 1, 1], [], []>} : vector<8x8xf32>, vector<8x32xf32>, vector<8x32xf32> -> vector<8x32xf32>
    %57 = arith.addf %37, %56 : vector<8x32xf32>
    %58 = vector.extract_strided_slice %8 {offsets = [0, 16], sizes = [8, 8], strides = [1, 1]} : vector<8x32xf32> to vector<8x8xf32>
    %59 = vector.extract_strided_slice %13 {offsets = [0, 16], sizes = [8, 8], strides = [1, 1]} : vector<8x32xf32> to vector<8x8xf32>
    %60 = vector.extract_strided_slice %18 {offsets = [0, 16], sizes = [8, 8], strides = [1, 1]} : vector<8x32xf32> to vector<8x8xf32>
    %cst_34 = arith.constant dense<0.000000e+00> : vector<8x8xf32>
    %61 = tpu.matmul %58, %59, %cst_34 {dimension_numbers = #tpu.dot_dimension_numbers<[1], [1], [0], [0], [0, 0, 1, 0], [], []>} : vector<8x8xf32>, vector<8x8xf32>, vector<8x8xf32> -> vector<8x8xf32>
    %cst_35 = arith.constant 0.353553385 : f32
    %62 = vector.broadcast %cst_35 : f32 to vector<8x8xf32>
    %63 = arith.mulf %61, %62 : vector<8x8xf32>
    %cst_36 = arith.constant dense<0xFF800000> : vector<8xf32>
    %64 = vector.multi_reduction <maximumf>, %63, %cst_36 [1] : vector<8x8xf32> to vector<8xf32>
    %65 = vector.shape_cast %64 : vector<8xf32> to vector<8x1xf32>
    %66 = vector.broadcast %65 : vector<8x1xf32> to vector<8x8xf32>
    %67 = arith.subf %63, %66 : vector<8x8xf32>
    %68 = math.exp %67 : vector<8x8xf32>
    %cst_37 = arith.constant dense<0.000000e+00> : vector<8xf32>
    %69 = vector.multi_reduction <add>, %68, %cst_37 [1] : vector<8x8xf32> to vector<8xf32>
    %70 = vector.shape_cast %69 : vector<8xf32> to vector<8x1xf32>
    %71 = tpu.reciprocal %70 {approx = true} : vector<8x1xf32> -> vector<8x1xf32>
    %72 = vector.broadcast %71 : vector<8x1xf32> to vector<8x8xf32>
    %73 = arith.mulf %68, %72 : vector<8x8xf32>
    %cst_38 = arith.constant dense<0.000000e+00> : vector<8x8xf32>
    %74 = tpu.matmul %73, %60, %cst_38 {dimension_numbers = #tpu.dot_dimension_numbers<[1], [0], [0], [1], [0, 0, 1, 1], [], []>} : vector<8x8xf32>, vector<8x8xf32>, vector<8x8xf32> -> vector<8x8xf32>
    %c16 = arith.constant 16 : index
    %c0_39 = arith.constant 0 : index
    %75 = vector.load %arg9[%c16, %c0_39] : memref<32x32xf32, #tpu.memory_space<vmem>>, vector<8x32xf32>
    %cst_40 = arith.constant dense<0.000000e+00> : vector<8x32xf32>
    %76 = tpu.matmul %74, %75, %cst_40 {dimension_numbers = #tpu.dot_dimension_numbers<[1], [0], [0], [1], [0, 0, 1, 1], [], []>} : vector<8x8xf32>, vector<8x32xf32>, vector<8x32xf32> -> vector<8x32xf32>
    %77 = arith.addf %57, %76 : vector<8x32xf32>
    %78 = vector.extract_strided_slice %8 {offsets = [0, 24], sizes = [8, 8], strides = [1, 1]} : vector<8x32xf32> to vector<8x8xf32>
    %79 = vector.extract_strided_slice %13 {offsets = [0, 24], sizes = [8, 8], strides = [1, 1]} : vector<8x32xf32> to vector<8x8xf32>
    %80 = vector.extract_strided_slice %18 {offsets = [0, 24], sizes = [8, 8], strides = [1, 1]} : vector<8x32xf32> to vector<8x8xf32>
    %cst_41 = arith.constant dense<0.000000e+00> : vector<8x8xf32>
    %81 = tpu.matmul %78, %79, %cst_41 {dimension_numbers = #tpu.dot_dimension_numbers<[1], [1], [0], [0], [0, 0, 1, 0], [], []>} : vector<8x8xf32>, vector<8x8xf32>, vector<8x8xf32> -> vector<8x8xf32>
    %cst_42 = arith.constant 0.353553385 : f32
    %82 = vector.broadcast %cst_42 : f32 to vector<8x8xf32>
    %83 = arith.mulf %81, %82 : vector<8x8xf32>
    %cst_43 = arith.constant dense<0xFF800000> : vector<8xf32>
    %84 = vector.multi_reduction <maximumf>, %83, %cst_43 [1] : vector<8x8xf32> to vector<8xf32>
    %85 = vector.shape_cast %84 : vector<8xf32> to vector<8x1xf32>
    %86 = vector.broadcast %85 : vector<8x1xf32> to vector<8x8xf32>
    %87 = arith.subf %83, %86 : vector<8x8xf32>
    %88 = math.exp %87 : vector<8x8xf32>
    %cst_44 = arith.constant dense<0.000000e+00> : vector<8xf32>
    %89 = vector.multi_reduction <add>, %88, %cst_44 [1] : vector<8x8xf32> to vector<8xf32>
    %90 = vector.shape_cast %89 : vector<8xf32> to vector<8x1xf32>
    %91 = tpu.reciprocal %90 {approx = true} : vector<8x1xf32> -> vector<8x1xf32>
    %92 = vector.broadcast %91 : vector<8x1xf32> to vector<8x8xf32>
    %93 = arith.mulf %88, %92 : vector<8x8xf32>
    %cst_45 = arith.constant dense<0.000000e+00> : vector<8x8xf32>
    %94 = tpu.matmul %93, %80, %cst_45 {dimension_numbers = #tpu.dot_dimension_numbers<[1], [0], [0], [1], [0, 0, 1, 1], [], []>} : vector<8x8xf32>, vector<8x8xf32>, vector<8x8xf32> -> vector<8x8xf32>
    %c24 = arith.constant 24 : index
    %c0_46 = arith.constant 0 : index
    %95 = vector.load %arg9[%c24, %c0_46] : memref<32x32xf32, #tpu.memory_space<vmem>>, vector<8x32xf32>
    %cst_47 = arith.constant dense<0.000000e+00> : vector<8x32xf32>
    %96 = tpu.matmul %94, %95, %cst_47 {dimension_numbers = #tpu.dot_dimension_numbers<[1], [0], [0], [1], [0, 0, 1, 1], [], []>} : vector<8x8xf32>, vector<8x32xf32>, vector<8x32xf32> -> vector<8x32xf32>
    %97 = arith.addf %77, %96 : vector<8x32xf32>
    %98 = arith.addf %1, %97 : vector<8x32xf32>
    %c0_48 = arith.constant 0 : index
    %c0_49 = arith.constant 0 : index
    %99 = vector.load %arg10[%c0_48, %c0_49] : memref<1x32xf32, #tpu.memory_space<vmem>>, vector<1x32xf32>
    %100 = vector.broadcast %99 : vector<1x32xf32> to vector<8x32xf32>
    %101 = arith.addf %98, %100 : vector<8x32xf32>
    %c0_50 = arith.constant 0 : index
    %c0_51 = arith.constant 0 : index
    %102 = vector.load %arg11[%c0_50, %c0_51] : memref<1x32xf32, #tpu.memory_space<vmem>>, vector<1x32xf32>
    %c0_52 = arith.constant 0 : index
    %c0_53 = arith.constant 0 : index
    %103 = vector.load %arg12[%c0_52, %c0_53] : memref<1x32xf32, #tpu.memory_space<vmem>>, vector<1x32xf32>
    %cst_54 = arith.constant dense<0.000000e+00> : vector<8xf32>
    %104 = vector.multi_reduction <add>, %101, %cst_54 [1] : vector<8x32xf32> to vector<8xf32>
    %105 = vector.shape_cast %104 : vector<8xf32> to vector<8x1xf32>
    %cst_55 = arith.constant 3.200000e+01 : f32
    %106 = vector.broadcast %cst_55 : f32 to vector<8x1xf32>
    %107 = arith.divf %105, %106 : vector<8x1xf32>
    %108 = vector.broadcast %107 : vector<8x1xf32> to vector<8x32xf32>
    %109 = arith.subf %101, %108 : vector<8x32xf32>
    %110 = arith.mulf %109, %109 : vector<8x32xf32>
    %cst_56 = arith.constant dense<0.000000e+00> : vector<8xf32>
    %111 = vector.multi_reduction <add>, %110, %cst_56 [1] : vector<8x32xf32> to vector<8xf32>
    %112 = vector.shape_cast %111 : vector<8xf32> to vector<8x1xf32>
    %cst_57 = arith.constant 3.200000e+01 : f32
    %113 = vector.broadcast %cst_57 : f32 to vector<8x1xf32>
    %114 = arith.divf %112, %113 : vector<8x1xf32>
    %115 = vector.broadcast %107 : vector<8x1xf32> to vector<8x32xf32>
    %116 = arith.subf %101, %115 : vector<8x32xf32>
    %cst_58 = arith.constant 9.99999974E-6 : f32
    %117 = vector.broadcast %cst_58 : f32 to vector<8x1xf32>
    %118 = arith.addf %114, %117 : vector<8x1xf32>
    %119 = math.rsqrt %118 : vector<8x1xf32>
    %120 = vector.broadcast %119 : vector<8x1xf32> to vector<8x32xf32>
    %121 = arith.mulf %116, %120 : vector<8x32xf32>
    %122 = vector.broadcast %102 : vector<1x32xf32> to vector<8x32xf32>
    %123 = arith.mulf %121, %122 : vector<8x32xf32>
    %124 = vector.broadcast %103 : vector<1x32xf32> to vector<8x32xf32>
    %125 = arith.addf %123, %124 : vector<8x32xf32>
    %c0_59 = arith.constant 0 : index
    %c0_60 = arith.constant 0 : index
    %c0_61 = arith.constant 0 : index
    %126 = vector.load %arg13[%c0_59, %c0_60, %c0_61] : memref<1x8x32xf32, #tpu.memory_space<vmem>>, vector<1x8x32xf32>
    %127 = vector.shape_cast %126 : vector<1x8x32xf32> to vector<8x32xf32>
    %128 = vector.shape_cast %125 : vector<8x32xf32> to vector<1x8x32xf32>
    tpu.vector_store %arg13[%c0_59, %c0_60, %c0_61], %128 {strides = array<i32>} : memref<1x8x32xf32, #tpu.memory_space<vmem>>, vector<1x8x32xf32>,
    return
  }
  func.func @transform_0(%arg0: i32) -> (i32, i32, i32) {
    %c0_i32 = arith.constant 0 : i32
    %c0_i32_0 = arith.constant 0 : i32
    %c0_i32_1 = arith.constant 0 : i32
    return %arg0, %c0_i32, %c0_i32_0 : i32, i32, i32
  }
  func.func @transform_1(%arg0: i32) -> (i32, i32, i32) {
    %c0_i32 = arith.constant 0 : i32
    %c0_i32_0 = arith.constant 0 : i32
    %c0_i32_1 = arith.constant 0 : i32
    return %arg0, %c0_i32, %c0_i32_0 : i32, i32, i32
  }
  func.func @transform_2(%arg0: i32) -> (i32, i32) {
    %c0_i32 = arith.constant 0 : i32
    %c0_i32_0 = arith.constant 0 : i32
    %c0_i32_1 = arith.constant 0 : i32
    return %c0_i32, %c0_i32_0 : i32, i32
  }
  func.func @transform_3(%arg0: i32) -> (i32, i32) {
    %c0_i32 = arith.constant 0 : i32
    %c0_i32_0 = arith.constant 0 : i32
    %c0_i32_1 = arith.constant 0 : i32
    return %c0_i32, %c0_i32_0 : i32, i32
  }
  func.func @transform_4(%arg0: i32) -> (i32, i32) {
    %c0_i32 = arith.constant 0 : i32
    %c0_i32_0 = arith.constant 0 : i32
    %c0_i32_1 = arith.constant 0 : i32
    return %c0_i32, %c0_i32_0 : i32, i32
  }
  func.func @transform_5(%arg0: i32) -> (i32, i32) {
    %c0_i32 = arith.constant 0 : i32
    %c0_i32_0 = arith.constant 0 : i32
    %c0_i32_1 = arith.constant 0 : i32
    return %c0_i32, %c0_i32_0 : i32, i32
  }
  func.func @transform_6(%arg0: i32) -> (i32, i32) {
    %c0_i32 = arith.constant 0 : i32
    %c0_i32_0 = arith.constant 0 : i32
    %c0_i32_1 = arith.constant 0 : i32
    return %c0_i32, %c0_i32_0 : i32, i32
  }
  func.func @transform_7(%arg0: i32) -> (i32, i32) {
    %c0_i32 = arith.constant 0 : i32
    %c0_i32_0 = arith.constant 0 : i32
    %c0_i32_1 = arith.constant 0 : i32
    return %c0_i32, %c0_i32_0 : i32, i32
  }
  func.func @transform_8(%arg0: i32) -> (i32, i32) {
    %c0_i32 = arith.constant 0 : i32
    %c0_i32_0 = arith.constant 0 : i32
    %c0_i32_1 = arith.constant 0 : i32
    return %c0_i32, %c0_i32_0 : i32, i32
  }
  func.func @transform_9(%arg0: i32) -> (i32, i32) {
    %c0_i32 = arith.constant 0 : i32
    %c0_i32_0 = arith.constant 0 : i32
    %c0_i32_1 = arith.constant 0 : i32
    return %c0_i32, %c0_i32_0 : i32, i32
  }
  func.func @transform_10(%arg0: i32) -> (i32, i32) {
    %c0_i32 = arith.constant 0 : i32
    %c0_i32_0 = arith.constant 0 : i32
    %c0_i32_1 = arith.constant 0 : i32
    return %c0_i32, %c0_i32_0 : i32, i32
  }
  func.func @transform_11(%arg0: i32) -> (i32, i32) {
    %c0_i32 = arith.constant 0 : i32
    %c0_i32_0 = arith.constant 0 : i32
    %c0_i32_1 = arith.constant 0 : i32
    return %c0_i32, %c0_i32_0 : i32, i32
  }
  func.func @transform_12(%arg0: i32) -> (i32, i32, i32) {
    %c0_i32 = arith.constant 0 : i32
    %c0_i32_0 = arith.constant 0 : i32
    %c0_i32_1 = arith.constant 0 : i32
    return %arg0, %c0_i32, %c0_i32_0 : i32, i32, i32
  }
}

module attributes {stable_mosaic.version = 11 : i64} {
  func.func @_ln_proj_kernel(%arg0: i32, %arg1: memref<1x8x32xf32, #tpu.memory_space<vmem>>, %arg2: memref<1x32xf32, #tpu.memory_space<vmem>>, %arg3: memref<1x32xf32, #tpu.memory_space<vmem>>, %arg4: memref<32x1xf32, #tpu.memory_space<vmem>>, %arg5: memref<1x1xf32, #tpu.memory_space<vmem>>, %arg6: memref<1x8x1xf32, #tpu.memory_space<vmem>>) attributes {dimension_semantics = [#tpu.dimension_semantics<parallel>], iteration_bounds = array<i64: 2>, scalar_prefetch = 0 : i64, scratch_operands = 0 : i64, tpu.core_type = #tpu.core_type<tc>, window_params = [{transform_indices = @transform_0, window_bounds = array<i64: 1, 8, 32>}, {pipeline_mode = #tpu.pipeline_mode<synchronous>, transform_indices = @transform_1, window_bounds = array<i64: 1, 32>}, {pipeline_mode = #tpu.pipeline_mode<synchronous>, transform_indices = @transform_2, window_bounds = array<i64: 1, 32>}, {pipeline_mode = #tpu.pipeline_mode<synchronous>, transform_indices = @transform_3, window_bounds = array<i64: 32, 1>}, {pipeline_mode = #tpu.pipeline_mode<synchronous>, transform_indices = @transform_4, window_bounds = array<i64: 1, 1>}, {transform_indices = @transform_5, window_bounds = array<i64: 1, 8, 1>}]} {
    %c0 = arith.constant 0 : index
    %c0_0 = arith.constant 0 : index
    %c0_1 = arith.constant 0 : index
    %0 = vector.load %arg1[%c0, %c0_0, %c0_1] : memref<1x8x32xf32, #tpu.memory_space<vmem>>, vector<1x8x32xf32>
    %1 = vector.shape_cast %0 : vector<1x8x32xf32> to vector<8x32xf32>
    %c0_2 = arith.constant 0 : index
    %c0_3 = arith.constant 0 : index
    %2 = vector.load %arg2[%c0_2, %c0_3] : memref<1x32xf32, #tpu.memory_space<vmem>>, vector<1x32xf32>
    %c0_4 = arith.constant 0 : index
    %c0_5 = arith.constant 0 : index
    %3 = vector.load %arg3[%c0_4, %c0_5] : memref<1x32xf32, #tpu.memory_space<vmem>>, vector<1x32xf32>
    %cst = arith.constant dense<0.000000e+00> : vector<8xf32>
    %4 = vector.multi_reduction <add>, %1, %cst [1] : vector<8x32xf32> to vector<8xf32>
    %5 = vector.shape_cast %4 : vector<8xf32> to vector<8x1xf32>
    %cst_6 = arith.constant 3.200000e+01 : f32
    %6 = vector.broadcast %cst_6 : f32 to vector<8x1xf32>
    %7 = arith.divf %5, %6 : vector<8x1xf32>
    %8 = vector.broadcast %7 : vector<8x1xf32> to vector<8x32xf32>
    %9 = arith.subf %1, %8 : vector<8x32xf32>
    %10 = arith.mulf %9, %9 : vector<8x32xf32>
    %cst_7 = arith.constant dense<0.000000e+00> : vector<8xf32>
    %11 = vector.multi_reduction <add>, %10, %cst_7 [1] : vector<8x32xf32> to vector<8xf32>
    %12 = vector.shape_cast %11 : vector<8xf32> to vector<8x1xf32>
    %cst_8 = arith.constant 3.200000e+01 : f32
    %13 = vector.broadcast %cst_8 : f32 to vector<8x1xf32>
    %14 = arith.divf %12, %13 : vector<8x1xf32>
    %15 = vector.broadcast %7 : vector<8x1xf32> to vector<8x32xf32>
    %16 = arith.subf %1, %15 : vector<8x32xf32>
    %cst_9 = arith.constant 9.99999974E-6 : f32
    %17 = vector.broadcast %cst_9 : f32 to vector<8x1xf32>
    %18 = arith.addf %14, %17 : vector<8x1xf32>
    %19 = math.rsqrt %18 : vector<8x1xf32>
    %20 = vector.broadcast %19 : vector<8x1xf32> to vector<8x32xf32>
    %21 = arith.mulf %16, %20 : vector<8x32xf32>
    %22 = vector.broadcast %2 : vector<1x32xf32> to vector<8x32xf32>
    %23 = arith.mulf %21, %22 : vector<8x32xf32>
    %24 = vector.broadcast %3 : vector<1x32xf32> to vector<8x32xf32>
    %25 = arith.addf %23, %24 : vector<8x32xf32>
    %c0_10 = arith.constant 0 : index
    %c0_11 = arith.constant 0 : index
    %26 = vector.load %arg4[%c0_10, %c0_11] : memref<32x1xf32, #tpu.memory_space<vmem>>, vector<32x1xf32>
    %cst_12 = arith.constant dense<0.000000e+00> : vector<8x1xf32>
    %27 = tpu.matmul %25, %26, %cst_12 {dimension_numbers = #tpu.dot_dimension_numbers<[1], [0], [0], [1], [0, 0, 1, 1], [], []>} : vector<8x32xf32>, vector<32x1xf32>, vector<8x1xf32> -> vector<8x1xf32>
    %c0_13 = arith.constant 0 : index
    %c0_14 = arith.constant 0 : index
    %28 = vector.load %arg5[%c0_13, %c0_14] : memref<1x1xf32, #tpu.memory_space<vmem>>, vector<1x1xf32>
    %29 = vector.broadcast %28 : vector<1x1xf32> to vector<8x1xf32>
    %30 = arith.addf %27, %29 : vector<8x1xf32>
    %c0_15 = arith.constant 0 : index
    %c0_16 = arith.constant 0 : index
    %c0_17 = arith.constant 0 : index
    %31 = vector.load %arg6[%c0_15, %c0_16, %c0_17] : memref<1x8x1xf32, #tpu.memory_space<vmem>>, vector<1x8x1xf32>
    %32 = vector.shape_cast %31 : vector<1x8x1xf32> to vector<8x1xf32>
    %33 = vector.shape_cast %30 : vector<8x1xf32> to vector<1x8x1xf32>
    tpu.vector_store %arg6[%c0_15, %c0_16, %c0_17], %33 {strides = array<i32>} : memref<1x8x1xf32, #tpu.memory_space<vmem>>, vector<1x8x1xf32>,
    return
  }
  func.func @transform_0(%arg0: i32) -> (i32, i32, i32) {
    %c0_i32 = arith.constant 0 : i32
    %c0_i32_0 = arith.constant 0 : i32
    %c0_i32_1 = arith.constant 0 : i32
    return %arg0, %c0_i32, %c0_i32_0 : i32, i32, i32
  }
  func.func @transform_1(%arg0: i32) -> (i32, i32) {
    %c0_i32 = arith.constant 0 : i32
    %c0_i32_0 = arith.constant 0 : i32
    %c0_i32_1 = arith.constant 0 : i32
    return %c0_i32, %c0_i32_0 : i32, i32
  }
  func.func @transform_2(%arg0: i32) -> (i32, i32) {
    %c0_i32 = arith.constant 0 : i32
    %c0_i32_0 = arith.constant 0 : i32
    %c0_i32_1 = arith.constant 0 : i32
    return %c0_i32, %c0_i32_0 : i32, i32
  }
  func.func @transform_3(%arg0: i32) -> (i32, i32) {
    %c0_i32 = arith.constant 0 : i32
    %c0_i32_0 = arith.constant 0 : i32
    %c0_i32_1 = arith.constant 0 : i32
    return %c0_i32, %c0_i32_0 : i32, i32
  }
  func.func @transform_4(%arg0: i32) -> (i32, i32) {
    %c0_i32 = arith.constant 0 : i32
    %c0_i32_0 = arith.constant 0 : i32
    %c0_i32_1 = arith.constant 0 : i32
    return %c0_i32, %c0_i32_0 : i32, i32
  }
  func.func @transform_5(%arg0: i32) -> (i32, i32, i32) {
    %c0_i32 = arith.constant 0 : i32
    %c0_i32_0 = arith.constant 0 : i32
    %c0_i32_1 = arith.constant 0 : i32
    return %arg0, %c0_i32, %c0_i32_0 : i32, i32, i32
  }
}

</mosaic_0001>

<bundles_post_ra>
// kernel: dyneformer_forward.17
= control target key start
LH: loop header
LB: loop body
LE: loop exit
PB: predicated region body
PF: predicated region fallthrough
CT: control target
= control target key end

     0   :  { %12 = vsyncpa [#allocation3], 0  ;;  %s824_s0 = inlined_call_operand.vmem [shape: f32[2,8,32], index: 0, kind: input, shape index: {}]   ;;  %s825_s1 = inlined_call_operand.hbm [shape: f32[32,64], index: 1, kind: input, shape index: {}]   ;;  %s826_s2 = inlined_call_operand.hbm [shape: f32[1,64], index: 2, kind: input, shape index: {}]   ;;  %s827_s3 = inlined_call_operand.vmem [shape: f32[64,32], index: 3, kind: input, shape index: {}]   ;;  %s828_s4 = inlined_call_operand.hbm [shape: f32[1,32], index: 4, kind: input, shape index: {}]   ;;  %s829_s5 = inlined_call_operand.vmem [shape: f32[1,32], index: 5, kind: input, shape index: {}]   ;;  %s830_s6 = inlined_call_operand.vmem [shape: f32[1,32], index: 6, kind: input, shape index: {}]   ;;  %s831_s7 = inlined_call_operand.vmem [shape: f32[2,8,32], index: 7, kind: output, shape index: {}]  }
   0x1   :  { %13 = vsyncpa [#allocation5], 0  ;;  %s734_s24 = smov 0  }
   0x2 LB: > { %s228_s27 = sshll.u32 %s826_s2, 4  ;;  %s743_s28 = sadd.s32 4294967295, %s686_s24   ;;  %s686_s24 = sphi %s734_s24, %s19_s24   ;;  %s229_s27 = int_to_ptr.hbm [resolvable:$true] %s228_s27 }
   0x3   : > { %p517_p0 = scmp.ge.s32.totalorder %s686_s24, 1  ;;  %p202_p1 = scmp.lt.s32.totalorder %s686_s24, 3 }
   0x4   : > { %p554_p2 = scmp.eq.s32.totalorder %s743_s28, 0  ;;  %s688_s30 = smov [#allocation4]  }
   0x5   : > { %p748_p3 = pnand %p517_p0, %p202_p1  ;;  %s230_s8 = sshll.u32 %s688_s30, 4  ;;  %s231_s8 = int_to_ptr.vmem [resolvable:$true] %s230_s8 }
   0x6   : > { %s213_s11 = sshll.u32 %s825_s1, 4  ;;  %s689_s12 = smov [#allocation2]   ;;  %s214_s11 = int_to_ptr.hbm [resolvable:$true] %s213_s11 }
   0x7   : > { %p544_p4 = pneg %p748_p3  ;;  %s215_s13 = sshll.u32 %s689_s12, 4  ;;  %s216_s13 = int_to_ptr.vmem [resolvable:$true] %s215_s13 }
   0x8   : > { %s243_s16 = sshll.u32 %s828_s4, 4  ;;  %s690_s17 = smov 128   ;;  %s244_s16 = int_to_ptr.hbm [resolvable:$true] %s243_s16 }
   0x9   : > { %p545_p5 = pnand %p554_p2, %p544_p4  ;;  %s691_s18 = smov 8  }
   0xa   : > { %s692_s19 = smov [#allocation6]   ;;  %271 = sbr.rel (%p748_p3) target bundleno = 555 (0x22b), region = 48 }
   0xb   : > { %550 = dma.hbm_to_vmem [thread:$0]  (!%p545_p5), %s229_s27, 16, %s231_s8, [#allocation5]  }
   0xc   : > { %547 = dma.hbm_to_vmem [thread:$0]  (!%p545_p5), %s214_s11, 512, %s216_s13, [#allocation3], %s690_s17, %s690_s17, %s691_s18  }
   0xd   : > { %s245_s20 = sshll.u32 %s692_s19, 4  ;;  %s246_s20 = int_to_ptr.vmem [resolvable:$true] %s245_s20 }
   0xe   : > { %553 = dma.hbm_to_vmem [thread:$0]  (!%p545_p5), %s244_s16, 16, %s246_s20, [#allocation5]  }
   0xf   : > { %677 = dma.done.wait (%p554_p2), [#allocation3], 512  }
  0x10   : > { %679 = vsyncadd (%p554_p2), [#allocation3], 4294966784 }
  0x11   : > { %681 = dma.done.wait (%p554_p2), [#allocation5], 32  }
  0x12   : > { %683 = vsyncadd (%p554_p2), [#allocation5], 4294967264  ;;  %p312_p6 = scmp.lt.s32.totalorder %s743_s28, 1  ;;  %v324_v0 = vld [vmem:[#allocation2 + $0x18] sm:$0xff]  ;;  %v323_v1 = vld [vmem:[#allocation2 + $0x10] sm:$0xff]  ;;  %vm329_vm0 = vcmask 261120  }
  0x13   : > { %345 = vmatpush.msra.mxu0 %v324_v0  ;;  %v361_v2 = vld [vmem:[%s827_s3 + $0x38] sm:$0xff]  ;;  %v322_v3 = vld [vmem:[#allocation2 + $0x8] sm:$0xff]  ;;  %v360_v4 = vld [vmem:[%s827_s3 + $0x30] sm:$0xff]  ;;  %vm366_vm1 = vcmask 523264   ;;  %v693_v22 = vmov 32.0  }
  0x14   : > { %s834_s28 = smov (!%p312_p6, %s743_s28), 1  ;;  %378 = vmatpush.msra.mxu1 %v361_v2  ;;  %v321_v5 = vld [vmem:[#allocation2] sm:$0xff]  ;;  %v359_v6 = vld [vmem:[%s827_s3 + $0x28] sm:$0xff]  ;;  %v357_v9 = vld [vmem:[%s827_s3 + $0x18] sm:$0xff]  ;;  %578 = vrcp.f32 %v693_v22 }
  0x15   : > { %s526_s21 = sshll.u32 %s834_s28, 3  ;;  %346 = vmatpush.msra.mxu0 %v323_v1  ;;  %v358_v8 = vld [vmem:[%s827_s3 + $0x20] sm:$0xff]  ;;  %v356_v10 = vld [vmem:[%s827_s3 + $0x10] sm:$0xff]  ;;  %v355_v11 = vld [vmem:[%s827_s3 + $0x8] sm:$0xff] }
  0x16   : > { %s315_s27 = scalar_lea.vmem %s824_s0, %s526_s21  ;;  %379 = vmatpush.msra.mxu1 %v360_v4  ;;  %v354_v12 = vld [vmem:[%s827_s3] sm:$0xff]  ;;  %s319_s29 = scalar_lea.vmem %s831_s7, %s526_s21 }
  0x17   : > { %347 = vmatpush.msra.mxu0 %v322_v3  ;;  %v320_v7 = vld [vmem:[%s315_s27] sm:$0xff] }
  0x18   : > { %380 = vmatpush.msra.mxu1 %v359_v6  ;;  %v574_v13 = vld [vmem:[#allocation4] ss:$0 sm:$0xff]  ;;  %v575_v17 = vld [vmem:[#allocation6] ss:$0 sm:$0xff] }
  0x19   : > { %348 = vmatpush.msra.mxu0 %v321_v5  ;;  %v576_v43 = vld [vmem:[%s829_s5] ss:$0 sm:$0xff] }
  0x1a   : > { %528 = vmatmul.msk.f32.vlgmr.msra.gmra.mxu0 %vm329_vm0, %v320_v7  ;;  %381 = vmatpush.msra.mxu1 %v358_v8  ;;  %v579_v23 = vpop.eup %578  ;;  %v577_v45 = vld [vmem:[%s830_s6] ss:$0 sm:$0xff] }
  0x1b   : > { %v397_v24 = vmul.f32 32.0, %v579_v23  ;;  %vm401_vm2 = vweird.f32 %v579_v23 }
  0x1c   : > { %382 = vmatpush.msra.mxu1 %v357_v9 }
  0x1d   : > { %v398_v25 = vsub.f32 1.0, %v397_v24 }
  0x1e   : > { %383 = vmatpush.msra.mxu1 %v356_v10 }
  0x1f   : > { %v399_v26 = vmul.f32 %v579_v23, %v398_v25 }
  0x20   : > { %384 = vmatpush.msra.mxu1 %v355_v11 }
  0x21   : > { %v400_v27 = vadd.f32 %v579_v23, %v399_v26 }
  0x22   : > { %385 = vmatpush.msra.mxu1 %v354_v12 }
  0x23   : > { %v402_v28 = vsel %vm401_vm2, %v579_v23, %v400_v27 }
  0x97   : > { %v350_v14 = vpop.f32.mrf.mxu0 }
  0x98   : > { %v351_v15 = vadd.f32 %v574_v13, %v350_v14 }
  0x9a   : > { %v353_v16 = vmax.f32 %v351_v15, 0.0 }
  0x9c   : > { %529 = vmatmul.msk.f32.vlgmr.msra.gmra.mxu1 %vm366_vm1, %v353_v16 }
 0x119   : > { %v387_v18 = vpop.f32.mrf.mxu1 }
 0x11a   : > { %v388_v19 = vadd.f32 %v575_v17, %v387_v18 }
 0x11c   : > { %v390_v20 = vadd.f32 %v388_v19, %v320_v7 }
 0x11e   : > { %v393_v21 = vsel %vm329_vm0, %v390_v20, 0.0 }
 0x11f   : > { %394 = vadd.xlane.f32.xlu0 %v393_v21 }
 0x192   : > { %v395_v29 = vpop.xlane.xlu0 %394 }
 0x193   : > { %v403_v30 = vmul.f32 %v402_v28, %v395_v29 }
 0x195   : > { %v404_v31 = vsub.f32 %v390_v20, %v403_v30 }
 0x197   : > { %v405_v32 = vmul.f32 %v404_v31, %v404_v31 }
 0x199   : > { %v406_v33 = vsel %vm329_vm0, %v405_v32, 0.0 }
 0x19a   : > { %407 = vadd.xlane.f32.xlu0 %v406_v33 }
 0x20d   : > { %v408_v34 = vpop.xlane.xlu0 %407 }
 0x20e   : > { %v409_v35 = vmul.f32 %v408_v34, %v402_v28 }
 0x210   : > { %v410_v36 = vadd.f32 1e-05, %v409_v35 }
 0x212   : > { %580 = vrsqrt.f32 %v410_v36  ;;  %vm417_vm4 = vweird.f32 %v410_v36 }
 0x218   : > { %v581_v37 = vpop.eup %580 }
 0x219   : > { %v412_v38 = vmul.f32 %v581_v37, %v410_v36  ;;  %vm418_vm3 = vweird.f32 %v581_v37 }
 0x21a   : > { %vm419_vm5 = vmor %vm417_vm4, %vm418_vm3 }
 0x21b   : > { %v413_v39 = vmul.f32 %v581_v37, %v412_v38 }
 0x21d   : > { %v414_v40 = vmul.f32 0.5, %v413_v39 }
 0x21f   : > { %v415_v41 = vsub.f32 1.5, %v414_v40 }
 0x221   : > { %v416_v42 = vmul.f32 %v581_v37, %v415_v41 }
 0x223   : > { %v420_v44 = vsel %vm419_vm5, %v581_v37, %v416_v42 }
 0x224   : > { %v421_v46 = vmul.f32 %v420_v44, %v404_v31 }
 0x226   : > { %v425_v47 = vmul.f32 %v576_v43, %v421_v46 }
 0x228   : > { %v429_v48 = vadd.f32 %v577_v45, %v425_v47 }
 0x22a   : > { %430 = vst.msk [vmem:[%s319_s29] sm:$0xff] %vm329_vm0, %v429_v48 }
 0x22b PF: > { %s19_s24 = sadd.s32 1, %s686_s24  }
 0x22c   : > { %p16_p7 = scmp.ge.s32.totalorder %s19_s24, 4  }
 0x22e   :  { %18 = sbr.rel (!%p16_p7) target bundleno = 2 (0x2), region = 91 }
 0x233   :  { %450 = vsyncpa [#allocation3], 1 }
 0x234   :  { %452 = vsyncpa [#allocation3 + $0x1], 1 }
 0x235   :  { %453 = vsyncpa [#allocation5], 1 }

// kernel: dyneformer_forward.16
= control target key start
LH: loop header
LB: loop body
LE: loop exit
PB: predicated region body
PF: predicated region fallthrough
CT: control target
= control target key end

     0   :  { %s1794_s0 = inlined_call_operand.vmem [shape: f32[2,8,32], index: 0, kind: input, shape index: {}, may-alias: {0,1}]   ;;  %s1795_s1 = inlined_call_operand.vmem [shape: f32[2,8,32], index: 1, kind: input, shape index: {}, may-alias: {0,1}]   ;;  %s1796_s2 = inlined_call_operand.vmem [shape: f32[32,32], index: 2, kind: input, shape index: {}]   ;;  %s1797_s3 = inlined_call_operand.hbm [shape: f32[1,32], index: 3, kind: input, shape index: {}]   ;;  %s1798_s4 = inlined_call_operand.hbm [shape: f32[32,32], index: 4, kind: input, shape index: {}]   ;;  %s1799_s5 = inlined_call_operand.hbm [shape: f32[1,32], index: 5, kind: input, shape index: {}]   ;;  %s1800_s6 = inlined_call_operand.hbm [shape: f32[32,32], index: 6, kind: input, shape index: {}]   ;;  %s1801_s7 = inlined_call_operand.hbm [shape: f32[1,32], index: 7, kind: input, shape index: {}]   ;;  %s1802_s8 = inlined_call_operand.hbm [shape: f32[32,32], index: 8, kind: input, shape index: {}]   ;;  %s1803_s9 = inlined_call_operand.hbm [shape: f32[1,32], index: 9, kind: input, shape index: {}]   ;;  %s1804_s10 = inlined_call_operand.vmem [shape: f32[1,32], index: 10, kind: input, shape index: {}]   ;;  %s1805_s11 = inlined_call_operand.vmem [shape: f32[1,32], index: 11, kind: input, shape index: {}]   ;;  %s1806_s12 = inlined_call_operand.vmem [shape: f32[2,8,32], index: 12, kind: output, shape index: {}]  }
   0x1   :  { %1807 = sst [smem:[#allocation17_spill]] %s1798_s4 }
   0x2   :  { %1808 = sst [smem:[#allocation18_spill]] %s1800_s6 }
   0x3   :  { %17 = vsyncpa [#allocation3], 0 }
   0x4   :  { %18 = vsyncpa [#allocation5], 0 }
   0x5   :  { %19 = vsyncpa [#allocation8], 0 }
   0x6   :  { %20 = vsyncpa [#allocation11], 0  ;;  %s1632_s21 = smov 0  }
   0x7 LB: > { %s1809_s4 = sld [smem:[#allocation17_spill]]  ;;  %s1641_s25 = sadd.s32 4294967295, %s1552_s21   ;;  %s1552_s21 = sphi %s1632_s21, %s26_s21  }
   0x8   : > { %p1168_p0 = scmp.ge.s32.totalorder %s1552_s21, 1  ;;  %p319_p1 = scmp.lt.s32.totalorder %s1552_s21, 3 }
   0x9   : > { %p1259_p2 = scmp.eq.s32.totalorder %s1641_s25, 0  ;;  %s1554_s27 = smov [#allocation4]  }
   0xa   : > { %p1646_p3 = pnand %p1168_p0, %p319_p1  ;;  %s347_s28 = sshll.u32 %s1554_s27, 4  ;;  %s348_s28 = int_to_ptr.vmem [resolvable:$true] %s347_s28 }
   0xb   : > { %s1811_s6 = sld [smem:[#allocation18_spill]]  ;;  %s1555_s15 = smov [#allocation7]  }
   0xc   : > { %p1237_p4 = pneg %p1646_p3  ;;  %s373_s16 = sshll.u32 %s1555_s15, 4  ;;  %s374_s16 = int_to_ptr.vmem [resolvable:$true] %s373_s16 }
   0xd   : > { %s345_s24 = sshll.u32 %s1809_s4, 4  ;;  %s397_s19 = sshll.u32 %s1802_s8, 4  ;;  %s346_s24 = int_to_ptr.hbm [resolvable:$true] %s345_s24  ;;  %s398_s19 = int_to_ptr.hbm [resolvable:$true] %s397_s19 }
   0xe   : > { %p1657_p5 = pnand %p1259_p2, %p1237_p4  ;;  %s1556_s20 = smov 128  }
   0xf   : > { %s1557_s22 = smov 8   ;;  %s1558_s23 = smov [#allocation10]  }
  0x10   : > { %1243 = dma.hbm_to_vmem [thread:$0]  (!%p1657_p5), %s346_s24, 512, %s348_s28, [#allocation5], %s1556_s20, %s1556_s20, %s1557_s22  }
  0x11   : > { %s371_s13 = sshll.u32 %s1811_s6, 4  ;;  %s399_s27 = sshll.u32 %s1558_s23, 4  ;;  %s372_s13 = int_to_ptr.hbm [resolvable:$true] %s371_s13  ;;  %s400_s27 = int_to_ptr.vmem [resolvable:$true] %s399_s27 }
  0x12   : > { %1249 = dma.hbm_to_vmem [thread:$0]  (!%p1657_p5), %s372_s13, 512, %s374_s16, [#allocation8], %s1556_s20, %s1556_s20, %s1557_s22  }
  0x13   : > { %s334_s15 = sshll.u32 %s1797_s3, 4  ;;  %s360_s4 = sshll.u32 %s1799_s5, 4  ;;  %s335_s15 = int_to_ptr.hbm [resolvable:$true] %s334_s15  ;;  %s361_s4 = int_to_ptr.hbm [resolvable:$true] %s360_s4 }
  0x14   : > { %1255 = dma.hbm_to_vmem [thread:$0]  (!%p1657_p5), %s398_s19, 512, %s400_s27, [#allocation11], %s1556_s20, %s1556_s20, %s1557_s22  }
  0x15   : > { %s1559_s6 = smov [#allocation2]   ;;  %s1560_s28 = smov [#allocation6]  }
  0x16   : > { %s336_s24 = sshll.u32 %s1559_s6, 4  ;;  %s362_s13 = sshll.u32 %s1560_s28, 4  ;;  %s337_s24 = int_to_ptr.vmem [resolvable:$true] %s336_s24  ;;  %s363_s13 = int_to_ptr.vmem [resolvable:$true] %s362_s13 }
  0x17   : > { %1240 = dma.hbm_to_vmem [thread:$0]  (!%p1657_p5), %s335_s15, 16, %s337_s24, [#allocation3]  }
  0x18   : > { %s386_s29 = sshll.u32 %s1801_s7, 4  ;;  %s412_s22 = sshll.u32 %s1803_s9, 4  ;;  %s387_s29 = int_to_ptr.hbm [resolvable:$true] %s386_s29  ;;  %s413_s22 = int_to_ptr.hbm [resolvable:$true] %s412_s22 }
  0x19   : > { %1246 = dma.hbm_to_vmem [thread:$0]  (!%p1657_p5), %s361_s4, 16, %s363_s13, [#allocation5]  }
  0x1a   : > { %s1561_s6 = smov [#allocation9]   ;;  %s1562_s30 = smov [#allocation12]  }
  0x1b   : > { %s388_s27 = sshll.u32 %s1561_s6, 4  ;;  %s414_s15 = sshll.u32 %s1562_s30, 4  ;;  %s389_s27 = int_to_ptr.vmem [resolvable:$true] %s388_s27  ;;  %s415_s15 = int_to_ptr.vmem [resolvable:$true] %s414_s15 }
  0x1c   : > { %1252 = dma.hbm_to_vmem [thread:$0]  (!%p1657_p5), %s387_s29, 16, %s389_s27, [#allocation8]  }
  0x1d   : > { %1258 = dma.hbm_to_vmem [thread:$0]  (!%p1657_p5), %s413_s22, 16, %s415_s15, [#allocation11]  }
  0x1e   : > { %447 = sbr.rel (%p1646_p3) target bundleno = 1625 (0x659), region = 68 }
  0x23   : > { %1535 = dma.done.wait (%p1259_p2), [#allocation3], 16  }
  0x24   : > { %1537 = vsyncadd (%p1259_p2), [#allocation3], 4294967280 }
  0x25   : > { %1539 = dma.done.wait (%p1259_p2), [#allocation5], 528  }
  0x26   : > { %1541 = vsyncadd (%p1259_p2), [#allocation5], 4294966768 }
  0x27   : > { %1543 = dma.done.wait (%p1259_p2), [#allocation8], 528  }
  0x28   : > { %1545 = vsyncadd (%p1259_p2), [#allocation8], 4294966768 }
  0x29   : > { %1547 = dma.done.wait (%p1259_p2), [#allocation11], 528  }
  0x2a   : > { %1549 = vsyncadd (%p1259_p2), [#allocation11], 4294966768  ;;  %p522_p6 = scmp.lt.s32.totalorder %s1641_s25, 1  ;;  %v571_v0 = vld [vmem:[#allocation4 + $0x18] sm:$0xff]  ;;  %v570_v1 = vld [vmem:[#allocation4 + $0x10] sm:$0xff]  ;;  %vm544_vm0 = vcmask 261120  }
  0x2b   : > { %v539_v2 = vld [vmem:[%s1796_s2 + $0x18] sm:$0xff]  ;;  %591 = vmatpush.msra.mxu1 %v571_v0  ;;  %v538_v3 = vld [vmem:[%s1796_s2 + $0x10] sm:$0xff]  ;;  %v568_v5 = vld [vmem:[#allocation4] sm:$0xff]  ;;  %vm627_vm1 = vcmask 64512   ;;  %s1563_s6 = smov 112   ;;  %s1564_s27 = smov 120  }
  0x2c   : > { %s1814_s25 = smov (!%p522_p6, %s1641_s25), 1  ;;  %560 = vmatpush.msra.mxu0 %v539_v2  ;;  %v569_v4 = vld [vmem:[#allocation4 + $0x8] sm:$0xff]  ;;  %v536_v8 = vld [vmem:[%s1796_s2] sm:$0xff]  ;;  %s1565_s30 = smov 104   ;;  %v601_v23 = vld [vmem:[#allocation7 + $0x10] sm:$0xff] }
  0x2d   : > { %s1710_s4 = sshll.u32 %s1814_s25, 3  ;;  %v537_v6 = vld [vmem:[%s1796_s2 + $0x8] sm:$0xff]  ;;  %592 = vmatpush.msra.mxu1 %v570_v1  ;;  %v1294_v10 = vld [vmem:[#allocation6] ss:$0 sm:$0xff]  ;;  %v1295_v11 = vld [vmem:[#allocation2] ss:$0 sm:$0xff] }
  0x2e   : > { %s529_s24 = scalar_lea.vmem %s1795_s1, %s1710_s4  ;;  %s525_s19 = scalar_lea.vmem %s1794_s0, %s1710_s4  ;;  %561 = vmatpush.msra.mxu0 %v538_v3  ;;  %v602_v16 = vld [vmem:[#allocation7 + $0x18] sm:$0xff]  ;;  %v600_v24 = vld [vmem:[#allocation7 + $0x8] sm:$0xff]  ;;  %v599_v25 = vld [vmem:[#allocation7] sm:$0xff] }
  0x2f   : > { %v535_v7 = vld [vmem:[%s529_s24] sm:$0xff]  ;;  %593 = vmatpush.msra.mxu1 %v569_v4  ;;  %619 = vmatpush.msra.mxu2 %v602_v16  ;;  %v757_v2 = vld [vmem:[#allocation10 + $0x8] sm:$0xff]  ;;  %s533_s28 = scalar_lea.vmem %s1806_s12, %s1710_s4 }
  0x30   : > { %562 = vmatpush.msra.mxu0 %v537_v6  ;;  %v1732_v9 = vld [vmem:[%s525_s19] sm:$0xff] }
  0x31   : > { %594 = vmatpush.msra.mxu1 %v568_v5  ;;  %620 = vmatpush.msra.mxu2 %v601_v23  ;;  %v1296_v34 = vld [vmem:[#allocation9] ss:$0 sm:$0xff]  ;;  %v689_v37 = vld [vmem:[#allocation10] sm:$0xff] }
  0x32   : > { %563 = vmatpush.msra.mxu0 %v536_v8  ;;  %1189 = vmatmul.msk.f32.vlgmr.msra.gmra.mxu1 %vm544_vm0, %v535_v7 }
  0x33   : > { %1188 = vmatmul.msk.f32.vlgmr.msra.gmra.mxu0 %vm544_vm0, %v1732_v9  ;;  %621 = vmatpush.msra.mxu2 %v600_v24 }
  0x35   : > { %622 = vmatpush.msra.mxu2 %v599_v25 }
  0x36   : > { %1190 = vmatmul.msk.f32.vlgmr.msra.gmra.mxu2 %vm544_vm0, %v535_v7 }
  0x37   : > { %776 = vmatpush.msrb.mxu2 %v757_v2 }
  0xaf   : > { %v596_v12 = vpop.f32.mrf.mxu1 }
  0xb0   : > { %v565_v13 = vpop.f32.mrf.mxu0  ;;  %v597_v14 = vadd.f32 %v1294_v10, %v596_v12 }
  0xb1   : > { %v566_v15 = vadd.f32 %v1295_v11, %v565_v13 }
  0xb2   : > { %806 = vrot.lane.b32.xlu2 %v597_v14, %s1563_s6  ;;  %692 = vrot.lane.b32.xlu1 %v597_v14, %s1564_s27 }
  0xb3   : > { %1191 = vmatpush.xpose.msk.msra.mxu3 %vm627_vm1, %v597_v14 }
  0xb6   : > { %1192 = vmatmul.msk.f32.vlgmr.msra.gmra.mxu3 %vm627_vm1, %v566_v15 }
  0xb9   : > { %v624_v35 = vpop.f32.mrf.mxu2 }
  0xba   : > { %897 = vrot.lane.b32.xlu2 %v597_v14, %s1565_s30  ;;  %690 = vrot.lane.b32.xlu1 %v566_v15, %s1564_s27  ;;  %v1752_v36 = vadd.f32 %v1296_v34, %v624_v35  ;;  %v870_v14 = vld [vmem:[#allocation10 + $0x10] sm:$0xff] }
  0xbb   : > { %889 = vmatpush.msra.mxu2 %v870_v14 }
  0xbc   : > { %684 = vmatpush.msrb.mxu3 %v1752_v36 }
  0xbe   : > { %799 = vmatpush.msra.mxu3 %v689_v37 }
  0xc2   : > { %895 = vrot.lane.b32.xlu1 %v566_v15, %s1565_s30 }
 0x10c   : > { %v807_v18 = vpop.permute.xlu2 %806 }
 0x114   : > { %v898_v38 = vpop.permute.xlu2 %897 }
 0x124   : > { %v693_v17 = vpop.permute.xlu1 %692 }
 0x125   : > { %1194 = vmatpush.xpose.msk.msrb.mxu0 %vm627_vm1, %v693_v17 }
 0x129   : > { %1199 = vmatpush.xpose.msk.msra.mxu0 %vm627_vm1, %v807_v18 }
 0x12c   : > { %v691_v19 = vpop.permute.xlu1 %690 }
 0x12d   : > { %1195 = vmatmul.msk.f32.vlgmr.msrb.gmra.mxu0 %vm627_vm1, %v691_v19 }
 0x134   : > { %v896_v52 = vpop.permute.xlu1 %895 }
 0x139   : > { %v651_v20 = vpop.f32.mrf.mxu3 }
 0x13a   : > { %v654_v21 = vmul.f32 0.35355338, %v651_v20  ;;  %v961_v20 = vld [vmem:[#allocation10 + $0x18] sm:$0xff] }
 0x13c   : > { %v655_v22 = vsel %vm627_vm1, %v654_v21, -inf }
 0x13d   : > { %656 = vmax.xlane.f32.xlu0 %v655_v22 }
 0x1aa   : > { %v715_v26 = vpop.f32.mrf.mxu0 }
 0x1ab   : > { %v718_v27 = vmul.f32 0.35355338, %v715_v26 }
 0x1ad   : > { %v719_v28 = vsel %vm627_vm1, %v718_v27, -inf }
 0x1ae   : > { %720 = vmax.xlane.f32.xlu2 %v719_v28  ;;  %v1297_v28 = vld [vmem:[#allocation12] ss:$0 sm:$0xff] }
 0x1b0   : > { %v657_v29 = vpop.xlane.xlu0 %656 }
 0x1b1   : > { %v658_v30 = vsub.f32 %v654_v21, %v657_v29 }
 0x1b3   : > { %v659_v31 = vmul.f32 1.442695, %v658_v30 }
 0x1b5   : > { %1300 = vpow2.f32 %v659_v31 }
 0x1bb   : > { %v1301_v32 = vpop.eup %1300 }
 0x1bc   : > { %v661_v33 = vsel %vm627_vm1, %v1301_v32, 0.0 }
 0x1bd   : > { %662 = vadd.xlane.f32.xlu0 %v661_v33 }
 0x1d1   : > { %804 = vrot.lane.b32.xlu0 %v566_v15, %s1563_s6 }
 0x221   : > { %v721_v39 = vpop.xlane.xlu2 %720 }
 0x222   : > { %v722_v40 = vsub.f32 %v718_v27, %v721_v39 }
 0x224   : > { %v723_v41 = vmul.f32 1.442695, %v722_v40 }
 0x226   : > { %1302 = vpow2.f32 %v723_v41 }
 0x22c   : > { %v1303_v42 = vpop.eup %1302 }
 0x22d   : > { %v725_v43 = vsel %vm627_vm1, %v1303_v42, 0.0 }
 0x22e   : > { %726 = vadd.xlane.f32.xlu2 %v725_v43 }
 0x230   : > { %v663_v44 = vpop.xlane.xlu0 %662 }
 0x231   : > { %1304 = vrcp.f32 %v663_v44 }
 0x237   : > { %v1305_v45 = vpop.eup %1304 }
 0x238   : > { %v665_v46 = vmul.f32 %v1305_v45, %v1301_v32  ;;  %v1566_v32 = vmov 32.0  }
 0x23a   : > { %1193 = vmatmul.msk.f32.vlgmr.msrb.gmra.mxu3 %vm627_vm1, %v665_v46 }
 0x23b   : > { %1203 = vmatpush.xpose.msk.msrb.mxu3 %vm627_vm1, %v898_v38 }
 0x243   : > { %v805_v47 = vpop.permute.xlu0 %804 }
 0x244   : > { %1200 = vmatmul.msk.f32.vlgmr.msra.gmra.mxu0 %vm627_vm1, %v805_v47 }
 0x2a1   : > { %v727_v58 = vpop.xlane.xlu2 %726 }
 0x2bd   : > { %v686_v48 = vpop.f32.mrf.mxu3 }
 0x2be   : > { %1198 = vmatmul.msk.f32.vlgmr.msra.gmra.mxu3 %vm627_vm1, %v686_v48 }
 0x2c1   : > { %v829_v49 = vpop.f32.mrf.mxu0 }
 0x2c2   : > { %v832_v50 = vmul.f32 0.35355338, %v829_v49 }
 0x2c4   : > { %v833_v51 = vsel %vm627_vm1, %v832_v50, -inf }
 0x2c5   : > { %834 = vmax.xlane.f32.xlu1 %v833_v51 }
 0x2c6   : > { %1204 = vmatmul.msk.f32.vlgmr.msrb.gmra.mxu3 %vm627_vm1, %v896_v52  ;;  %v1298_v52 = vld [vmem:[%s1804_s10] ss:$0 sm:$0xff] }
 0x2de   : > { %731 = vrot.lane.b32.xlu1 %v1752_v36, %s1564_s27 }
 0x338   : > { %v835_v53 = vpop.xlane.xlu1 %834 }
 0x339   : > { %v836_v54 = vsub.f32 %v832_v50, %v835_v53 }
 0x33b   : > { %v837_v55 = vmul.f32 1.442695, %v836_v54  ;;  %v1299_v54 = vld [vmem:[%s1805_s11] ss:$0 sm:$0xff] }
 0x33d   : > { %1306 = vpow2.f32 %v837_v55 }
 0x33e   : > { %1308 = vrcp.f32 %v727_v58 }
 0x341   : > { %v801_v56 = vpop.f32.mrf.mxu3 }
 0x343   : > { %v1307_v57 = vpop.eup %1306 }
 0x344   : > { %v839_v59 = vsel %vm627_vm1, %v1307_v57, 0.0  ;;  %v1309_v63 = vpop.eup %1308 }
 0x345   : > { %840 = vadd.xlane.f32.xlu2 %v839_v59  ;;  %v729_v1 = vmul.f32 %v1309_v63, %v1303_v42 }
 0x349   : > { %v920_v60 = vpop.f32.mrf.mxu3 }
 0x34a   : > { %v923_v61 = vmul.f32 0.35355338, %v920_v60 }
 0x34c   : > { %v924_v62 = vsel %vm627_vm1, %v923_v61, -inf }
 0x34d   : > { %925 = vmax.xlane.f32.xlu0 %v924_v62 }
 0x350   : > { %v732_v0 = vpop.permute.xlu1 %731 }
 0x351   : > { %752 = vmatpush.msrb.mxu1 %v732_v0 }
 0x352   : > { %1196 = vmatmul.msk.f32.vlgmr.msrb.gmra.mxu1 %vm627_vm1, %v729_v1 }
 0x361   : > { %844 = vrot.lane.b32.xlu0 %v1752_v36, %s1563_s6 }
 0x3b8   : > { %v841_v6 = vpop.xlane.xlu2 %840 }
 0x3c0   : > { %v926_v3 = vpop.xlane.xlu0 %925 }
 0x3c1   : > { %v927_v4 = vsub.f32 %v923_v61, %v926_v3 }
 0x3c3   : > { %v928_v5 = vmul.f32 1.442695, %v927_v4 }
 0x3c5   : > { %1310 = vpow2.f32 %v928_v5 }
 0x3c6   : > { %1312 = vrcp.f32 %v841_v6 }
 0x3cb   : > { %v1311_v7 = vpop.eup %1310 }
 0x3cc   : > { %v930_v8 = vsel %vm627_vm1, %v1311_v7, 0.0  ;;  %v1313_v11 = vpop.eup %1312 }
 0x3cd   : > { %931 = vadd.xlane.f32.xlu2 %v930_v8  ;;  %v843_v12 = vmul.f32 %v1313_v11, %v1307_v57 }
 0x3cf   : > { %v754_v10 = vpop.f32.mrf.mxu1 }
 0x3d0   : > { %1197 = vmatmul.msk.f32.vlgmr.msrb.gmra.mxu2 %vm627_vm1, %v754_v10 }
 0x3d3   : > { %v845_v13 = vpop.permute.xlu0 %844 }
 0x3d4   : > { %865 = vmatpush.msra.mxu1 %v845_v13 }
 0x3d5   : > { %1201 = vmatmul.msk.f32.vlgmr.msra.gmra.mxu1 %vm627_vm1, %v843_v12 }
 0x3d6   : > { %980 = vmatpush.msrb.mxu1 %v961_v20 }
 0x3e5   : > { %935 = vrot.lane.b32.xlu2 %v1752_v36, %s1565_s30 }
 0x440   : > { %v932_v15 = vpop.xlane.xlu2 %931 }
 0x441   : > { %1314 = vrcp.f32 %v932_v15 }
 0x442   : > { %1316 = vrcp.f32 %v1566_v32 }
 0x447   : > { %v1315_v16 = vpop.eup %1314 }
 0x448   : > { %v934_v17 = vmul.f32 %v1315_v16, %v1311_v7  ;;  %v936_v18 = vpop.permute.xlu2 %935  ;;  %v1317_v33 = vpop.eup %1316 }
 0x449   : > { %956 = vmatpush.msrb.mxu0 %v936_v18  ;;  %v998_v34 = vmul.f32 32.0, %v1317_v33  ;;  %vm1002_vm2 = vweird.f32 %v1317_v33 }
 0x44a   : > { %1205 = vmatmul.msk.f32.vlgmr.msrb.gmra.mxu0 %vm627_vm1, %v934_v17 }
 0x44b   : > { %v999_v35 = vsub.f32 1.0, %v998_v34 }
 0x44d   : > { %v1000_v36 = vmul.f32 %v1317_v33, %v999_v35 }
 0x44f   : > { %v1001_v37 = vadd.f32 %v1317_v33, %v1000_v36 }
 0x451   : > { %v1003_v38 = vsel %vm1002_vm2, %v1317_v33, %v1001_v37 }
 0x452   : > { %v867_v19 = vpop.f32.mrf.mxu1 }
 0x453   : > { %1202 = vmatmul.msk.f32.vlgmr.msra.gmra.mxu2 %vm627_vm1, %v867_v19  ;;  %v778_v22 = vpop.f32.mrf.mxu2 }
 0x454   : > { %v802_v24 = vadd.f32 %v801_v56, %v778_v22 }
 0x4c7   : > { %v958_v21 = vpop.f32.mrf.mxu0 }
 0x4c8   : > { %1206 = vmatmul.msk.f32.vlgmr.msrb.gmra.mxu1 %vm627_vm1, %v958_v21 }
 0x4d6   : > { %v891_v23 = vpop.f32.mrf.mxu2 }
 0x4d7   : > { %v894_v25 = vadd.f32 %v891_v23, %v802_v24 }
 0x545   : > { %v982_v26 = vpop.f32.mrf.mxu1 }
 0x546   : > { %v985_v27 = vadd.f32 %v982_v26, %v894_v25 }
 0x548   : > { %v986_v29 = vadd.f32 %v985_v27, %v1732_v9 }
 0x54a   : > { %v991_v30 = vadd.f32 %v1297_v28, %v986_v29 }
 0x54c   : > { %v994_v31 = vsel %vm544_vm0, %v991_v30, 0.0 }
 0x54d   : > { %995 = vadd.xlane.f32.xlu1 %v994_v31 }
 0x5c0   : > { %v996_v39 = vpop.xlane.xlu1 %995 }
 0x5c1   : > { %v1004_v40 = vmul.f32 %v1003_v38, %v996_v39 }
 0x5c3   : > { %v1005_v41 = vsub.f32 %v991_v30, %v1004_v40 }
 0x5c5   : > { %v1006_v42 = vmul.f32 %v1005_v41, %v1005_v41 }
 0x5c7   : > { %v1007_v43 = vsel %vm544_vm0, %v1006_v42, 0.0 }
 0x5c8   : > { %1008 = vadd.xlane.f32.xlu0 %v1007_v43 }
 0x63b   : > { %v1009_v9 = vpop.xlane.xlu0 %1008 }
 0x63c   : > { %v1010_v44 = vmul.f32 %v1009_v9, %v1003_v38 }
 0x63e   : > { %v1011_v45 = vadd.f32 1e-05, %v1010_v44 }
 0x640   : > { %1318 = vrsqrt.f32 %v1011_v45  ;;  %vm1018_vm4 = vweird.f32 %v1011_v45 }
 0x646   : > { %v1319_v46 = vpop.eup %1318 }
 0x647   : > { %v1013_v47 = vmul.f32 %v1319_v46, %v1011_v45  ;;  %vm1019_vm3 = vweird.f32 %v1319_v46 }
 0x648   : > { %vm1020_vm5 = vmor %vm1018_vm4, %vm1019_vm3 }
 0x649   : > { %v1014_v48 = vmul.f32 %v1319_v46, %v1013_v47 }
 0x64b   : > { %v1015_v49 = vmul.f32 0.5, %v1014_v48 }
 0x64d   : > { %v1016_v50 = vsub.f32 1.5, %v1015_v49 }
 0x64f   : > { %v1017_v51 = vmul.f32 %v1319_v46, %v1016_v50 }
 0x651   : > { %v1021_v53 = vsel %vm1020_vm5, %v1319_v46, %v1017_v51 }
 0x652   : > { %v1022_v55 = vmul.f32 %v1021_v53, %v1005_v41 }
 0x654   : > { %v1026_v56 = vmul.f32 %v1298_v52, %v1022_v55 }
 0x656   : > { %v1030_v57 = vadd.f32 %v1299_v54, %v1026_v56 }
 0x658   : > { %1031 = vst.msk [vmem:[%s533_s28] sm:$0xff] %vm544_vm0, %v1030_v57 }
 0x659 PF: > { %s26_s21 = sadd.s32 1, %s1552_s21  }
 0x65a   : > { %p23_p7 = scmp.ge.s32.totalorder %s26_s21, 4  }
 0x65c   :  { %25 = sbr.rel (!%p23_p7) target bundleno = 7 (0x7), region = 130 }
 0x661   :  { %1051 = vsyncpa [#allocation3], 1 }
 0x662   :  { %1053 = vsyncpa [#allocation3 + $0x1], 1 }
 0x663   :  { %1054 = vsyncpa [#allocation5], 1 }
 0x664   :  { %1055 = vsyncpa [#allocation8], 1 }
 0x665   :  { %1056 = vsyncpa [#allocation11], 1 }

// kernel: dyneformer_forward.15
= control target key start
LH: loop header
LB: loop body
LE: loop exit
PB: predicated region body
PF: predicated region fallthrough
CT: control target
= control target key end

     0   :  { %s1792_s0 = inlined_call_operand.vmem [shape: f32[2,8,4], index: 0, kind: input, shape index: {}]   ;;  %s1793_s1 = inlined_call_operand.vmem [shape: f32[2,8,4], index: 1, kind: input, shape index: {}]   ;;  %s1794_s2 = inlined_call_operand.vmem [shape: f32[2,8,4], index: 2, kind: input, shape index: {}]   ;;  %s1795_s3 = inlined_call_operand.vmem [shape: f32[2,8,4], index: 3, kind: input, shape index: {}]   ;;  %s1796_s4 = inlined_call_operand.vmem [shape: f32[8,32], index: 4, kind: input, shape index: {}]   ;;  %s1797_s5 = inlined_call_operand.hbm [shape: f32[2,1,6], index: 5, kind: input, shape index: {}]   ;;  %s1798_s6 = inlined_call_operand.vmem [shape: f32[4,32], index: 6, kind: input, shape index: {}]   ;;  %s1799_s7 = inlined_call_operand.hbm [shape: f32[4,32], index: 7, kind: input, shape index: {}]   ;;  %s1800_s8 = inlined_call_operand.hbm [shape: f32[4,32], index: 8, kind: input, shape index: {}]   ;;  %s1801_s9 = inlined_call_operand.hbm [shape: f32[4,32], index: 9, kind: input, shape index: {}]   ;;  %s1802_s10 = inlined_call_operand.vmem [shape: f32[32,32], index: 10, kind: input, shape index: {}]   ;;  %s1803_s11 = inlined_call_operand.hbm [shape: f32[1,32], index: 11, kind: input, shape index: {}]   ;;  %s1804_s12 = inlined_call_operand.hbm [shape: f32[6,32], index: 12, kind: input, shape index: {}]   ;;  %s1805_s13 = inlined_call_operand.hbm [shape: f32[1,32], index: 13, kind: input, shape index: {}]   ;;  %s1806_s14 = inlined_call_operand.vmem [shape: f32[1,32], index: 14, kind: input, shape index: {}]   ;;  %s1807_s15 = inlined_call_operand.vmem [shape: f32[1,32], index: 15, kind: input, shape index: {}]   ;;  %s1808_s16 = inlined_call_operand.vmem [shape: f32[2,8,32], index: 16, kind: output, shape index: {}]  }
   0x1   :  { %1809 = sst [smem:[#allocation17_spill]] %s1792_s0 }
   0x2   :  { %1810 = sst [smem:[#allocation18_spill]] %s1799_s7 }
   0x3   :  { %1811 = sst [smem:[#allocation19_spill]] %s1801_s9 }
   0x4   :  { %1812 = sst [smem:[#allocation20_spill]] %s1804_s12 }
   0x5   :  { %1813 = sst [smem:[#allocation21_spill]] %s1806_s14 }
   0x6   :  { %1814 = sst [smem:[#allocation22_spill]] %s1807_s15 }
   0x7   :  { %1815 = sst [smem:[#allocation23_spill]] %s1808_s16 }
   0x8   :  { %21 = vsyncpa [#allocation3], 0 }
   0x9   :  { %23 = vsyncpa [#allocation3 + $0x1], 0 }
   0xa   :  { %24 = vsyncpa [#allocation5], 0 }
   0xb   :  { %25 = vsyncpa [#allocation8], 0 }
   0xc   :  { %26 = vsyncpa [#allocation11], 0  ;;  %s1587_s21 = smov 0   ;;  %s1589_s22 = smov 0  }
   0xd   :  { %s1591_s23 = smov 0   ;;  %s1593_s24 = smov 0  }
   0xe LB: > { %s1816_s7 = sld [smem:[#allocation18_spill]]  ;;  %s1611_s28 = sadd.s32 4294967295, %s1493_s24   ;;  %s1493_s24 = sphi %s1593_s24, %s1830_s24   ;;  %s1489_s23 = sphi %s1591_s23, %s1829_s23   ;;  %s1485_s22 = sphi %s1589_s22, %s1828_s22   ;;  %s1481_s21 = sphi %s1587_s21, %s1827_s21  }
   0xf   : > { %p1092_p0 = scmp.ge.s32.totalorder %s1493_s24, 1  ;;  %p178_p1 = scmp.eq.s32.totalorder %s1611_s28, 0 }
  0x10   : > { %p424_p2 = scmp.lt.s32.totalorder %s1493_s24, 3  ;;  %s1495_s30 = smov [#allocation4]  }
  0x11   : > { %s444_s0 = sshll.u32 %s1495_s30, 4  ;;  %s1818_s9 = sld [smem:[#allocation19_spill]]  ;;  %s445_s0 = int_to_ptr.vmem [resolvable:$true] %s444_s0 }
  0x12   : > { %p1616_p3 = pnand %p1092_p0, %p424_p2  ;;  %s1496_s25 = smov [#allocation7]  }
  0x13   : > { %s468_s26 = sshll.u32 %s1496_s25, 4  ;;  %s1820_s12 = sld [smem:[#allocation20_spill]]  ;;  %s469_s26 = int_to_ptr.vmem [resolvable:$true] %s468_s26 }
  0x14   : > { %s442_s27 = sshll.u32 %s1816_s7, 4  ;;  %p1151_p4 = pneg %p1616_p3  ;;  %s443_s27 = int_to_ptr.hbm [resolvable:$true] %s442_s27 }
  0x15   : > { %s1497_s15 = smov [#allocation10]   ;;  %s1498_s7 = smov [#allocation6]  }
  0x16   : > { %p1627_p5 = pnand %p1151_p4, %p178_p1  ;;  %s495_s14 = sshll.u32 %s1497_s15, 4  ;;  %s496_s14 = int_to_ptr.vmem [resolvable:$true] %s495_s14 }
  0x17   : > { %s466_s19 = sshll.u32 %s1818_s9, 4  ;;  %s454_s9 = sshll.u32 %s1800_s8, 4  ;;  %s467_s19 = int_to_ptr.hbm [resolvable:$true] %s466_s19  ;;  %s455_s9 = int_to_ptr.hbm [resolvable:$true] %s454_s9 }
  0x18   : > { %1154 = dma.hbm_to_vmem [thread:$0]  (!%p1627_p5), %s443_s27, 64, %s445_s0, [#allocation5]  }
  0x19   : > { %s493_s16 = sshll.u32 %s1820_s12, 4  ;;  %s456_s25 = sshll.u32 %s1498_s7, 4  ;;  %s494_s16 = int_to_ptr.hbm [resolvable:$true] %s493_s16  ;;  %s457_s25 = int_to_ptr.vmem [resolvable:$true] %s456_s25 }
  0x1a   : > { %1160 = dma.hbm_to_vmem [thread:$0]  (!%p1627_p5), %s467_s19, 64, %s469_s26, [#allocation8]  }
  0x1b   : > { %1166 = dma.hbm_to_vmem [thread:$0]  (!%p1627_p5), %s494_s16, 128, %s496_s14, [#allocation11]  }
  0x1c   : > { %s481_s27 = sshll.u32 %s1803_s11, 4  ;;  %s505_s14 = sshll.u32 %s1805_s13, 4  ;;  %s482_s27 = int_to_ptr.hbm [resolvable:$true] %s481_s27  ;;  %s506_s14 = int_to_ptr.hbm [resolvable:$true] %s505_s14 }
  0x1d   : > { %1157 = dma.hbm_to_vmem [thread:$0]  (!%p1627_p5), %s455_s9, 64, %s457_s25, [#allocation5]  }
  0x1e   : > { %s1499_s16 = smov [#allocation9]   ;;  %s1500_s12 = smov [#allocation12]  }
  0x1f   : > { %s483_s19 = sshll.u32 %s1499_s16, 4  ;;  %s507_s9 = sshll.u32 %s1500_s12, 4  ;;  %s484_s19 = int_to_ptr.vmem [resolvable:$true] %s483_s19  ;;  %s508_s9 = int_to_ptr.vmem [resolvable:$true] %s507_s9 }
  0x20   : > { %1163 = dma.hbm_to_vmem [thread:$0]  (!%p1627_p5), %s482_s27, 16, %s484_s19, [#allocation8]  }
  0x21   : > { %1169 = dma.hbm_to_vmem [thread:$0]  (!%p1627_p5), %s506_s14, 16, %s508_s9, [#allocation11]  }
  0x22   : > { %s1656_s26 = sadd.s32 1, %s1493_s24   ;;  %s164_s17 = sadd.s32 1, %s1489_s23 }
  0x23   : > { %s161_s18 = ssub.s32 %s1493_s24, %s1656_s26  ;;  %p171_p6 = scmp.ne.s32.totalorder %s1489_s23, %s1485_s22 }
  0x24   : > { %p162_p7 = scmp.eq.s32.totalorder %s161_s18, 0  ;;  %p172_p8 = scmp.eq.s32.totalorder %s1493_s24, 0 }
  0x25   : > { %p177_p9 = scmp.ne.s32.totalorder %s1485_s22, %s1481_s21  ;;  %p1180_p10 = scmp.lt.s32.totalorder %s1493_s24, 2 }
  0x26   : > { %s1668_s7 = scalar_select %p162_p7, %s1489_s23, %s164_s17  }
  0x27   : > { %p173_p11 = por %p172_p8, %p171_p6  ;;  %p1672_p12 = por %p178_p1, %p177_p9 }
  0x28   : > { %s552_s20 = sand.u32 1, %s1489_s23   ;;  %s558_s15 = scalar_lea.hbm %s1797_s5, %s1493_s24 }
  0x29   : > { %s560_s0 = sshll.u32 %s558_s15, 4  ;;  %s555_s14 = scalar_lea.vmem [#allocation2], %s552_s20  ;;  %s561_s0 = int_to_ptr.hbm [resolvable:$true] %s560_s0 }
  0x2a   : > { %s562_s16 = sshll.u32 %s555_s14, 4  ;;  %p1681_p13 = pnand %p1180_p10, %p173_p11  ;;  %s563_s16 = int_to_ptr.vmem [resolvable:$true] %s562_s16 }
  0x2b   : > { %s553_s19 = scalar_lea.sflag [#allocation3], %s552_s20  ;;  %s1417_s12 = sshra.s32 %s561_s0, 4  ;;  %s1418_s12 = int_to_ptr.hbm [resolvable:$true] %s1417_s12 }
  0x2c   : > { %s1419_s9 = scalar_lea.hbm %s1418_s12, 1  ;;  %p1421_p2 = pneg %p1681_p13 }
  0x2d   : > { %p1420_p0 = scmp.ne.s32.totalorder %s1418_s12, %s1419_s9  ;;  %s1424_s18 = scalar_lea.hbm %s1797_s5, 2 }
  0x2e   : > { %p1425_p6 = scmp.lt.s32.totalorder %s1418_s12, %s1797_s5  ;;  %p1426_p7 = scmp.lt.s32.totalorder %s1424_s18, %s1419_s9 }
  0x2f   : > { %p1422_p4 = pnand %p1421_p2, %p1420_p0 }
  0x30   : > { %p1427_p8 = por %p1426_p7, %p1425_p6 }
  0x31   : > { %p1423_p5 = pneg %p1422_p4 }
  0x33   : > { %p1428_p9 = pnand %p1427_p8, %p1423_p5 }
  0x35   : > { %1431 = shalt.err (!%p1428_p9)
}
  0x36   : > { %1173 = dma.hbm_to_vmem [thread:$0]  (!%p1681_p13), %s561_s0, 16, %s563_s16, %s553_s19  }
  0x37   : > { %571 = sbr.rel (%p1616_p3) target bundleno = 866 (0x362), region = 84  ;;  %s573_s20 = sand.u32 (!%p1616_p3), 1, %s1485_s22  }
  0x38   : > { %s574_s15 = scalar_lea.sflag (!%p1616_p3), [#allocation3], %s573_s20  ;;  %s1698_s14 = scalar_lea.vmem (!%p1616_p3), [#allocation2], %s573_s20 }
  0x3c   : > { %1464 = dma.done.wait (%p1672_p12), %s574_s15, 16  }
  0x3d   : > { %1466 = vsyncadd (%p1672_p12), %s574_s15, 4294967280 }
  0x3e   : > { %1468 = dma.done.wait (%p178_p1), [#allocation5], 128  }
  0x3f   : > { %1470 = vsyncadd (%p178_p1), [#allocation5], 4294967168 }
  0x40   : > { %1472 = dma.done.wait (%p178_p1), [#allocation8], 80  }
  0x41   : > { %1474 = vsyncadd (%p178_p1), [#allocation8], 4294967216 }
  0x42   : > { %1476 = dma.done.wait (%p178_p1), [#allocation11], 144  }
  0x43   : > { %1478 = vsyncadd (%p178_p1), [#allocation11], 4294967152  ;;  %p670_p3 = scmp.lt.s32.totalorder %s1611_s28, 1  ;;  %vm699_vm0 = vcmask 1043456   ;;  %vm695_vm1 = vcmask 31744   ;;  %s1823_s30 = sld [smem:[#allocation17_spill]] }
  0x44   : > { %v749_v0 = vld [vmem:[#allocation6] sm:$0xf]  ;;  %v778_v2 = vld [vmem:[#allocation7] sm:$0xf]  ;;  %v694_v4 = vld [vmem:[#allocation4] sm:$0xf] }
  0x45   : > { %s1832_s28 = smov (!%p670_p3, %s1611_s28), 1  ;;  %1116 = vmatpush.msk.msra.mxu2 %vm699_vm0, %v749_v0  ;;  %1118 = vmatpush.msk.msra.mxu3 %vm699_vm0, %v778_v2  ;;  %v693_v5 = vld [vmem:[%s1798_s6] sm:$0xf]  ;;  %v811_v8 = vld [vmem:[%s1802_s10 + $0x18] sm:$0xff]  ;;  %v810_v9 = vld [vmem:[%s1802_s10 + $0x10] sm:$0xff]  ;;  %vm816_vm2 = vcmask 261120  }
  0x46   : > { %s1718_s29 = sshll.u32 %s1832_s28, 3  ;;  %1112 = vmatpush.msk.msra.mxu0 %vm699_vm0, %v694_v4  ;;  %1114 = vmatpush.msk.msra.mxu1 %vm699_vm0, %v693_v5  ;;  %v809_v10 = vld [vmem:[%s1802_s10 + $0x8] sm:$0xff]  ;;  %v808_v11 = vld [vmem:[%s1802_s10] sm:$0xff]  ;;  %v841_v21 = vld [vmem:[#allocation10] sm:$0x3f]  ;;  %vm847_vm3 = vcmask 1045504  }
  0x47   : > { %s681_s16 = scalar_lea.vmem %s1794_s2, %s1718_s29  ;;  %s685_s12 = scalar_lea.vmem %s1795_s3, %s1718_s29  ;;  %v806_v18 = vld [vmem:[%s1796_s4] sm:$0xff]  ;;  %v1226_v22 = vld [vmem:[#allocation9] ss:$0 sm:$0xff]  ;;  %vm843_vm4 = vcmask 48128   ;;  %v842_v32 = vld [vmem:[#allocation12] sm:$0x1] }
  0x48   : > { %s677_s17 = scalar_lea.vmem %s1793_s1, %s1718_s29  ;;  %v692_v1 = vld [vmem:[%s681_s16] sm:$0xff]  ;;  %832 = vmatpush.msrb.mxu0 %v811_v8  ;;  %1121 = vmatpush.msk.msrb.mxu1 %vm847_vm3, %v841_v21  ;;  %v1501_v42 = vmov 32.0   ;;  %s1825_s15 = sld [smem:[#allocation22_spill]] }
  0x49   : > { %s673_s27 = scalar_lea.vmem %s1823_s30, %s1718_s29  ;;  %v777_v3 = vld [vmem:[%s685_s12] sm:$0xff]  ;;  %1117 = vmatmul.msk.f32.vlgmr.msra.gmra.mxu2 %vm695_vm1, %v692_v1  ;;  %s1824_s30 = sld [smem:[#allocation21_spill]] }
  0x4a   : > { %1119 = vmatmul.msk.f32.vlgmr.msra.gmra.mxu3 %vm695_vm1, %v777_v3  ;;  %v691_v6 = vld [vmem:[%s677_s17] sm:$0xff]  ;;  %833 = vmatpush.msrb.mxu0 %v810_v9  ;;  %s1826_s16 = sld [smem:[#allocation23_spill]] }
  0x4b   : > { %v690_v7 = vld [vmem:[%s673_s27] sm:$0xff]  ;;  %1113 = vmatmul.msk.f32.vlgmr.msra.gmra.mxu0 %vm695_vm1, %v691_v6 }
  0x4c   : > { %1115 = vmatmul.msk.f32.vlgmr.msra.gmra.mxu1 %vm695_vm1, %v690_v7  ;;  %834 = vmatpush.msrb.mxu0 %v809_v10  ;;  %v840_v26 = vld [vmem:[%s1698_s14] sm:$0x1] }
  0x4e   : > { %835 = vmatpush.msrb.mxu0 %v808_v11  ;;  %v1228_v1 = vld [vmem:[%s1825_s15] ss:$0 sm:$0xff] }
  0x4f   : > { %v1227_v63 = vld [vmem:[%s1824_s30] ss:$0 sm:$0xff] }
  0x50   : > { %s689_s21 = scalar_lea.vmem %s1826_s16, %s1718_s29 }
  0x54   : > { %1122 = vmatmul.msk.f32.vlgmr.msrb.gmra.mxu1 %vm843_vm4, %v840_v26 }
  0xc8   : > { %v720_v12 = vpop.f32.mrf.mxu0 }
  0xc9   : > { %v746_v13 = vpop.f32.mrf.mxu1 }
  0xca   : > { %v747_v14 = vadd.f32 %v746_v13, %v720_v12 }
  0xcc   : > { %v773_v15 = vpop.f32.mrf.mxu2 }
  0xcd   : > { %v802_v16 = vpop.f32.mrf.mxu3  ;;  %v776_v17 = vadd.f32 %v773_v15, %v747_v14 }
  0xcf   : > { %v805_v19 = vadd.f32 %v802_v16, %v776_v17 }
  0xd1   : > { %v807_v20 = vadd.f32 %v806_v18, %v805_v19  ;;  %v868_v33 = vpop.f32.mrf.mxu1 }
  0xd2   : > { %v869_v35 = vadd.f32 %v868_v33, %v842_v32 }
  0xd3   : > { %1120 = vmatmul.msk.f32.vlgmr.msrb.gmra.mxu0 %vm816_vm2, %v807_v20 }
  0xd4   : > { %v882_v36 = vperm.slane %v869_v35, 0 }
 0x150   : > { %v837_v23 = vpop.f32.mrf.mxu0 }
 0x151   : > { %v838_v24 = vadd.f32 %v1226_v22, %v837_v23 }
 0x153   : > { %v871_v25 = vsel %vm816_vm2, %v838_v24, -inf }
 0x154   : > { %872 = vmax.xlane.f32.xlu0 %v871_v25 }
 0x1c7   : > { %v873_v27 = vpop.xlane.xlu0 %872 }
 0x1c8   : > { %v874_v28 = vsub.f32 %v838_v24, %v873_v27 }
 0x1ca   : > { %v875_v29 = vmul.f32 1.442695, %v874_v28 }
 0x1cc   : > { %1229 = vpow2.f32 %v875_v29 }
 0x1d2   : > { %v1230_v30 = vpop.eup %1229 }
 0x1d3   : > { %v877_v31 = vsel %vm816_vm2, %v1230_v30, 0.0 }
 0x1d4   : > { %878 = vadd.xlane.f32.xlu0 %v877_v31 }
 0x247   : > { %v879_v34 = vpop.xlane.xlu0 %878 }
 0x248   : > { %1231 = vrcp.f32 %v879_v34 }
 0x249   : > { %1233 = vrcp.f32 %v1501_v42 }
 0x24e   : > { %v1232_v37 = vpop.eup %1231 }
 0x24f   : > { %v881_v38 = vmul.f32 %v1232_v37, %v1230_v30  ;;  %v1234_v43 = vpop.eup %1233 }
 0x250   : > { %v891_v44 = vmul.f32 32.0, %v1234_v43  ;;  %vm895_vm5 = vweird.f32 %v1234_v43 }
 0x251   : > { %v883_v39 = vmul.f32 %v882_v36, %v881_v38 }
 0x252   : > { %v892_v45 = vsub.f32 1.0, %v891_v44 }
 0x253   : > { %v884_v40 = vadd.f32 %v883_v39, %v807_v20 }
 0x254   : > { %v893_v46 = vmul.f32 %v1234_v43, %v892_v45 }
 0x255   : > { %v887_v41 = vsel %vm816_vm2, %v884_v40, 0.0 }
 0x256   : > { %888 = vadd.xlane.f32.xlu1 %v887_v41  ;;  %v894_v47 = vadd.f32 %v1234_v43, %v893_v46 }
 0x258   : > { %v896_v48 = vsel %vm895_vm5, %v1234_v43, %v894_v47 }
 0x2c9   : > { %v889_v49 = vpop.xlane.xlu1 %888 }
 0x2ca   : > { %v897_v50 = vmul.f32 %v896_v48, %v889_v49 }
 0x2cc   : > { %v898_v51 = vsub.f32 %v884_v40, %v897_v50 }
 0x2ce   : > { %v899_v52 = vmul.f32 %v898_v51, %v898_v51 }
 0x2d0   : > { %v900_v53 = vsel %vm816_vm2, %v899_v52, 0.0 }
 0x2d1   : > { %901 = vadd.xlane.f32.xlu1 %v900_v53 }
 0x344   : > { %v902_v54 = vpop.xlane.xlu1 %901 }
 0x345   : > { %v903_v55 = vmul.f32 %v902_v54, %v896_v48 }
 0x347   : > { %v904_v56 = vadd.f32 1e-05, %v903_v55 }
 0x349   : > { %1235 = vrsqrt.f32 %v904_v56  ;;  %vm911_vm7 = vweird.f32 %v904_v56 }
 0x34f   : > { %v1236_v57 = vpop.eup %1235 }
 0x350   : > { %v906_v58 = vmul.f32 %v1236_v57, %v904_v56  ;;  %vm912_vm6 = vweird.f32 %v1236_v57 }
 0x351   : > { %vm913_vm8 = vmor %vm911_vm7, %vm912_vm6 }
 0x352   : > { %v907_v59 = vmul.f32 %v1236_v57, %v906_v58 }
 0x354   : > { %v908_v60 = vmul.f32 0.5, %v907_v59 }
 0x356   : > { %v909_v61 = vsub.f32 1.5, %v908_v60 }
 0x358   : > { %v910_v62 = vmul.f32 %v1236_v57, %v909_v61 }
 0x35a   : > { %v914_v0 = vsel %vm913_vm8, %v1236_v57, %v910_v62 }
 0x35b   : > { %v915_v2 = vmul.f32 %v914_v0, %v898_v51 }
 0x35d   : > { %v919_v3 = vmul.f32 %v1227_v63, %v915_v2 }
 0x35f   : > { %v923_v4 = vadd.f32 %v1228_v1, %v919_v3 }
 0x361   : > { %924 = vst.msk [vmem:[%s689_s21] sm:$0xff] %vm816_vm2, %v923_v4 }
 0x362 PF: > { %p29_p1 = scmp.ge.s32.totalorder %s1656_s26, 4   ;;  %s1827_s21 = smov %s1485_s22 }
 0x363   : > { %s1828_s22 = smov %s1489_s23  ;;  %s1829_s23 = smov %s1668_s7 }
 0x364   : > { %s1830_s24 = smov %s1656_s26  ;;  %31 = sbr.rel (!%p29_p1) target bundleno = 14 (0xe), region = 160 }
 0x369   :  { %944 = vsyncpa [#allocation3], 1 }
 0x36a   :  { %946 = vsyncpa [#allocation3 + $0x1], 1 }
 0x36b   :  { %947 = vsyncpa [#allocation5], 1 }
 0x36c   :  { %948 = vsyncpa [#allocation8], 1 }
 0x36d   :  { %949 = vsyncpa [#allocation11], 1 }

// kernel: dyneformer_forward.18
= control target key start
LH: loop header
LB: loop body
LE: loop exit
PB: predicated region body
PF: predicated region fallthrough
CT: control target
= control target key end

     0   :  { %14 = vsyncpa [#allocation3], 0  ;;  %s618_s0 = inlined_call_operand.vmem [shape: f32[2,256], index: 0, kind: input, shape index: {}]   ;;  %s619_s1 = inlined_call_operand.vmem [shape: f32[5,8], index: 1, kind: input, shape index: {}]   ;;  %s620_s2 = inlined_call_operand.hbm [shape: f32[256,5], index: 2, kind: input, shape index: {}]   ;;  %s621_s3 = inlined_call_operand.hbm [shape: f32[1,5], index: 3, kind: input, shape index: {}]   ;;  %s622_s4 = inlined_call_operand.hbm [shape: f32[8,256], index: 4, kind: input, shape index: {}]   ;;  %s623_s5 = inlined_call_operand.hbm [shape: f32[1,256], index: 5, kind: input, shape index: {}]   ;;  %s624_s6 = inlined_call_operand.vmem [shape: f32[2,256], index: 6, kind: output, shape index: {0}]   ;;  %s625_s7 = inlined_call_operand.hbm [shape: f32[2,5], index: 7, kind: output, shape index: {1}]   ;;  %s626_s8 = inlined_call_operand.hbm [shape: f32[2,8], index: 8, kind: output, shape index: {2}]  }
   0x1   :  { %15 = vsyncpa [#allocation6], 0 }
   0x2   :  { %16 = vsyncpa [#allocation9], 0 }
   0x3   :  { %17 = vsyncpa [#allocation4], 0  ;;  %s41_s29 = sshll.u32 %s621_s3, 4  ;;  %s42_s29 = int_to_ptr.hbm [resolvable:$true] %s41_s29 }
   0x4   :  { %18 = vsyncpa [#allocation12], 0  ;;  %s532_s30 = smov [#allocation5]   ;;  %s27_s12 = sshll.u32 %s620_s2, 4  ;;  %s28_s12 = int_to_ptr.hbm [resolvable:$true] %s27_s12 }
   0x5   :  { %s43_s9 = sshll.u32 %s532_s30, 4  ;;  %s533_s13 = smov [#allocation2]   ;;  %s44_s9 = int_to_ptr.vmem [resolvable:$true] %s43_s9 }
   0x6   :  { %46 = dma.hbm_to_vmem [thread:$0]  %s42_s29, 16, %s44_s9, [#allocation6]  }
   0x7   :  { %s29_s14 = sshll.u32 %s533_s13, 4  ;;  %s534_s15 = smov 128   ;;  %s30_s14 = int_to_ptr.vmem [resolvable:$true] %s29_s14 }
   0x8   :  { %s535_s16 = smov 8   ;;  %s52_s3 = sshll.u32 %s622_s4, 4  ;;  %s53_s3 = int_to_ptr.hbm [resolvable:$true] %s52_s3 }
   0x9   :  { %35 = dma.hbm_to_vmem [thread:$0]  %s28_s12, 4096, %s30_s14, [#allocation3], %s534_s15, %s534_s15, %s535_s16  }
   0xa   :  { %s536_s19 = smov [#allocation7]   ;;  %s63_s2 = sshll.u32 %s623_s5, 4  ;;  %s64_s2 = int_to_ptr.hbm [resolvable:$true] %s63_s2 }
   0xb   :  { %s54_s20 = sshll.u32 %s536_s19, 4  ;;  %s537_s23 = smov [#allocation8]   ;;  %s55_s20 = int_to_ptr.vmem [resolvable:$true] %s54_s20 }
   0xc   :  { %57 = dma.hbm_to_vmem [thread:$0]  %s53_s3, 256, %s55_s20, [#allocation6]  }
   0xd   :  { %s65_s24 = sshll.u32 %s537_s23, 4  ;;  %s66_s24 = int_to_ptr.vmem [resolvable:$true] %s65_s24 }
   0xe   :  { %68 = dma.hbm_to_vmem [thread:$0]  %s64_s2, 32, %s66_s24, [#allocation9]  }
   0xf   :  { %522 = dma.done.wait [#allocation3], 4096  }
  0x10   :  { %523 = vsyncadd [#allocation3], 4294963200 }
  0x11   :  { %524 = dma.done.wait [#allocation6], 272  }
  0x12   :  { %525 = vsyncadd [#allocation6], 4294967024 }
  0x13   :  { %526 = dma.done.wait [#allocation9], 32  }
  0x14   :  { %527 = vsyncadd [#allocation9], 4294967264  ;;  %v101_v0 = vld [vmem:[#allocation2 + $0x78] sm:$0xff]  ;;  %v100_v1 = vld [vmem:[#allocation2 + $0x70] sm:$0xff]  ;;  %vm190_vm0 = vcmask 64512   ;;  %vm168_vm1 = vcmask 33792  }
  0x15   :  { %v117_v2 = vld [vmem:[#allocation2 + $0xf8] sm:$0xff]  ;;  %128 = vmatpush.msra.mxu0 %v101_v0  ;;  %v116_v3 = vld [vmem:[#allocation2 + $0xf0] sm:$0xff]  ;;  %v99_v4 = vld [vmem:[#allocation2 + $0x68] sm:$0xff]  ;;  %vm238_vm2 = vcmask 1044480   ;;  %vm234_vm3 = vcmask 39936   ;;  %s538_s28 = smov [#allocation10]  }
  0x16   :  { %148 = vmatpush.msra.mxu1 %v117_v2  ;;  %v115_v5 = vld [vmem:[#allocation2 + $0xe8] sm:$0xff]  ;;  %v98_v6 = vld [vmem:[#allocation2 + $0x60] sm:$0xff]  ;;  %v97_v8 = vld [vmem:[#allocation2 + $0x58] sm:$0xff]  ;;  %s325_s29 = sshll.u32 %s538_s28, 4  ;;  %s327_s10 = sshll.u32 %s625_s7, 4  ;;  %vm288_vm4 = vcmask 1041408   ;;  %s326_s29 = int_to_ptr.vmem [resolvable:$true] %s325_s29  ;;  %s328_s10 = int_to_ptr.hbm [resolvable:$true] %s327_s10 }
  0x17   :  { %129 = vmatpush.msra.mxu0 %v100_v1  ;;  %v114_v7 = vld [vmem:[#allocation2 + $0xe0] sm:$0xff]  ;;  %v113_v9 = vld [vmem:[#allocation2 + $0xd8] sm:$0xff]  ;;  %v96_v10 = vld [vmem:[#allocation2 + $0x50] sm:$0xff]  ;;  %s539_s12 = smov [#allocation11]   ;;  %s338_s16 = sshll.u32 %s626_s8, 4  ;;  %vm316_vm5 = vcmask 58368   ;;  %s339_s16 = int_to_ptr.hbm [resolvable:$true] %s338_s16 }
  0x18   :  { %149 = vmatpush.msra.mxu1 %v116_v3  ;;  %v112_v11 = vld [vmem:[#allocation2 + $0xd0] sm:$0xff]  ;;  %v95_v12 = vld [vmem:[#allocation2 + $0x48] sm:$0xff]  ;;  %v85_v14 = vld [vmem:[%s618_s0] sm:$0xf]  ;;  %s336_s13 = sshll.u32 %s539_s12, 4  ;;  %s337_s13 = int_to_ptr.vmem [resolvable:$true] %s336_s13 }
  0x19   :  { %130 = vmatpush.msra.mxu0 %v99_v4  ;;  %v111_v13 = vld [vmem:[#allocation2 + $0xc8] sm:$0xff]  ;;  %123 = vst [vmem:[#allocation1] ss:$4 sm:$0xff] %v85_v14  ;;  %v94_v15 = vld [vmem:[#allocation2 + $0x40] sm:$0xff]  ;;  %v93_v17 = vld [vmem:[#allocation2 + $0x38] sm:$0xff] }
  0x1a   :  { %150 = vmatpush.msra.mxu1 %v115_v5  ;;  %v110_v16 = vld [vmem:[#allocation2 + $0xc0] sm:$0xff]  ;;  %v109_v18 = vld [vmem:[#allocation2 + $0xb8] sm:$0xff]  ;;  %v92_v19 = vld [vmem:[#allocation2 + $0x30] sm:$0xff] }
  0x1b   :  { %131 = vmatpush.msra.mxu0 %v98_v6  ;;  %v108_v20 = vld [vmem:[#allocation2 + $0xb0] sm:$0xff]  ;;  %v91_v21 = vld [vmem:[#allocation2 + $0x28] sm:$0xff]  ;;  %v90_v23 = vld [vmem:[#allocation2 + $0x20] sm:$0xff] }
  0x1c   :  { %151 = vmatpush.msra.mxu1 %v114_v7  ;;  %v107_v22 = vld [vmem:[#allocation2 + $0xa8] sm:$0xff]  ;;  %v106_v24 = vld [vmem:[#allocation2 + $0xa0] sm:$0xff]  ;;  %v89_v25 = vld [vmem:[#allocation2 + $0x18] sm:$0xff] }
  0x1d   :  { %132 = vmatpush.msra.mxu0 %v97_v8  ;;  %v105_v26 = vld [vmem:[#allocation2 + $0x98] sm:$0xff]  ;;  %v88_v27 = vld [vmem:[#allocation2 + $0x10] sm:$0xff]  ;;  %v87_v29 = vld [vmem:[#allocation2 + $0x8] sm:$0xff] }
  0x1e   :  { %152 = vmatpush.msra.mxu1 %v113_v9  ;;  %v104_v28 = vld [vmem:[#allocation2 + $0x90] sm:$0xff]  ;;  %v103_v30 = vld [vmem:[#allocation2 + $0x88] sm:$0xff]  ;;  %v86_v31 = vld [vmem:[#allocation2] sm:$0xff] }
  0x1f   :  { %133 = vmatpush.msra.mxu0 %v96_v10  ;;  %v102_v32 = vld [vmem:[#allocation2 + $0x80] sm:$0xff]  ;;  %v181_v36 = vld [vmem:[%s619_s1] sm:$0x1f]  ;;  %v183_v43 = vld [vmem:[#allocation7 + $0x8] sm:$0xff] }
  0x20   :  { %153 = vmatpush.msra.mxu1 %v112_v11  ;;  %v124_v33 = vld.sshfl [vmem:[#allocation1] sm:$0xff pattern:$0x73625140]  ;;  %v125_v34 = vld.sshfl [vmem:[#allocation1 + $0x8] sm:$0xff pattern:$0x73625140]  ;;  %229 = vmatpush.msra.mxu3 %v183_v43 }
  0x21   :  { %134 = vmatpush.msra.mxu0 %v95_v12  ;;  %v182_v35 = vld [vmem:[#allocation7] sm:$0xff]  ;;  %v373_v37 = vld [vmem:[#allocation5] ss:$0 sm:$0xff]  ;;  %358 = vmatmul.msk.f32.vlgmr.msra.gmra.mxu3 %vm190_vm0, %v181_v36  ;;  %v184_v49 = vld [vmem:[#allocation8] sm:$0x3] }
  0x22   :  { %154 = vmatpush.msra.mxu1 %v111_v13  ;;  %209 = vmatpush.msra.mxu2 %v182_v35  ;;  %v186_v50 = vperm.slane %v184_v49, 0  ;;  %v187_v53 = vperm.slane %v184_v49, 1  ;;  %v292_v56 = vld [vmem:[%s619_s1] sm:$0x1f] }
  0x23   :  { %135 = vmatpush.msra.mxu0 %v94_v15  ;;  %357 = vmatmul.msk.f32.vlgmr.msra.gmra.mxu2 %vm190_vm0, %v181_v36 }
  0x24   :  { %155 = vmatpush.msra.mxu1 %v110_v16 }
  0x25   :  { %136 = vmatpush.msra.mxu0 %v93_v17 }
  0x26   :  { %156 = vmatpush.msra.mxu1 %v109_v18 }
  0x27   :  { %137 = vmatpush.msra.mxu0 %v92_v19 }
  0x28   :  { %157 = vmatpush.msra.mxu1 %v108_v20 }
  0x29   :  { %138 = vmatpush.msra.mxu0 %v91_v21 }
  0x2a   :  { %158 = vmatpush.msra.mxu1 %v107_v22 }
  0x2b   :  { %139 = vmatpush.msra.mxu0 %v90_v23 }
  0x2c   :  { %159 = vmatpush.msra.mxu1 %v106_v24 }
  0x2d   :  { %140 = vmatpush.msra.mxu0 %v89_v25 }
  0x2e   :  { %160 = vmatpush.msra.mxu1 %v105_v26 }
  0x2f   :  { %141 = vmatpush.msra.mxu0 %v88_v27 }
  0x30   :  { %161 = vmatpush.msra.mxu1 %v104_v28 }
  0x31   :  { %142 = vmatpush.msra.mxu0 %v87_v29 }
  0x32   :  { %162 = vmatpush.msra.mxu1 %v103_v30 }
  0x33   :  { %143 = vmatpush.msra.mxu0 %v86_v31 }
  0x34   :  { %163 = vmatpush.msra.mxu1 %v102_v32  ;;  %144 = vmatmul.f32.vlgmr.msra.gmra.mxu0 %v124_v33 }
  0x35   :  { %164 = vmatmul.f32.vlgmr.msra.gmra.mxu1 %v125_v34 }
  0xa4   :  { %v231_v54 = vpop.f32.mrf.mxu3 }
  0xa5   :  { %v232_v55 = vadd.f32 %v231_v54, %v187_v53 }
  0xa6   :  { %v211_v51 = vpop.f32.mrf.mxu2 }
  0xa7   :  { %v212_v52 = vadd.f32 %v211_v51, %v186_v50  ;;  %361 = vmatpush.msk.msrb.mxu3 %vm238_vm2, %v232_v55 }
  0xa9   :  { %359 = vmatpush.msk.msrb.mxu2 %vm238_vm2, %v212_v52 }
  0xab   :  { %363 = vmatpush.msk.msra.mxu2 %vm238_vm2, %v292_v56 }
  0xb1   :  { %v145_v38 = vpop.f32.mrf.mxu0 }
  0xb2   :  { %v165_v39 = vpop.f32.mrf.mxu1  ;;  %v146_v40 = vadd.f32 %v373_v37, %v145_v38 }
  0xb4   :  { %v166_v41 = vadd.f32 %v165_v39, %v146_v40 }
  0xb6   :  { %v169_v42 = vsel %vm168_vm1, %v166_v41, -inf }
  0xb7   :  { %170 = vmax.xlane.f32.xlu0 %v169_v42 }
 0x12a   :  { %v171_v44 = vpop.xlane.xlu0 %170 }
 0x12b   :  { %v172_v45 = vsub.f32 %v166_v41, %v171_v44 }
 0x12d   :  { %v173_v46 = vmul.f32 1.442695, %v172_v45 }
 0x12f   :  { %374 = vpow2.f32 %v173_v46 }
 0x135   :  { %v375_v47 = vpop.eup %374 }
 0x136   :  { %v175_v48 = vsel %vm168_vm1, %v375_v47, 0.0 }
 0x137   :  { %176 = vadd.xlane.f32.xlu0 %v175_v48 }
 0x1aa   :  { %v177_v57 = vpop.xlane.xlu0 %176 }
 0x1ab   :  { %376 = vrcp.f32 %v177_v57 }
 0x1b1   :  { %v377_v58 = vpop.eup %376 }
 0x1b2   :  { %v179_v59 = vmul.f32 %v377_v58, %v375_v47 }
 0x1b4   :  { %180 = vst.msk [vmem:[#allocation10] sm:$0x3] %vm168_vm1, %v179_v59  ;;  %360 = vmatmul.msk.f32.vlgmr.msrb.gmra.mxu2 %vm234_vm3, %v179_v59  ;;  %362 = vmatmul.msk.f32.vlgmr.msrb.gmra.mxu3 %vm234_vm3, %v179_v59 }
 0x1b5   :  { %330 = dma.vmem_to_hbm [thread:$0]  %s326_s29, 32, %s328_s10, [#allocation4]  }
 0x1bc   :  { %364 = vmatmul.msk.f32.vlgmr.msra.gmra.mxu2 %vm234_vm3, %v179_v59 }
 0x237   :  { %v262_v60 = vpop.f32.mrf.mxu2  ;;  %v282_v61 = vpop.f32.mrf.mxu3 }
 0x238   :  { %v287_v62 = vrot.slane %v282_v61, 6 }
 0x23a   :  { %v289_v63 = vsel %vm288_vm4, %v262_v60, %v287_v62 }
 0x23b   :  { %291 = vst [vmem:[%s624_s6] sm:$0xf] %v289_v63 }
 0x23f   :  { %v313_v0 = vpop.f32.mrf.mxu2 }
 0x240   :  { %317 = vst.msk [vmem:[#allocation11] sm:$0x3] %vm316_vm5, %v313_v0 }
 0x241   :  { %341 = dma.vmem_to_hbm [thread:$0]  %s337_s13, 32, %s339_s16, [#allocation12]  }
 0x242   :  { %528 = dma.done.wait [#allocation4], 32  }
 0x243   :  { %529 = vsyncadd [#allocation4], 4294967264 }
 0x244   :  { %530 = dma.done.wait [#allocation12], 32  }
 0x245   :  { %531 = vsyncadd [#allocation12], 4294967264 }
 0x246   :  { %352 = vsyncpa [#allocation3], 1 }
 0x247   :  { %353 = vsyncpa [#allocation6], 1 }
 0x248   :  { %354 = vsyncpa [#allocation9], 1 }
 0x249   :  { %355 = vsyncpa [#allocation4], 1 }
 0x24a   :  { %356 = vsyncpa [#allocation12], 1 }

// kernel: dyneformer_forward.19
= control target key start
LH: loop header
LB: loop body
LE: loop exit
PB: predicated region body
PF: predicated region fallthrough
CT: control target
= control target key end

     0   :  { %s378_s15 = smov 0   ;;  %s412_s0 = inlined_call_operand.vmem [shape: f32[2,8,32], index: 0, kind: input, shape index: {}]   ;;  %s413_s1 = inlined_call_operand.vmem [shape: f32[2,8,32], index: 1, kind: input, shape index: {}]   ;;  %s414_s2 = inlined_call_operand.vmem [shape: f32[1,32], index: 2, kind: input, shape index: {}]   ;;  %s415_s3 = inlined_call_operand.vmem [shape: f32[1,32], index: 3, kind: input, shape index: {}]   ;;  %s416_s4 = inlined_call_operand.vmem [shape: f32[2,8,32], index: 4, kind: output, shape index: {}]  }
   0x1 LB: > { %s319_s16 = sadd.s32 4294967295, %s350_s15   ;;  %p323_p0 = scmp.ge.s32.totalorder %s350_s15, 1  ;;  %s350_s15 = sphi %s378_s15, %s14_s15  }
   0x2   : > { %p170_p1 = scmp.lt.s32.totalorder %s350_s15, 3 }
   0x4   : > { %p171_p2 = pnand %p323_p0, %p170_p1 }
   0x5   : > { %p198_p3 = scmp.lt.s32.totalorder (!%p171_p2), %s319_s16, 1 }
   0x6   : > { %174 = sbr.rel (%p171_p2) target bundleno = 287 (0x11f), region = 36 }
   0xb   : > { %s418_s16 = smov (!%p198_p3, %s319_s16), 1  ;;  %vm215_vm0 = vcmask 261120   ;;  %v352_v4 = vmov 32.0   ;;  %v338_v25 = vld [vmem:[%s414_s2] ss:$0 sm:$0xff] }
   0xc   : > { %s386_s17 = sshll.u32 %s418_s16, 3  ;;  %340 = vrcp.f32 %v352_v4  ;;  %v339_v27 = vld [vmem:[%s415_s3] ss:$0 sm:$0xff] }
   0xd   : > { %s201_s20 = scalar_lea.vmem %s412_s0, %s386_s17  ;;  %s205_s23 = scalar_lea.vmem %s413_s1, %s386_s17 }
   0xe   : > { %v210_v0 = vld [vmem:[%s201_s20] sm:$0xff]  ;;  %s209_s30 = scalar_lea.vmem %s416_s4, %s386_s17 }
   0xf   : > { %v211_v1 = vld [vmem:[%s205_s23] sm:$0xff] }
  0x10   : > { %v212_v2 = vadd.f32 %v211_v1, %v210_v0 }
  0x12   : > { %v216_v3 = vsel %vm215_vm0, %v212_v2, 0.0  ;;  %v341_v5 = vpop.eup %340 }
  0x13   : > { %217 = vadd.xlane.f32.xlu0 %v216_v3  ;;  %v220_v6 = vmul.f32 32.0, %v341_v5  ;;  %vm224_vm1 = vweird.f32 %v341_v5 }
  0x15   : > { %v221_v7 = vsub.f32 1.0, %v220_v6 }
  0x17   : > { %v222_v8 = vmul.f32 %v341_v5, %v221_v7 }
  0x19   : > { %v223_v9 = vadd.f32 %v341_v5, %v222_v8 }
  0x1b   : > { %v225_v10 = vsel %vm224_vm1, %v341_v5, %v223_v9 }
  0x86   : > { %v218_v11 = vpop.xlane.xlu0 %217 }
  0x87   : > { %v226_v12 = vmul.f32 %v225_v10, %v218_v11 }
  0x89   : > { %v227_v13 = vsub.f32 %v212_v2, %v226_v12 }
  0x8b   : > { %v228_v14 = vmul.f32 %v227_v13, %v227_v13 }
  0x8d   : > { %v229_v15 = vsel %vm215_vm0, %v228_v14, 0.0 }
  0x8e   : > { %230 = vadd.xlane.f32.xlu0 %v229_v15 }
 0x101   : > { %v231_v16 = vpop.xlane.xlu0 %230 }
 0x102   : > { %v232_v17 = vmul.f32 %v231_v16, %v225_v10 }
 0x104   : > { %v233_v18 = vadd.f32 1e-05, %v232_v17 }
 0x106   : > { %342 = vrsqrt.f32 %v233_v18  ;;  %vm240_vm3 = vweird.f32 %v233_v18 }
 0x10c   : > { %v343_v19 = vpop.eup %342 }
 0x10d   : > { %v235_v20 = vmul.f32 %v343_v19, %v233_v18  ;;  %vm241_vm2 = vweird.f32 %v343_v19 }
 0x10e   : > { %vm242_vm4 = vmor %vm240_vm3, %vm241_vm2 }
 0x10f   : > { %v236_v21 = vmul.f32 %v343_v19, %v235_v20 }
 0x111   : > { %v237_v22 = vmul.f32 0.5, %v236_v21 }
 0x113   : > { %v238_v23 = vsub.f32 1.5, %v237_v22 }
 0x115   : > { %v239_v24 = vmul.f32 %v343_v19, %v238_v23 }
 0x117   : > { %v243_v26 = vsel %vm242_vm4, %v343_v19, %v239_v24 }
 0x118   : > { %v244_v28 = vmul.f32 %v243_v26, %v227_v13 }
 0x11a   : > { %v248_v29 = vmul.f32 %v338_v25, %v244_v28 }
 0x11c   : > { %v252_v30 = vadd.f32 %v339_v27, %v248_v29 }
 0x11e   : > { %253 = vst.msk [vmem:[%s209_s30] sm:$0xff] %vm215_vm0, %v252_v30 }
 0x11f PF: > { %s14_s15 = sadd.s32 1, %s350_s15  }
 0x120   : > { %p11_p4 = scmp.ge.s32.totalorder %s14_s15, 4  }
 0x122   :  { %13 = sbr.rel (!%p11_p4) target bundleno = 1 (0x1), region = 69 }

// kernel: dyneformer_forward.21
= control target key start
LH: loop header
LB: loop body
LE: loop exit
PB: predicated region body
PF: predicated region fallthrough
CT: control target
= control target key end

     0   :  { %12 = vsyncpa [#allocation3], 0  ;;  %s751_s0 = inlined_call_operand.vmem [shape: f32[2,8,32], index: 0, kind: input, shape index: {}]   ;;  %s752_s1 = inlined_call_operand.vmem [shape: f32[32,64], index: 1, kind: input, shape index: {}]   ;;  %s753_s2 = inlined_call_operand.hbm [shape: f32[1,64], index: 2, kind: input, shape index: {}]   ;;  %s754_s3 = inlined_call_operand.vmem [shape: f32[64,32], index: 3, kind: input, shape index: {}]   ;;  %s755_s4 = inlined_call_operand.hbm [shape: f32[1,32], index: 4, kind: input, shape index: {}]   ;;  %s756_s5 = inlined_call_operand.vmem [shape: f32[1,32], index: 5, kind: input, shape index: {}]   ;;  %s757_s6 = inlined_call_operand.vmem [shape: f32[1,32], index: 6, kind: input, shape index: {}]   ;;  %s758_s7 = inlined_call_operand.vmem [shape: f32[2,8,32], index: 7, kind: output, shape index: {}]  }
   0x1   :  { %13 = vsyncpa [#allocation5], 0  ;;  %s662_s24 = smov 0  }
   0x2 LB: > { %s217_s27 = sshll.u32 %s753_s2, 4  ;;  %s490_s28 = sadd.s32 4294967295, %s617_s24   ;;  %s617_s24 = sphi %s662_s24, %s19_s24   ;;  %s218_s27 = int_to_ptr.hbm [resolvable:$true] %s217_s27 }
   0x3   : > { %p492_p0 = scmp.ge.s32.totalorder %s617_s24, 1  ;;  %p202_p1 = scmp.lt.s32.totalorder %s617_s24, 3 }
   0x4   : > { %p520_p2 = scmp.eq.s32.totalorder %s490_s28, 0  ;;  %s619_s30 = smov [#allocation2]  }
   0x5   : > { %p673_p3 = pnand %p492_p0, %p202_p1  ;;  %s219_s8 = sshll.u32 %s619_s30, 4  ;;  %s220_s8 = int_to_ptr.vmem [resolvable:$true] %s219_s8 }
   0x6   : > { %s232_s11 = sshll.u32 %s755_s4, 4  ;;  %s620_s12 = smov [#allocation4]   ;;  %s233_s11 = int_to_ptr.hbm [resolvable:$true] %s232_s11 }
   0x7   : > { %p513_p4 = pneg %p673_p3  ;;  %s234_s13 = sshll.u32 %s620_s12, 4  ;;  %s235_s13 = int_to_ptr.vmem [resolvable:$true] %s234_s13 }
   0x8   : > { %260 = sbr.rel (%p673_p3) target bundleno = 553 (0x229), region = 48 }
   0x9   : > { %p514_p5 = pnand %p520_p2, %p513_p4 }
   0xb   : > { %516 = dma.hbm_to_vmem [thread:$0]  (!%p514_p5), %s218_s27, 16, %s220_s8, [#allocation3]  }
   0xc   : > { %519 = dma.hbm_to_vmem [thread:$0]  (!%p514_p5), %s233_s11, 16, %s235_s13, [#allocation5]  }
   0xd   : > { %608 = dma.done.wait (%p520_p2), [#allocation3], 16  }
   0xe   : > { %610 = vsyncadd (%p520_p2), [#allocation3], 4294967280 }
   0xf   : > { %612 = dma.done.wait (%p520_p2), [#allocation5], 16  }
  0x10   : > { %614 = vsyncadd (%p520_p2), [#allocation5], 4294967280  ;;  %p296_p6 = scmp.lt.s32.totalorder %s490_s28, 1  ;;  %v308_v0 = vld [vmem:[%s752_s1 + $0x18] sm:$0xff]  ;;  %v307_v1 = vld [vmem:[%s752_s1 + $0x10] sm:$0xff]  ;;  %vm313_vm0 = vcmask 261120  }
  0x11   : > { %329 = vmatpush.msra.mxu0 %v308_v0  ;;  %v345_v2 = vld [vmem:[%s754_s3 + $0x38] sm:$0xff]  ;;  %v306_v3 = vld [vmem:[%s752_s1 + $0x8] sm:$0xff]  ;;  %v344_v4 = vld [vmem:[%s754_s3 + $0x30] sm:$0xff]  ;;  %vm350_vm1 = vcmask 523264   ;;  %v621_v22 = vmov 32.0  }
  0x12   : > { %s761_s28 = smov (!%p296_p6, %s490_s28), 1  ;;  %362 = vmatpush.msra.mxu1 %v345_v2  ;;  %v305_v5 = vld [vmem:[%s752_s1] sm:$0xff]  ;;  %v343_v6 = vld [vmem:[%s754_s3 + $0x28] sm:$0xff]  ;;  %v341_v9 = vld [vmem:[%s754_s3 + $0x18] sm:$0xff]  ;;  %539 = vrcp.f32 %v621_v22 }
  0x13   : > { %s499_s14 = sshll.u32 %s761_s28, 3  ;;  %330 = vmatpush.msra.mxu0 %v307_v1  ;;  %v342_v8 = vld [vmem:[%s754_s3 + $0x20] sm:$0xff]  ;;  %v340_v10 = vld [vmem:[%s754_s3 + $0x10] sm:$0xff]  ;;  %v339_v11 = vld [vmem:[%s754_s3 + $0x8] sm:$0xff] }
  0x14   : > { %s299_s26 = scalar_lea.vmem %s751_s0, %s499_s14  ;;  %363 = vmatpush.msra.mxu1 %v344_v4  ;;  %v338_v12 = vld [vmem:[%s754_s3] sm:$0xff]  ;;  %s303_s30 = scalar_lea.vmem %s758_s7, %s499_s14 }
  0x15   : > { %331 = vmatpush.msra.mxu0 %v306_v3  ;;  %v304_v7 = vld [vmem:[%s299_s26] sm:$0xff] }
  0x16   : > { %364 = vmatpush.msra.mxu1 %v343_v6  ;;  %v535_v13 = vld [vmem:[#allocation2] ss:$0 sm:$0xff]  ;;  %v536_v17 = vld [vmem:[#allocation4] ss:$0 sm:$0xff] }
  0x17   : > { %332 = vmatpush.msra.mxu0 %v305_v5  ;;  %v537_v43 = vld [vmem:[%s756_s5] ss:$0 sm:$0xff] }
  0x18   : > { %501 = vmatmul.msk.f32.vlgmr.msra.gmra.mxu0 %vm313_vm0, %v304_v7  ;;  %365 = vmatpush.msra.mxu1 %v342_v8  ;;  %v540_v23 = vpop.eup %539  ;;  %v538_v45 = vld [vmem:[%s757_s6] ss:$0 sm:$0xff] }
  0x19   : > { %v381_v24 = vmul.f32 32.0, %v540_v23  ;;  %vm385_vm2 = vweird.f32 %v540_v23 }
  0x1a   : > { %366 = vmatpush.msra.mxu1 %v341_v9 }
  0x1b   : > { %v382_v25 = vsub.f32 1.0, %v381_v24 }
  0x1c   : > { %367 = vmatpush.msra.mxu1 %v340_v10 }
  0x1d   : > { %v383_v26 = vmul.f32 %v540_v23, %v382_v25 }
  0x1e   : > { %368 = vmatpush.msra.mxu1 %v339_v11 }
  0x1f   : > { %v384_v27 = vadd.f32 %v540_v23, %v383_v26 }
  0x20   : > { %369 = vmatpush.msra.mxu1 %v338_v12 }
  0x21   : > { %v386_v28 = vsel %vm385_vm2, %v540_v23, %v384_v27 }
  0x95   : > { %v334_v14 = vpop.f32.mrf.mxu0 }
  0x96   : > { %v335_v15 = vadd.f32 %v535_v13, %v334_v14 }
  0x98   : > { %v337_v16 = vmax.f32 %v335_v15, 0.0 }
  0x9a   : > { %502 = vmatmul.msk.f32.vlgmr.msra.gmra.mxu1 %vm350_vm1, %v337_v16 }
 0x117   : > { %v371_v18 = vpop.f32.mrf.mxu1 }
 0x118   : > { %v372_v19 = vadd.f32 %v536_v17, %v371_v18 }
 0x11a   : > { %v374_v20 = vadd.f32 %v372_v19, %v304_v7 }
 0x11c   : > { %v377_v21 = vsel %vm313_vm0, %v374_v20, 0.0 }
 0x11d   : > { %378 = vadd.xlane.f32.xlu0 %v377_v21 }
 0x190   : > { %v379_v29 = vpop.xlane.xlu0 %378 }
 0x191   : > { %v387_v30 = vmul.f32 %v386_v28, %v379_v29 }
 0x193   : > { %v388_v31 = vsub.f32 %v374_v20, %v387_v30 }
 0x195   : > { %v389_v32 = vmul.f32 %v388_v31, %v388_v31 }
 0x197   : > { %v390_v33 = vsel %vm313_vm0, %v389_v32, 0.0 }
 0x198   : > { %391 = vadd.xlane.f32.xlu0 %v390_v33 }
 0x20b   : > { %v392_v34 = vpop.xlane.xlu0 %391 }
 0x20c   : > { %v393_v35 = vmul.f32 %v392_v34, %v386_v28 }
 0x20e   : > { %v394_v36 = vadd.f32 1e-05, %v393_v35 }
 0x210   : > { %541 = vrsqrt.f32 %v394_v36  ;;  %vm401_vm4 = vweird.f32 %v394_v36 }
 0x216   : > { %v542_v37 = vpop.eup %541 }
 0x217   : > { %v396_v38 = vmul.f32 %v542_v37, %v394_v36  ;;  %vm402_vm3 = vweird.f32 %v542_v37 }
 0x218   : > { %vm403_vm5 = vmor %vm401_vm4, %vm402_vm3 }
 0x219   : > { %v397_v39 = vmul.f32 %v542_v37, %v396_v38 }
 0x21b   : > { %v398_v40 = vmul.f32 0.5, %v397_v39 }
 0x21d   : > { %v399_v41 = vsub.f32 1.5, %v398_v40 }
 0x21f   : > { %v400_v42 = vmul.f32 %v542_v37, %v399_v41 }
 0x221   : > { %v404_v44 = vsel %vm403_vm5, %v542_v37, %v400_v42 }
 0x222   : > { %v405_v46 = vmul.f32 %v404_v44, %v388_v31 }
 0x224   : > { %v409_v47 = vmul.f32 %v537_v43, %v405_v46 }
 0x226   : > { %v413_v48 = vadd.f32 %v538_v45, %v409_v47 }
 0x228   : > { %414 = vst.msk [vmem:[%s303_s30] sm:$0xff] %vm313_vm0, %v413_v48 }
 0x229 PF: > { %s19_s24 = sadd.s32 1, %s617_s24  }
 0x22a   : > { %p16_p7 = scmp.ge.s32.totalorder %s19_s24, 4  }
 0x22c   :  { %18 = sbr.rel (!%p16_p7) target bundleno = 2 (0x2), region = 87 }
 0x231   :  { %434 = vsyncpa [#allocation3], 1 }
 0x232   :  { %436 = vsyncpa [#allocation3 + $0x1], 1 }
 0x233   :  { %437 = vsyncpa [#allocation5], 1 }

// kernel: dyneformer_forward.22
= control target key start
LH: loop header
LB: loop body
LE: loop exit
PB: predicated region body
PF: predicated region fallthrough
CT: control target
= control target key end

     0   :  { %14 = vsyncpa [#allocation3], 0  ;;  %s577_s0 = inlined_call_operand.vmem [shape: f32[2,256], index: 0, kind: input, shape index: {}]   ;;  %s578_s1 = inlined_call_operand.vmem [shape: f32[5,8], index: 1, kind: input, shape index: {}]   ;;  %s579_s2 = inlined_call_operand.hbm [shape: f32[256,5], index: 2, kind: input, shape index: {}]   ;;  %s580_s3 = inlined_call_operand.hbm [shape: f32[1,5], index: 3, kind: input, shape index: {}]   ;;  %s581_s4 = inlined_call_operand.hbm [shape: f32[8,256], index: 4, kind: input, shape index: {}]   ;;  %s582_s5 = inlined_call_operand.hbm [shape: f32[1,256], index: 5, kind: input, shape index: {}]   ;;  %s583_s6 = inlined_call_operand.vmem [shape: f32[2,256], index: 6, kind: output, shape index: {0}]   ;;  %s584_s7 = inlined_call_operand.hbm [shape: f32[2,5], index: 7, kind: output, shape index: {1}]   ;;  %s585_s8 = inlined_call_operand.vmem [shape: f32[2,8], index: 8, kind: output, shape index: {2}]  }
   0x1   :  { %15 = vsyncpa [#allocation6], 0 }
   0x2   :  { %16 = vsyncpa [#allocation9], 0  ;;  %s40_s29 = sshll.u32 %s580_s3, 4  ;;  %s41_s29 = int_to_ptr.hbm [resolvable:$true] %s40_s29 }
   0x3   :  { %17 = vsyncpa [#allocation4], 0  ;;  %s492_s30 = smov [#allocation5]   ;;  %s26_s12 = sshll.u32 %s579_s2, 4  ;;  %s27_s12 = int_to_ptr.hbm [resolvable:$true] %s26_s12 }
   0x4   :  { %s42_s9 = sshll.u32 %s492_s30, 4  ;;  %s493_s13 = smov [#allocation2]   ;;  %s43_s9 = int_to_ptr.vmem [resolvable:$true] %s42_s9 }
   0x5   :  { %45 = dma.hbm_to_vmem [thread:$0]  %s41_s29, 16, %s43_s9, [#allocation6]  }
   0x6   :  { %s28_s14 = sshll.u32 %s493_s13, 4  ;;  %s494_s15 = smov 128   ;;  %s29_s14 = int_to_ptr.vmem [resolvable:$true] %s28_s14 }
   0x7   :  { %s495_s16 = smov 8   ;;  %s51_s3 = sshll.u32 %s581_s4, 4  ;;  %s52_s3 = int_to_ptr.hbm [resolvable:$true] %s51_s3 }
   0x8   :  { %34 = dma.hbm_to_vmem [thread:$0]  %s27_s12, 4096, %s29_s14, [#allocation3], %s494_s15, %s494_s15, %s495_s16  }
   0x9   :  { %s496_s19 = smov [#allocation7]   ;;  %s62_s2 = sshll.u32 %s582_s5, 4  ;;  %s63_s2 = int_to_ptr.hbm [resolvable:$true] %s62_s2 }
   0xa   :  { %s53_s20 = sshll.u32 %s496_s19, 4  ;;  %s497_s23 = smov [#allocation8]   ;;  %s54_s20 = int_to_ptr.vmem [resolvable:$true] %s53_s20 }
   0xb   :  { %56 = dma.hbm_to_vmem [thread:$0]  %s52_s3, 256, %s54_s20, [#allocation6]  }
   0xc   :  { %s64_s24 = sshll.u32 %s497_s23, 4  ;;  %s65_s24 = int_to_ptr.vmem [resolvable:$true] %s64_s24 }
   0xd   :  { %67 = dma.hbm_to_vmem [thread:$0]  %s63_s2, 32, %s65_s24, [#allocation9]  }
   0xe   :  { %484 = dma.done.wait [#allocation3], 4096  }
   0xf   :  { %485 = vsyncadd [#allocation3], 4294963200 }
  0x10   :  { %486 = dma.done.wait [#allocation6], 272  }
  0x11   :  { %487 = vsyncadd [#allocation6], 4294967024 }
  0x12   :  { %488 = dma.done.wait [#allocation9], 32  }
  0x13   :  { %489 = vsyncadd [#allocation9], 4294967264  ;;  %v100_v0 = vld [vmem:[#allocation2 + $0x78] sm:$0xff]  ;;  %v99_v1 = vld [vmem:[#allocation2 + $0x70] sm:$0xff]  ;;  %vm189_vm0 = vcmask 64512   ;;  %vm167_vm1 = vcmask 33792  }
  0x14   :  { %v116_v2 = vld [vmem:[#allocation2 + $0xf8] sm:$0xff]  ;;  %127 = vmatpush.msra.mxu0 %v100_v0  ;;  %v115_v3 = vld [vmem:[#allocation2 + $0xf0] sm:$0xff]  ;;  %v98_v4 = vld [vmem:[#allocation2 + $0x68] sm:$0xff]  ;;  %vm237_vm2 = vcmask 1044480   ;;  %vm233_vm3 = vcmask 39936   ;;  %s498_s28 = smov [#allocation10]  }
  0x15   :  { %147 = vmatpush.msra.mxu1 %v116_v2  ;;  %v114_v5 = vld [vmem:[#allocation2 + $0xe8] sm:$0xff]  ;;  %v97_v6 = vld [vmem:[#allocation2 + $0x60] sm:$0xff]  ;;  %v96_v8 = vld [vmem:[#allocation2 + $0x58] sm:$0xff]  ;;  %s324_s29 = sshll.u32 %s498_s28, 4  ;;  %s326_s10 = sshll.u32 %s584_s7, 4  ;;  %vm287_vm4 = vcmask 1041408   ;;  %s325_s29 = int_to_ptr.vmem [resolvable:$true] %s324_s29  ;;  %s327_s10 = int_to_ptr.hbm [resolvable:$true] %s326_s10 }
  0x16   :  { %128 = vmatpush.msra.mxu0 %v99_v1  ;;  %v113_v7 = vld [vmem:[#allocation2 + $0xe0] sm:$0xff]  ;;  %v112_v9 = vld [vmem:[#allocation2 + $0xd8] sm:$0xff]  ;;  %v95_v10 = vld [vmem:[#allocation2 + $0x50] sm:$0xff]  ;;  %vm315_vm5 = vcmask 58368  }
  0x17   :  { %148 = vmatpush.msra.mxu1 %v115_v3  ;;  %v111_v11 = vld [vmem:[#allocation2 + $0xd0] sm:$0xff]  ;;  %v94_v12 = vld [vmem:[#allocation2 + $0x48] sm:$0xff]  ;;  %v84_v14 = vld [vmem:[%s577_s0] sm:$0xf] }
  0x18   :  { %129 = vmatpush.msra.mxu0 %v98_v4  ;;  %v110_v13 = vld [vmem:[#allocation2 + $0xc8] sm:$0xff]  ;;  %122 = vst [vmem:[#allocation1] ss:$4 sm:$0xff] %v84_v14  ;;  %v93_v15 = vld [vmem:[#allocation2 + $0x40] sm:$0xff]  ;;  %v92_v17 = vld [vmem:[#allocation2 + $0x38] sm:$0xff] }
  0x19   :  { %149 = vmatpush.msra.mxu1 %v114_v5  ;;  %v109_v16 = vld [vmem:[#allocation2 + $0xc0] sm:$0xff]  ;;  %v108_v18 = vld [vmem:[#allocation2 + $0xb8] sm:$0xff]  ;;  %v91_v19 = vld [vmem:[#allocation2 + $0x30] sm:$0xff] }
  0x1a   :  { %130 = vmatpush.msra.mxu0 %v97_v6  ;;  %v107_v20 = vld [vmem:[#allocation2 + $0xb0] sm:$0xff]  ;;  %v90_v21 = vld [vmem:[#allocation2 + $0x28] sm:$0xff]  ;;  %v89_v23 = vld [vmem:[#allocation2 + $0x20] sm:$0xff] }
  0x1b   :  { %150 = vmatpush.msra.mxu1 %v113_v7  ;;  %v106_v22 = vld [vmem:[#allocation2 + $0xa8] sm:$0xff]  ;;  %v105_v24 = vld [vmem:[#allocation2 + $0xa0] sm:$0xff]  ;;  %v88_v25 = vld [vmem:[#allocation2 + $0x18] sm:$0xff] }
  0x1c   :  { %131 = vmatpush.msra.mxu0 %v96_v8  ;;  %v104_v26 = vld [vmem:[#allocation2 + $0x98] sm:$0xff]  ;;  %v87_v27 = vld [vmem:[#allocation2 + $0x10] sm:$0xff]  ;;  %v86_v29 = vld [vmem:[#allocation2 + $0x8] sm:$0xff] }
  0x1d   :  { %151 = vmatpush.msra.mxu1 %v112_v9  ;;  %v103_v28 = vld [vmem:[#allocation2 + $0x90] sm:$0xff]  ;;  %v102_v30 = vld [vmem:[#allocation2 + $0x88] sm:$0xff]  ;;  %v85_v31 = vld [vmem:[#allocation2] sm:$0xff] }
  0x1e   :  { %132 = vmatpush.msra.mxu0 %v95_v10  ;;  %v101_v32 = vld [vmem:[#allocation2 + $0x80] sm:$0xff]  ;;  %v180_v36 = vld [vmem:[%s578_s1] sm:$0x1f]  ;;  %v182_v37 = vld [vmem:[#allocation7 + $0x8] sm:$0xff] }
  0x1f   :  { %152 = vmatpush.msra.mxu1 %v111_v11  ;;  %v123_v33 = vld.sshfl [vmem:[#allocation1] sm:$0xff pattern:$0x73625140]  ;;  %v124_v34 = vld.sshfl [vmem:[#allocation1 + $0x8] sm:$0xff pattern:$0x73625140]  ;;  %228 = vmatpush.msra.mxu3 %v182_v37 }
  0x20   :  { %133 = vmatpush.msra.mxu0 %v94_v12  ;;  %v181_v35 = vld [vmem:[#allocation7] sm:$0xff]  ;;  %345 = vmatmul.msk.f32.vlgmr.msra.gmra.mxu3 %vm189_vm0, %v180_v36  ;;  %v359_v38 = vld [vmem:[#allocation5] ss:$0 sm:$0xff]  ;;  %v183_v49 = vld [vmem:[#allocation8] sm:$0x3] }
  0x21   :  { %153 = vmatpush.msra.mxu1 %v110_v13  ;;  %208 = vmatpush.msra.mxu2 %v181_v35  ;;  %v185_v50 = vperm.slane %v183_v49, 0  ;;  %v186_v53 = vperm.slane %v183_v49, 1  ;;  %v291_v56 = vld [vmem:[%s578_s1] sm:$0x1f] }
  0x22   :  { %134 = vmatpush.msra.mxu0 %v93_v15  ;;  %344 = vmatmul.msk.f32.vlgmr.msra.gmra.mxu2 %vm189_vm0, %v180_v36 }
  0x23   :  { %154 = vmatpush.msra.mxu1 %v109_v16 }
  0x24   :  { %135 = vmatpush.msra.mxu0 %v92_v17 }
  0x25   :  { %155 = vmatpush.msra.mxu1 %v108_v18 }
  0x26   :  { %136 = vmatpush.msra.mxu0 %v91_v19 }
  0x27   :  { %156 = vmatpush.msra.mxu1 %v107_v20 }
  0x28   :  { %137 = vmatpush.msra.mxu0 %v90_v21 }
  0x29   :  { %157 = vmatpush.msra.mxu1 %v106_v22 }
  0x2a   :  { %138 = vmatpush.msra.mxu0 %v89_v23 }
  0x2b   :  { %158 = vmatpush.msra.mxu1 %v105_v24 }
  0x2c   :  { %139 = vmatpush.msra.mxu0 %v88_v25 }
  0x2d   :  { %159 = vmatpush.msra.mxu1 %v104_v26 }
  0x2e   :  { %140 = vmatpush.msra.mxu0 %v87_v27 }
  0x2f   :  { %160 = vmatpush.msra.mxu1 %v103_v28 }
  0x30   :  { %141 = vmatpush.msra.mxu0 %v86_v29 }
  0x31   :  { %161 = vmatpush.msra.mxu1 %v102_v30 }
  0x32   :  { %142 = vmatpush.msra.mxu0 %v85_v31 }
  0x33   :  { %162 = vmatpush.msra.mxu1 %v101_v32  ;;  %143 = vmatmul.f32.vlgmr.msra.gmra.mxu0 %v123_v33 }
  0x34   :  { %163 = vmatmul.f32.vlgmr.msra.gmra.mxu1 %v124_v34 }
  0xa3   :  { %v230_v54 = vpop.f32.mrf.mxu3 }
  0xa4   :  { %v231_v55 = vadd.f32 %v230_v54, %v186_v53 }
  0xa5   :  { %v210_v51 = vpop.f32.mrf.mxu2 }
  0xa6   :  { %v211_v52 = vadd.f32 %v210_v51, %v185_v50  ;;  %348 = vmatpush.msk.msrb.mxu3 %vm237_vm2, %v231_v55 }
  0xa8   :  { %346 = vmatpush.msk.msrb.mxu2 %vm237_vm2, %v211_v52 }
  0xaa   :  { %350 = vmatpush.msk.msra.mxu2 %vm237_vm2, %v291_v56 }
  0xb0   :  { %v144_v39 = vpop.f32.mrf.mxu0 }
  0xb1   :  { %v164_v40 = vpop.f32.mrf.mxu1  ;;  %v145_v41 = vadd.f32 %v359_v38, %v144_v39 }
  0xb3   :  { %v165_v42 = vadd.f32 %v164_v40, %v145_v41 }
  0xb5   :  { %v168_v43 = vsel %vm167_vm1, %v165_v42, -inf }
  0xb6   :  { %169 = vmax.xlane.f32.xlu0 %v168_v43 }
 0x129   :  { %v170_v44 = vpop.xlane.xlu0 %169 }
 0x12a   :  { %v171_v45 = vsub.f32 %v165_v42, %v170_v44 }
 0x12c   :  { %v172_v46 = vmul.f32 1.442695, %v171_v45 }
 0x12e   :  { %360 = vpow2.f32 %v172_v46 }
 0x134   :  { %v361_v47 = vpop.eup %360 }
 0x135   :  { %v174_v48 = vsel %vm167_vm1, %v361_v47, 0.0 }
 0x136   :  { %175 = vadd.xlane.f32.xlu0 %v174_v48 }
 0x1a9   :  { %v176_v57 = vpop.xlane.xlu0 %175 }
 0x1aa   :  { %362 = vrcp.f32 %v176_v57 }
 0x1b0   :  { %v363_v58 = vpop.eup %362 }
 0x1b1   :  { %v178_v59 = vmul.f32 %v363_v58, %v361_v47 }
 0x1b3   :  { %179 = vst.msk [vmem:[#allocation10] sm:$0x3] %vm167_vm1, %v178_v59  ;;  %347 = vmatmul.msk.f32.vlgmr.msrb.gmra.mxu2 %vm233_vm3, %v178_v59  ;;  %349 = vmatmul.msk.f32.vlgmr.msrb.gmra.mxu3 %vm233_vm3, %v178_v59 }
 0x1b4   :  { %329 = dma.vmem_to_hbm [thread:$0]  %s325_s29, 32, %s327_s10, [#allocation4]  }
 0x1bb   :  { %351 = vmatmul.msk.f32.vlgmr.msra.gmra.mxu2 %vm233_vm3, %v178_v59 }
 0x236   :  { %v261_v60 = vpop.f32.mrf.mxu2  ;;  %v281_v61 = vpop.f32.mrf.mxu3 }
 0x237   :  { %v286_v62 = vrot.slane %v281_v61, 6 }
 0x239   :  { %v288_v63 = vsel %vm287_vm4, %v261_v60, %v286_v62 }
 0x23a   :  { %290 = vst [vmem:[%s583_s6] sm:$0xf] %v288_v63 }
 0x23e   :  { %v312_v0 = vpop.f32.mrf.mxu2 }
 0x23f   :  { %316 = vst.msk [vmem:[%s585_s8] sm:$0x3] %vm315_vm5, %v312_v0 }
 0x240   :  { %490 = dma.done.wait [#allocation4], 32  }
 0x241   :  { %491 = vsyncadd [#allocation4], 4294967264 }
 0x242   :  { %340 = vsyncpa [#allocation3], 1 }
 0x243   :  { %341 = vsyncpa [#allocation6], 1 }
 0x244   :  { %342 = vsyncpa [#allocation9], 1 }
 0x245   :  { %343 = vsyncpa [#allocation4], 1 }

// kernel: dyneformer_forward.20
= control target key start
LH: loop header
LB: loop body
LE: loop exit
PB: predicated region body
PF: predicated region fallthrough
CT: control target
= control target key end

     0   :  { %s1865_s0 = inlined_call_operand.vmem [shape: f32[2,8,32], index: 0, kind: input, shape index: {}, may-alias: {0,1}]   ;;  %s1866_s1 = inlined_call_operand.vmem [shape: f32[2,8,32], index: 1, kind: input, shape index: {}, may-alias: {0,1}]   ;;  %s1867_s2 = inlined_call_operand.hbm [shape: f32[32,32], index: 2, kind: input, shape index: {}]   ;;  %s1868_s3 = inlined_call_operand.hbm [shape: f32[1,32], index: 3, kind: input, shape index: {}]   ;;  %s1869_s4 = inlined_call_operand.hbm [shape: f32[32,32], index: 4, kind: input, shape index: {}]   ;;  %s1870_s5 = inlined_call_operand.hbm [shape: f32[1,32], index: 5, kind: input, shape index: {}]   ;;  %s1871_s6 = inlined_call_operand.hbm [shape: f32[32,32], index: 6, kind: input, shape index: {}]   ;;  %s1872_s7 = inlined_call_operand.hbm [shape: f32[1,32], index: 7, kind: input, shape index: {}]   ;;  %s1873_s8 = inlined_call_operand.hbm [shape: f32[32,32], index: 8, kind: input, shape index: {}]   ;;  %s1874_s9 = inlined_call_operand.hbm [shape: f32[1,32], index: 9, kind: input, shape index: {}]   ;;  %s1875_s10 = inlined_call_operand.vmem [shape: f32[1,32], index: 10, kind: input, shape index: {}]   ;;  %s1876_s11 = inlined_call_operand.vmem [shape: f32[1,32], index: 11, kind: input, shape index: {}]   ;;  %s1877_s12 = inlined_call_operand.vmem [shape: f32[2,8,32], index: 12, kind: output, shape index: {}]  }
   0x1   :  { %1878 = sst [smem:[#allocation20_spill]] %s1867_s2 }
   0x2   :  { %17 = vsyncpa [#allocation3], 0 }
   0x3   :  { %18 = vsyncpa [#allocation5], 0 }
   0x4   :  { %19 = vsyncpa [#allocation8], 0 }
   0x5   :  { %20 = vsyncpa [#allocation11], 0 }
   0x6   :  { %21 = vsyncpa [#allocation14], 0  ;;  %s1706_s21 = smov 0  }
   0x7 LB: > { %s346_s24 = sshll.u32 %s1868_s3, 4  ;;  %s1715_s25 = sadd.s32 4294967295, %s1625_s21   ;;  %s1625_s21 = sphi %s1706_s21, %s27_s21   ;;  %s347_s24 = int_to_ptr.hbm [resolvable:$true] %s346_s24 }
   0x8   : > { %p1195_p0 = scmp.ge.s32.totalorder %s1625_s21, 1  ;;  %p320_p1 = scmp.lt.s32.totalorder %s1625_s21, 3 }
   0x9   : > { %p1295_p2 = scmp.eq.s32.totalorder %s1715_s25, 0  ;;  %s1627_s27 = smov [#allocation4]  }
   0xa   : > { %p1720_p3 = pnand %p1195_p0, %p320_p1  ;;  %s348_s28 = sshll.u32 %s1627_s27, 4  ;;  %s349_s28 = int_to_ptr.vmem [resolvable:$true] %s348_s28 }
   0xb   : > { %s372_s13 = sshll.u32 %s1870_s5, 4  ;;  %s398_s16 = sshll.u32 %s1872_s7, 4  ;;  %s373_s13 = int_to_ptr.hbm [resolvable:$true] %s372_s13  ;;  %s399_s16 = int_to_ptr.hbm [resolvable:$true] %s398_s16 }
   0xc   : > { %p1270_p4 = pneg %p1720_p3  ;;  %s1628_s18 = smov [#allocation7]  }
   0xd   : > { %s374_s19 = sshll.u32 %s1628_s18, 4  ;;  %s1629_s20 = smov [#allocation10]   ;;  %s375_s19 = int_to_ptr.vmem [resolvable:$true] %s374_s19 }
   0xe   : > { %p1734_p5 = pnand %p1295_p2, %p1270_p4  ;;  %s400_s22 = sshll.u32 %s1629_s20, 4  ;;  %s401_s22 = int_to_ptr.vmem [resolvable:$true] %s400_s22 }
   0xf   : > { %s1881_s2 = sld [smem:[#allocation20_spill]]  ;;  %s1630_s30 = smov [#allocation2]  }
  0x10   : > { %1276 = dma.hbm_to_vmem [thread:$0]  (!%p1734_p5), %s347_s24, 16, %s349_s28, [#allocation5]  }
  0x11   : > { %1282 = dma.hbm_to_vmem [thread:$0]  (!%p1734_p5), %s373_s13, 16, %s375_s19, [#allocation8]  }
  0x12   : > { %1288 = dma.hbm_to_vmem [thread:$0]  (!%p1734_p5), %s399_s16, 16, %s401_s22, [#allocation11]  }
  0x13   : > { %s333_s14 = sshll.u32 %s1630_s30, 4  ;;  %s357_s24 = sshll.u32 %s1869_s4, 4  ;;  %s334_s14 = int_to_ptr.vmem [resolvable:$true] %s333_s14  ;;  %s358_s24 = int_to_ptr.hbm [resolvable:$true] %s357_s24 }
  0x14   : > { %s1631_s28 = smov 128   ;;  %s1632_s13 = smov 8  }
  0x15   : > { %s331_s29 = sshll.u32 %s1881_s2, 4  ;;  %s1633_s19 = smov [#allocation6]   ;;  %s332_s29 = int_to_ptr.hbm [resolvable:$true] %s331_s29 }
  0x16   : > { %1273 = dma.hbm_to_vmem [thread:$0]  (!%p1734_p5), %s332_s29, 512, %s334_s14, [#allocation3], %s1631_s28, %s1631_s28, %s1632_s13  }
  0x17   : > { %s359_s20 = sshll.u32 %s1633_s19, 4  ;;  %s383_s16 = sshll.u32 %s1871_s6, 4  ;;  %s360_s20 = int_to_ptr.vmem [resolvable:$true] %s359_s20  ;;  %s384_s16 = int_to_ptr.hbm [resolvable:$true] %s383_s16 }
  0x18   : > { %1279 = dma.hbm_to_vmem [thread:$0]  (!%p1734_p5), %s358_s24, 512, %s360_s20, [#allocation5], %s1631_s28, %s1631_s28, %s1632_s13  }
  0x19   : > { %s409_s15 = sshll.u32 %s1873_s8, 4  ;;  %s1634_s18 = smov [#allocation9]   ;;  %s410_s15 = int_to_ptr.hbm [resolvable:$true] %s409_s15 }
  0x1a   : > { %s385_s2 = sshll.u32 %s1634_s18, 4  ;;  %s1635_s29 = smov [#allocation12]   ;;  %s386_s2 = int_to_ptr.vmem [resolvable:$true] %s385_s2 }
  0x1b   : > { %1285 = dma.hbm_to_vmem [thread:$0]  (!%p1734_p5), %s384_s16, 512, %s386_s2, [#allocation8], %s1631_s28, %s1631_s28, %s1632_s13  }
  0x1c   : > { %s411_s14 = sshll.u32 %s1635_s29, 4  ;;  %s424_s27 = sshll.u32 %s1874_s9, 4  ;;  %s412_s14 = int_to_ptr.vmem [resolvable:$true] %s411_s14  ;;  %s425_s27 = int_to_ptr.hbm [resolvable:$true] %s424_s27 }
  0x1d   : > { %1291 = dma.hbm_to_vmem [thread:$0]  (!%p1734_p5), %s410_s15, 512, %s412_s14, [#allocation11], %s1631_s28, %s1631_s28, %s1632_s13  }
  0x1e   : > { %s1636_s24 = smov [#allocation13]   ;;  %459 = sbr.rel (%p1720_p3) target bundleno = 1627 (0x65b), region = 68 }
  0x1f   : > { %s426_s20 = sshll.u32 %s1636_s24, 4  ;;  %s427_s20 = int_to_ptr.vmem [resolvable:$true] %s426_s20 }
  0x20   : > { %1294 = dma.hbm_to_vmem [thread:$0]  (!%p1734_p5), %s425_s27, 16, %s427_s20, [#allocation14]  }
  0x23   : > { %1604 = dma.done.wait (%p1295_p2), [#allocation3], 512  }
  0x24   : > { %1606 = vsyncadd (%p1295_p2), [#allocation3], 4294966784 }
  0x25   : > { %1608 = dma.done.wait (%p1295_p2), [#allocation5], 528  }
  0x26   : > { %1610 = vsyncadd (%p1295_p2), [#allocation5], 4294966768 }
  0x27   : > { %1612 = dma.done.wait (%p1295_p2), [#allocation8], 528  }
  0x28   : > { %1614 = vsyncadd (%p1295_p2), [#allocation8], 4294966768 }
  0x29   : > { %1616 = dma.done.wait (%p1295_p2), [#allocation11], 528  }
  0x2a   : > { %1618 = vsyncadd (%p1295_p2), [#allocation11], 4294966768 }
  0x2b   : > { %1620 = dma.done.wait (%p1295_p2), [#allocation14], 16  }
  0x2c   : > { %1622 = vsyncadd (%p1295_p2), [#allocation14], 4294967280  ;;  %p539_p6 = scmp.lt.s32.totalorder %s1715_s25, 1  ;;  %v588_v0 = vld [vmem:[#allocation6 + $0x18] sm:$0xff]  ;;  %v587_v1 = vld [vmem:[#allocation6 + $0x10] sm:$0xff]  ;;  %vm561_vm0 = vcmask 261120  }
  0x2d   : > { %v556_v2 = vld [vmem:[#allocation2 + $0x18] sm:$0xff]  ;;  %608 = vmatpush.msra.mxu1 %v588_v0  ;;  %v555_v3 = vld [vmem:[#allocation2 + $0x10] sm:$0xff]  ;;  %v585_v5 = vld [vmem:[#allocation6] sm:$0xff]  ;;  %vm644_vm1 = vcmask 64512   ;;  %s1637_s22 = smov 112   ;;  %s1638_s30 = smov 120  }
  0x2e   : > { %s1883_s25 = smov (!%p539_p6, %s1715_s25), 1  ;;  %577 = vmatpush.msra.mxu0 %v556_v2  ;;  %v586_v4 = vld [vmem:[#allocation6 + $0x8] sm:$0xff]  ;;  %v553_v8 = vld [vmem:[#allocation2] sm:$0xff]  ;;  %s1639_s15 = smov 104   ;;  %v618_v23 = vld [vmem:[#allocation9 + $0x10] sm:$0xff] }
  0x2f   : > { %s1793_s2 = sshll.u32 %s1883_s25, 3  ;;  %v554_v6 = vld [vmem:[#allocation2 + $0x8] sm:$0xff]  ;;  %609 = vmatpush.msra.mxu1 %v587_v1  ;;  %v1333_v10 = vld [vmem:[#allocation7] ss:$0 sm:$0xff]  ;;  %v1334_v11 = vld [vmem:[#allocation4] ss:$0 sm:$0xff] }
  0x30   : > { %s546_s28 = scalar_lea.vmem %s1866_s1, %s1793_s2  ;;  %s542_s25 = scalar_lea.vmem %s1865_s0, %s1793_s2  ;;  %578 = vmatpush.msra.mxu0 %v555_v3  ;;  %v619_v16 = vld [vmem:[#allocation9 + $0x18] sm:$0xff]  ;;  %v617_v24 = vld [vmem:[#allocation9 + $0x8] sm:$0xff]  ;;  %v616_v25 = vld [vmem:[#allocation9] sm:$0xff] }
  0x31   : > { %v552_v7 = vld [vmem:[%s546_s28] sm:$0xff]  ;;  %610 = vmatpush.msra.mxu1 %v586_v4  ;;  %636 = vmatpush.msra.mxu2 %v619_v16  ;;  %v774_v2 = vld [vmem:[#allocation12 + $0x8] sm:$0xff]  ;;  %s550_s24 = scalar_lea.vmem %s1877_s12, %s1793_s2 }
  0x32   : > { %579 = vmatpush.msra.mxu0 %v554_v6  ;;  %v1803_v9 = vld [vmem:[%s542_s25] sm:$0xff] }
  0x33   : > { %611 = vmatpush.msra.mxu1 %v585_v5  ;;  %637 = vmatpush.msra.mxu2 %v618_v23  ;;  %v1335_v34 = vld [vmem:[#allocation10] ss:$0 sm:$0xff]  ;;  %v706_v37 = vld [vmem:[#allocation12] sm:$0xff] }
  0x34   : > { %580 = vmatpush.msra.mxu0 %v553_v8  ;;  %1218 = vmatmul.msk.f32.vlgmr.msra.gmra.mxu1 %vm561_vm0, %v552_v7 }
  0x35   : > { %1217 = vmatmul.msk.f32.vlgmr.msra.gmra.mxu0 %vm561_vm0, %v1803_v9  ;;  %638 = vmatpush.msra.mxu2 %v617_v24 }
  0x37   : > { %639 = vmatpush.msra.mxu2 %v616_v25 }
  0x38   : > { %1219 = vmatmul.msk.f32.vlgmr.msra.gmra.mxu2 %vm561_vm0, %v552_v7 }
  0x39   : > { %793 = vmatpush.msrb.mxu2 %v774_v2 }
  0xb1   : > { %v613_v12 = vpop.f32.mrf.mxu1 }
  0xb2   : > { %v582_v13 = vpop.f32.mrf.mxu0  ;;  %v614_v14 = vadd.f32 %v1333_v10, %v613_v12 }
  0xb3   : > { %v583_v15 = vadd.f32 %v1334_v11, %v582_v13 }
  0xb4   : > { %823 = vrot.lane.b32.xlu2 %v614_v14, %s1637_s22  ;;  %709 = vrot.lane.b32.xlu1 %v614_v14, %s1638_s30 }
  0xb5   : > { %1220 = vmatpush.xpose.msk.msra.mxu3 %vm644_vm1, %v614_v14 }
  0xb8   : > { %1221 = vmatmul.msk.f32.vlgmr.msra.gmra.mxu3 %vm644_vm1, %v583_v15 }
  0xbb   : > { %v641_v35 = vpop.f32.mrf.mxu2 }
  0xbc   : > { %914 = vrot.lane.b32.xlu2 %v614_v14, %s1639_s15  ;;  %707 = vrot.lane.b32.xlu1 %v583_v15, %s1638_s30  ;;  %v1823_v36 = vadd.f32 %v1335_v34, %v641_v35  ;;  %v887_v14 = vld [vmem:[#allocation12 + $0x10] sm:$0xff] }
  0xbd   : > { %906 = vmatpush.msra.mxu2 %v887_v14 }
  0xbe   : > { %701 = vmatpush.msrb.mxu3 %v1823_v36 }
  0xc0   : > { %816 = vmatpush.msra.mxu3 %v706_v37 }
  0xc4   : > { %912 = vrot.lane.b32.xlu1 %v583_v15, %s1639_s15 }
 0x10e   : > { %v824_v18 = vpop.permute.xlu2 %823 }
 0x116   : > { %v915_v38 = vpop.permute.xlu2 %914 }
 0x126   : > { %v710_v17 = vpop.permute.xlu1 %709 }
 0x127   : > { %1223 = vmatpush.xpose.msk.msrb.mxu0 %vm644_vm1, %v710_v17 }
 0x12b   : > { %1228 = vmatpush.xpose.msk.msra.mxu0 %vm644_vm1, %v824_v18 }
 0x12e   : > { %v708_v19 = vpop.permute.xlu1 %707 }
 0x12f   : > { %1224 = vmatmul.msk.f32.vlgmr.msrb.gmra.mxu0 %vm644_vm1, %v708_v19 }
 0x136   : > { %v913_v52 = vpop.permute.xlu1 %912 }
 0x13b   : > { %v668_v20 = vpop.f32.mrf.mxu3 }
 0x13c   : > { %v671_v21 = vmul.f32 0.35355338, %v668_v20  ;;  %v978_v20 = vld [vmem:[#allocation12 + $0x18] sm:$0xff] }
 0x13e   : > { %v672_v22 = vsel %vm644_vm1, %v671_v21, -inf }
 0x13f   : > { %673 = vmax.xlane.f32.xlu0 %v672_v22 }
 0x1ac   : > { %v732_v26 = vpop.f32.mrf.mxu0 }
 0x1ad   : > { %v735_v27 = vmul.f32 0.35355338, %v732_v26 }
 0x1af   : > { %v736_v28 = vsel %vm644_vm1, %v735_v27, -inf }
 0x1b0   : > { %737 = vmax.xlane.f32.xlu2 %v736_v28  ;;  %v1336_v28 = vld [vmem:[#allocation13] ss:$0 sm:$0xff] }
 0x1b2   : > { %v674_v29 = vpop.xlane.xlu0 %673 }
 0x1b3   : > { %v675_v30 = vsub.f32 %v671_v21, %v674_v29 }
 0x1b5   : > { %v676_v31 = vmul.f32 1.442695, %v675_v30 }
 0x1b7   : > { %1339 = vpow2.f32 %v676_v31 }
 0x1bd   : > { %v1340_v32 = vpop.eup %1339 }
 0x1be   : > { %v678_v33 = vsel %vm644_vm1, %v1340_v32, 0.0 }
 0x1bf   : > { %679 = vadd.xlane.f32.xlu0 %v678_v33 }
 0x1d3   : > { %821 = vrot.lane.b32.xlu0 %v583_v15, %s1637_s22 }
 0x223   : > { %v738_v39 = vpop.xlane.xlu2 %737 }
 0x224   : > { %v739_v40 = vsub.f32 %v735_v27, %v738_v39 }
 0x226   : > { %v740_v41 = vmul.f32 1.442695, %v739_v40 }
 0x228   : > { %1341 = vpow2.f32 %v740_v41 }
 0x22e   : > { %v1342_v42 = vpop.eup %1341 }
 0x22f   : > { %v742_v43 = vsel %vm644_vm1, %v1342_v42, 0.0 }
 0x230   : > { %743 = vadd.xlane.f32.xlu2 %v742_v43 }
 0x232   : > { %v680_v44 = vpop.xlane.xlu0 %679 }
 0x233   : > { %1343 = vrcp.f32 %v680_v44 }
 0x239   : > { %v1344_v45 = vpop.eup %1343 }
 0x23a   : > { %v682_v46 = vmul.f32 %v1344_v45, %v1340_v32  ;;  %v1640_v32 = vmov 32.0  }
 0x23c   : > { %1222 = vmatmul.msk.f32.vlgmr.msrb.gmra.mxu3 %vm644_vm1, %v682_v46 }
 0x23d   : > { %1232 = vmatpush.xpose.msk.msrb.mxu3 %vm644_vm1, %v915_v38 }
 0x245   : > { %v822_v47 = vpop.permute.xlu0 %821 }
 0x246   : > { %1229 = vmatmul.msk.f32.vlgmr.msra.gmra.mxu0 %vm644_vm1, %v822_v47 }
 0x2a3   : > { %v744_v58 = vpop.xlane.xlu2 %743 }
 0x2bf   : > { %v703_v48 = vpop.f32.mrf.mxu3 }
 0x2c0   : > { %1227 = vmatmul.msk.f32.vlgmr.msra.gmra.mxu3 %vm644_vm1, %v703_v48 }
 0x2c3   : > { %v846_v49 = vpop.f32.mrf.mxu0 }
 0x2c4   : > { %v849_v50 = vmul.f32 0.35355338, %v846_v49 }
 0x2c6   : > { %v850_v51 = vsel %vm644_vm1, %v849_v50, -inf }
 0x2c7   : > { %851 = vmax.xlane.f32.xlu1 %v850_v51 }
 0x2c8   : > { %1233 = vmatmul.msk.f32.vlgmr.msrb.gmra.mxu3 %vm644_vm1, %v913_v52  ;;  %v1337_v52 = vld [vmem:[%s1875_s10] ss:$0 sm:$0xff] }
 0x2e0   : > { %748 = vrot.lane.b32.xlu1 %v1823_v36, %s1638_s30 }
 0x33a   : > { %v852_v53 = vpop.xlane.xlu1 %851 }
 0x33b   : > { %v853_v54 = vsub.f32 %v849_v50, %v852_v53 }
 0x33d   : > { %v854_v55 = vmul.f32 1.442695, %v853_v54  ;;  %v1338_v54 = vld [vmem:[%s1876_s11] ss:$0 sm:$0xff] }
 0x33f   : > { %1345 = vpow2.f32 %v854_v55 }
 0x340   : > { %1347 = vrcp.f32 %v744_v58 }
 0x343   : > { %v818_v56 = vpop.f32.mrf.mxu3 }
 0x345   : > { %v1346_v57 = vpop.eup %1345 }
 0x346   : > { %v856_v59 = vsel %vm644_vm1, %v1346_v57, 0.0  ;;  %v1348_v63 = vpop.eup %1347 }
 0x347   : > { %857 = vadd.xlane.f32.xlu2 %v856_v59  ;;  %v746_v1 = vmul.f32 %v1348_v63, %v1342_v42 }
 0x34b   : > { %v937_v60 = vpop.f32.mrf.mxu3 }
 0x34c   : > { %v940_v61 = vmul.f32 0.35355338, %v937_v60 }
 0x34e   : > { %v941_v62 = vsel %vm644_vm1, %v940_v61, -inf }
 0x34f   : > { %942 = vmax.xlane.f32.xlu0 %v941_v62 }
 0x352   : > { %v749_v0 = vpop.permute.xlu1 %748 }
 0x353   : > { %769 = vmatpush.msrb.mxu1 %v749_v0 }
 0x354   : > { %1225 = vmatmul.msk.f32.vlgmr.msrb.gmra.mxu1 %vm644_vm1, %v746_v1 }
 0x363   : > { %861 = vrot.lane.b32.xlu0 %v1823_v36, %s1637_s22 }
 0x3ba   : > { %v858_v6 = vpop.xlane.xlu2 %857 }
 0x3c2   : > { %v943_v3 = vpop.xlane.xlu0 %942 }
 0x3c3   : > { %v944_v4 = vsub.f32 %v940_v61, %v943_v3 }
 0x3c5   : > { %v945_v5 = vmul.f32 1.442695, %v944_v4 }
 0x3c7   : > { %1349 = vpow2.f32 %v945_v5 }
 0x3c8   : > { %1351 = vrcp.f32 %v858_v6 }
 0x3cd   : > { %v1350_v7 = vpop.eup %1349 }
 0x3ce   : > { %v947_v8 = vsel %vm644_vm1, %v1350_v7, 0.0  ;;  %v1352_v11 = vpop.eup %1351 }
 0x3cf   : > { %948 = vadd.xlane.f32.xlu2 %v947_v8  ;;  %v860_v12 = vmul.f32 %v1352_v11, %v1346_v57 }
 0x3d1   : > { %v771_v10 = vpop.f32.mrf.mxu1 }
 0x3d2   : > { %1226 = vmatmul.msk.f32.vlgmr.msrb.gmra.mxu2 %vm644_vm1, %v771_v10 }
 0x3d5   : > { %v862_v13 = vpop.permute.xlu0 %861 }
 0x3d6   : > { %882 = vmatpush.msra.mxu1 %v862_v13 }
 0x3d7   : > { %1230 = vmatmul.msk.f32.vlgmr.msra.gmra.mxu1 %vm644_vm1, %v860_v12 }
 0x3d8   : > { %997 = vmatpush.msrb.mxu1 %v978_v20 }
 0x3e7   : > { %952 = vrot.lane.b32.xlu2 %v1823_v36, %s1639_s15 }
 0x442   : > { %v949_v15 = vpop.xlane.xlu2 %948 }
 0x443   : > { %1353 = vrcp.f32 %v949_v15 }
 0x444   : > { %1355 = vrcp.f32 %v1640_v32 }
 0x449   : > { %v1354_v16 = vpop.eup %1353 }
 0x44a   : > { %v951_v17 = vmul.f32 %v1354_v16, %v1350_v7  ;;  %v953_v18 = vpop.permute.xlu2 %952  ;;  %v1356_v33 = vpop.eup %1355 }
 0x44b   : > { %973 = vmatpush.msrb.mxu0 %v953_v18  ;;  %v1015_v34 = vmul.f32 32.0, %v1356_v33  ;;  %vm1019_vm2 = vweird.f32 %v1356_v33 }
 0x44c   : > { %1234 = vmatmul.msk.f32.vlgmr.msrb.gmra.mxu0 %vm644_vm1, %v951_v17 }
 0x44d   : > { %v1016_v35 = vsub.f32 1.0, %v1015_v34 }
 0x44f   : > { %v1017_v36 = vmul.f32 %v1356_v33, %v1016_v35 }
 0x451   : > { %v1018_v37 = vadd.f32 %v1356_v33, %v1017_v36 }
 0x453   : > { %v1020_v38 = vsel %vm1019_vm2, %v1356_v33, %v1018_v37 }
 0x454   : > { %v884_v19 = vpop.f32.mrf.mxu1 }
 0x455   : > { %1231 = vmatmul.msk.f32.vlgmr.msra.gmra.mxu2 %vm644_vm1, %v884_v19  ;;  %v795_v22 = vpop.f32.mrf.mxu2 }
 0x456   : > { %v819_v24 = vadd.f32 %v818_v56, %v795_v22 }
 0x4c9   : > { %v975_v21 = vpop.f32.mrf.mxu0 }
 0x4ca   : > { %1235 = vmatmul.msk.f32.vlgmr.msrb.gmra.mxu1 %vm644_vm1, %v975_v21 }
 0x4d8   : > { %v908_v23 = vpop.f32.mrf.mxu2 }
 0x4d9   : > { %v911_v25 = vadd.f32 %v908_v23, %v819_v24 }
 0x547   : > { %v999_v26 = vpop.f32.mrf.mxu1 }
 0x548   : > { %v1002_v27 = vadd.f32 %v999_v26, %v911_v25 }
 0x54a   : > { %v1003_v29 = vadd.f32 %v1002_v27, %v1803_v9 }
 0x54c   : > { %v1008_v30 = vadd.f32 %v1336_v28, %v1003_v29 }
 0x54e   : > { %v1011_v31 = vsel %vm561_vm0, %v1008_v30, 0.0 }
 0x54f   : > { %1012 = vadd.xlane.f32.xlu1 %v1011_v31 }
 0x5c2   : > { %v1013_v39 = vpop.xlane.xlu1 %1012 }
 0x5c3   : > { %v1021_v40 = vmul.f32 %v1020_v38, %v1013_v39 }
 0x5c5   : > { %v1022_v41 = vsub.f32 %v1008_v30, %v1021_v40 }
 0x5c7   : > { %v1023_v42 = vmul.f32 %v1022_v41, %v1022_v41 }
 0x5c9   : > { %v1024_v43 = vsel %vm561_vm0, %v1023_v42, 0.0 }
 0x5ca   : > { %1025 = vadd.xlane.f32.xlu0 %v1024_v43 }
 0x63d   : > { %v1026_v9 = vpop.xlane.xlu0 %1025 }
 0x63e   : > { %v1027_v44 = vmul.f32 %v1026_v9, %v1020_v38 }
 0x640   : > { %v1028_v45 = vadd.f32 1e-05, %v1027_v44 }
 0x642   : > { %1357 = vrsqrt.f32 %v1028_v45  ;;  %vm1035_vm4 = vweird.f32 %v1028_v45 }
 0x648   : > { %v1358_v46 = vpop.eup %1357 }
 0x649   : > { %v1030_v47 = vmul.f32 %v1358_v46, %v1028_v45  ;;  %vm1036_vm3 = vweird.f32 %v1358_v46 }
 0x64a   : > { %vm1037_vm5 = vmor %vm1035_vm4, %vm1036_vm3 }
 0x64b   : > { %v1031_v48 = vmul.f32 %v1358_v46, %v1030_v47 }
 0x64d   : > { %v1032_v49 = vmul.f32 0.5, %v1031_v48 }
 0x64f   : > { %v1033_v50 = vsub.f32 1.5, %v1032_v49 }
 0x651   : > { %v1034_v51 = vmul.f32 %v1358_v46, %v1033_v50 }
 0x653   : > { %v1038_v53 = vsel %vm1037_vm5, %v1358_v46, %v1034_v51 }
 0x654   : > { %v1039_v55 = vmul.f32 %v1038_v53, %v1022_v41 }
 0x656   : > { %v1043_v56 = vmul.f32 %v1337_v52, %v1039_v55 }
 0x658   : > { %v1047_v57 = vadd.f32 %v1338_v54, %v1043_v56 }
 0x65a   : > { %1048 = vst.msk [vmem:[%s550_s24] sm:$0xff] %vm561_vm0, %v1047_v57 }
 0x65b PF: > { %s27_s21 = sadd.s32 1, %s1625_s21  }
 0x65c   : > { %p24_p7 = scmp.ge.s32.totalorder %s27_s21, 4  }
 0x65e   :  { %26 = sbr.rel (!%p24_p7) target bundleno = 7 (0x7), region = 134 }
 0x663   :  { %1068 = vsyncpa [#allocation3], 1 }
 0x664   :  { %1070 = vsyncpa [#allocation3 + $0x1], 1 }
 0x665   :  { %1071 = vsyncpa [#allocation5], 1 }
 0x666   :  { %1072 = vsyncpa [#allocation8], 1 }
 0x667   :  { %1073 = vsyncpa [#allocation11], 1 }
 0x668   :  { %1074 = vsyncpa [#allocation14], 1 }

// kernel: dyneformer_forward.24
= control target key start
LH: loop header
LB: loop body
LE: loop exit
PB: predicated region body
PF: predicated region fallthrough
CT: control target
= control target key end

     0   :  { %s314_s12 = smov 0   ;;  %s347_s0 = inlined_call_operand.vmem [shape: f32[2,8,32], index: 0, kind: input, shape index: {}]   ;;  %s348_s1 = inlined_call_operand.vmem [shape: f32[1,32], index: 1, kind: input, shape index: {}]   ;;  %s349_s2 = inlined_call_operand.vmem [shape: f32[1,32], index: 2, kind: input, shape index: {}]   ;;  %s350_s3 = inlined_call_operand.vmem [shape: f32[2,8,32], index: 3, kind: output, shape index: {}]  }
   0x1 LB: > { %s261_s13 = sadd.s32 4294967295, %s291_s12   ;;  %p265_p0 = scmp.ge.s32.totalorder %s291_s12, 1  ;;  %s291_s12 = sphi %s314_s12, %s13_s12  }
   0x2   : > { %p136_p1 = scmp.lt.s32.totalorder %s291_s12, 3 }
   0x4   : > { %p137_p2 = pnand %p265_p0, %p136_p1 }
   0x5   : > { %p158_p3 = scmp.lt.s32.totalorder (!%p137_p2), %s261_s13, 1 }
   0x6   : > { %140 = sbr.rel (%p137_p2) target bundleno = 284 (0x11c), region = 32 }
   0xb   : > { %s352_s13 = smov (!%p158_p3, %s261_s13), 1  ;;  %vm169_vm0 = vcmask 261120   ;;  %v293_v2 = vmov 32.0   ;;  %v279_v23 = vld [vmem:[%s348_s1] ss:$0 sm:$0xff] }
   0xc   : > { %s266_s14 = sshll.u32 %s352_s13, 3  ;;  %281 = vrcp.f32 %v293_v2  ;;  %v280_v25 = vld [vmem:[%s349_s2] ss:$0 sm:$0xff] }
   0xd   : > { %s161_s17 = scalar_lea.vmem %s347_s0, %s266_s14  ;;  %s165_s24 = scalar_lea.vmem %s350_s3, %s266_s14 }
   0xe   : > { %v166_v0 = vld [vmem:[%s161_s17] sm:$0xff] }
   0xf   : > { %v170_v1 = vsel %vm169_vm0, %v166_v0, 0.0 }
  0x10   : > { %171 = vadd.xlane.f32.xlu0 %v170_v1 }
  0x12   : > { %v282_v3 = vpop.eup %281 }
  0x13   : > { %v174_v4 = vmul.f32 32.0, %v282_v3  ;;  %vm178_vm1 = vweird.f32 %v282_v3 }
  0x15   : > { %v175_v5 = vsub.f32 1.0, %v174_v4 }
  0x17   : > { %v176_v6 = vmul.f32 %v282_v3, %v175_v5 }
  0x19   : > { %v177_v7 = vadd.f32 %v282_v3, %v176_v6 }
  0x1b   : > { %v179_v8 = vsel %vm178_vm1, %v282_v3, %v177_v7 }
  0x83   : > { %v172_v9 = vpop.xlane.xlu0 %171 }
  0x84   : > { %v180_v10 = vmul.f32 %v179_v8, %v172_v9 }
  0x86   : > { %v181_v11 = vsub.f32 %v166_v0, %v180_v10 }
  0x88   : > { %v182_v12 = vmul.f32 %v181_v11, %v181_v11 }
  0x8a   : > { %v183_v13 = vsel %vm169_vm0, %v182_v12, 0.0 }
  0x8b   : > { %184 = vadd.xlane.f32.xlu0 %v183_v13 }
  0xfe   : > { %v185_v14 = vpop.xlane.xlu0 %184 }
  0xff   : > { %v186_v15 = vmul.f32 %v185_v14, %v179_v8 }
 0x101   : > { %v187_v16 = vadd.f32 1e-05, %v186_v15 }
 0x103   : > { %283 = vrsqrt.f32 %v187_v16  ;;  %vm194_vm3 = vweird.f32 %v187_v16 }
 0x109   : > { %v284_v17 = vpop.eup %283 }
 0x10a   : > { %v189_v18 = vmul.f32 %v284_v17, %v187_v16  ;;  %vm195_vm2 = vweird.f32 %v284_v17 }
 0x10b   : > { %vm196_vm4 = vmor %vm194_vm3, %vm195_vm2 }
 0x10c   : > { %v190_v19 = vmul.f32 %v284_v17, %v189_v18 }
 0x10e   : > { %v191_v20 = vmul.f32 0.5, %v190_v19 }
 0x110   : > { %v192_v21 = vsub.f32 1.5, %v191_v20 }
 0x112   : > { %v193_v22 = vmul.f32 %v284_v17, %v192_v21 }
 0x114   : > { %v197_v24 = vsel %vm196_vm4, %v284_v17, %v193_v22 }
 0x115   : > { %v198_v26 = vmul.f32 %v197_v24, %v181_v11 }
 0x117   : > { %v202_v27 = vmul.f32 %v279_v23, %v198_v26 }
 0x119   : > { %v206_v28 = vadd.f32 %v280_v25, %v202_v27 }
 0x11b   : > { %207 = vst.msk [vmem:[%s165_s24] sm:$0xff] %vm169_vm0, %v206_v28 }
 0x11c PF: > { %s13_s12 = sadd.s32 1, %s291_s12  }
 0x11d   : > { %p10_p4 = scmp.ge.s32.totalorder %s13_s12, 4  }
 0x11f   :  { %12 = sbr.rel (!%p10_p4) target bundleno = 1 (0x1), region = 62 }

// kernel: dyneformer_forward.25
= control target key start
LH: loop header
LB: loop body
LE: loop exit
PB: predicated region body
PF: predicated region fallthrough
CT: control target
= control target key end

     0   :  { %s1540_s0 = inlined_call_operand.vmem [shape: f32[2,8,4], index: 0, kind: input, shape index: {}]   ;;  %s1541_s1 = inlined_call_operand.vmem [shape: f32[2,8,4], index: 1, kind: input, shape index: {}]   ;;  %s1542_s2 = inlined_call_operand.vmem [shape: f32[2,8,4], index: 2, kind: input, shape index: {}]   ;;  %s1543_s3 = inlined_call_operand.vmem [shape: f32[2,8,4], index: 3, kind: input, shape index: {}]   ;;  %s1544_s4 = inlined_call_operand.vmem [shape: f32[8,32], index: 4, kind: input, shape index: {}]   ;;  %s1545_s5 = inlined_call_operand.vmem [shape: f32[2,1,6], index: 5, kind: input, shape index: {}]   ;;  %s1546_s6 = inlined_call_operand.vmem [shape: f32[4,32], index: 6, kind: input, shape index: {}]   ;;  %s1547_s7 = inlined_call_operand.hbm [shape: f32[4,32], index: 7, kind: input, shape index: {}]   ;;  %s1548_s8 = inlined_call_operand.hbm [shape: f32[4,32], index: 8, kind: input, shape index: {}]   ;;  %s1549_s9 = inlined_call_operand.hbm [shape: f32[4,32], index: 9, kind: input, shape index: {}]   ;;  %s1550_s10 = inlined_call_operand.vmem [shape: f32[32,32], index: 10, kind: input, shape index: {}]   ;;  %s1551_s11 = inlined_call_operand.hbm [shape: f32[1,32], index: 11, kind: input, shape index: {}]   ;;  %s1552_s12 = inlined_call_operand.vmem [shape: f32[6,32], index: 12, kind: input, shape index: {}]   ;;  %s1553_s13 = inlined_call_operand.hbm [shape: f32[1,32], index: 13, kind: input, shape index: {}]   ;;  %s1554_s14 = inlined_call_operand.vmem [shape: f32[1,32], index: 14, kind: input, shape index: {}]   ;;  %s1555_s15 = inlined_call_operand.vmem [shape: f32[1,32], index: 15, kind: input, shape index: {}]   ;;  %s1556_s16 = inlined_call_operand.vmem [shape: f32[2,8,32], index: 16, kind: output, shape index: {}]  }
   0x1   :  { %1558 = sst [smem:[#allocation14_spill]] %s1540_s0 }
   0x2   :  { %1559 = sst [smem:[#allocation15_spill]] %s1547_s7 }
   0x3   :  { %1560 = sst [smem:[#allocation16_spill]] %s1548_s8 }
   0x4   :  { %1561 = sst [smem:[#allocation17_spill]] %s1551_s11 }
   0x5   :  { %21 = vsyncpa [#allocation3], 0 }
   0x6   :  { %22 = vsyncpa [#allocation5], 0 }
   0x7   :  { %23 = vsyncpa [#allocation8], 0  ;;  %s1403_s21 = smov 0  }
   0x8 LB: > { %1562 = sst [smem:[#allocation13_spill]] %s1310_s21  ;;  %s1412_s25 = sadd.s32 4294967295, %s1310_s21   ;;  %s1310_s21 = sphi %s1403_s21, %s29_s21  }
   0x9   : > { %s1563_s8 = sld [smem:[#allocation16_spill]]  ;;  %p1040_p0 = scmp.ge.s32.totalorder %s1310_s21, 1 }
   0xa   : > { %p421_p1 = scmp.lt.s32.totalorder %s1310_s21, 3  ;;  %p1107_p2 = scmp.eq.s32.totalorder %s1412_s25, 0 }
   0xb   : > { %s1312_s27 = smov [#allocation4]   ;;  %s1565_s11 = sld [smem:[#allocation17_spill]] }
   0xc   : > { %p1417_p3 = pnand %p1040_p0, %p421_p1  ;;  %s453_s28 = sshll.u32 %s1312_s27, 4  ;;  %s454_s28 = int_to_ptr.vmem [resolvable:$true] %s453_s28 }
   0xd   : > { %s1566_s7 = sld [smem:[#allocation15_spill]]  ;;  %s1313_s22 = smov [#allocation7]  }
   0xe   : > { %p1091_p4 = pneg %p1417_p3  ;;  %s480_s23 = sshll.u32 %s1313_s22, 4  ;;  %s481_s23 = int_to_ptr.vmem [resolvable:$true] %s480_s23 }
   0xf   : > { %s451_s24 = sshll.u32 %s1563_s8, 4  ;;  %s1314_s27 = smov [#allocation2]   ;;  %s452_s24 = int_to_ptr.hbm [resolvable:$true] %s451_s24 }
  0x10   : > { %p1431_p5 = pnand %p1107_p2, %p1091_p4  ;;  %s441_s29 = sshll.u32 %s1314_s27, 4  ;;  %s442_s29 = int_to_ptr.vmem [resolvable:$true] %s441_s29 }
  0x11   : > { %s478_s0 = sshll.u32 %s1565_s11, 4  ;;  %s463_s18 = sshll.u32 %s1549_s9, 4  ;;  %s479_s0 = int_to_ptr.hbm [resolvable:$true] %s478_s0  ;;  %s464_s18 = int_to_ptr.hbm [resolvable:$true] %s463_s18 }
  0x12   : > { %1097 = dma.hbm_to_vmem [thread:$0]  (!%p1431_p5), %s452_s24, 64, %s454_s28, [#allocation5]  }
  0x13   : > { %s439_s19 = sshll.u32 %s1566_s7, 4  ;;  %s493_s8 = sshll.u32 %s1553_s13, 4  ;;  %s440_s19 = int_to_ptr.hbm [resolvable:$true] %s439_s19  ;;  %s494_s8 = int_to_ptr.hbm [resolvable:$true] %s493_s8 }
  0x14   : > { %1103 = dma.hbm_to_vmem [thread:$0]  (!%p1431_p5), %s479_s0, 16, %s481_s23, [#allocation8]  }
  0x15   : > { %1094 = dma.hbm_to_vmem [thread:$0]  (!%p1431_p5), %s440_s19, 64, %s442_s29, [#allocation3]  }
  0x16   : > { %s1315_s11 = smov [#allocation6]   ;;  %s1316_s24 = smov [#allocation9]  }
  0x17   : > { %s465_s21 = sshll.u32 %s1315_s11, 4  ;;  %s495_s28 = sshll.u32 %s1316_s24, 4  ;;  %s466_s21 = int_to_ptr.vmem [resolvable:$true] %s465_s21  ;;  %s496_s28 = int_to_ptr.vmem [resolvable:$true] %s495_s28 }
  0x18   : > { %1100 = dma.hbm_to_vmem [thread:$0]  (!%p1431_p5), %s464_s18, 64, %s466_s21, [#allocation5]  }
  0x19   : > { %1106 = dma.hbm_to_vmem [thread:$0]  (!%p1431_p5), %s494_s8, 16, %s496_s28, [#allocation8]  }
  0x1a   : > { %548 = sbr.rel (%p1417_p3) target bundleno = 835 (0x343), region = 84 }
  0x1f   : > { %1297 = dma.done.wait (%p1107_p2), [#allocation3], 64  }
  0x20   : > { %1299 = vsyncadd (%p1107_p2), [#allocation3], 4294967232 }
  0x21   : > { %1301 = dma.done.wait (%p1107_p2), [#allocation5], 128  }
  0x22   : > { %1303 = vsyncadd (%p1107_p2), [#allocation5], 4294967168 }
  0x23   : > { %1305 = dma.done.wait (%p1107_p2), [#allocation8], 32  }
  0x24   : > { %1307 = vsyncadd (%p1107_p2), [#allocation8], 4294967264  ;;  %p632_p6 = scmp.lt.s32.totalorder %s1412_s25, 1  ;;  %vm664_vm0 = vcmask 1043456   ;;  %vm660_vm1 = vcmask 31744   ;;  %s1568_s17 = sld [smem:[#allocation14_spill]] }
  0x25   : > { %v714_v0 = vld [vmem:[#allocation4] sm:$0xf]  ;;  %v743_v2 = vld [vmem:[#allocation6] sm:$0xf]  ;;  %v659_v4 = vld [vmem:[#allocation2] sm:$0xf] }
  0x26   : > { %s1571_s25 = smov (!%p632_p6, %s1412_s25), 1  ;;  %1062 = vmatpush.msk.msra.mxu2 %vm664_vm0, %v714_v0  ;;  %1064 = vmatpush.msk.msra.mxu3 %vm664_vm0, %v743_v2  ;;  %v658_v5 = vld [vmem:[%s1546_s6] sm:$0xf]  ;;  %v776_v8 = vld [vmem:[%s1550_s10 + $0x18] sm:$0xff]  ;;  %v775_v9 = vld [vmem:[%s1550_s10 + $0x10] sm:$0xff]  ;;  %vm781_vm2 = vcmask 261120  }
  0x27   : > { %s1470_s7 = sshll.u32 %s1571_s25, 3  ;;  %1058 = vmatpush.msk.msra.mxu0 %vm664_vm0, %v659_v4  ;;  %1060 = vmatpush.msk.msra.mxu1 %vm664_vm0, %v658_v5  ;;  %v774_v10 = vld [vmem:[%s1550_s10 + $0x8] sm:$0xff]  ;;  %v773_v11 = vld [vmem:[%s1550_s10] sm:$0xff]  ;;  %vm812_vm3 = vcmask 1045504   ;;  %s650_s22 = scalar_lea.vmem %s1545_s5, %s1571_s25  ;;  %vm808_vm4 = vcmask 48128   ;;  %v1317_v42 = vmov 32.0  }
  0x28   : > { %s643_s21 = scalar_lea.vmem %s1542_s2, %s1470_s7  ;;  %s647_s19 = scalar_lea.vmem %s1543_s3, %s1470_s7  ;;  %v771_v18 = vld [vmem:[%s1544_s4] sm:$0xff]  ;;  %v1131_v22 = vld [vmem:[#allocation7] ss:$0 sm:$0xff]  ;;  %v807_v32 = vld [vmem:[#allocation9] sm:$0x1] }
  0x29   : > { %s639_s27 = scalar_lea.vmem %s1541_s1, %s1470_s7  ;;  %v657_v1 = vld [vmem:[%s643_s21] sm:$0xff]  ;;  %797 = vmatpush.msrb.mxu0 %v776_v8  ;;  %s654_s26 = scalar_lea.vmem %s1556_s16, %s1470_s7 }
  0x2a   : > { %s635_s18 = scalar_lea.vmem %s1568_s17, %s1470_s7  ;;  %v742_v3 = vld [vmem:[%s647_s19] sm:$0xff]  ;;  %1063 = vmatmul.msk.f32.vlgmr.msra.gmra.mxu2 %vm660_vm1, %v657_v1 }
  0x2b   : > { %1065 = vmatmul.msk.f32.vlgmr.msra.gmra.mxu3 %vm660_vm1, %v742_v3  ;;  %v656_v6 = vld [vmem:[%s639_s27] sm:$0xff]  ;;  %798 = vmatpush.msrb.mxu0 %v775_v9 }
  0x2c   : > { %v655_v7 = vld [vmem:[%s635_s18] sm:$0xff]  ;;  %1059 = vmatmul.msk.f32.vlgmr.msra.gmra.mxu0 %vm660_vm1, %v656_v6 }
  0x2d   : > { %1061 = vmatmul.msk.f32.vlgmr.msra.gmra.mxu1 %vm660_vm1, %v655_v7  ;;  %799 = vmatpush.msrb.mxu0 %v774_v10  ;;  %v806_v21 = vld [vmem:[%s1552_s12] sm:$0x3f] }
  0x2e   : > { %1067 = vmatpush.msk.msrb.mxu1 %vm812_vm3, %v806_v21  ;;  %v805_v26 = vld [vmem:[%s650_s22] sm:$0x1] }
  0x2f   : > { %800 = vmatpush.msrb.mxu0 %v773_v11  ;;  %v1132_v63 = vld [vmem:[%s1554_s14] ss:$0 sm:$0xff] }
  0x30   : > { %v1133_v1 = vld [vmem:[%s1555_s15] ss:$0 sm:$0xff] }
  0x35   : > { %1068 = vmatmul.msk.f32.vlgmr.msrb.gmra.mxu1 %vm808_vm4, %v805_v26 }
  0xa9   : > { %v685_v12 = vpop.f32.mrf.mxu0 }
  0xaa   : > { %v711_v13 = vpop.f32.mrf.mxu1 }
  0xab   : > { %v712_v14 = vadd.f32 %v711_v13, %v685_v12 }
  0xad   : > { %v738_v15 = vpop.f32.mrf.mxu2 }
  0xae   : > { %v767_v16 = vpop.f32.mrf.mxu3  ;;  %v741_v17 = vadd.f32 %v738_v15, %v712_v14 }
  0xb0   : > { %v770_v19 = vadd.f32 %v767_v16, %v741_v17 }
  0xb2   : > { %v772_v20 = vadd.f32 %v771_v18, %v770_v19  ;;  %v833_v33 = vpop.f32.mrf.mxu1 }
  0xb3   : > { %v834_v35 = vadd.f32 %v833_v33, %v807_v32 }
  0xb4   : > { %1066 = vmatmul.msk.f32.vlgmr.msrb.gmra.mxu0 %vm781_vm2, %v772_v20 }
  0xb5   : > { %v847_v36 = vperm.slane %v834_v35, 0 }
 0x131   : > { %v802_v23 = vpop.f32.mrf.mxu0 }
 0x132   : > { %v803_v24 = vadd.f32 %v1131_v22, %v802_v23 }
 0x134   : > { %v836_v25 = vsel %vm781_vm2, %v803_v24, -inf }
 0x135   : > { %837 = vmax.xlane.f32.xlu0 %v836_v25 }
 0x1a8   : > { %v838_v27 = vpop.xlane.xlu0 %837 }
 0x1a9   : > { %v839_v28 = vsub.f32 %v803_v24, %v838_v27 }
 0x1ab   : > { %v840_v29 = vmul.f32 1.442695, %v839_v28 }
 0x1ad   : > { %1134 = vpow2.f32 %v840_v29 }
 0x1b3   : > { %v1135_v30 = vpop.eup %1134 }
 0x1b4   : > { %v842_v31 = vsel %vm781_vm2, %v1135_v30, 0.0 }
 0x1b5   : > { %843 = vadd.xlane.f32.xlu0 %v842_v31 }
 0x228   : > { %v844_v34 = vpop.xlane.xlu0 %843 }
 0x229   : > { %1136 = vrcp.f32 %v844_v34 }
 0x22a   : > { %1138 = vrcp.f32 %v1317_v42 }
 0x22f   : > { %v1137_v37 = vpop.eup %1136 }
 0x230   : > { %v846_v38 = vmul.f32 %v1137_v37, %v1135_v30  ;;  %v1139_v43 = vpop.eup %1138 }
 0x231   : > { %v856_v44 = vmul.f32 32.0, %v1139_v43  ;;  %vm860_vm5 = vweird.f32 %v1139_v43 }
 0x232   : > { %v848_v39 = vmul.f32 %v847_v36, %v846_v38 }
 0x233   : > { %v857_v45 = vsub.f32 1.0, %v856_v44 }
 0x234   : > { %v849_v40 = vadd.f32 %v848_v39, %v772_v20 }
 0x235   : > { %v858_v46 = vmul.f32 %v1139_v43, %v857_v45 }
 0x236   : > { %v852_v41 = vsel %vm781_vm2, %v849_v40, 0.0 }
 0x237   : > { %853 = vadd.xlane.f32.xlu1 %v852_v41  ;;  %v859_v47 = vadd.f32 %v1139_v43, %v858_v46 }
 0x239   : > { %v861_v48 = vsel %vm860_vm5, %v1139_v43, %v859_v47 }
 0x2aa   : > { %v854_v49 = vpop.xlane.xlu1 %853 }
 0x2ab   : > { %v862_v50 = vmul.f32 %v861_v48, %v854_v49 }
 0x2ad   : > { %v863_v51 = vsub.f32 %v849_v40, %v862_v50 }
 0x2af   : > { %v864_v52 = vmul.f32 %v863_v51, %v863_v51 }
 0x2b1   : > { %v865_v53 = vsel %vm781_vm2, %v864_v52, 0.0 }
 0x2b2   : > { %866 = vadd.xlane.f32.xlu1 %v865_v53 }
 0x325   : > { %v867_v54 = vpop.xlane.xlu1 %866 }
 0x326   : > { %v868_v55 = vmul.f32 %v867_v54, %v861_v48 }
 0x328   : > { %v869_v56 = vadd.f32 1e-05, %v868_v55 }
 0x32a   : > { %1140 = vrsqrt.f32 %v869_v56  ;;  %vm876_vm7 = vweird.f32 %v869_v56 }
 0x330   : > { %v1141_v57 = vpop.eup %1140 }
 0x331   : > { %v871_v58 = vmul.f32 %v1141_v57, %v869_v56  ;;  %vm877_vm6 = vweird.f32 %v1141_v57 }
 0x332   : > { %vm878_vm8 = vmor %vm876_vm7, %vm877_vm6 }
 0x333   : > { %v872_v59 = vmul.f32 %v1141_v57, %v871_v58 }
 0x335   : > { %v873_v60 = vmul.f32 0.5, %v872_v59 }
 0x337   : > { %v874_v61 = vsub.f32 1.5, %v873_v60 }
 0x339   : > { %v875_v62 = vmul.f32 %v1141_v57, %v874_v61 }
 0x33b   : > { %v879_v0 = vsel %vm878_vm8, %v1141_v57, %v875_v62 }
 0x33c   : > { %v880_v2 = vmul.f32 %v879_v0, %v863_v51 }
 0x33e   : > { %v884_v3 = vmul.f32 %v1132_v63, %v880_v2 }
 0x340   : > { %v888_v4 = vadd.f32 %v1133_v1, %v884_v3 }
 0x342   : > { %889 = vst.msk [vmem:[%s654_s26] sm:$0xff] %vm781_vm2, %v888_v4 }
 0x343 PF: > { %s1569_s0 = sld [smem:[#allocation13_spill]] }
 0x349   : > { %s29_s21 = sadd.s32 1, %s1569_s0  }
 0x34a   : > { %p26_p7 = scmp.ge.s32.totalorder %s29_s21, 4  }
 0x34c   :  { %28 = sbr.rel (!%p26_p7) target bundleno = 8 (0x8), region = 147 }
 0x351   :  { %909 = vsyncpa [#allocation3], 1 }
 0x352   :  { %911 = vsyncpa [#allocation3 + $0x1], 1 }
 0x353   :  { %912 = vsyncpa [#allocation5], 1 }
 0x354   :  { %913 = vsyncpa [#allocation8], 1 }

// kernel: dyneformer_forward.29
= control target key start
LH: loop header
LB: loop body
LE: loop exit
PB: predicated region body
PF: predicated region fallthrough
CT: control target
= control target key end

     0   :  { %s417_s20 = smov 0   ;;  %s462_s0 = inlined_call_operand.vmem [shape: f32[2,8,32], index: 0, kind: input, shape index: {}]   ;;  %s463_s1 = inlined_call_operand.vmem [shape: f32[1,32], index: 1, kind: input, shape index: {}]   ;;  %s464_s2 = inlined_call_operand.vmem [shape: f32[1,32], index: 2, kind: input, shape index: {}]   ;;  %s465_s3 = inlined_call_operand.vmem [shape: f32[32,1], index: 3, kind: input, shape index: {}]   ;;  %s466_s4 = inlined_call_operand.<no memory space> [shape: f32[1,1], index: 4, kind: input, shape index: {}]   ;;  %s467_s5 = inlined_call_operand.vmem [shape: f32[2,8,1], index: 5, kind: output, shape index: {}]  }
   0x1   :  { %v10_v0 = vstv %s466_s4 }
   0x2   :  { %11 = vst [vmem:[#allocation2] sm:$0x1] %v10_v0 }
   0x3 LB: > { %s349_s21 = sadd.s32 4294967295, %s381_s20   ;;  %p353_p0 = scmp.ge.s32.totalorder %s381_s20, 1  ;;  %s381_s20 = sphi %s417_s20, %s17_s20  }
   0x4   : > { %p188_p1 = scmp.lt.s32.totalorder %s381_s20, 3 }
   0x6   : > { %p189_p2 = pnand %p353_p0, %p188_p1 }
   0x7   : > { %p214_p3 = scmp.lt.s32.totalorder (!%p189_p2), %s349_s21, 1 }
   0x8   : > { %192 = sbr.rel (%p189_p2) target bundleno = 414 (0x19e), region = 40 }
   0xd   : > { %s469_s21 = smov (!%p214_p3, %s349_s21), 1  ;;  %vm225_vm0 = vcmask 261120   ;;  %v383_v3 = vmov 32.0   ;;  %v266_v15 = vld [vmem:[%s465_s3 + $0x18] sm:$0xff]  ;;  %v265_v16 = vld [vmem:[%s465_s3 + $0x10] sm:$0xff]  ;;  %v264_v17 = vld [vmem:[%s465_s3 + $0x8] sm:$0xff] }
   0xe   : > { %s354_s4 = sshll.u32 %s469_s21, 3  ;;  %371 = vrcp.f32 %v383_v3  ;;  %286 = vmatpush.msra.mxu0 %v266_v15  ;;  %v263_v18 = vld [vmem:[%s465_s3] sm:$0xff]  ;;  %vm294_vm5 = vcmask 7168  }
   0xf   : > { %s217_s24 = scalar_lea.vmem %s462_s0, %s354_s4  ;;  %v368_v28 = vld [vmem:[%s463_s1] ss:$0 sm:$0xff]  ;;  %s221_s14 = scalar_lea.vmem %s467_s5, %s354_s4 }
  0x10   : > { %v222_v1 = vld [vmem:[%s217_s24] sm:$0xff]  ;;  %287 = vmatpush.msra.mxu0 %v265_v16 }
  0x11   : > { %v226_v2 = vsel %vm225_vm0, %v222_v1, 0.0  ;;  %v369_v31 = vld [vmem:[%s464_s2] ss:$0 sm:$0xff] }
  0x12   : > { %227 = vadd.xlane.f32.xlu0 %v226_v2  ;;  %288 = vmatpush.msra.mxu0 %v264_v17  ;;  %v370_v34 = vld [vmem:[#allocation2] ss:$0 sm:$0xff] }
  0x14   : > { %v372_v4 = vpop.eup %371  ;;  %289 = vmatpush.msra.mxu0 %v263_v18 }
  0x15   : > { %v230_v5 = vmul.f32 32.0, %v372_v4  ;;  %vm234_vm1 = vweird.f32 %v372_v4 }
  0x17   : > { %v231_v6 = vsub.f32 1.0, %v230_v5 }
  0x19   : > { %v232_v7 = vmul.f32 %v372_v4, %v231_v6 }
  0x1b   : > { %v233_v8 = vadd.f32 %v372_v4, %v232_v7 }
  0x1d   : > { %v235_v9 = vsel %vm234_vm1, %v372_v4, %v233_v8 }
  0x85   : > { %v228_v10 = vpop.xlane.xlu0 %227 }
  0x86   : > { %v236_v11 = vmul.f32 %v235_v9, %v228_v10 }
  0x88   : > { %v237_v12 = vsub.f32 %v222_v1, %v236_v11 }
  0x8a   : > { %v238_v13 = vmul.f32 %v237_v12, %v237_v12 }
  0x8c   : > { %v239_v14 = vsel %vm225_vm0, %v238_v13, 0.0 }
  0x8d   : > { %240 = vadd.xlane.f32.xlu0 %v239_v14 }
 0x100   : > { %v241_v19 = vpop.xlane.xlu0 %240 }
 0x101   : > { %v242_v20 = vmul.f32 %v241_v19, %v235_v9 }
 0x103   : > { %v243_v21 = vadd.f32 1e-05, %v242_v20 }
 0x105   : > { %373 = vrsqrt.f32 %v243_v21  ;;  %vm250_vm3 = vweird.f32 %v243_v21 }
 0x10b   : > { %v374_v22 = vpop.eup %373 }
 0x10c   : > { %v245_v23 = vmul.f32 %v374_v22, %v243_v21  ;;  %vm251_vm2 = vweird.f32 %v374_v22 }
 0x10d   : > { %vm252_vm4 = vmor %vm250_vm3, %vm251_vm2 }
 0x10e   : > { %v246_v24 = vmul.f32 %v374_v22, %v245_v23 }
 0x110   : > { %v247_v25 = vmul.f32 0.5, %v246_v24 }
 0x112   : > { %v248_v26 = vsub.f32 1.5, %v247_v25 }
 0x114   : > { %v249_v27 = vmul.f32 %v374_v22, %v248_v26 }
 0x116   : > { %v253_v29 = vsel %vm252_vm4, %v374_v22, %v249_v27 }
 0x117   : > { %v254_v30 = vmul.f32 %v253_v29, %v237_v12 }
 0x119   : > { %v258_v32 = vmul.f32 %v368_v28, %v254_v30 }
 0x11b   : > { %v262_v33 = vadd.f32 %v369_v31, %v258_v32 }
 0x11d   : > { %356 = vmatmul.msk.f32.vlgmr.msra.gmra.mxu0 %vm225_vm0, %v262_v33 }
 0x19a   : > { %v291_v35 = vpop.f32.mrf.mxu0 }
 0x19b   : > { %v292_v36 = vadd.f32 %v370_v34, %v291_v35 }
 0x19d   : > { %295 = vst.msk [vmem:[%s221_s14] sm:$0xff] %vm294_vm5, %v292_v36 }
 0x19e PF: > { %s17_s20 = sadd.s32 1, %s381_s20  }
 0x19f   : > { %p14_p4 = scmp.ge.s32.totalorder %s17_s20, 4  }
 0x1a1   :  { %16 = sbr.rel (!%p14_p4) target bundleno = 3 (0x3), region = 70 }

// kernel: dyneformer_forward.27
= control target key start
LH: loop header
LB: loop body
LE: loop exit
PB: predicated region body
PF: predicated region fallthrough
CT: control target
= control target key end

     0   :  { %17 = vsyncpa [#allocation3], 0  ;;  %s1597_s0 = inlined_call_operand.vmem [shape: f32[2,8,32], index: 0, kind: input, shape index: {}]   ;;  %s1598_s1 = inlined_call_operand.vmem [shape: f32[2,8,32], index: 1, kind: input, shape index: {}]   ;;  %s1599_s2 = inlined_call_operand.vmem [shape: f32[32,32], index: 2, kind: input, shape index: {}]   ;;  %s1600_s3 = inlined_call_operand.hbm [shape: f32[1,32], index: 3, kind: input, shape index: {}]   ;;  %s1601_s4 = inlined_call_operand.vmem [shape: f32[32,32], index: 4, kind: input, shape index: {}]   ;;  %s1602_s5 = inlined_call_operand.hbm [shape: f32[1,32], index: 5, kind: input, shape index: {}]   ;;  %s1603_s6 = inlined_call_operand.vmem [shape: f32[32,32], index: 6, kind: input, shape index: {}]   ;;  %s1604_s7 = inlined_call_operand.hbm [shape: f32[1,32], index: 7, kind: input, shape index: {}]   ;;  %s1605_s8 = inlined_call_operand.vmem [shape: f32[32,32], index: 8, kind: input, shape index: {}]   ;;  %s1606_s9 = inlined_call_operand.hbm [shape: f32[1,32], index: 9, kind: input, shape index: {}]   ;;  %s1607_s10 = inlined_call_operand.vmem [shape: f32[1,32], index: 10, kind: input, shape index: {}]   ;;  %s1608_s11 = inlined_call_operand.vmem [shape: f32[1,32], index: 11, kind: input, shape index: {}]   ;;  %s1609_s12 = inlined_call_operand.vmem [shape: f32[2,8,32], index: 12, kind: output, shape index: {}]  }
   0x1   :  { %18 = vsyncpa [#allocation5], 0 }
   0x2   :  { %19 = vsyncpa [#allocation8], 0  ;;  %s1418_s21 = smov 0  }
   0x3 LB: > { %s348_s24 = sshll.u32 %s1602_s5, 4  ;;  %s1427_s25 = sadd.s32 4294967295, %s1343_s21   ;;  %s1343_s21 = sphi %s1418_s21, %s25_s21   ;;  %s349_s24 = int_to_ptr.hbm [resolvable:$true] %s348_s24 }
   0x4   : > { %p1091_p0 = scmp.ge.s32.totalorder %s1343_s21, 1  ;;  %p318_p1 = scmp.lt.s32.totalorder %s1343_s21, 3 }
   0x5   : > { %p1155_p2 = scmp.eq.s32.totalorder %s1427_s25, 0  ;;  %s1345_s27 = smov [#allocation4]  }
   0x6   : > { %p1432_p3 = pnand %p1091_p0, %p318_p1  ;;  %s350_s28 = sshll.u32 %s1345_s27, 4  ;;  %s351_s28 = int_to_ptr.vmem [resolvable:$true] %s350_s28 }
   0x7   : > { %s333_s13 = sshll.u32 %s1600_s3, 4  ;;  %s363_s16 = sshll.u32 %s1604_s7, 4  ;;  %s334_s13 = int_to_ptr.hbm [resolvable:$true] %s333_s13  ;;  %s364_s16 = int_to_ptr.hbm [resolvable:$true] %s363_s16 }
   0x8   : > { %p1142_p4 = pneg %p1432_p3  ;;  %s1346_s18 = smov [#allocation2]  }
   0x9   : > { %s335_s19 = sshll.u32 %s1346_s18, 4  ;;  %s1347_s20 = smov [#allocation6]   ;;  %s336_s19 = int_to_ptr.vmem [resolvable:$true] %s335_s19 }
   0xa   : > { %p1446_p5 = pnand %p1155_p2, %p1142_p4  ;;  %s365_s22 = sshll.u32 %s1347_s20, 4  ;;  %s366_s22 = int_to_ptr.vmem [resolvable:$true] %s365_s22 }
   0xb   : > { %s378_s29 = sshll.u32 %s1606_s9, 4  ;;  %s1348_s30 = smov [#allocation7]   ;;  %s379_s29 = int_to_ptr.hbm [resolvable:$true] %s378_s29 }
   0xc   : > { %1148 = dma.hbm_to_vmem [thread:$0]  (!%p1446_p5), %s349_s24, 16, %s351_s28, [#allocation5]  }
   0xd   : > { %1145 = dma.hbm_to_vmem [thread:$0]  (!%p1446_p5), %s334_s13, 16, %s336_s19, [#allocation3]  }
   0xe   : > { %1151 = dma.hbm_to_vmem [thread:$0]  (!%p1446_p5), %s364_s16, 16, %s366_s22, [#allocation5]  }
   0xf   : > { %s380_s14 = sshll.u32 %s1348_s30, 4  ;;  %413 = sbr.rel (%p1432_p3) target bundleno = 1608 (0x648), region = 68  ;;  %s381_s14 = int_to_ptr.vmem [resolvable:$true] %s380_s14 }
  0x10   : > { %1154 = dma.hbm_to_vmem [thread:$0]  (!%p1446_p5), %s379_s29, 16, %s381_s14, [#allocation8]  }
  0x14   : > { %1330 = dma.done.wait (%p1155_p2), [#allocation3], 16  }
  0x15   : > { %1332 = vsyncadd (%p1155_p2), [#allocation3], 4294967280 }
  0x16   : > { %1334 = dma.done.wait (%p1155_p2), [#allocation5], 32  }
  0x17   : > { %1336 = vsyncadd (%p1155_p2), [#allocation5], 4294967264 }
  0x18   : > { %1338 = dma.done.wait (%p1155_p2), [#allocation8], 16  }
  0x19   : > { %1340 = vsyncadd (%p1155_p2), [#allocation8], 4294967280  ;;  %p473_p6 = scmp.lt.s32.totalorder %s1427_s25, 1  ;;  %v522_v0 = vld [vmem:[%s1601_s4 + $0x18] sm:$0xff]  ;;  %v521_v1 = vld [vmem:[%s1601_s4 + $0x10] sm:$0xff]  ;;  %vm495_vm0 = vcmask 261120  }
  0x1a   : > { %v490_v2 = vld [vmem:[%s1599_s2 + $0x18] sm:$0xff]  ;;  %542 = vmatpush.msra.mxu1 %v522_v0  ;;  %v489_v3 = vld [vmem:[%s1599_s2 + $0x10] sm:$0xff]  ;;  %v520_v4 = vld [vmem:[%s1601_s4 + $0x8] sm:$0xff]  ;;  %vm578_vm1 = vcmask 64512   ;;  %s1349_s18 = smov 112   ;;  %s1350_s19 = smov 120  }
  0x1b   : > { %s1613_s25 = smov (!%p473_p6, %s1427_s25), 1  ;;  %511 = vmatpush.msra.mxu0 %v490_v2  ;;  %v519_v5 = vld [vmem:[%s1601_s4] sm:$0xff]  ;;  %v488_v6 = vld [vmem:[%s1599_s2 + $0x8] sm:$0xff]  ;;  %v553_v16 = vld [vmem:[%s1603_s6 + $0x18] sm:$0xff] }
  0x1c   : > { %s1477_s24 = sshll.u32 %s1613_s25, 3  ;;  %543 = vmatpush.msra.mxu1 %v521_v1  ;;  %v487_v8 = vld [vmem:[%s1599_s2] sm:$0xff]  ;;  %570 = vmatpush.msra.mxu2 %v553_v16  ;;  %v552_v23 = vld [vmem:[%s1603_s6 + $0x10] sm:$0xff]  ;;  %v551_v24 = vld [vmem:[%s1603_s6 + $0x8] sm:$0xff] }
  0x1d   : > { %s480_s20 = scalar_lea.vmem %s1598_s1, %s1477_s24  ;;  %s476_s15 = scalar_lea.vmem %s1597_s0, %s1477_s24  ;;  %512 = vmatpush.msra.mxu0 %v489_v3  ;;  %v1179_v10 = vld [vmem:[#allocation4] ss:$0 sm:$0xff]  ;;  %v1180_v11 = vld [vmem:[#allocation2] ss:$0 sm:$0xff]  ;;  %v1181_v34 = vld [vmem:[#allocation6] ss:$0 sm:$0xff] }
  0x1e   : > { %v486_v7 = vld [vmem:[%s480_s20] sm:$0xff]  ;;  %544 = vmatpush.msra.mxu1 %v520_v4  ;;  %s1351_s20 = smov 104   ;;  %571 = vmatpush.msra.mxu2 %v552_v23  ;;  %v708_v2 = vld [vmem:[%s1605_s8 + $0x8] sm:$0xff]  ;;  %s484_s14 = scalar_lea.vmem %s1609_s12, %s1477_s24 }
  0x1f   : > { %513 = vmatpush.msra.mxu0 %v488_v6  ;;  %v1511_v9 = vld [vmem:[%s476_s15] sm:$0xff] }
  0x20   : > { %545 = vmatpush.msra.mxu1 %v519_v5  ;;  %572 = vmatpush.msra.mxu2 %v551_v24  ;;  %v550_v25 = vld [vmem:[%s1603_s6] sm:$0xff] }
  0x21   : > { %514 = vmatpush.msra.mxu0 %v487_v8  ;;  %1106 = vmatmul.msk.f32.vlgmr.msra.gmra.mxu1 %vm495_vm0, %v486_v7  ;;  %v640_v37 = vld [vmem:[%s1605_s8] sm:$0xff] }
  0x22   : > { %1105 = vmatmul.msk.f32.vlgmr.msra.gmra.mxu0 %vm495_vm0, %v1511_v9  ;;  %573 = vmatpush.msra.mxu2 %v550_v25 }
  0x23   : > { %1107 = vmatmul.msk.f32.vlgmr.msra.gmra.mxu2 %vm495_vm0, %v486_v7 }
  0x24   : > { %727 = vmatpush.msrb.mxu2 %v708_v2 }
  0x9e   : > { %v547_v12 = vpop.f32.mrf.mxu1 }
  0x9f   : > { %v516_v13 = vpop.f32.mrf.mxu0  ;;  %v548_v14 = vadd.f32 %v1179_v10, %v547_v12 }
  0xa0   : > { %v517_v15 = vadd.f32 %v1180_v11, %v516_v13 }
  0xa1   : > { %757 = vrot.lane.b32.xlu2 %v548_v14, %s1349_s18  ;;  %643 = vrot.lane.b32.xlu1 %v548_v14, %s1350_s19 }
  0xa2   : > { %1108 = vmatpush.xpose.msk.msra.mxu3 %vm578_vm1, %v548_v14 }
  0xa5   : > { %1109 = vmatmul.msk.f32.vlgmr.msra.gmra.mxu3 %vm578_vm1, %v517_v15 }
  0xa6   : > { %v575_v35 = vpop.f32.mrf.mxu2 }
  0xa7   : > { %v1543_v36 = vadd.f32 %v1181_v34, %v575_v35 }
  0xa9   : > { %848 = vrot.lane.b32.xlu2 %v548_v14, %s1351_s20  ;;  %641 = vrot.lane.b32.xlu1 %v517_v15, %s1350_s19  ;;  %v821_v14 = vld [vmem:[%s1605_s8 + $0x10] sm:$0xff] }
  0xaa   : > { %635 = vmatpush.msrb.mxu3 %v1543_v36  ;;  %840 = vmatpush.msra.mxu2 %v821_v14 }
  0xac   : > { %750 = vmatpush.msra.mxu3 %v640_v37 }
  0xb1   : > { %846 = vrot.lane.b32.xlu1 %v517_v15, %s1351_s20 }
  0xfb   : > { %v758_v18 = vpop.permute.xlu2 %757 }
 0x103   : > { %v849_v38 = vpop.permute.xlu2 %848 }
 0x113   : > { %v644_v17 = vpop.permute.xlu1 %643 }
 0x114   : > { %1111 = vmatpush.xpose.msk.msrb.mxu0 %vm578_vm1, %v644_v17 }
 0x118   : > { %1116 = vmatpush.xpose.msk.msra.mxu0 %vm578_vm1, %v758_v18 }
 0x11b   : > { %v642_v19 = vpop.permute.xlu1 %641 }
 0x11c   : > { %1112 = vmatmul.msk.f32.vlgmr.msrb.gmra.mxu0 %vm578_vm1, %v642_v19 }
 0x123   : > { %v847_v52 = vpop.permute.xlu1 %846 }
 0x128   : > { %v602_v20 = vpop.f32.mrf.mxu3 }
 0x129   : > { %v605_v21 = vmul.f32 0.35355338, %v602_v20  ;;  %v912_v20 = vld [vmem:[%s1605_s8 + $0x18] sm:$0xff] }
 0x12b   : > { %v606_v22 = vsel %vm578_vm1, %v605_v21, -inf }
 0x12c   : > { %607 = vmax.xlane.f32.xlu0 %v606_v22 }
 0x199   : > { %v666_v26 = vpop.f32.mrf.mxu0 }
 0x19a   : > { %v669_v27 = vmul.f32 0.35355338, %v666_v26 }
 0x19c   : > { %v670_v28 = vsel %vm578_vm1, %v669_v27, -inf }
 0x19d   : > { %671 = vmax.xlane.f32.xlu2 %v670_v28  ;;  %v1182_v28 = vld [vmem:[#allocation7] ss:$0 sm:$0xff] }
 0x19f   : > { %v608_v29 = vpop.xlane.xlu0 %607 }
 0x1a0   : > { %v609_v30 = vsub.f32 %v605_v21, %v608_v29 }
 0x1a2   : > { %v610_v31 = vmul.f32 1.442695, %v609_v30 }
 0x1a4   : > { %1185 = vpow2.f32 %v610_v31 }
 0x1aa   : > { %v1186_v32 = vpop.eup %1185 }
 0x1ab   : > { %v612_v33 = vsel %vm578_vm1, %v1186_v32, 0.0 }
 0x1ac   : > { %613 = vadd.xlane.f32.xlu0 %v612_v33 }
 0x1c0   : > { %755 = vrot.lane.b32.xlu0 %v517_v15, %s1349_s18 }
 0x210   : > { %v672_v39 = vpop.xlane.xlu2 %671 }
 0x211   : > { %v673_v40 = vsub.f32 %v669_v27, %v672_v39 }
 0x213   : > { %v674_v41 = vmul.f32 1.442695, %v673_v40 }
 0x215   : > { %1187 = vpow2.f32 %v674_v41 }
 0x21b   : > { %v1188_v42 = vpop.eup %1187 }
 0x21c   : > { %v676_v43 = vsel %vm578_vm1, %v1188_v42, 0.0 }
 0x21d   : > { %677 = vadd.xlane.f32.xlu2 %v676_v43 }
 0x21f   : > { %v614_v44 = vpop.xlane.xlu0 %613 }
 0x220   : > { %1189 = vrcp.f32 %v614_v44 }
 0x226   : > { %v1190_v45 = vpop.eup %1189 }
 0x227   : > { %v616_v46 = vmul.f32 %v1190_v45, %v1186_v32  ;;  %v1352_v32 = vmov 32.0  }
 0x229   : > { %1110 = vmatmul.msk.f32.vlgmr.msrb.gmra.mxu3 %vm578_vm1, %v616_v46 }
 0x22a   : > { %1120 = vmatpush.xpose.msk.msrb.mxu3 %vm578_vm1, %v849_v38 }
 0x232   : > { %v756_v47 = vpop.permute.xlu0 %755 }
 0x233   : > { %1117 = vmatmul.msk.f32.vlgmr.msra.gmra.mxu0 %vm578_vm1, %v756_v47 }
 0x290   : > { %v678_v58 = vpop.xlane.xlu2 %677 }
 0x2ac   : > { %v637_v48 = vpop.f32.mrf.mxu3 }
 0x2ad   : > { %1115 = vmatmul.msk.f32.vlgmr.msra.gmra.mxu3 %vm578_vm1, %v637_v48 }
 0x2b0   : > { %v780_v49 = vpop.f32.mrf.mxu0 }
 0x2b1   : > { %v783_v50 = vmul.f32 0.35355338, %v780_v49 }
 0x2b3   : > { %v784_v51 = vsel %vm578_vm1, %v783_v50, -inf }
 0x2b4   : > { %785 = vmax.xlane.f32.xlu1 %v784_v51 }
 0x2b5   : > { %1121 = vmatmul.msk.f32.vlgmr.msrb.gmra.mxu3 %vm578_vm1, %v847_v52  ;;  %v1183_v52 = vld [vmem:[%s1607_s10] ss:$0 sm:$0xff] }
 0x2cd   : > { %682 = vrot.lane.b32.xlu1 %v1543_v36, %s1350_s19 }
 0x327   : > { %v786_v53 = vpop.xlane.xlu1 %785 }
 0x328   : > { %v787_v54 = vsub.f32 %v783_v50, %v786_v53 }
 0x32a   : > { %v788_v55 = vmul.f32 1.442695, %v787_v54  ;;  %v1184_v54 = vld [vmem:[%s1608_s11] ss:$0 sm:$0xff] }
 0x32c   : > { %1191 = vpow2.f32 %v788_v55 }
 0x32d   : > { %1193 = vrcp.f32 %v678_v58 }
 0x330   : > { %v752_v56 = vpop.f32.mrf.mxu3 }
 0x332   : > { %v1192_v57 = vpop.eup %1191 }
 0x333   : > { %v790_v59 = vsel %vm578_vm1, %v1192_v57, 0.0  ;;  %v1194_v63 = vpop.eup %1193 }
 0x334   : > { %791 = vadd.xlane.f32.xlu2 %v790_v59  ;;  %v680_v1 = vmul.f32 %v1194_v63, %v1188_v42 }
 0x338   : > { %v871_v60 = vpop.f32.mrf.mxu3 }
 0x339   : > { %v874_v61 = vmul.f32 0.35355338, %v871_v60 }
 0x33b   : > { %v875_v62 = vsel %vm578_vm1, %v874_v61, -inf }
 0x33c   : > { %876 = vmax.xlane.f32.xlu0 %v875_v62 }
 0x33f   : > { %v683_v0 = vpop.permute.xlu1 %682 }
 0x340   : > { %703 = vmatpush.msrb.mxu1 %v683_v0 }
 0x341   : > { %1113 = vmatmul.msk.f32.vlgmr.msrb.gmra.mxu1 %vm578_vm1, %v680_v1 }
 0x350   : > { %795 = vrot.lane.b32.xlu0 %v1543_v36, %s1349_s18 }
 0x3a7   : > { %v792_v6 = vpop.xlane.xlu2 %791 }
 0x3af   : > { %v877_v3 = vpop.xlane.xlu0 %876 }
 0x3b0   : > { %v878_v4 = vsub.f32 %v874_v61, %v877_v3 }
 0x3b2   : > { %v879_v5 = vmul.f32 1.442695, %v878_v4 }
 0x3b4   : > { %1195 = vpow2.f32 %v879_v5 }
 0x3b5   : > { %1197 = vrcp.f32 %v792_v6 }
 0x3ba   : > { %v1196_v7 = vpop.eup %1195 }
 0x3bb   : > { %v881_v8 = vsel %vm578_vm1, %v1196_v7, 0.0  ;;  %v1198_v11 = vpop.eup %1197 }
 0x3bc   : > { %882 = vadd.xlane.f32.xlu2 %v881_v8  ;;  %v794_v12 = vmul.f32 %v1198_v11, %v1192_v57 }
 0x3be   : > { %v705_v10 = vpop.f32.mrf.mxu1 }
 0x3bf   : > { %1114 = vmatmul.msk.f32.vlgmr.msrb.gmra.mxu2 %vm578_vm1, %v705_v10 }
 0x3c2   : > { %v796_v13 = vpop.permute.xlu0 %795 }
 0x3c3   : > { %816 = vmatpush.msra.mxu1 %v796_v13 }
 0x3c4   : > { %1118 = vmatmul.msk.f32.vlgmr.msra.gmra.mxu1 %vm578_vm1, %v794_v12 }
 0x3c5   : > { %931 = vmatpush.msrb.mxu1 %v912_v20 }
 0x3d4   : > { %886 = vrot.lane.b32.xlu2 %v1543_v36, %s1351_s20 }
 0x42f   : > { %v883_v15 = vpop.xlane.xlu2 %882 }
 0x430   : > { %1199 = vrcp.f32 %v883_v15 }
 0x431   : > { %1201 = vrcp.f32 %v1352_v32 }
 0x436   : > { %v1200_v16 = vpop.eup %1199 }
 0x437   : > { %v885_v17 = vmul.f32 %v1200_v16, %v1196_v7  ;;  %v887_v18 = vpop.permute.xlu2 %886  ;;  %v1202_v33 = vpop.eup %1201 }
 0x438   : > { %907 = vmatpush.msrb.mxu0 %v887_v18  ;;  %v949_v34 = vmul.f32 32.0, %v1202_v33  ;;  %vm953_vm2 = vweird.f32 %v1202_v33 }
 0x439   : > { %1122 = vmatmul.msk.f32.vlgmr.msrb.gmra.mxu0 %vm578_vm1, %v885_v17 }
 0x43a   : > { %v950_v35 = vsub.f32 1.0, %v949_v34 }
 0x43c   : > { %v951_v36 = vmul.f32 %v1202_v33, %v950_v35 }
 0x43e   : > { %v952_v37 = vadd.f32 %v1202_v33, %v951_v36 }
 0x440   : > { %v954_v38 = vsel %vm953_vm2, %v1202_v33, %v952_v37 }
 0x441   : > { %v818_v19 = vpop.f32.mrf.mxu1 }
 0x442   : > { %1119 = vmatmul.msk.f32.vlgmr.msra.gmra.mxu2 %vm578_vm1, %v818_v19  ;;  %v729_v22 = vpop.f32.mrf.mxu2 }
 0x443   : > { %v753_v24 = vadd.f32 %v752_v56, %v729_v22 }
 0x4b6   : > { %v909_v21 = vpop.f32.mrf.mxu0 }
 0x4b7   : > { %1123 = vmatmul.msk.f32.vlgmr.msrb.gmra.mxu1 %vm578_vm1, %v909_v21 }
 0x4c5   : > { %v842_v23 = vpop.f32.mrf.mxu2 }
 0x4c6   : > { %v845_v25 = vadd.f32 %v842_v23, %v753_v24 }
 0x534   : > { %v933_v26 = vpop.f32.mrf.mxu1 }
 0x535   : > { %v936_v27 = vadd.f32 %v933_v26, %v845_v25 }
 0x537   : > { %v937_v29 = vadd.f32 %v936_v27, %v1511_v9 }
 0x539   : > { %v942_v30 = vadd.f32 %v1182_v28, %v937_v29 }
 0x53b   : > { %v945_v31 = vsel %vm495_vm0, %v942_v30, 0.0 }
 0x53c   : > { %946 = vadd.xlane.f32.xlu1 %v945_v31 }
 0x5af   : > { %v947_v39 = vpop.xlane.xlu1 %946 }
 0x5b0   : > { %v955_v40 = vmul.f32 %v954_v38, %v947_v39 }
 0x5b2   : > { %v956_v41 = vsub.f32 %v942_v30, %v955_v40 }
 0x5b4   : > { %v957_v42 = vmul.f32 %v956_v41, %v956_v41 }
 0x5b6   : > { %v958_v43 = vsel %vm495_vm0, %v957_v42, 0.0 }
 0x5b7   : > { %959 = vadd.xlane.f32.xlu0 %v958_v43 }
 0x62a   : > { %v960_v9 = vpop.xlane.xlu0 %959 }
 0x62b   : > { %v961_v44 = vmul.f32 %v960_v9, %v954_v38 }
 0x62d   : > { %v962_v45 = vadd.f32 1e-05, %v961_v44 }
 0x62f   : > { %1203 = vrsqrt.f32 %v962_v45  ;;  %vm969_vm4 = vweird.f32 %v962_v45 }
 0x635   : > { %v1204_v46 = vpop.eup %1203 }
 0x636   : > { %v964_v47 = vmul.f32 %v1204_v46, %v962_v45  ;;  %vm970_vm3 = vweird.f32 %v1204_v46 }
 0x637   : > { %vm971_vm5 = vmor %vm969_vm4, %vm970_vm3 }
 0x638   : > { %v965_v48 = vmul.f32 %v1204_v46, %v964_v47 }
 0x63a   : > { %v966_v49 = vmul.f32 0.5, %v965_v48 }
 0x63c   : > { %v967_v50 = vsub.f32 1.5, %v966_v49 }
 0x63e   : > { %v968_v51 = vmul.f32 %v1204_v46, %v967_v50 }
 0x640   : > { %v972_v53 = vsel %vm971_vm5, %v1204_v46, %v968_v51 }
 0x641   : > { %v973_v55 = vmul.f32 %v972_v53, %v956_v41 }
 0x643   : > { %v977_v56 = vmul.f32 %v1183_v52, %v973_v55 }
 0x645   : > { %v981_v57 = vadd.f32 %v1184_v54, %v977_v56 }
 0x647   : > { %982 = vst.msk [vmem:[%s484_s14] sm:$0xff] %vm495_vm0, %v981_v57 }
 0x648 PF: > { %s25_s21 = sadd.s32 1, %s1343_s21  }
 0x649   : > { %p22_p7 = scmp.ge.s32.totalorder %s25_s21, 4  }
 0x64b   :  { %24 = sbr.rel (!%p22_p7) target bundleno = 3 (0x3), region = 118 }
 0x650   :  { %1002 = vsyncpa [#allocation3], 1 }
 0x651   :  { %1004 = vsyncpa [#allocation3 + $0x1], 1 }
 0x652   :  { %1005 = vsyncpa [#allocation5], 1 }
 0x653   :  { %1006 = vsyncpa [#allocation8], 1 }

// kernel: dyneformer_forward.26
= control target key start
LH: loop header
LB: loop body
LE: loop exit
PB: predicated region body
PF: predicated region fallthrough
CT: control target
= control target key end

     0   :  { %s1733_s0 = inlined_call_operand.vmem [shape: f32[2,8,32], index: 0, kind: input, shape index: {}, may-alias: {0,1}]   ;;  %s1734_s1 = inlined_call_operand.vmem [shape: f32[2,8,32], index: 1, kind: input, shape index: {}, may-alias: {0,1}]   ;;  %s1735_s2 = inlined_call_operand.vmem [shape: f32[32,32], index: 2, kind: input, shape index: {}]   ;;  %s1736_s3 = inlined_call_operand.hbm [shape: f32[1,32], index: 3, kind: input, shape index: {}]   ;;  %s1737_s4 = inlined_call_operand.vmem [shape: f32[32,32], index: 4, kind: input, shape index: {}]   ;;  %s1738_s5 = inlined_call_operand.hbm [shape: f32[1,32], index: 5, kind: input, shape index: {}]   ;;  %s1739_s6 = inlined_call_operand.hbm [shape: f32[32,32], index: 6, kind: input, shape index: {}]   ;;  %s1740_s7 = inlined_call_operand.hbm [shape: f32[1,32], index: 7, kind: input, shape index: {}]   ;;  %s1741_s8 = inlined_call_operand.hbm [shape: f32[32,32], index: 8, kind: input, shape index: {}]   ;;  %s1742_s9 = inlined_call_operand.hbm [shape: f32[1,32], index: 9, kind: input, shape index: {}]   ;;  %s1743_s10 = inlined_call_operand.vmem [shape: f32[1,32], index: 10, kind: input, shape index: {}]   ;;  %s1744_s11 = inlined_call_operand.vmem [shape: f32[1,32], index: 11, kind: input, shape index: {}]   ;;  %s1745_s12 = inlined_call_operand.vmem [shape: f32[2,8,32], index: 12, kind: output, shape index: {}]  }
   0x1   :  { %1746 = sst [smem:[#allocation16_spill]] %s1736_s3 }
   0x2   :  { %17 = vsyncpa [#allocation3], 0 }
   0x3   :  { %18 = vsyncpa [#allocation5], 0 }
   0x4   :  { %19 = vsyncpa [#allocation8], 0 }
   0x5   :  { %20 = vsyncpa [#allocation11], 0  ;;  %s1564_s21 = smov 0  }
   0x6 LB: > { %s349_s24 = sshll.u32 %s1738_s5, 4  ;;  %s1573_s25 = sadd.s32 4294967295, %s1485_s21   ;;  %s1485_s21 = sphi %s1564_s21, %s26_s21   ;;  %s350_s24 = int_to_ptr.hbm [resolvable:$true] %s349_s24 }
   0x7   : > { %p1143_p0 = scmp.ge.s32.totalorder %s1485_s21, 1  ;;  %p319_p1 = scmp.lt.s32.totalorder %s1485_s21, 3 }
   0x8   : > { %p1225_p2 = scmp.eq.s32.totalorder %s1573_s25, 0  ;;  %s1487_s27 = smov [#allocation4]  }
   0x9   : > { %p1578_p3 = pnand %p1143_p0, %p319_p1  ;;  %s351_s28 = sshll.u32 %s1487_s27, 4  ;;  %s352_s28 = int_to_ptr.vmem [resolvable:$true] %s351_s28 }
   0xa   : > { %s375_s13 = sshll.u32 %s1740_s7, 4  ;;  %s1748_s3 = sld [smem:[#allocation16_spill]]  ;;  %s376_s13 = int_to_ptr.hbm [resolvable:$true] %s375_s13 }
   0xb   : > { %p1206_p4 = pneg %p1578_p3  ;;  %s1488_s18 = smov [#allocation7]  }
   0xc   : > { %s377_s19 = sshll.u32 %s1488_s18, 4  ;;  %s1489_s20 = smov [#allocation2]   ;;  %s378_s19 = int_to_ptr.vmem [resolvable:$true] %s377_s19 }
   0xd   : > { %p1592_p5 = pnand %p1225_p2, %p1206_p4  ;;  %s336_s22 = sshll.u32 %s1489_s20, 4  ;;  %s337_s22 = int_to_ptr.vmem [resolvable:$true] %s336_s22 }
   0xe   : > { %s360_s29 = sshll.u32 %s1739_s6, 4  ;;  %s1490_s30 = smov [#allocation6]   ;;  %s361_s29 = int_to_ptr.hbm [resolvable:$true] %s360_s29 }
   0xf   : > { %1212 = dma.hbm_to_vmem [thread:$0]  (!%p1592_p5), %s350_s24, 16, %s352_s28, [#allocation5]  }
  0x10   : > { %s334_s16 = sshll.u32 %s1748_s3, 4  ;;  %s362_s14 = sshll.u32 %s1490_s30, 4  ;;  %s335_s16 = int_to_ptr.hbm [resolvable:$true] %s334_s16  ;;  %s363_s14 = int_to_ptr.vmem [resolvable:$true] %s362_s14 }
  0x11   : > { %1218 = dma.hbm_to_vmem [thread:$0]  (!%p1592_p5), %s376_s13, 16, %s378_s19, [#allocation8]  }
  0x12   : > { %1209 = dma.hbm_to_vmem [thread:$0]  (!%p1592_p5), %s335_s16, 16, %s337_s22, [#allocation3]  }
  0x13   : > { %s386_s24 = sshll.u32 %s1741_s8, 4  ;;  %s1491_s28 = smov 128   ;;  %s387_s24 = int_to_ptr.hbm [resolvable:$true] %s386_s24 }
  0x14   : > { %s1492_s13 = smov 8   ;;  %s1493_s19 = smov [#allocation9]  }
  0x15   : > { %1215 = dma.hbm_to_vmem [thread:$0]  (!%p1592_p5), %s361_s29, 512, %s363_s14, [#allocation5], %s1491_s28, %s1491_s28, %s1492_s13  }
  0x16   : > { %s388_s20 = sshll.u32 %s1493_s19, 4  ;;  %s401_s3 = sshll.u32 %s1742_s9, 4  ;;  %s389_s20 = int_to_ptr.vmem [resolvable:$true] %s388_s20  ;;  %s402_s3 = int_to_ptr.hbm [resolvable:$true] %s401_s3 }
  0x17   : > { %1221 = dma.hbm_to_vmem [thread:$0]  (!%p1592_p5), %s387_s24, 512, %s389_s20, [#allocation8], %s1491_s28, %s1491_s28, %s1492_s13  }
  0x18   : > { %s1494_s16 = smov [#allocation10]   ;;  %436 = sbr.rel (%p1578_p3) target bundleno = 1619 (0x653), region = 68 }
  0x19   : > { %s403_s22 = sshll.u32 %s1494_s16, 4  ;;  %s404_s22 = int_to_ptr.vmem [resolvable:$true] %s403_s22 }
  0x1a   : > { %1224 = dma.hbm_to_vmem [thread:$0]  (!%p1592_p5), %s402_s3, 16, %s404_s22, [#allocation11]  }
  0x1d   : > { %1468 = dma.done.wait (%p1225_p2), [#allocation3], 16  }
  0x1e   : > { %1470 = vsyncadd (%p1225_p2), [#allocation3], 4294967280 }
  0x1f   : > { %1472 = dma.done.wait (%p1225_p2), [#allocation5], 528  }
  0x20   : > { %1474 = vsyncadd (%p1225_p2), [#allocation5], 4294966768 }
  0x21   : > { %1476 = dma.done.wait (%p1225_p2), [#allocation8], 528  }
  0x22   : > { %1478 = vsyncadd (%p1225_p2), [#allocation8], 4294966768 }
  0x23   : > { %1480 = dma.done.wait (%p1225_p2), [#allocation11], 16  }
  0x24   : > { %1482 = vsyncadd (%p1225_p2), [#allocation11], 4294967280  ;;  %p506_p6 = scmp.lt.s32.totalorder %s1573_s25, 1  ;;  %v555_v0 = vld [vmem:[%s1737_s4 + $0x18] sm:$0xff]  ;;  %v554_v1 = vld [vmem:[%s1737_s4 + $0x10] sm:$0xff]  ;;  %vm528_vm0 = vcmask 261120  }
  0x25   : > { %v523_v2 = vld [vmem:[%s1735_s2 + $0x18] sm:$0xff]  ;;  %575 = vmatpush.msra.mxu1 %v555_v0  ;;  %v522_v3 = vld [vmem:[%s1735_s2 + $0x10] sm:$0xff]  ;;  %v553_v4 = vld [vmem:[%s1737_s4 + $0x8] sm:$0xff]  ;;  %vm611_vm1 = vcmask 64512   ;;  %s1495_s15 = smov 112   ;;  %s1496_s18 = smov 120  }
  0x26   : > { %s1751_s25 = smov (!%p506_p6, %s1573_s25), 1  ;;  %544 = vmatpush.msra.mxu0 %v523_v2  ;;  %v552_v5 = vld [vmem:[%s1737_s4] sm:$0xff]  ;;  %v521_v6 = vld [vmem:[%s1735_s2 + $0x8] sm:$0xff]  ;;  %s1497_s24 = smov 104   ;;  %v585_v23 = vld [vmem:[#allocation6 + $0x10] sm:$0xff] }
  0x27   : > { %s1637_s3 = sshll.u32 %s1751_s25, 3  ;;  %576 = vmatpush.msra.mxu1 %v554_v1  ;;  %v520_v8 = vld [vmem:[%s1735_s2] sm:$0xff]  ;;  %v584_v24 = vld [vmem:[#allocation6 + $0x8] sm:$0xff] }
  0x28   : > { %s513_s28 = scalar_lea.vmem %s1734_s1, %s1637_s3  ;;  %s509_s29 = scalar_lea.vmem %s1733_s0, %s1637_s3  ;;  %545 = vmatpush.msra.mxu0 %v522_v3  ;;  %v1257_v10 = vld [vmem:[#allocation4] ss:$0 sm:$0xff]  ;;  %v1258_v11 = vld [vmem:[#allocation2] ss:$0 sm:$0xff]  ;;  %v583_v25 = vld [vmem:[#allocation6] sm:$0xff] }
  0x29   : > { %v519_v7 = vld [vmem:[%s513_s28] sm:$0xff]  ;;  %577 = vmatpush.msra.mxu1 %v553_v4  ;;  %v741_v2 = vld [vmem:[#allocation9 + $0x8] sm:$0xff]  ;;  %s517_s27 = scalar_lea.vmem %s1745_s12, %s1637_s3 }
  0x2a   : > { %546 = vmatpush.msra.mxu0 %v521_v6  ;;  %v1671_v9 = vld [vmem:[%s509_s29] sm:$0xff] }
  0x2b   : > { %578 = vmatpush.msra.mxu1 %v552_v5  ;;  %v586_v16 = vld [vmem:[#allocation6 + $0x18] sm:$0xff]  ;;  %v1259_v34 = vld [vmem:[#allocation7] ss:$0 sm:$0xff]  ;;  %v673_v37 = vld [vmem:[#allocation9] sm:$0xff] }
  0x2c   : > { %547 = vmatpush.msra.mxu0 %v520_v8  ;;  %1162 = vmatmul.msk.f32.vlgmr.msra.gmra.mxu1 %vm528_vm0, %v519_v7 }
  0x2d   : > { %1161 = vmatmul.msk.f32.vlgmr.msra.gmra.mxu0 %vm528_vm0, %v1671_v9  ;;  %603 = vmatpush.msra.mxu2 %v586_v16 }
  0x2f   : > { %604 = vmatpush.msra.mxu2 %v585_v23 }
  0x31   : > { %605 = vmatpush.msra.mxu2 %v584_v24 }
  0x33   : > { %606 = vmatpush.msra.mxu2 %v583_v25 }
  0x34   : > { %1163 = vmatmul.msk.f32.vlgmr.msra.gmra.mxu2 %vm528_vm0, %v519_v7 }
  0x35   : > { %760 = vmatpush.msrb.mxu2 %v741_v2 }
  0xa9   : > { %v580_v12 = vpop.f32.mrf.mxu1 }
  0xaa   : > { %v549_v13 = vpop.f32.mrf.mxu0  ;;  %v581_v14 = vadd.f32 %v1257_v10, %v580_v12 }
  0xab   : > { %v550_v15 = vadd.f32 %v1258_v11, %v549_v13 }
  0xac   : > { %790 = vrot.lane.b32.xlu2 %v581_v14, %s1495_s15  ;;  %676 = vrot.lane.b32.xlu1 %v581_v14, %s1496_s18 }
  0xad   : > { %1164 = vmatpush.xpose.msk.msra.mxu3 %vm611_vm1, %v581_v14 }
  0xb0   : > { %1165 = vmatmul.msk.f32.vlgmr.msra.gmra.mxu3 %vm611_vm1, %v550_v15 }
  0xb4   : > { %881 = vrot.lane.b32.xlu2 %v581_v14, %s1497_s24  ;;  %674 = vrot.lane.b32.xlu1 %v550_v15, %s1496_s18  ;;  %v854_v14 = vld [vmem:[#allocation9 + $0x10] sm:$0xff] }
  0xb5   : > { %873 = vmatpush.msra.mxu2 %v854_v14 }
  0xb7   : > { %v608_v35 = vpop.f32.mrf.mxu2 }
  0xb8   : > { %v1691_v36 = vadd.f32 %v1259_v34, %v608_v35 }
  0xba   : > { %668 = vmatpush.msrb.mxu3 %v1691_v36 }
  0xbc   : > { %879 = vrot.lane.b32.xlu1 %v550_v15, %s1497_s24  ;;  %783 = vmatpush.msra.mxu3 %v673_v37 }
 0x106   : > { %v791_v18 = vpop.permute.xlu2 %790 }
 0x10e   : > { %v882_v38 = vpop.permute.xlu2 %881 }
 0x11e   : > { %v677_v17 = vpop.permute.xlu1 %676 }
 0x11f   : > { %1167 = vmatpush.xpose.msk.msrb.mxu0 %vm611_vm1, %v677_v17 }
 0x123   : > { %1172 = vmatpush.xpose.msk.msra.mxu0 %vm611_vm1, %v791_v18 }
 0x126   : > { %v675_v19 = vpop.permute.xlu1 %674 }
 0x127   : > { %1168 = vmatmul.msk.f32.vlgmr.msrb.gmra.mxu0 %vm611_vm1, %v675_v19 }
 0x12e   : > { %v880_v52 = vpop.permute.xlu1 %879 }
 0x133   : > { %v635_v20 = vpop.f32.mrf.mxu3 }
 0x134   : > { %v638_v21 = vmul.f32 0.35355338, %v635_v20  ;;  %v945_v20 = vld [vmem:[#allocation9 + $0x18] sm:$0xff] }
 0x136   : > { %v639_v22 = vsel %vm611_vm1, %v638_v21, -inf }
 0x137   : > { %640 = vmax.xlane.f32.xlu0 %v639_v22 }
 0x1a4   : > { %v699_v26 = vpop.f32.mrf.mxu0 }
 0x1a5   : > { %v702_v27 = vmul.f32 0.35355338, %v699_v26 }
 0x1a7   : > { %v703_v28 = vsel %vm611_vm1, %v702_v27, -inf }
 0x1a8   : > { %704 = vmax.xlane.f32.xlu2 %v703_v28  ;;  %v1260_v28 = vld [vmem:[#allocation10] ss:$0 sm:$0xff] }
 0x1aa   : > { %v641_v29 = vpop.xlane.xlu0 %640 }
 0x1ab   : > { %v642_v30 = vsub.f32 %v638_v21, %v641_v29 }
 0x1ad   : > { %v643_v31 = vmul.f32 1.442695, %v642_v30 }
 0x1af   : > { %1263 = vpow2.f32 %v643_v31 }
 0x1b5   : > { %v1264_v32 = vpop.eup %1263 }
 0x1b6   : > { %v645_v33 = vsel %vm611_vm1, %v1264_v32, 0.0 }
 0x1b7   : > { %646 = vadd.xlane.f32.xlu0 %v645_v33 }
 0x1cb   : > { %788 = vrot.lane.b32.xlu0 %v550_v15, %s1495_s15 }
 0x21b   : > { %v705_v39 = vpop.xlane.xlu2 %704 }
 0x21c   : > { %v706_v40 = vsub.f32 %v702_v27, %v705_v39 }
 0x21e   : > { %v707_v41 = vmul.f32 1.442695, %v706_v40 }
 0x220   : > { %1265 = vpow2.f32 %v707_v41 }
 0x226   : > { %v1266_v42 = vpop.eup %1265 }
 0x227   : > { %v709_v43 = vsel %vm611_vm1, %v1266_v42, 0.0 }
 0x228   : > { %710 = vadd.xlane.f32.xlu2 %v709_v43 }
 0x22a   : > { %v647_v44 = vpop.xlane.xlu0 %646 }
 0x22b   : > { %1267 = vrcp.f32 %v647_v44 }
 0x231   : > { %v1268_v45 = vpop.eup %1267 }
 0x232   : > { %v649_v46 = vmul.f32 %v1268_v45, %v1264_v32  ;;  %v1498_v32 = vmov 32.0  }
 0x234   : > { %1166 = vmatmul.msk.f32.vlgmr.msrb.gmra.mxu3 %vm611_vm1, %v649_v46 }
 0x235   : > { %1176 = vmatpush.xpose.msk.msrb.mxu3 %vm611_vm1, %v882_v38 }
 0x23d   : > { %v789_v47 = vpop.permute.xlu0 %788 }
 0x23e   : > { %1173 = vmatmul.msk.f32.vlgmr.msra.gmra.mxu0 %vm611_vm1, %v789_v47 }
 0x29b   : > { %v711_v58 = vpop.xlane.xlu2 %710 }
 0x2b7   : > { %v670_v48 = vpop.f32.mrf.mxu3 }
 0x2b8   : > { %1171 = vmatmul.msk.f32.vlgmr.msra.gmra.mxu3 %vm611_vm1, %v670_v48 }
 0x2bb   : > { %v813_v49 = vpop.f32.mrf.mxu0 }
 0x2bc   : > { %v816_v50 = vmul.f32 0.35355338, %v813_v49 }
 0x2be   : > { %v817_v51 = vsel %vm611_vm1, %v816_v50, -inf }
 0x2bf   : > { %818 = vmax.xlane.f32.xlu1 %v817_v51 }
 0x2c0   : > { %1177 = vmatmul.msk.f32.vlgmr.msrb.gmra.mxu3 %vm611_vm1, %v880_v52  ;;  %v1261_v52 = vld [vmem:[%s1743_s10] ss:$0 sm:$0xff] }
 0x2d8   : > { %715 = vrot.lane.b32.xlu1 %v1691_v36, %s1496_s18 }
 0x332   : > { %v819_v53 = vpop.xlane.xlu1 %818 }
 0x333   : > { %v820_v54 = vsub.f32 %v816_v50, %v819_v53 }
 0x335   : > { %v821_v55 = vmul.f32 1.442695, %v820_v54  ;;  %v1262_v54 = vld [vmem:[%s1744_s11] ss:$0 sm:$0xff] }
 0x337   : > { %1269 = vpow2.f32 %v821_v55 }
 0x338   : > { %1271 = vrcp.f32 %v711_v58 }
 0x33b   : > { %v785_v56 = vpop.f32.mrf.mxu3 }
 0x33d   : > { %v1270_v57 = vpop.eup %1269 }
 0x33e   : > { %v823_v59 = vsel %vm611_vm1, %v1270_v57, 0.0  ;;  %v1272_v63 = vpop.eup %1271 }
 0x33f   : > { %824 = vadd.xlane.f32.xlu2 %v823_v59  ;;  %v713_v1 = vmul.f32 %v1272_v63, %v1266_v42 }
 0x343   : > { %v904_v60 = vpop.f32.mrf.mxu3 }
 0x344   : > { %v907_v61 = vmul.f32 0.35355338, %v904_v60 }
 0x346   : > { %v908_v62 = vsel %vm611_vm1, %v907_v61, -inf }
 0x347   : > { %909 = vmax.xlane.f32.xlu0 %v908_v62 }
 0x34a   : > { %v716_v0 = vpop.permute.xlu1 %715 }
 0x34b   : > { %736 = vmatpush.msrb.mxu1 %v716_v0 }
 0x34c   : > { %1169 = vmatmul.msk.f32.vlgmr.msrb.gmra.mxu1 %vm611_vm1, %v713_v1 }
 0x35b   : > { %828 = vrot.lane.b32.xlu0 %v1691_v36, %s1495_s15 }
 0x3b2   : > { %v825_v6 = vpop.xlane.xlu2 %824 }
 0x3ba   : > { %v910_v3 = vpop.xlane.xlu0 %909 }
 0x3bb   : > { %v911_v4 = vsub.f32 %v907_v61, %v910_v3 }
 0x3bd   : > { %v912_v5 = vmul.f32 1.442695, %v911_v4 }
 0x3bf   : > { %1273 = vpow2.f32 %v912_v5 }
 0x3c0   : > { %1275 = vrcp.f32 %v825_v6 }
 0x3c5   : > { %v1274_v7 = vpop.eup %1273 }
 0x3c6   : > { %v914_v8 = vsel %vm611_vm1, %v1274_v7, 0.0  ;;  %v1276_v11 = vpop.eup %1275 }
 0x3c7   : > { %915 = vadd.xlane.f32.xlu2 %v914_v8  ;;  %v827_v12 = vmul.f32 %v1276_v11, %v1270_v57 }
 0x3c9   : > { %v738_v10 = vpop.f32.mrf.mxu1 }
 0x3ca   : > { %1170 = vmatmul.msk.f32.vlgmr.msrb.gmra.mxu2 %vm611_vm1, %v738_v10 }
 0x3cd   : > { %v829_v13 = vpop.permute.xlu0 %828 }
 0x3ce   : > { %849 = vmatpush.msra.mxu1 %v829_v13 }
 0x3cf   : > { %1174 = vmatmul.msk.f32.vlgmr.msra.gmra.mxu1 %vm611_vm1, %v827_v12 }
 0x3d0   : > { %964 = vmatpush.msrb.mxu1 %v945_v20 }
 0x3df   : > { %919 = vrot.lane.b32.xlu2 %v1691_v36, %s1497_s24 }
 0x43a   : > { %v916_v15 = vpop.xlane.xlu2 %915 }
 0x43b   : > { %1277 = vrcp.f32 %v916_v15 }
 0x43c   : > { %1279 = vrcp.f32 %v1498_v32 }
 0x441   : > { %v1278_v16 = vpop.eup %1277 }
 0x442   : > { %v918_v17 = vmul.f32 %v1278_v16, %v1274_v7  ;;  %v920_v18 = vpop.permute.xlu2 %919  ;;  %v1280_v33 = vpop.eup %1279 }
 0x443   : > { %940 = vmatpush.msrb.mxu0 %v920_v18  ;;  %v982_v34 = vmul.f32 32.0, %v1280_v33  ;;  %vm986_vm2 = vweird.f32 %v1280_v33 }
 0x444   : > { %1178 = vmatmul.msk.f32.vlgmr.msrb.gmra.mxu0 %vm611_vm1, %v918_v17 }
 0x445   : > { %v983_v35 = vsub.f32 1.0, %v982_v34 }
 0x447   : > { %v984_v36 = vmul.f32 %v1280_v33, %v983_v35 }
 0x449   : > { %v985_v37 = vadd.f32 %v1280_v33, %v984_v36 }
 0x44b   : > { %v987_v38 = vsel %vm986_vm2, %v1280_v33, %v985_v37 }
 0x44c   : > { %v851_v19 = vpop.f32.mrf.mxu1 }
 0x44d   : > { %1175 = vmatmul.msk.f32.vlgmr.msra.gmra.mxu2 %vm611_vm1, %v851_v19  ;;  %v762_v22 = vpop.f32.mrf.mxu2 }
 0x44e   : > { %v786_v24 = vadd.f32 %v785_v56, %v762_v22 }
 0x4c1   : > { %v942_v21 = vpop.f32.mrf.mxu0 }
 0x4c2   : > { %1179 = vmatmul.msk.f32.vlgmr.msrb.gmra.mxu1 %vm611_vm1, %v942_v21 }
 0x4d0   : > { %v875_v23 = vpop.f32.mrf.mxu2 }
 0x4d1   : > { %v878_v25 = vadd.f32 %v875_v23, %v786_v24 }
 0x53f   : > { %v966_v26 = vpop.f32.mrf.mxu1 }
 0x540   : > { %v969_v27 = vadd.f32 %v966_v26, %v878_v25 }
 0x542   : > { %v970_v29 = vadd.f32 %v969_v27, %v1671_v9 }
 0x544   : > { %v975_v30 = vadd.f32 %v1260_v28, %v970_v29 }
 0x546   : > { %v978_v31 = vsel %vm528_vm0, %v975_v30, 0.0 }
 0x547   : > { %979 = vadd.xlane.f32.xlu1 %v978_v31 }
 0x5ba   : > { %v980_v39 = vpop.xlane.xlu1 %979 }
 0x5bb   : > { %v988_v40 = vmul.f32 %v987_v38, %v980_v39 }
 0x5bd   : > { %v989_v41 = vsub.f32 %v975_v30, %v988_v40 }
 0x5bf   : > { %v990_v42 = vmul.f32 %v989_v41, %v989_v41 }
 0x5c1   : > { %v991_v43 = vsel %vm528_vm0, %v990_v42, 0.0 }
 0x5c2   : > { %992 = vadd.xlane.f32.xlu0 %v991_v43 }
 0x635   : > { %v993_v9 = vpop.xlane.xlu0 %992 }
 0x636   : > { %v994_v44 = vmul.f32 %v993_v9, %v987_v38 }
 0x638   : > { %v995_v45 = vadd.f32 1e-05, %v994_v44 }
 0x63a   : > { %1281 = vrsqrt.f32 %v995_v45  ;;  %vm1002_vm4 = vweird.f32 %v995_v45 }
 0x640   : > { %v1282_v46 = vpop.eup %1281 }
 0x641   : > { %v997_v47 = vmul.f32 %v1282_v46, %v995_v45  ;;  %vm1003_vm3 = vweird.f32 %v1282_v46 }
 0x642   : > { %vm1004_vm5 = vmor %vm1002_vm4, %vm1003_vm3 }
 0x643   : > { %v998_v48 = vmul.f32 %v1282_v46, %v997_v47 }
 0x645   : > { %v999_v49 = vmul.f32 0.5, %v998_v48 }
 0x647   : > { %v1000_v50 = vsub.f32 1.5, %v999_v49 }
 0x649   : > { %v1001_v51 = vmul.f32 %v1282_v46, %v1000_v50 }
 0x64b   : > { %v1005_v53 = vsel %vm1004_vm5, %v1282_v46, %v1001_v51 }
 0x64c   : > { %v1006_v55 = vmul.f32 %v1005_v53, %v989_v41 }
 0x64e   : > { %v1010_v56 = vmul.f32 %v1261_v52, %v1006_v55 }
 0x650   : > { %v1014_v57 = vadd.f32 %v1262_v54, %v1010_v56 }
 0x652   : > { %1015 = vst.msk [vmem:[%s517_s27] sm:$0xff] %vm528_vm0, %v1014_v57 }
 0x653 PF: > { %s26_s21 = sadd.s32 1, %s1485_s21  }
 0x654   : > { %p23_p7 = scmp.ge.s32.totalorder %s26_s21, 4  }
 0x656   :  { %25 = sbr.rel (!%p23_p7) target bundleno = 6 (0x6), region = 126 }
 0x65b   :  { %1035 = vsyncpa [#allocation3], 1 }
 0x65c   :  { %1037 = vsyncpa [#allocation3 + $0x1], 1 }
 0x65d   :  { %1038 = vsyncpa [#allocation5], 1 }
 0x65e   :  { %1039 = vsyncpa [#allocation8], 1 }
 0x65f   :  { %1040 = vsyncpa [#allocation11], 1 }

</bundles_post_ra>
